<compile_context>
chip_gen: v7x
topology: tpu7x:2x2x1
jax: 0.10.0
libtpu: 0.0.40
codegen_flags: <defaults>
</compile_context>

<pallas_src>
import functools
import math

import jax
import jax.numpy as jnp
import numpy as np
from jax.experimental import pallas as pl
from jax.experimental.pallas import tpu as pltpu


# ---------------------------------------------------------------------------
# small math helpers (used inside the kernels)
# ---------------------------------------------------------------------------
def _fast_reciprocal(x):
    # EUP approximate reciprocal + one Newton-Raphson step -> ~f32 accuracy,
    # cheaper than a full vector divide.
    r = pl.reciprocal(x, approx=True)
    return r * (2.0 - x * r)


def _layernorm(v, w, b, eps=1e-5):
    mu = jnp.mean(v, axis=-1, keepdims=True)
    var = jnp.mean((v - mu) ** 2, axis=-1, keepdims=True)
    return (v - mu) * jax.lax.rsqrt(var + eps) * w + b


def _erf(x):
    # Abramowitz & Stegun 7.1.26 polynomial erf (abs err ~1.5e-7); exp() runs on the
    # EUP, the divide is replaced by the fast reciprocal, the rest is a few VALU ops.
    p = 0.3275911
    a1, a2, a3, a4, a5 = 0.254829592, -0.284496736, 1.421413741, -1.453152027, 1.061405429
    sgn = jnp.where(x >= 0.0, 1.0, -1.0)
    ax = jnp.abs(x)
    t = _fast_reciprocal(1.0 + p * ax)
    poly = ((((a5 * t + a4) * t + a3) * t + a2) * t + a1) * t
    return sgn * (1.0 - poly * jnp.exp(-ax * ax))


def _gelu_exact(x):
    # torch.nn.GELU() default = exact (erf) GELU
    return 0.5 * x * (1.0 + _erf(x * (1.0 / math.sqrt(2.0))))


# ---------------------------------------------------------------------------
# Kernel 1: y = x + attn(norm1(x)), one grid step per batch element
# ---------------------------------------------------------------------------
def attn_kernel(x_ref, ln1w_ref, ln1b_ref, wqkv_ref, qnw_ref, qnb_ref,
                knw_ref, knb_ref, wproj_ref, bproj_ref, y_ref,
                *, n_tokens, num_heads, head_dim):
    bf16 = jnp.bfloat16
    f32 = jnp.float32
    hd = head_dim
    C = num_heads * hd

    x = x_ref[0]                                                      # (Np, C) f32
    xn = _layernorm(x, ln1w_ref[...], ln1b_ref[...]).astype(bf16)     # (Np, C) bf16

    # one fused QKV matmul: 3*C output columns keep the MXU busy, xn is read once
    qkv = jnp.dot(xn, wqkv_ref[...], preferred_element_type=f32)      # (Np, 3C) f32

    o_parts = []
    for h in range(num_heads):                                        # static, unrolled
        q = _layernorm(qkv[:, 0 * C + h * hd: 0 * C + (h + 1) * hd],
                       qnw_ref[...], qnb_ref[...])                    # scale pre-folded
        k = _layernorm(qkv[:, 1 * C + h * hd: 1 * C + (h + 1) * hd],
                       knw_ref[...], knb_ref[...])
        v = qkv[:, 2 * C + h * hd: 2 * C + (h + 1) * hd]

        # scores = q @ k.T (contraction over head_dim), f32 accumulation
        s = jax.lax.dot_general(q.astype(bf16), k.astype(bf16),
                                (((1,), (1,)), ((), ())),
                                preferred_element_type=f32)           # (Np, Np)
        if n_tokens < s.shape[-1]:                                    # mask padded keys
            col = jax.lax.broadcasted_iota(jnp.int32, s.shape, 1)
            s = jnp.where(col < n_tokens, s, -1e30)

        m = jnp.max(s, axis=-1, keepdims=True)
        p = jnp.exp(s - m)
        p = p * _fast_reciprocal(jnp.sum(p, axis=-1, keepdims=True))  # accurate softmax
        o = jnp.dot(p.astype(bf16), v.astype(bf16),
                    preferred_element_type=f32)                       # (Np, hd)
        o_parts.append(o.astype(bf16))

    o_all = jnp.concatenate(o_parts, axis=-1)                         # (Np, C) bf16
    # single full-depth projection + bias + residual, written exactly once
    y_ref[0] = x + jnp.dot(o_all, wproj_ref[...],
                           preferred_element_type=f32) + bproj_ref[...]


# ---------------------------------------------------------------------------
# Kernel 2: out = y + mlp(norm2(y)), one grid step per token tile
# ---------------------------------------------------------------------------
def mlp_kernel(y_ref, ln2w_ref, ln2b_ref, w1_ref, b1_ref, w2_ref, b2_ref, o_ref):
    bf16 = jnp.bfloat16
    f32 = jnp.float32
    y = y_ref[...]                                                    # (TM, C) f32
    yn = _layernorm(y, ln2w_ref[...], ln2b_ref[...]).astype(bf16)
    h1 = jnp.dot(yn, w1_ref[...], preferred_element_type=f32) + b1_ref[...]
    h1 = _gelu_exact(h1)
    h2 = jnp.dot(h1.astype(bf16), w2_ref[...], preferred_element_type=f32) + b2_ref[...]
    o_ref[...] = y + h2


# ---------------------------------------------------------------------------
# one-time parameter preparation (hoisted out of the per-forward path)
# ---------------------------------------------------------------------------
def prepare_block_params(params, num_heads):
    C = params["wqkv_t"].shape[0]
    hd = C // num_heads
    scale = hd ** -0.5
    bf16 = jnp.bfloat16
    f32 = jnp.float32
    return dict(
        num_heads=num_heads, head_dim=hd,
        ln1_w=params["ln1_w"].astype(f32), ln1_b=params["ln1_b"].astype(f32),
        wqkv=params["wqkv_t"].astype(bf16),                  # (C, 3C), cols = [3, H, hd]
        qn_w=(params["qn_w"] * scale).astype(f32),           # fold attention scale
        qn_b=(params["qn_b"] * scale).astype(f32),
        kn_w=params["kn_w"].astype(f32), kn_b=params["kn_b"].astype(f32),
        wproj=params["wproj_t"].astype(bf16), bproj=params["bproj"].astype(f32),
        ln2_w=params["ln2_w"].astype(f32), ln2_b=params["ln2_b"].astype(f32),
        w1=params["w1_t"].astype(bf16), b1=params["b1"].astype(f32),
        w2=params["w2_t"].astype(bf16), b2=params["b2"].astype(f32),
    )


# ---------------------------------------------------------------------------
# forward wrapper
# ---------------------------------------------------------------------------
def vit_block(x, p):
    B, N, C = x.shape
    H = p["num_heads"]
    hd = p["head_dim"]
    hidden = p["w1"].shape[1]
    f32 = jnp.float32

    # pad tokens to a lane-dense multiple of 128 (padded keys are masked in-kernel,
    # padded rows are sliced off below)
    Np = ((N + 127) // 128) * 128
    xp = jnp.pad(x, ((0, 0), (0, Np - N), (0, 0))) if Np != N else x

    const2 = lambda shape: pl.BlockSpec(shape, lambda b: (0, 0))
    # ---- kernel 1: attention + residual, grid over batch ----
    y = pl.pallas_call(
        functools.partial(attn_kernel, n_tokens=N, num_heads=H, head_dim=hd),
        grid=(B,),
        in_specs=[
            pl.BlockSpec((1, Np, C), lambda b: (b, 0, 0)),   # x (per batch element)
            const2((1, C)), const2((1, C)),                  # norm1 w, b
            const2((C, 3 * C)),                              # fused qkv weight (resident)
            const2((1, hd)), const2((1, hd)),                # q_norm w*scale, b*scale
            const2((1, hd)), const2((1, hd)),                # k_norm w, b
            const2((C, C)),                                  # proj weight (resident)
            const2((1, C)),                                  # proj bias
        ],
        out_specs=pl.BlockSpec((1, Np, C), lambda b: (b, 0, 0)),
        out_shape=jax.ShapeDtypeStruct((B, Np, C), f32),
        compiler_params=pltpu.CompilerParams(
            dimension_semantics=("parallel",)),
    )(xp, p["ln1_w"], p["ln1_b"], p["wqkv"], p["qn_w"], p["qn_b"],
      p["kn_w"], p["kn_b"], p["wproj"], p["bproj"])

    # ---- kernel 2: MLP + residual, grid over flattened token tiles ----
    total = B * Np                                           # multiple of 128
    TM = 256 if total % 256 == 0 else 128                    # amortize per-step overhead
    yf = y.reshape(total, C)
    out = pl.pallas_call(
        mlp_kernel,
        grid=(total // TM,),
        in_specs=[
            pl.BlockSpec((TM, C), lambda i: (i, 0)),         # y token tile
            pl.BlockSpec((1, C), lambda i: (0, 0)),          # norm2 w
            pl.BlockSpec((1, C), lambda i: (0, 0)),          # norm2 b
            pl.BlockSpec((C, hidden), lambda i: (0, 0)),     # fc1 weight (resident)
            pl.BlockSpec((1, hidden), lambda i: (0, 0)),     # fc1 bias
            pl.BlockSpec((hidden, C), lambda i: (0, 0)),     # fc2 weight (resident)
            pl.BlockSpec((1, C), lambda i: (0, 0)),          # fc2 bias
        ],
        out_specs=pl.BlockSpec((TM, C), lambda i: (i, 0)),
        out_shape=jax.ShapeDtypeStruct((total, C), f32),
        compiler_params=pltpu.CompilerParams(
            dimension_semantics=("parallel",)),
    )(yf, p["ln2_w"], p["ln2_b"], p["w1"], p["b1"], p["w2"], p["b2"])

    return out.reshape(B, Np, C)[:, :N, :]


# ---------------------------------------------------------------------------
# pure-JAX reference (same math as the PyTorch module, drop=0).
# Matmul operands are cast to bf16 (f32 accumulation) to mirror the kernel's MXU usage.
# ---------------------------------------------------------------------------
def reference_block(x, params, num_heads, mm_dtype=jnp.bfloat16):
    B, N, C = x.shape
    hd = C // num_heads
    scale = hd ** -0.5
    f32 = jnp.float32

    def ln(v, w, b, eps=1e-5):
        mu = jnp.mean(v, axis=-1, keepdims=True)
        var = jnp.mean((v - mu) ** 2, axis=-1, keepdims=True)
        return (v - mu) / jnp.sqrt(var + eps) * w + b

    def mm(a, b):
        return jnp.dot(a.astype(mm_dtype), b.astype(mm_dtype),
                       preferred_element_type=f32)

    xn = ln(x, params["ln1_w"][0], params["ln1_b"][0])
    qkv = mm(xn, params["wqkv_t"])                                   # (B, N, 3C)
    qkv = qkv.reshape(B, N, 3, num_heads, hd).transpose(2, 0, 3, 1, 4)
    q, k, v = qkv[0], qkv[1], qkv[2]                                 # (B, H, N, hd)
    qn = ln(q, params["qn_w"][0], params["qn_b"][0]) * scale
    kn = ln(k, params["kn_w"][0], params["kn_b"][0])
    s = jnp.einsum("bhqd,bhkd->bhqk", qn.astype(mm_dtype), kn.astype(mm_dtype),
                   preferred_element_type=f32)
    p = jax.nn.softmax(s, axis=-1)
    o = jnp.einsum("bhqk,bhkd->bhqd", p.astype(mm_dtype), v.astype(mm_dtype),
                   preferred_element_type=f32)
    o = o.transpose(0, 2, 1, 3).reshape(B, N, C)
    o = mm(o, params["wproj_t"]) + params["bproj"][0]
    x = x + o
    xn2 = ln(x, params["ln2_w"][0], params["ln2_b"][0])
    h = jax.nn.gelu(mm(xn2, params["w1_t"]) + params["b1"][0], approximate=False)
    return x + (mm(h, params["w2_t"]) + params["b2"][0])


# ---------------------------------------------------------------------------
if __name__ == "__main__":
    B, N, C = 2, 16, 256
    num_heads = 4
    head_dim = C // num_heads
    mlp_hidden = int(C * 4.0)

    key = jax.random.PRNGKey(0)
    ks = jax.random.split(key, 16)

    x = jax.random.normal(ks[0], (B, N, C), dtype=jnp.float32)

    params = {
        # LayerNorm affine params (perturbed away from identity to exercise them)
        "ln1_w": 1.0 + 0.1 * jax.random.normal(ks[8], (1, C), jnp.float32),
        "ln1_b": 0.1 * jax.random.normal(ks[9], (1, C), jnp.float32),
        "ln2_w": 1.0 + 0.1 * jax.random.normal(ks[10], (1, C), jnp.float32),
        "ln2_b": 0.1 * jax.random.normal(ks[11], (1, C), jnp.float32),
        "qn_w": 1.0 + 0.1 * jax.random.normal(ks[12], (1, head_dim), jnp.float32),
        "qn_b": 0.1 * jax.random.normal(ks[13], (1, head_dim), jnp.float32),
        "kn_w": 1.0 + 0.1 * jax.random.normal(ks[14], (1, head_dim), jnp.float32),
        "kn_b": 0.1 * jax.random.normal(ks[15], (1, head_dim), jnp.float32),
        # Linear layers, pre-transposed to (in, out).  qkv_bias=False.
        "wqkv_t": 0.05 * jax.random.normal(ks[1], (C, 3 * C), jnp.float32),
        "wproj_t": 0.05 * jax.random.normal(ks[2], (C, C), jnp.float32),
        "bproj": 0.05 * jax.random.normal(ks[3], (1, C), jnp.float32),
        "w1_t": 0.05 * jax.random.normal(ks[4], (C, mlp_hidden), jnp.float32),
        "b1": 0.05 * jax.random.normal(ks[5], (1, mlp_hidden), jnp.float32),
        "w2_t": 0.05 * jax.random.normal(ks[6], (mlp_hidden, C), jnp.float32),
        "b2": 0.05 * jax.random.normal(ks[7], (1, C), jnp.float32),
    }

    prepped = prepare_block_params(params, num_heads)        # one-time weight prep
    out = vit_block(x, prepped)
    out = jax.block_until_ready(out)

    ref = reference_block(x, params, num_heads)              # bf16-MXU-matched reference
    np.testing.assert_allclose(np.asarray(out), np.asarray(ref), rtol=2e-2, atol=1e-2)

    print("KERNEL_OK")
</pallas_src>

<mosaic_0001>
module attributes {stable_mosaic.version = 11 : i64} {
  func.func @attn_kernel(%arg0: i32, %arg1: memref<1x128x256xf32, #tpu.memory_space<vmem>>, %arg2: memref<1x256xf32, #tpu.memory_space<vmem>>, %arg3: memref<1x256xf32, #tpu.memory_space<vmem>>, %arg4: memref<256x768xbf16, #tpu.memory_space<vmem>>, %arg5: memref<1x64xf32, #tpu.memory_space<vmem>>, %arg6: memref<1x64xf32, #tpu.memory_space<vmem>>, %arg7: memref<1x64xf32, #tpu.memory_space<vmem>>, %arg8: memref<1x64xf32, #tpu.memory_space<vmem>>, %arg9: memref<256x256xbf16, #tpu.memory_space<vmem>>, %arg10: memref<1x256xf32, #tpu.memory_space<vmem>>, %arg11: memref<1x128x256xf32, #tpu.memory_space<vmem>>) attributes {dimension_semantics = [#tpu.dimension_semantics<parallel>], iteration_bounds = array<i64: 2>, scalar_prefetch = 0 : i64, scratch_operands = 0 : i64, tpu.core_type = #tpu.core_type<tc>, window_params = [{transform_indices = @transform_0, window_bounds = array<i64: 1, 128, 256>}, {pipeline_mode = #tpu.pipeline_mode<synchronous>, transform_indices = @transform_1, window_bounds = array<i64: 1, 256>}, {pipeline_mode = #tpu.pipeline_mode<synchronous>, transform_indices = @transform_2, window_bounds = array<i64: 1, 256>}, {pipeline_mode = #tpu.pipeline_mode<synchronous>, transform_indices = @transform_3, window_bounds = array<i64: 256, 768>}, {pipeline_mode = #tpu.pipeline_mode<synchronous>, transform_indices = @transform_4, window_bounds = array<i64: 1, 64>}, {pipeline_mode = #tpu.pipeline_mode<synchronous>, transform_indices = @transform_5, window_bounds = array<i64: 1, 64>}, {pipeline_mode = #tpu.pipeline_mode<synchronous>, transform_indices = @transform_6, window_bounds = array<i64: 1, 64>}, {pipeline_mode = #tpu.pipeline_mode<synchronous>, transform_indices = @transform_7, window_bounds = array<i64: 1, 64>}, {pipeline_mode = #tpu.pipeline_mode<synchronous>, transform_indices = @transform_8, window_bounds = array<i64: 256, 256>}, {pipeline_mode = #tpu.pipeline_mode<synchronous>, transform_indices = @transform_9, window_bounds = array<i64: 1, 256>}, {transform_indices = @transform_10, window_bounds = array<i64: 1, 128, 256>}]} {
    %c0 = arith.constant 0 : index
    %c0_0 = arith.constant 0 : index
    %c0_1 = arith.constant 0 : index
    %0 = vector.load %arg1[%c0, %c0_0, %c0_1] : memref<1x128x256xf32, #tpu.memory_space<vmem>>, vector<1x128x256xf32>
    %1 = vector.shape_cast %0 : vector<1x128x256xf32> to vector<128x256xf32>
    %c0_2 = arith.constant 0 : index
    %c0_3 = arith.constant 0 : index
    %2 = vector.load %arg2[%c0_2, %c0_3] : memref<1x256xf32, #tpu.memory_space<vmem>>, vector<1x256xf32>
    %c0_4 = arith.constant 0 : index
    %c0_5 = arith.constant 0 : index
    %3 = vector.load %arg3[%c0_4, %c0_5] : memref<1x256xf32, #tpu.memory_space<vmem>>, vector<1x256xf32>
    %cst = arith.constant dense<0.000000e+00> : vector<128xf32>
    %4 = vector.multi_reduction <add>, %1, %cst [1] : vector<128x256xf32> to vector<128xf32>
    %5 = vector.shape_cast %4 : vector<128xf32> to vector<128x1xf32>
    %cst_6 = arith.constant 2.560000e+02 : f32
    %6 = vector.broadcast %cst_6 : f32 to vector<128x1xf32>
    %7 = arith.divf %5, %6 : vector<128x1xf32>
    %8 = vector.broadcast %7 : vector<128x1xf32> to vector<128x256xf32>
    %9 = arith.subf %1, %8 : vector<128x256xf32>
    %10 = arith.mulf %9, %9 : vector<128x256xf32>
    %cst_7 = arith.constant dense<0.000000e+00> : vector<128xf32>
    %11 = vector.multi_reduction <add>, %10, %cst_7 [1] : vector<128x256xf32> to vector<128xf32>
    %12 = vector.shape_cast %11 : vector<128xf32> to vector<128x1xf32>
    %cst_8 = arith.constant 2.560000e+02 : f32
    %13 = vector.broadcast %cst_8 : f32 to vector<128x1xf32>
    %14 = arith.divf %12, %13 : vector<128x1xf32>
    %15 = vector.broadcast %7 : vector<128x1xf32> to vector<128x256xf32>
    %16 = arith.subf %1, %15 : vector<128x256xf32>
    %cst_9 = arith.constant 9.99999974E-6 : f32
    %17 = vector.broadcast %cst_9 : f32 to vector<128x1xf32>
    %18 = arith.addf %14, %17 : vector<128x1xf32>
    %19 = math.rsqrt %18 : vector<128x1xf32>
    %20 = vector.broadcast %19 : vector<128x1xf32> to vector<128x256xf32>
    %21 = arith.mulf %16, %20 : vector<128x256xf32>
    %22 = vector.broadcast %2 : vector<1x256xf32> to vector<128x256xf32>
    %23 = arith.mulf %21, %22 : vector<128x256xf32>
    %24 = vector.broadcast %3 : vector<1x256xf32> to vector<128x256xf32>
    %25 = arith.addf %23, %24 : vector<128x256xf32>
    %26 = arith.truncf %25 : vector<128x256xf32> to vector<128x256xbf16>
    %c0_10 = arith.constant 0 : index
    %c0_11 = arith.constant 0 : index
    %27 = vector.load %arg4[%c0_10, %c0_11] : memref<256x768xbf16, #tpu.memory_space<vmem>>, vector<256x768xbf16>
    %cst_12 = arith.constant dense<0.000000e+00> : vector<128x768xf32>
    %28 = tpu.matmul %26, %27, %cst_12 {dimension_numbers = #tpu.dot_dimension_numbers<[1], [0], [0], [1], [0, 0, 1, 1], [], []>} : vector<128x256xbf16>, vector<256x768xbf16>, vector<128x768xf32> -> vector<128x768xf32>
    %29 = vector.extract_strided_slice %28 {offsets = [0, 0], sizes = [128, 64], strides = [1, 1]} : vector<128x768xf32> to vector<128x64xf32>
    %c0_13 = arith.constant 0 : index
    %c0_14 = arith.constant 0 : index
    %30 = vector.load %arg5[%c0_13, %c0_14] : memref<1x64xf32, #tpu.memory_space<vmem>>, vector<1x64xf32>
    %c0_15 = arith.constant 0 : index
    %c0_16 = arith.constant 0 : index
    %31 = vector.load %arg6[%c0_15, %c0_16] : memref<1x64xf32, #tpu.memory_space<vmem>>, vector<1x64xf32>
    %cst_17 = arith.constant dense<0.000000e+00> : vector<128xf32>
    %32 = vector.multi_reduction <add>, %29, %cst_17 [1] : vector<128x64xf32> to vector<128xf32>
    %33 = vector.shape_cast %32 : vector<128xf32> to vector<128x1xf32>
    %cst_18 = arith.constant 6.400000e+01 : f32
    %34 = vector.broadcast %cst_18 : f32 to vector<128x1xf32>
    %35 = arith.divf %33, %34 : vector<128x1xf32>
    %36 = vector.broadcast %35 : vector<128x1xf32> to vector<128x64xf32>
    %37 = arith.subf %29, %36 : vector<128x64xf32>
    %38 = arith.mulf %37, %37 : vector<128x64xf32>
    %cst_19 = arith.constant dense<0.000000e+00> : vector<128xf32>
    %39 = vector.multi_reduction <add>, %38, %cst_19 [1] : vector<128x64xf32> to vector<128xf32>
    %40 = vector.shape_cast %39 : vector<128xf32> to vector<128x1xf32>
    %cst_20 = arith.constant 6.400000e+01 : f32
    %41 = vector.broadcast %cst_20 : f32 to vector<128x1xf32>
    %42 = arith.divf %40, %41 : vector<128x1xf32>
    %43 = vector.broadcast %35 : vector<128x1xf32> to vector<128x64xf32>
    %44 = arith.subf %29, %43 : vector<128x64xf32>
    %cst_21 = arith.constant 9.99999974E-6 : f32
    %45 = vector.broadcast %cst_21 : f32 to vector<128x1xf32>
    %46 = arith.addf %42, %45 : vector<128x1xf32>
    %47 = math.rsqrt %46 : vector<128x1xf32>
    %48 = vector.broadcast %47 : vector<128x1xf32> to vector<128x64xf32>
    %49 = arith.mulf %44, %48 : vector<128x64xf32>
    %50 = vector.broadcast %30 : vector<1x64xf32> to vector<128x64xf32>
    %51 = arith.mulf %49, %50 : vector<128x64xf32>
    %52 = vector.broadcast %31 : vector<1x64xf32> to vector<128x64xf32>
    %53 = arith.addf %51, %52 : vector<128x64xf32>
    %54 = vector.extract_strided_slice %28 {offsets = [0, 256], sizes = [128, 64], strides = [1, 1]} : vector<128x768xf32> to vector<128x64xf32>
    %c0_22 = arith.constant 0 : index
    %c0_23 = arith.constant 0 : index
    %55 = vector.load %arg7[%c0_22, %c0_23] : memref<1x64xf32, #tpu.memory_space<vmem>>, vector<1x64xf32>
    %c0_24 = arith.constant 0 : index
    %c0_25 = arith.constant 0 : index
    %56 = vector.load %arg8[%c0_24, %c0_25] : memref<1x64xf32, #tpu.memory_space<vmem>>, vector<1x64xf32>
    %cst_26 = arith.constant dense<0.000000e+00> : vector<128xf32>
    %57 = vector.multi_reduction <add>, %54, %cst_26 [1] : vector<128x64xf32> to vector<128xf32>
    %58 = vector.shape_cast %57 : vector<128xf32> to vector<128x1xf32>
    %cst_27 = arith.constant 6.400000e+01 : f32
    %59 = vector.broadcast %cst_27 : f32 to vector<128x1xf32>
    %60 = arith.divf %58, %59 : vector<128x1xf32>
    %61 = vector.broadcast %60 : vector<128x1xf32> to vector<128x64xf32>
    %62 = arith.subf %54, %61 : vector<128x64xf32>
    %63 = arith.mulf %62, %62 : vector<128x64xf32>
    %cst_28 = arith.constant dense<0.000000e+00> : vector<128xf32>
    %64 = vector.multi_reduction <add>, %63, %cst_28 [1] : vector<128x64xf32> to vector<128xf32>
    %65 = vector.shape_cast %64 : vector<128xf32> to vector<128x1xf32>
    %cst_29 = arith.constant 6.400000e+01 : f32
    %66 = vector.broadcast %cst_29 : f32 to vector<128x1xf32>
    %67 = arith.divf %65, %66 : vector<128x1xf32>
    %68 = vector.broadcast %60 : vector<128x1xf32> to vector<128x64xf32>
    %69 = arith.subf %54, %68 : vector<128x64xf32>
    %cst_30 = arith.constant 9.99999974E-6 : f32
    %70 = vector.broadcast %cst_30 : f32 to vector<128x1xf32>
    %71 = arith.addf %67, %70 : vector<128x1xf32>
    %72 = math.rsqrt %71 : vector<128x1xf32>
    %73 = vector.broadcast %72 : vector<128x1xf32> to vector<128x64xf32>
    %74 = arith.mulf %69, %73 : vector<128x64xf32>
    %75 = vector.broadcast %55 : vector<1x64xf32> to vector<128x64xf32>
    %76 = arith.mulf %74, %75 : vector<128x64xf32>
    %77 = vector.broadcast %56 : vector<1x64xf32> to vector<128x64xf32>
    %78 = arith.addf %76, %77 : vector<128x64xf32>
    %79 = vector.extract_strided_slice %28 {offsets = [0, 512], sizes = [128, 64], strides = [1, 1]} : vector<128x768xf32> to vector<128x64xf32>
    %80 = arith.truncf %53 : vector<128x64xf32> to vector<128x64xbf16>
    %81 = arith.truncf %78 : vector<128x64xf32> to vector<128x64xbf16>
    %cst_31 = arith.constant dense<0.000000e+00> : vector<128x128xf32>
    %82 = tpu.matmul %80, %81, %cst_31 {dimension_numbers = #tpu.dot_dimension_numbers<[1], [1], [0], [0], [0, 0, 1, 0], [], []>} : vector<128x64xbf16>, vector<128x64xbf16>, vector<128x128xf32> -> vector<128x128xf32>
    %83 = tpu.iota {dimensions = array<i32: 1>} : vector<128x128xi32>
    %c16_i32 = arith.constant 16 : i32
    %84 = vector.broadcast %c16_i32 : i32 to vector<128x128xi32>
    %85 = arith.cmpi slt, %83, %84 : vector<128x128xi32>
    %cst_32 = arith.constant -1.000000e+30 : f32
    %86 = vector.broadcast %cst_32 : f32 to vector<128x128xf32>
    %87 = arith.select %85, %82, %86 : vector<128x128xi1>, vector<128x128xf32>
    %cst_33 = arith.constant dense<0xFF800000> : vector<128xf32>
    %88 = vector.multi_reduction <maximumf>, %87, %cst_33 [1] : vector<128x128xf32> to vector<128xf32>
    %89 = vector.shape_cast %88 : vector<128xf32> to vector<128x1xf32>
    %90 = vector.broadcast %89 : vector<128x1xf32> to vector<128x128xf32>
    %91 = arith.subf %87, %90 : vector<128x128xf32>
    %92 = math.exp %91 : vector<128x128xf32>
    %cst_34 = arith.constant dense<0.000000e+00> : vector<128xf32>
    %93 = vector.multi_reduction <add>, %92, %cst_34 [1] : vector<128x128xf32> to vector<128xf32>
    %94 = vector.shape_cast %93 : vector<128xf32> to vector<128x1xf32>
    %95 = tpu.reciprocal %94 {approx = true} : vector<128x1xf32> -> vector<128x1xf32>
    %96 = arith.mulf %94, %95 : vector<128x1xf32>
    %cst_35 = arith.constant 2.000000e+00 : f32
    %97 = vector.broadcast %cst_35 : f32 to vector<128x1xf32>
    %98 = arith.subf %97, %96 : vector<128x1xf32>
    %99 = arith.mulf %95, %98 : vector<128x1xf32>
    %100 = vector.broadcast %99 : vector<128x1xf32> to vector<128x128xf32>
    %101 = arith.mulf %92, %100 : vector<128x128xf32>
    %102 = arith.truncf %101 : vector<128x128xf32> to vector<128x128xbf16>
    %103 = arith.truncf %79 : vector<128x64xf32> to vector<128x64xbf16>
    %cst_36 = arith.constant dense<0.000000e+00> : vector<128x64xf32>
    %104 = tpu.matmul %102, %103, %cst_36 {dimension_numbers = #tpu.dot_dimension_numbers<[1], [0], [0], [1], [0, 0, 1, 1], [], []>} : vector<128x128xbf16>, vector<128x64xbf16>, vector<128x64xf32> -> vector<128x64xf32>
    %105 = arith.truncf %104 : vector<128x64xf32> to vector<128x64xbf16>
    %106 = vector.extract_strided_slice %28 {offsets = [0, 64], sizes = [128, 64], strides = [1, 1]} : vector<128x768xf32> to vector<128x64xf32>
    %c0_37 = arith.constant 0 : index
    %c0_38 = arith.constant 0 : index
    %107 = vector.load %arg5[%c0_37, %c0_38] : memref<1x64xf32, #tpu.memory_space<vmem>>, vector<1x64xf32>
    %c0_39 = arith.constant 0 : index
    %c0_40 = arith.constant 0 : index
    %108 = vector.load %arg6[%c0_39, %c0_40] : memref<1x64xf32, #tpu.memory_space<vmem>>, vector<1x64xf32>
    %cst_41 = arith.constant dense<0.000000e+00> : vector<128xf32>
    %109 = vector.multi_reduction <add>, %106, %cst_41 [1] : vector<128x64xf32> to vector<128xf32>
    %110 = vector.shape_cast %109 : vector<128xf32> to vector<128x1xf32>
    %cst_42 = arith.constant 6.400000e+01 : f32
    %111 = vector.broadcast %cst_42 : f32 to vector<128x1xf32>
    %112 = arith.divf %110, %111 : vector<128x1xf32>
    %113 = vector.broadcast %112 : vector<128x1xf32> to vector<128x64xf32>
    %114 = arith.subf %106, %113 : vector<128x64xf32>
    %115 = arith.mulf %114, %114 : vector<128x64xf32>
    %cst_43 = arith.constant dense<0.000000e+00> : vector<128xf32>
    %116 = vector.multi_reduction <add>, %115, %cst_43 [1] : vector<128x64xf32> to vector<128xf32>
    %117 = vector.shape_cast %116 : vector<128xf32> to vector<128x1xf32>
    %cst_44 = arith.constant 6.400000e+01 : f32
    %118 = vector.broadcast %cst_44 : f32 to vector<128x1xf32>
    %119 = arith.divf %117, %118 : vector<128x1xf32>
    %120 = vector.broadcast %112 : vector<128x1xf32> to vector<128x64xf32>
    %121 = arith.subf %106, %120 : vector<128x64xf32>
    %cst_45 = arith.constant 9.99999974E-6 : f32
    %122 = vector.broadcast %cst_45 : f32 to vector<128x1xf32>
    %123 = arith.addf %119, %122 : vector<128x1xf32>
    %124 = math.rsqrt %123 : vector<128x1xf32>
    %125 = vector.broadcast %124 : vector<128x1xf32> to vector<128x64xf32>
    %126 = arith.mulf %121, %125 : vector<128x64xf32>
    %127 = vector.broadcast %107 : vector<1x64xf32> to vector<128x64xf32>
    %128 = arith.mulf %126, %127 : vector<128x64xf32>
    %129 = vector.broadcast %108 : vector<1x64xf32> to vector<128x64xf32>
    %130 = arith.addf %128, %129 : vector<128x64xf32>
    %131 = vector.extract_strided_slice %28 {offsets = [0, 320], sizes = [128, 64], strides = [1, 1]} : vector<128x768xf32> to vector<128x64xf32>
    %c0_46 = arith.constant 0 : index
    %c0_47 = arith.constant 0 : index
    %132 = vector.load %arg7[%c0_46, %c0_47] : memref<1x64xf32, #tpu.memory_space<vmem>>, vector<1x64xf32>
    %c0_48 = arith.constant 0 : index
    %c0_49 = arith.constant 0 : index
    %133 = vector.load %arg8[%c0_48, %c0_49] : memref<1x64xf32, #tpu.memory_space<vmem>>, vector<1x64xf32>
    %cst_50 = arith.constant dense<0.000000e+00> : vector<128xf32>
    %134 = vector.multi_reduction <add>, %131, %cst_50 [1] : vector<128x64xf32> to vector<128xf32>
    %135 = vector.shape_cast %134 : vector<128xf32> to vector<128x1xf32>
    %cst_51 = arith.constant 6.400000e+01 : f32
    %136 = vector.broadcast %cst_51 : f32 to vector<128x1xf32>
    %137 = arith.divf %135, %136 : vector<128x1xf32>
    %138 = vector.broadcast %137 : vector<128x1xf32> to vector<128x64xf32>
    %139 = arith.subf %131, %138 : vector<128x64xf32>
    %140 = arith.mulf %139, %139 : vector<128x64xf32>
    %cst_52 = arith.constant dense<0.000000e+00> : vector<128xf32>
    %141 = vector.multi_reduction <add>, %140, %cst_52 [1] : vector<128x64xf32> to vector<128xf32>
    %142 = vector.shape_cast %141 : vector<128xf32> to vector<128x1xf32>
    %cst_53 = arith.constant 6.400000e+01 : f32
    %143 = vector.broadcast %cst_53 : f32 to vector<128x1xf32>
    %144 = arith.divf %142, %143 : vector<128x1xf32>
    %145 = vector.broadcast %137 : vector<128x1xf32> to vector<128x64xf32>
    %146 = arith.subf %131, %145 : vector<128x64xf32>
    %cst_54 = arith.constant 9.99999974E-6 : f32
    %147 = vector.broadcast %cst_54 : f32 to vector<128x1xf32>
    %148 = arith.addf %144, %147 : vector<128x1xf32>
    %149 = math.rsqrt %148 : vector<128x1xf32>
    %150 = vector.broadcast %149 : vector<128x1xf32> to vector<128x64xf32>
    %151 = arith.mulf %146, %150 : vector<128x64xf32>
    %152 = vector.broadcast %132 : vector<1x64xf32> to vector<128x64xf32>
    %153 = arith.mulf %151, %152 : vector<128x64xf32>
    %154 = vector.broadcast %133 : vector<1x64xf32> to vector<128x64xf32>
    %155 = arith.addf %153, %154 : vector<128x64xf32>
    %156 = vector.extract_strided_slice %28 {offsets = [0, 576], sizes = [128, 64], strides = [1, 1]} : vector<128x768xf32> to vector<128x64xf32>
    %157 = arith.truncf %130 : vector<128x64xf32> to vector<128x64xbf16>
    %158 = arith.truncf %155 : vector<128x64xf32> to vector<128x64xbf16>
    %cst_55 = arith.constant dense<0.000000e+00> : vector<128x128xf32>
    %159 = tpu.matmul %157, %158, %cst_55 {dimension_numbers = #tpu.dot_dimension_numbers<[1], [1], [0], [0], [0, 0, 1, 0], [], []>} : vector<128x64xbf16>, vector<128x64xbf16>, vector<128x128xf32> -> vector<128x128xf32>
    %160 = tpu.iota {dimensions = array<i32: 1>} : vector<128x128xi32>
    %c16_i32_56 = arith.constant 16 : i32
    %161 = vector.broadcast %c16_i32_56 : i32 to vector<128x128xi32>
    %162 = arith.cmpi slt, %160, %161 : vector<128x128xi32>
    %cst_57 = arith.constant -1.000000e+30 : f32
    %163 = vector.broadcast %cst_57 : f32 to vector<128x128xf32>
    %164 = arith.select %162, %159, %163 : vector<128x128xi1>, vector<128x128xf32>
    %cst_58 = arith.constant dense<0xFF800000> : vector<128xf32>
    %165 = vector.multi_reduction <maximumf>, %164, %cst_58 [1] : vector<128x128xf32> to vector<128xf32>
    %166 = vector.shape_cast %165 : vector<128xf32> to vector<128x1xf32>
    %167 = vector.broadcast %166 : vector<128x1xf32> to vector<128x128xf32>
    %168 = arith.subf %164, %167 : vector<128x128xf32>
    %169 = math.exp %168 : vector<128x128xf32>
    %cst_59 = arith.constant dense<0.000000e+00> : vector<128xf32>
    %170 = vector.multi_reduction <add>, %169, %cst_59 [1] : vector<128x128xf32> to vector<128xf32>
    %171 = vector.shape_cast %170 : vector<128xf32> to vector<128x1xf32>
    %172 = tpu.reciprocal %171 {approx = true} : vector<128x1xf32> -> vector<128x1xf32>
    %173 = arith.mulf %171, %172 : vector<128x1xf32>
    %cst_60 = arith.constant 2.000000e+00 : f32
    %174 = vector.broadcast %cst_60 : f32 to vector<128x1xf32>
    %175 = arith.subf %174, %173 : vector<128x1xf32>
    %176 = arith.mulf %172, %175 : vector<128x1xf32>
    %177 = vector.broadcast %176 : vector<128x1xf32> to vector<128x128xf32>
    %178 = arith.mulf %169, %177 : vector<128x128xf32>
    %179 = arith.truncf %178 : vector<128x128xf32> to vector<128x128xbf16>
    %180 = arith.truncf %156 : vector<128x64xf32> to vector<128x64xbf16>
    %cst_61 = arith.constant dense<0.000000e+00> : vector<128x64xf32>
    %181 = tpu.matmul %179, %180, %cst_61 {dimension_numbers = #tpu.dot_dimension_numbers<[1], [0], [0], [1], [0, 0, 1, 1], [], []>} : vector<128x128xbf16>, vector<128x64xbf16>, vector<128x64xf32> -> vector<128x64xf32>
    %182 = arith.truncf %181 : vector<128x64xf32> to vector<128x64xbf16>
    %183 = vector.extract_strided_slice %28 {offsets = [0, 128], sizes = [128, 64], strides = [1, 1]} : vector<128x768xf32> to vector<128x64xf32>
    %c0_62 = arith.constant 0 : index
    %c0_63 = arith.constant 0 : index
    %184 = vector.load %arg5[%c0_62, %c0_63] : memref<1x64xf32, #tpu.memory_space<vmem>>, vector<1x64xf32>
    %c0_64 = arith.constant 0 : index
    %c0_65 = arith.constant 0 : index
    %185 = vector.load %arg6[%c0_64, %c0_65] : memref<1x64xf32, #tpu.memory_space<vmem>>, vector<1x64xf32>
    %cst_66 = arith.constant dense<0.000000e+00> : vector<128xf32>
    %186 = vector.multi_reduction <add>, %183, %cst_66 [1] : vector<128x64xf32> to vector<128xf32>
    %187 = vector.shape_cast %186 : vector<128xf32> to vector<128x1xf32>
    %cst_67 = arith.constant 6.400000e+01 : f32
    %188 = vector.broadcast %cst_67 : f32 to vector<128x1xf32>
    %189 = arith.divf %187, %188 : vector<128x1xf32>
    %190 = vector.broadcast %189 : vector<128x1xf32> to vector<128x64xf32>
    %191 = arith.subf %183, %190 : vector<128x64xf32>
    %192 = arith.mulf %191, %191 : vector<128x64xf32>
    %cst_68 = arith.constant dense<0.000000e+00> : vector<128xf32>
    %193 = vector.multi_reduction <add>, %192, %cst_68 [1] : vector<128x64xf32> to vector<128xf32>
    %194 = vector.shape_cast %193 : vector<128xf32> to vector<128x1xf32>
    %cst_69 = arith.constant 6.400000e+01 : f32
    %195 = vector.broadcast %cst_69 : f32 to vector<128x1xf32>
    %196 = arith.divf %194, %195 : vector<128x1xf32>
    %197 = vector.broadcast %189 : vector<128x1xf32> to vector<128x64xf32>
    %198 = arith.subf %183, %197 : vector<128x64xf32>
    %cst_70 = arith.constant 9.99999974E-6 : f32
    %199 = vector.broadcast %cst_70 : f32 to vector<128x1xf32>
    %200 = arith.addf %196, %199 : vector<128x1xf32>
    %201 = math.rsqrt %200 : vector<128x1xf32>
    %202 = vector.broadcast %201 : vector<128x1xf32> to vector<128x64xf32>
    %203 = arith.mulf %198, %202 : vector<128x64xf32>
    %204 = vector.broadcast %184 : vector<1x64xf32> to vector<128x64xf32>
    %205 = arith.mulf %203, %204 : vector<128x64xf32>
    %206 = vector.broadcast %185 : vector<1x64xf32> to vector<128x64xf32>
    %207 = arith.addf %205, %206 : vector<128x64xf32>
    %208 = vector.extract_strided_slice %28 {offsets = [0, 384], sizes = [128, 64], strides = [1, 1]} : vector<128x768xf32> to vector<128x64xf32>
    %c0_71 = arith.constant 0 : index
    %c0_72 = arith.constant 0 : index
    %209 = vector.load %arg7[%c0_71, %c0_72] : memref<1x64xf32, #tpu.memory_space<vmem>>, vector<1x64xf32>
    %c0_73 = arith.constant 0 : index
    %c0_74 = arith.constant 0 : index
    %210 = vector.load %arg8[%c0_73, %c0_74] : memref<1x64xf32, #tpu.memory_space<vmem>>, vector<1x64xf32>
    %cst_75 = arith.constant dense<0.000000e+00> : vector<128xf32>
    %211 = vector.multi_reduction <add>, %208, %cst_75 [1] : vector<128x64xf32> to vector<128xf32>
    %212 = vector.shape_cast %211 : vector<128xf32> to vector<128x1xf32>
    %cst_76 = arith.constant 6.400000e+01 : f32
    %213 = vector.broadcast %cst_76 : f32 to vector<128x1xf32>
    %214 = arith.divf %212, %213 : vector<128x1xf32>
    %215 = vector.broadcast %214 : vector<128x1xf32> to vector<128x64xf32>
    %216 = arith.subf %208, %215 : vector<128x64xf32>
    %217 = arith.mulf %216, %216 : vector<128x64xf32>
    %cst_77 = arith.constant dense<0.000000e+00> : vector<128xf32>
    %218 = vector.multi_reduction <add>, %217, %cst_77 [1] : vector<128x64xf32> to vector<128xf32>
    %219 = vector.shape_cast %218 : vector<128xf32> to vector<128x1xf32>
    %cst_78 = arith.constant 6.400000e+01 : f32
    %220 = vector.broadcast %cst_78 : f32 to vector<128x1xf32>
    %221 = arith.divf %219, %220 : vector<128x1xf32>
    %222 = vector.broadcast %214 : vector<128x1xf32> to vector<128x64xf32>
    %223 = arith.subf %208, %222 : vector<128x64xf32>
    %cst_79 = arith.constant 9.99999974E-6 : f32
    %224 = vector.broadcast %cst_79 : f32 to vector<128x1xf32>
    %225 = arith.addf %221, %224 : vector<128x1xf32>
    %226 = math.rsqrt %225 : vector<128x1xf32>
    %227 = vector.broadcast %226 : vector<128x1xf32> to vector<128x64xf32>
    %228 = arith.mulf %223, %227 : vector<128x64xf32>
    %229 = vector.broadcast %209 : vector<1x64xf32> to vector<128x64xf32>
    %230 = arith.mulf %228, %229 : vector<128x64xf32>
    %231 = vector.broadcast %210 : vector<1x64xf32> to vector<128x64xf32>
    %232 = arith.addf %230, %231 : vector<128x64xf32>
    %233 = vector.extract_strided_slice %28 {offsets = [0, 640], sizes = [128, 64], strides = [1, 1]} : vector<128x768xf32> to vector<128x64xf32>
    %234 = arith.truncf %207 : vector<128x64xf32> to vector<128x64xbf16>
    %235 = arith.truncf %232 : vector<128x64xf32> to vector<128x64xbf16>
    %cst_80 = arith.constant dense<0.000000e+00> : vector<128x128xf32>
    %236 = tpu.matmul %234, %235, %cst_80 {dimension_numbers = #tpu.dot_dimension_numbers<[1], [1], [0], [0], [0, 0, 1, 0], [], []>} : vector<128x64xbf16>, vector<128x64xbf16>, vector<128x128xf32> -> vector<128x128xf32>
    %237 = tpu.iota {dimensions = array<i32: 1>} : vector<128x128xi32>
    %c16_i32_81 = arith.constant 16 : i32
    %238 = vector.broadcast %c16_i32_81 : i32 to vector<128x128xi32>
    %239 = arith.cmpi slt, %237, %238 : vector<128x128xi32>
    %cst_82 = arith.constant -1.000000e+30 : f32
    %240 = vector.broadcast %cst_82 : f32 to vector<128x128xf32>
    %241 = arith.select %239, %236, %240 : vector<128x128xi1>, vector<128x128xf32>
    %cst_83 = arith.constant dense<0xFF800000> : vector<128xf32>
    %242 = vector.multi_reduction <maximumf>, %241, %cst_83 [1] : vector<128x128xf32> to vector<128xf32>
    %243 = vector.shape_cast %242 : vector<128xf32> to vector<128x1xf32>
    %244 = vector.broadcast %243 : vector<128x1xf32> to vector<128x128xf32>
    %245 = arith.subf %241, %244 : vector<128x128xf32>
    %246 = math.exp %245 : vector<128x128xf32>
    %cst_84 = arith.constant dense<0.000000e+00> : vector<128xf32>
    %247 = vector.multi_reduction <add>, %246, %cst_84 [1] : vector<128x128xf32> to vector<128xf32>
    %248 = vector.shape_cast %247 : vector<128xf32> to vector<128x1xf32>
    %249 = tpu.reciprocal %248 {approx = true} : vector<128x1xf32> -> vector<128x1xf32>
    %250 = arith.mulf %248, %249 : vector<128x1xf32>
    %cst_85 = arith.constant 2.000000e+00 : f32
    %251 = vector.broadcast %cst_85 : f32 to vector<128x1xf32>
    %252 = arith.subf %251, %250 : vector<128x1xf32>
    %253 = arith.mulf %249, %252 : vector<128x1xf32>
    %254 = vector.broadcast %253 : vector<128x1xf32> to vector<128x128xf32>
    %255 = arith.mulf %246, %254 : vector<128x128xf32>
    %256 = arith.truncf %255 : vector<128x128xf32> to vector<128x128xbf16>
    %257 = arith.truncf %233 : vector<128x64xf32> to vector<128x64xbf16>
    %cst_86 = arith.constant dense<0.000000e+00> : vector<128x64xf32>
    %258 = tpu.matmul %256, %257, %cst_86 {dimension_numbers = #tpu.dot_dimension_numbers<[1], [0], [0], [1], [0, 0, 1, 1], [], []>} : vector<128x128xbf16>, vector<128x64xbf16>, vector<128x64xf32> -> vector<128x64xf32>
    %259 = arith.truncf %258 : vector<128x64xf32> to vector<128x64xbf16>
    %260 = vector.extract_strided_slice %28 {offsets = [0, 192], sizes = [128, 64], strides = [1, 1]} : vector<128x768xf32> to vector<128x64xf32>
    %c0_87 = arith.constant 0 : index
    %c0_88 = arith.constant 0 : index
    %261 = vector.load %arg5[%c0_87, %c0_88] : memref<1x64xf32, #tpu.memory_space<vmem>>, vector<1x64xf32>
    %c0_89 = arith.constant 0 : index
    %c0_90 = arith.constant 0 : index
    %262 = vector.load %arg6[%c0_89, %c0_90] : memref<1x64xf32, #tpu.memory_space<vmem>>, vector<1x64xf32>
    %cst_91 = arith.constant dense<0.000000e+00> : vector<128xf32>
    %263 = vector.multi_reduction <add>, %260, %cst_91 [1] : vector<128x64xf32> to vector<128xf32>
    %264 = vector.shape_cast %263 : vector<128xf32> to vector<128x1xf32>
    %cst_92 = arith.constant 6.400000e+01 : f32
    %265 = vector.broadcast %cst_92 : f32 to vector<128x1xf32>
    %266 = arith.divf %264, %265 : vector<128x1xf32>
    %267 = vector.broadcast %266 : vector<128x1xf32> to vector<128x64xf32>
    %268 = arith.subf %260, %267 : vector<128x64xf32>
    %269 = arith.mulf %268, %268 : vector<128x64xf32>
    %cst_93 = arith.constant dense<0.000000e+00> : vector<128xf32>
    %270 = vector.multi_reduction <add>, %269, %cst_93 [1] : vector<128x64xf32> to vector<128xf32>
    %271 = vector.shape_cast %270 : vector<128xf32> to vector<128x1xf32>
    %cst_94 = arith.constant 6.400000e+01 : f32
    %272 = vector.broadcast %cst_94 : f32 to vector<128x1xf32>
    %273 = arith.divf %271, %272 : vector<128x1xf32>
    %274 = vector.broadcast %266 : vector<128x1xf32> to vector<128x64xf32>
    %275 = arith.subf %260, %274 : vector<128x64xf32>
    %cst_95 = arith.constant 9.99999974E-6 : f32
    %276 = vector.broadcast %cst_95 : f32 to vector<128x1xf32>
    %277 = arith.addf %273, %276 : vector<128x1xf32>
    %278 = math.rsqrt %277 : vector<128x1xf32>
    %279 = vector.broadcast %278 : vector<128x1xf32> to vector<128x64xf32>
    %280 = arith.mulf %275, %279 : vector<128x64xf32>
    %281 = vector.broadcast %261 : vector<1x64xf32> to vector<128x64xf32>
    %282 = arith.mulf %280, %281 : vector<128x64xf32>
    %283 = vector.broadcast %262 : vector<1x64xf32> to vector<128x64xf32>
    %284 = arith.addf %282, %283 : vector<128x64xf32>
    %285 = vector.extract_strided_slice %28 {offsets = [0, 448], sizes = [128, 64], strides = [1, 1]} : vector<128x768xf32> to vector<128x64xf32>
    %c0_96 = arith.constant 0 : index
    %c0_97 = arith.constant 0 : index
    %286 = vector.load %arg7[%c0_96, %c0_97] : memref<1x64xf32, #tpu.memory_space<vmem>>, vector<1x64xf32>
    %c0_98 = arith.constant 0 : index
    %c0_99 = arith.constant 0 : index
    %287 = vector.load %arg8[%c0_98, %c0_99] : memref<1x64xf32, #tpu.memory_space<vmem>>, vector<1x64xf32>
    %cst_100 = arith.constant dense<0.000000e+00> : vector<128xf32>
    %288 = vector.multi_reduction <add>, %285, %cst_100 [1] : vector<128x64xf32> to vector<128xf32>
    %289 = vector.shape_cast %288 : vector<128xf32> to vector<128x1xf32>
    %cst_101 = arith.constant 6.400000e+01 : f32
    %290 = vector.broadcast %cst_101 : f32 to vector<128x1xf32>
    %291 = arith.divf %289, %290 : vector<128x1xf32>
    %292 = vector.broadcast %291 : vector<128x1xf32> to vector<128x64xf32>
    %293 = arith.subf %285, %292 : vector<128x64xf32>
    %294 = arith.mulf %293, %293 : vector<128x64xf32>
    %cst_102 = arith.constant dense<0.000000e+00> : vector<128xf32>
    %295 = vector.multi_reduction <add>, %294, %cst_102 [1] : vector<128x64xf32> to vector<128xf32>
    %296 = vector.shape_cast %295 : vector<128xf32> to vector<128x1xf32>
    %cst_103 = arith.constant 6.400000e+01 : f32
    %297 = vector.broadcast %cst_103 : f32 to vector<128x1xf32>
    %298 = arith.divf %296, %297 : vector<128x1xf32>
    %299 = vector.broadcast %291 : vector<128x1xf32> to vector<128x64xf32>
    %300 = arith.subf %285, %299 : vector<128x64xf32>
    %cst_104 = arith.constant 9.99999974E-6 : f32
    %301 = vector.broadcast %cst_104 : f32 to vector<128x1xf32>
    %302 = arith.addf %298, %301 : vector<128x1xf32>
    %303 = math.rsqrt %302 : vector<128x1xf32>
    %304 = vector.broadcast %303 : vector<128x1xf32> to vector<128x64xf32>
    %305 = arith.mulf %300, %304 : vector<128x64xf32>
    %306 = vector.broadcast %286 : vector<1x64xf32> to vector<128x64xf32>
    %307 = arith.mulf %305, %306 : vector<128x64xf32>
    %308 = vector.broadcast %287 : vector<1x64xf32> to vector<128x64xf32>
    %309 = arith.addf %307, %308 : vector<128x64xf32>
    %310 = vector.extract_strided_slice %28 {offsets = [0, 704], sizes = [128, 64], strides = [1, 1]} : vector<128x768xf32> to vector<128x64xf32>
    %311 = arith.truncf %284 : vector<128x64xf32> to vector<128x64xbf16>
    %312 = arith.truncf %309 : vector<128x64xf32> to vector<128x64xbf16>
    %cst_105 = arith.constant dense<0.000000e+00> : vector<128x128xf32>
    %313 = tpu.matmul %311, %312, %cst_105 {dimension_numbers = #tpu.dot_dimension_numbers<[1], [1], [0], [0], [0, 0, 1, 0], [], []>} : vector<128x64xbf16>, vector<128x64xbf16>, vector<128x128xf32> -> vector<128x128xf32>
    %314 = tpu.iota {dimensions = array<i32: 1>} : vector<128x128xi32>
    %c16_i32_106 = arith.constant 16 : i32
    %315 = vector.broadcast %c16_i32_106 : i32 to vector<128x128xi32>
    %316 = arith.cmpi slt, %314, %315 : vector<128x128xi32>
    %cst_107 = arith.constant -1.000000e+30 : f32
    %317 = vector.broadcast %cst_107 : f32 to vector<128x128xf32>
    %318 = arith.select %316, %313, %317 : vector<128x128xi1>, vector<128x128xf32>
    %cst_108 = arith.constant dense<0xFF800000> : vector<128xf32>
    %319 = vector.multi_reduction <maximumf>, %318, %cst_108 [1] : vector<128x128xf32> to vector<128xf32>
    %320 = vector.shape_cast %319 : vector<128xf32> to vector<128x1xf32>
    %321 = vector.broadcast %320 : vector<128x1xf32> to vector<128x128xf32>
    %322 = arith.subf %318, %321 : vector<128x128xf32>
    %323 = math.exp %322 : vector<128x128xf32>
    %cst_109 = arith.constant dense<0.000000e+00> : vector<128xf32>
    %324 = vector.multi_reduction <add>, %323, %cst_109 [1] : vector<128x128xf32> to vector<128xf32>
    %325 = vector.shape_cast %324 : vector<128xf32> to vector<128x1xf32>
    %326 = tpu.reciprocal %325 {approx = true} : vector<128x1xf32> -> vector<128x1xf32>
    %327 = arith.mulf %325, %326 : vector<128x1xf32>
    %cst_110 = arith.constant 2.000000e+00 : f32
    %328 = vector.broadcast %cst_110 : f32 to vector<128x1xf32>
    %329 = arith.subf %328, %327 : vector<128x1xf32>
    %330 = arith.mulf %326, %329 : vector<128x1xf32>
    %331 = vector.broadcast %330 : vector<128x1xf32> to vector<128x128xf32>
    %332 = arith.mulf %323, %331 : vector<128x128xf32>
    %333 = arith.truncf %332 : vector<128x128xf32> to vector<128x128xbf16>
    %334 = arith.truncf %310 : vector<128x64xf32> to vector<128x64xbf16>
    %cst_111 = arith.constant dense<0.000000e+00> : vector<128x64xf32>
    %335 = tpu.matmul %333, %334, %cst_111 {dimension_numbers = #tpu.dot_dimension_numbers<[1], [0], [0], [1], [0, 0, 1, 1], [], []>} : vector<128x128xbf16>, vector<128x64xbf16>, vector<128x64xf32> -> vector<128x64xf32>
    %336 = arith.truncf %335 : vector<128x64xf32> to vector<128x64xbf16>
    %337 = tpu.concatenate %105, %182, %259, %336 in 1 : vector<128x64xbf16>, vector<128x64xbf16>, vector<128x64xbf16>, vector<128x64xbf16> -> vector<128x256xbf16>
    %c0_112 = arith.constant 0 : index
    %c0_113 = arith.constant 0 : index
    %338 = vector.load %arg9[%c0_112, %c0_113] : memref<256x256xbf16, #tpu.memory_space<vmem>>, vector<256x256xbf16>
    %cst_114 = arith.constant dense<0.000000e+00> : vector<128x256xf32>
    %339 = tpu.matmul %337, %338, %cst_114 {dimension_numbers = #tpu.dot_dimension_numbers<[1], [0], [0], [1], [0, 0, 1, 1], [], []>} : vector<128x256xbf16>, vector<256x256xbf16>, vector<128x256xf32> -> vector<128x256xf32>
    %340 = arith.addf %1, %339 : vector<128x256xf32>
    %c0_115 = arith.constant 0 : index
    %c0_116 = arith.constant 0 : index
    %341 = vector.load %arg10[%c0_115, %c0_116] : memref<1x256xf32, #tpu.memory_space<vmem>>, vector<1x256xf32>
    %342 = vector.broadcast %341 : vector<1x256xf32> to vector<128x256xf32>
    %343 = arith.addf %340, %342 : vector<128x256xf32>
    %c0_117 = arith.constant 0 : index
    %c0_118 = arith.constant 0 : index
    %c0_119 = arith.constant 0 : index
    %344 = vector.load %arg11[%c0_117, %c0_118, %c0_119] : memref<1x128x256xf32, #tpu.memory_space<vmem>>, vector<1x128x256xf32>
    %345 = vector.shape_cast %344 : vector<1x128x256xf32> to vector<128x256xf32>
    %346 = vector.shape_cast %343 : vector<128x256xf32> to vector<1x128x256xf32>
    tpu.vector_store %arg11[%c0_117, %c0_118, %c0_119], %346 {strides = array<i32>} : memref<1x128x256xf32, #tpu.memory_space<vmem>>, vector<1x128x256xf32>,
    return
  }
  func.func @transform_0(%arg0: i32) -> (i32, i32, i32) {
    %c0_i32 = arith.constant 0 : i32
    %c0_i32_0 = arith.constant 0 : i32
    %c0_i32_1 = arith.constant 0 : i32
    return %arg0, %c0_i32, %c0_i32_0 : i32, i32, i32
  }
  func.func @transform_1(%arg0: i32) -> (i32, i32) {
    %c0_i32 = arith.constant 0 : i32
    %c0_i32_0 = arith.constant 0 : i32
    %c0_i32_1 = arith.constant 0 : i32
    return %c0_i32, %c0_i32_0 : i32, i32
  }
  func.func @transform_2(%arg0: i32) -> (i32, i32) {
    %c0_i32 = arith.constant 0 : i32
    %c0_i32_0 = arith.constant 0 : i32
    %c0_i32_1 = arith.constant 0 : i32
    return %c0_i32, %c0_i32_0 : i32, i32
  }
  func.func @transform_3(%arg0: i32) -> (i32, i32) {
    %c0_i32 = arith.constant 0 : i32
    %c0_i32_0 = arith.constant 0 : i32
    %c0_i32_1 = arith.constant 0 : i32
    return %c0_i32, %c0_i32_0 : i32, i32
  }
  func.func @transform_4(%arg0: i32) -> (i32, i32) {
    %c0_i32 = arith.constant 0 : i32
    %c0_i32_0 = arith.constant 0 : i32
    %c0_i32_1 = arith.constant 0 : i32
    return %c0_i32, %c0_i32_0 : i32, i32
  }
  func.func @transform_5(%arg0: i32) -> (i32, i32) {
    %c0_i32 = arith.constant 0 : i32
    %c0_i32_0 = arith.constant 0 : i32
    %c0_i32_1 = arith.constant 0 : i32
    return %c0_i32, %c0_i32_0 : i32, i32
  }
  func.func @transform_6(%arg0: i32) -> (i32, i32) {
    %c0_i32 = arith.constant 0 : i32
    %c0_i32_0 = arith.constant 0 : i32
    %c0_i32_1 = arith.constant 0 : i32
    return %c0_i32, %c0_i32_0 : i32, i32
  }
  func.func @transform_7(%arg0: i32) -> (i32, i32) {
    %c0_i32 = arith.constant 0 : i32
    %c0_i32_0 = arith.constant 0 : i32
    %c0_i32_1 = arith.constant 0 : i32
    return %c0_i32, %c0_i32_0 : i32, i32
  }
  func.func @transform_8(%arg0: i32) -> (i32, i32) {
    %c0_i32 = arith.constant 0 : i32
    %c0_i32_0 = arith.constant 0 : i32
    %c0_i32_1 = arith.constant 0 : i32
    return %c0_i32, %c0_i32_0 : i32, i32
  }
  func.func @transform_9(%arg0: i32) -> (i32, i32) {
    %c0_i32 = arith.constant 0 : i32
    %c0_i32_0 = arith.constant 0 : i32
    %c0_i32_1 = arith.constant 0 : i32
    return %c0_i32, %c0_i32_0 : i32, i32
  }
  func.func @transform_10(%arg0: i32) -> (i32, i32, i32) {
    %c0_i32 = arith.constant 0 : i32
    %c0_i32_0 = arith.constant 0 : i32
    %c0_i32_1 = arith.constant 0 : i32
    return %arg0, %c0_i32, %c0_i32_0 : i32, i32, i32
  }
}

</mosaic_0001>

<bundles_post_ra>
// kernel: tpu_custom_call.1
= control target key start
LH: loop header
LB: loop body
LE: loop exit
PB: predicated region body
PF: predicated region fallthrough
CT: control target
= control target key end

     0   :  { %15 = vsyncpa [#allocation3], 0  ;;  %s13152_s0 = inlined_call_operand.hbm [shape: f32[2,128,256], index: 0, kind: input, shape index: {}]   ;;  %s13153_s1 = inlined_call_operand.vmem [shape: f32[1,256], index: 1, kind: input, shape index: {}]   ;;  %s13154_s2 = inlined_call_operand.vmem [shape: f32[1,256], index: 2, kind: input, shape index: {}]   ;;  %s13155_s3 = inlined_call_operand.hbm [shape: bf16[256,768], index: 3, kind: input, shape index: {}]   ;;  %s13156_s4 = inlined_call_operand.vmem [shape: f32[1,64], index: 4, kind: input, shape index: {}]   ;;  %s13157_s5 = inlined_call_operand.vmem [shape: f32[1,64], index: 5, kind: input, shape index: {}]   ;;  %s13158_s6 = inlined_call_operand.vmem [shape: f32[1,64], index: 6, kind: input, shape index: {}]   ;;  %s13159_s7 = inlined_call_operand.vmem [shape: f32[1,64], index: 7, kind: input, shape index: {}]   ;;  %s13160_s8 = inlined_call_operand.hbm [shape: bf16[256,256], index: 8, kind: input, shape index: {}]   ;;  %s13161_s9 = inlined_call_operand.vmem [shape: f32[1,256], index: 9, kind: input, shape index: {}]   ;;  %s13162_s10 = inlined_call_operand.hbm [shape: f32[2,128,256], index: 10, kind: output, shape index: {}]  }
   0x1   :  { %17 = vsyncpa [#allocation3 + $0x1], 0 }
   0x2   :  { %18 = vsyncpa [#allocation6], 0 }
   0x3   :  { %19 = vsyncpa [#allocation4], 0 }
   0x4   :  { %21 = vsyncpa [#allocation4 + $0x1], 0  ;;  %s8608_s13 = smov 0   ;;  %s8610_s14 = smov 0  }
   0x5   :  { %s8612_s15 = smov 0   ;;  %s8614_s16 = smov 0  }
   0x6 LB: > { %13401 = sst [smem:[#allocation12_spill]] %s8526_s13  ;;  %s8629_s17 = sadd.s32 4294967295, %s8538_s16   ;;  %s8538_s16 = sphi %s8614_s16, %s14022_s16   ;;  %s8534_s15 = sphi %s8612_s15, %s14021_s15   ;;  %s8530_s14 = sphi %s8610_s14, %s14020_s14   ;;  %s8526_s13 = sphi %s8608_s13, %s14019_s13  }
   0x7   : > { %s6928_s18 = sadd.s32 4294967294, %s8538_s16   ;;  %p47_p0 = scmp.ne.s32.totalorder %s8530_s14, %s8526_s13 }
   0x8   : > { %p13163_p1 = scmp.eq.s32.totalorder %s8629_s17, 0  ;;  %p266_p3 = scmp.eq.s32.totalorder %s6928_s18, 1 }
   0x9   : > { %p6929_p5 = scmp.ge.s32.totalorder %s8538_s16, 1  ;;  %p273_p7 = scmp.lt.s32.totalorder %s8538_s16, 3 }
   0xa   : > { %p8638_p4 = por %p13163_p1, %p47_p0  ;;  %p8643_p6 = por %p266_p3, %p47_p0 }
   0xb   : > { %p8648_p8 = pnand %p6929_p5, %p273_p7  ;;  %s8540_s22 = smov [#allocation5]  }
   0xc   : > { %s13402_s19 = scalar_select %p8638_p4, 1, 0 }
   0xd   : > { %s13403_s20 = scalar_select %p8643_p6, 1, 0 }
   0xe   : > { %s291_s23 = sshll.u32 %s8540_s22, 4  ;;  %p7540_p9 = pneg %p8648_p8  ;;  %s8652_s23 = int_to_ptr.vmem [resolvable:$true] %s291_s23 }
   0xf   : > { %13404 = sst [smem:[#allocation13_spill]] %s13403_s20  ;;  %s8541_s25 = smov [#allocation7]  }
  0x10   : > { %p8659_p11 = pnand %p7540_p9, %p13163_p1  ;;  %s316_s26 = sshll.u32 %s8541_s25, 4  ;;  %s8663_s26 = int_to_ptr.vmem [resolvable:$true] %s316_s26 }
  0x11   : > { %s8382_s29 = scalar_lea.hbm %s13155_s3, 12288 }
  0x12   : > { %p8383_p12 = scmp.ne.s32.totalorder %s13155_s3, %s8382_s29  ;;  %p8384_p13 = pneg %p8659_p11 }
  0x13   : > { %p8389_p5 = scmp.lt.u32.totalorder %s8382_s29, %s13155_s3 }
  0x14   : > { %p8385_p0 = pnand %p8384_p13, %p8383_p12 }
  0x16   : > { %p8386_p3 = pneg %p8385_p0 }
  0x18   : > { %p8391_p7 = pnand %p8389_p5, %p8386_p3 }
  0x1a   : > { %8394 = shalt.err (!%p8391_p7)
}
  0x1b   : > { %s8395_s22 = scalar_lea.vmem %s8652_s23, 12288  ;;  %p8403_p2 = scmp.lt.s32.totalorder %s8652_s23, %s8652_s23 }
  0x1c   : > { %p8396_p9 = scmp.ne.s32.totalorder %s8652_s23, %s8395_s22  ;;  %p8404_p12 = scmp.lt.s32.totalorder %s8395_s22, %s8395_s22 }
  0x1e   : > { %p8398_p10 = pnand %p8396_p9, %p8384_p13  ;;  %p8405_p0 = por %p8404_p12, %p8403_p2 }
  0x20   : > { %p8399_p1 = pneg %p8398_p10 }
  0x22   : > { %p8406_p6 = pnand %p8405_p0, %p8399_p1 }
  0x24   : > { %8409 = shalt.err (!%p8406_p6)
}
  0x25   : > { %s8542_s25 = smov 384   ;;  %s8543_s27 = smov 24  }
  0x26   : > { %7543 = dma.hbm_to_vmem [thread:$0]  (!%p8659_p11), %s13155_s3, 12288, %s8652_s23, [#allocation6], %s8542_s25, %s8542_s25, %s8543_s27  }
  0x27   : > { %s8410_s12 = scalar_lea.hbm %s13160_s8, 4096 }
  0x28   : > { %p8411_p2 = scmp.ne.s32.totalorder %s13160_s8, %s8410_s12  ;;  %p8417_p10 = scmp.lt.u32.totalorder %s8410_s12, %s13160_s8 }
  0x2a   : > { %p8413_p1 = pnand %p8411_p2, %p8384_p13 }
  0x2c   : > { %p8414_p6 = pneg %p8413_p1 }
  0x2e   : > { %p8419_p3 = pnand %p8417_p10, %p8414_p6 }
  0x30   : > { %8422 = shalt.err (!%p8419_p3)
}
  0x31   : > { %s8423_s23 = scalar_lea.vmem %s8663_s26, 4096  ;;  %p8431_p12 = scmp.lt.s32.totalorder %s8663_s26, %s8663_s26 }
  0x32   : > { %p8424_p5 = scmp.ne.s32.totalorder %s8663_s26, %s8423_s23  ;;  %p8432_p0 = scmp.lt.s32.totalorder %s8423_s23, %s8423_s23 }
  0x34   : > { %p8426_p7 = pnand %p8424_p5, %p8384_p13  ;;  %p8433_p2 = por %p8432_p0, %p8431_p12 }
  0x36   : > { %p8427_p9 = pneg %p8426_p7 }
  0x38   : > { %p8434_p1 = pnand %p8433_p2, %p8427_p9 }
  0x3a   : > { %8437 = shalt.err (!%p8434_p1)
}
  0x3b   : > { %s8544_s13 = smov 128   ;;  %s8545_s20 = smov 8  }
  0x3c   : > { %7546 = dma.hbm_to_vmem [thread:$0]  (!%p8659_p11), %s13160_s8, 4096, %s8663_s26, [#allocation6], %s8544_s13, %s8544_s13, %s8545_s20  }
  0x3d   : > { %s8718_s28 = sadd.s32 1, %s8538_s16   ;;  %s34_s30 = sadd.s32 1, %s8534_s15 }
  0x3e   : > { %s31_s29 = ssub.s32 %s8538_s16, %s8718_s28  ;;  %p41_p6 = scmp.ne.s32.totalorder %s8534_s15, %s8530_s14 }
  0x3f   : > { %p32_p13 = scmp.eq.s32.totalorder %s31_s29, 0  ;;  %p42_p10 = scmp.eq.s32.totalorder %s8538_s16, 0 }
  0x40   : > { %p13407_p5 = scmp.eq.s32.totalorder %s8629_s17, 1  ;;  %p7557_p9 = scmp.lt.s32.totalorder %s8538_s16, 2 }
  0x41   : > { %s8727_s11 = scalar_select %p32_p13, %s8534_s15, %s34_s30  }
  0x42   : > { %p43_p3 = por %p42_p10, %p41_p6  ;;  %p8731_p7 = por %p13407_p5, %p41_p6 }
  0x43   : > { %s333_s24 = sand.u32 1, %s8534_s15   ;;  %s7110_s26 = sshll.u32 %s8538_s16, 12 }
  0x44   : > { %s13408_s12 = scalar_select %p8731_p7, 1, 0 }
  0x45   : > { %s6933_s18 = sshll.u32 %s333_s24, 8  ;;  %s8741_s13 = scalar_lea.hbm %s13152_s0, %s7110_s26 }
  0x46   : > { %s337_s20 = scalar_lea.vmem [#allocation2], %s6933_s18  ;;  %p8745_p11 = pnand %p7557_p9, %p43_p3 }
  0x47   : > { %s344_s25 = sshll.u32 %s337_s20, 4  ;;  %s8749_s29 = scalar_lea.sflag [#allocation3], %s333_s24  ;;  %s8743_s25 = int_to_ptr.vmem [resolvable:$true] %s344_s25 }
  0x48   : > { %s8438_s30 = scalar_lea.hbm %s8741_s13, 4096  ;;  %p8440_p0 = pneg %p8745_p11 }
  0x49   : > { %p8439_p12 = scmp.ne.s32.totalorder %s8741_s13, %s8438_s30  ;;  %s8443_s22 = scalar_lea.hbm %s13152_s0, 8192 }
  0x4a   : > { %p8444_p13 = scmp.lt.u32.totalorder %s8741_s13, %s13152_s0  ;;  %p8445_p6 = scmp.lt.u32.totalorder %s8443_s22, %s8438_s30 }
  0x4b   : > { %p8441_p2 = pnand %p8440_p0, %p8439_p12  ;;  %p8447_p3 = scmp.lt.u32.totalorder %s8438_s30, %s8741_s13 }
  0x4c   : > { %p8446_p10 = por %p8445_p6, %p8444_p13 }
  0x4d   : > { %p8442_p1 = pneg %p8441_p2 }
  0x4e   : > { %p8448_p5 = por %p8447_p3, %p8446_p10 }
  0x50   : > { %p8449_p9 = pnand %p8448_p5, %p8442_p1 }
  0x52   : > { %8452 = shalt.err (!%p8449_p9)
}
  0x53   : > { %s8453_s24 = scalar_lea.vmem %s8743_s25, 4096  ;;  %s8546_s18 = smov [#allocation2]  }
  0x54   : > { %p8454_p12 = scmp.ne.s32.totalorder %s8743_s25, %s8453_s24  ;;  %s8458_s26 = sshll.u32 %s8546_s18, 4  ;;  %s8459_s26 = int_to_ptr.vmem [resolvable:$false] %s8458_s26 }
  0x55   : > { %s8460_s23 = scalar_lea.vmem %s8459_s26, 8192  ;;  %p8461_p4 = scmp.lt.s32.totalorder %s8743_s25, %s8459_s26 }
  0x56   : > { %p8456_p2 = pnand %p8454_p12, %p8440_p0  ;;  %p8462_p13 = scmp.lt.s32.totalorder %s8460_s23, %s8453_s24 }
  0x58   : > { %p8457_p7 = pneg %p8456_p2  ;;  %p8463_p6 = por %p8462_p13, %p8461_p4 }
  0x5a   : > { %p8464_p10 = pnand %p8463_p6, %p8457_p7 }
  0x5c   : > { %8467 = shalt.err (!%p8464_p10)
}
  0x5d   : > { %s8547_s30 = smov 256   ;;  %s8548_s22 = smov 16  }
  0x5e   : > { %7550 = dma.hbm_to_vmem [thread:$0]  (!%p8745_p11), %s8741_s13, 4096, %s8743_s25, %s8749_s29, %s8547_s30, %s8547_s30, %s8548_s22  }
  0x5f   : > { %356 = sbr.rel (%p8648_p8) target bundleno = 5340 (0x14dc), region = 60 }
  0x66   : > { %s8780_s20 = sand.u32 1, %s8530_s14   ;;  %p13410_p4 = scmp.ne.s32.totalorder %s13402_s19, 0 }
  0x67   : > { %s6937_s24 = sshll.u32 %s8780_s20, 8  ;;  %s359_s18 = scalar_lea.sflag [#allocation3], %s8780_s20 }
  0x68   : > { %s8786_s26 = scalar_lea.vmem [#allocation2], %s6937_s24 }
  0x69   : > { %8513 = dma.done.wait (%p13410_p4), %s359_s18, 4096  }
  0x6a   : > { %8515 = vsyncadd (%p13410_p4), %s359_s18, 4294963200  ;;  %p13411_p7 = scmp.eq.s32.totalorder %s8629_s17, 0 }
  0x6c   : > { %8517 = dma.done.wait (%p13411_p7), [#allocation6], 16384   ;;  %p13412_p8 = pmov %p13411_p7 }
  0x6d   : > { %v8797_v0 = vld [vmem:[%s8786_s26] sm:$0xff]  ;;  %v8800_v1 = vld [vmem:[%s8786_s26 + $0x8] sm:$0xff]  ;;  %v8811_v5 = vld [vmem:[%s8786_s26 + $0x10] sm:$0xff]  ;;  %s8549_s27 = smov 64   ;;  %vm1718_vm0 = vcmask 523264   ;;  %s13009_s30 = scalar_lea.vmem [#allocation8], %s6937_s24 }
  0x6e   : > { %8519 = vsyncadd (%p13412_p8), [#allocation6], 4294950912  ;;  %v8803_v2 = vld [vmem:[%s8786_s26 + $0x20] sm:$0xff]  ;;  %v442_v3 = vadd.f32 %v8800_v1, %v8797_v0  ;;  %v8808_v4 = vld [vmem:[%s8786_s26 + $0x28] sm:$0xff]  ;;  %s7111_s24 = sshll.u32 %s8629_s17, 12  ;;  %s6836_s22 = sshll.u32 %s13009_s30, 4  ;;  %s13104_s22 = int_to_ptr.vmem [resolvable:$true] %s6836_s22 }
  0x6f   : > { %v8814_v6 = vld [vmem:[%s8786_s26 + $0x18] sm:$0xff]  ;;  %v448_v7 = vadd.f32 %v8808_v4, %v8803_v2  ;;  %v8819_v8 = vld [vmem:[%s8786_s26 + $0x30] sm:$0xff]  ;;  %v8829_v12 = vld [vmem:[%s8786_s26 + $0x40] sm:$0xff]  ;;  %s13102_s17 = scalar_lea.hbm %s13162_s10, %s7111_s24  ;;  %s8468_s21 = scalar_lea.vmem %s13104_s22, 4096 }
  0x70   : > { %v8822_v9 = vld [vmem:[%s8786_s26 + $0x38] sm:$0xff]  ;;  %443 = vadd.xlane.f32.xlu0 %v442_v3  ;;  %v445_v10 = vadd.f32 %v8814_v6, %v8811_v5  ;;  %v8832_v13 = vld [vmem:[%s8786_s26 + $0x48] sm:$0xff]  ;;  %v8835_v14 = vld [vmem:[%s8786_s26 + $0x50] sm:$0xff]  ;;  %p8469_p11 = scmp.ne.s32.totalorder %s13104_s22, %s8468_s21  ;;  %p14014_p0 = scmp.ne.s32.totalorder %s13408_s12, 0 }
  0x71   : > { %449 = vadd.xlane.f32.xlu1 %v448_v7  ;;  %v451_v11 = vadd.f32 %v8822_v9, %v8819_v8  ;;  %v8838_v15 = vld [vmem:[%s8786_s26 + $0x58] sm:$0xff]  ;;  %v454_v16 = vadd.f32 %v8832_v13, %v8829_v12  ;;  %v8845_v18 = vld [vmem:[%s8786_s26 + $0x60] sm:$0xff]  ;;  %v8848_v19 = vld [vmem:[%s8786_s26 + $0x68] sm:$0xff]  ;;  %s8550_s13 = smov [#allocation8]  }
  0x72   : > { %v457_v17 = vadd.f32 %v8838_v15, %v8835_v14  ;;  %v8851_v20 = vld [vmem:[%s8786_s26 + $0x70] sm:$0xff]  ;;  %v8854_v21 = vld [vmem:[%s8786_s26 + $0x78] sm:$0xff]  ;;  %v8857_v22 = vld [vmem:[%s8786_s26 + $0x80] sm:$0xff]  ;;  %v460_v24 = vadd.f32 %v8848_v19, %v8845_v18  ;;  %p8470_p1 = pnand %p8469_p11, %p14014_p0  ;;  %s8472_s25 = sshll.u32 %s8550_s13, 4  ;;  %s8473_s25 = int_to_ptr.vmem [resolvable:$false] %s8472_s25 }
  0x73   : > { %v8860_v23 = vld [vmem:[%s8786_s26 + $0x88] sm:$0xff]  ;;  %v8865_v25 = vld [vmem:[%s8786_s26 + $0x90] sm:$0xff]  ;;  %v8868_v26 = vld [vmem:[%s8786_s26 + $0x98] sm:$0xff]  ;;  %v463_v27 = vadd.f32 %v8854_v21, %v8851_v20  ;;  %s8474_s29 = scalar_lea.vmem %s8473_s25, 8192  ;;  %p8475_p5 = scmp.lt.s32.totalorder %s13104_s22, %s8473_s25 }
  0x74   : > { %446 = vadd.xlane.f32.xlu0 %v445_v10  ;;  %v8873_v28 = vld [vmem:[%s8786_s26 + $0xa0] sm:$0xff]  ;;  %v8876_v29 = vld [vmem:[%s8786_s26 + $0xa8] sm:$0xff]  ;;  %v466_v30 = vadd.f32 %v8860_v23, %v8857_v22  ;;  %v8881_v31 = vld [vmem:[%s8786_s26 + $0xb0] sm:$0xff]  ;;  %v469_v33 = vadd.f32 %v8868_v26, %v8865_v25  ;;  %p8471_p3 = pneg %p8470_p1  ;;  %p8476_p9 = scmp.lt.s32.totalorder %s8474_s29, %s8468_s21 }
  0x75   : > { %452 = vadd.xlane.f32.xlu1 %v451_v11  ;;  %v8884_v32 = vld [vmem:[%s8786_s26 + $0xb8] sm:$0xff]  ;;  %v8889_v34 = vld [vmem:[%s8786_s26 + $0xc0] sm:$0xff]  ;;  %v8892_v35 = vld [vmem:[%s8786_s26 + $0xc8] sm:$0xff]  ;;  %v472_v36 = vadd.f32 %v8876_v29, %v8873_v28 }
  0x76   : > { %v8897_v37 = vld [vmem:[%s8786_s26 + $0xd0] sm:$0xff]  ;;  %v8900_v38 = vld [vmem:[%s8786_s26 + $0xd8] sm:$0xff]  ;;  %v475_v39 = vadd.f32 %v8884_v32, %v8881_v31  ;;  %v8905_v40 = vld [vmem:[%s8786_s26 + $0xe0] sm:$0xff]  ;;  %v478_v42 = vadd.f32 %v8892_v35, %v8889_v34  ;;  %p8477_p12 = por %p8476_p9, %p8475_p5 }
  0x77   : > { %v8908_v41 = vld [vmem:[%s8786_s26 + $0xe8] sm:$0xff]  ;;  %v8913_v43 = vld [vmem:[%s8786_s26 + $0xf0] sm:$0xff]  ;;  %v8916_v44 = vld [vmem:[%s8786_s26 + $0xf8] sm:$0xff]  ;;  %v481_v45 = vadd.f32 %v8900_v38, %v8897_v37 }
  0x78   : > { %455 = vadd.xlane.f32.xlu0 %v454_v16  ;;  %v484_v46 = vadd.f32 %v8908_v41, %v8905_v40  ;;  %v487_v47 = vadd.f32 %v8916_v44, %v8913_v43  ;;  %v7040_v48 = vld [vmem:[%s13159_s7] ss:$0 sm:$0xff]  ;;  %v7604_v50 = vld [vmem:[#allocation5 + $0x4] ss:$24 sps:$4 sm:$0xff]   ;;  %v7606_v51 = vld [vmem:[#allocation5 + $0x14] ss:$24 sps:$4 sm:$0xff]   ;;  %p8478_p2 = pnand %p8477_p12, %p8471_p3 }
  0x79   : > { %458 = vadd.xlane.f32.xlu1 %v457_v17  ;;  %v7039_v49 = vld [vmem:[%s13158_s6] ss:$0 sm:$0xff]  ;;  %v7609_v53 = vld [vmem:[#allocation5 + $0x10] ss:$24 sps:$4 sm:$0xff]   ;;  %v7610_v54 = vld [vmem:[#allocation5 + $0x34] ss:$24 sps:$4 sm:$0xff]   ;;  %1377 = vmatprep.subr.bf16.mxu1 %v7604_v50 }
  0x7a   : > { %v7608_v52 = vld [vmem:[#allocation5] ss:$24 sps:$4 sm:$0xff]   ;;  %v7612_v55 = vld [vmem:[#allocation5 + $0x44] ss:$24 sps:$4 sm:$0xff]   ;;  %1603 = vmatprep.subr.bf16.mxu0 %v7606_v51  ;;  %v7614_v56 = vld [vmem:[#allocation5 + $0x30] ss:$24 sps:$4 sm:$0xff]  }
  0x7b   : > { %1378 = vmatpush1.bf16.msra.mxu1 %v7608_v52  ;;  %1604 = vmatpush1.bf16.msra.mxu0 %v7609_v53  ;;  %v7615_v57 = vld [vmem:[#allocation5 + $0x40] ss:$24 sps:$4 sm:$0xff]   ;;  %v7616_v58 = vld [vmem:[#allocation5 + $0x64] ss:$24 sps:$4 sm:$0xff]   ;;  %v7618_v59 = vld [vmem:[#allocation5 + $0x74] ss:$24 sps:$4 sm:$0xff]  }
  0x7c   : > { %461 = vadd.xlane.f32.xlu0 %v460_v24  ;;  %1379 = vmatprep.subr.bf16.mxu1 %v7610_v54  ;;  %v7620_v60 = vld [vmem:[#allocation5 + $0x60] ss:$24 sps:$4 sm:$0xff]   ;;  %v7621_v61 = vld [vmem:[#allocation5 + $0x70] ss:$24 sps:$4 sm:$0xff]   ;;  %v7622_v62 = vld [vmem:[#allocation5 + $0x94] ss:$24 sps:$4 sm:$0xff]  }
  0x7d   : > { %464 = vadd.xlane.f32.xlu1 %v463_v27  ;;  %1605 = vmatprep.subr.bf16.mxu0 %v7612_v55  ;;  %v7624_v63 = vld [vmem:[#allocation5 + $0xa4] ss:$24 sps:$4 sm:$0xff]   ;;  %v7626_v3 = vld [vmem:[#allocation5 + $0x90] ss:$24 sps:$4 sm:$0xff]   ;;  %v7627_v7 = vld [vmem:[#allocation5 + $0xa0] ss:$24 sps:$4 sm:$0xff]  }
  0x7e   : > { %v7628_v10 = vld [vmem:[#allocation5 + $0xc4] ss:$24 sps:$4 sm:$0xff]   ;;  %v7630_v11 = vld [vmem:[#allocation5 + $0xd4] ss:$24 sps:$4 sm:$0xff]   ;;  %v7632_v16 = vld [vmem:[#allocation5 + $0xc0] ss:$24 sps:$4 sm:$0xff]  }
  0x7f   : > { %1380 = vmatpush1.bf16.msra.mxu1 %v7614_v56  ;;  %1606 = vmatpush1.bf16.msra.mxu0 %v7615_v57  ;;  %v7633_v17 = vld [vmem:[#allocation5 + $0xd0] ss:$24 sps:$4 sm:$0xff]   ;;  %v7634_v24 = vld [vmem:[#allocation5 + $0xf4] ss:$24 sps:$4 sm:$0xff]   ;;  %v7636_v27 = vld [vmem:[#allocation5 + $0x104] ss:$24 sps:$4 sm:$0xff]  }
  0x80   : > { %467 = vadd.xlane.f32.xlu0 %v466_v30  ;;  %1381 = vmatprep.subr.bf16.mxu1 %v7616_v58  ;;  %v7638_v30 = vld [vmem:[#allocation5 + $0xf0] ss:$24 sps:$4 sm:$0xff]   ;;  %v7652_v50 = vld [vmem:[#allocation5 + $0x184] ss:$24 sps:$4 sm:$0xff]   ;;  %v7654_v51 = vld [vmem:[#allocation5 + $0x194] ss:$24 sps:$4 sm:$0xff]  }
  0x81   : > { %470 = vadd.xlane.f32.xlu1 %v469_v33  ;;  %1607 = vmatprep.subr.bf16.mxu0 %v7618_v59  ;;  %v7639_v33 = vld [vmem:[#allocation5 + $0x100] ss:$24 sps:$4 sm:$0xff]   ;;  %v7657_v53 = vld [vmem:[#allocation5 + $0x190] ss:$24 sps:$4 sm:$0xff]  }
  0x82   : > { %v7656_v52 = vld [vmem:[#allocation5 + $0x180] ss:$24 sps:$4 sm:$0xff]  }
  0x83   : > { %1382 = vmatpush1.bf16.msra.mxu1 %v7620_v60  ;;  %1608 = vmatpush1.bf16.msra.mxu0 %v7621_v61 }
  0x84   : > { %473 = vadd.xlane.f32.xlu0 %v472_v36  ;;  %1383 = vmatprep.subr.bf16.mxu1 %v7622_v62  ;;  %v7640_v36 = vld [vmem:[#allocation5 + $0x124] ss:$24 sps:$4 sm:$0xff]  }
  0x85   : > { %476 = vadd.xlane.f32.xlu1 %v475_v39  ;;  %1609 = vmatprep.subr.bf16.mxu0 %v7624_v63  ;;  %v7642_v39 = vld [vmem:[#allocation5 + $0x134] ss:$24 sps:$4 sm:$0xff]  }
  0x87   : > { %1384 = vmatpush1.bf16.msra.mxu1 %v7626_v3  ;;  %1610 = vmatpush1.bf16.msra.mxu0 %v7627_v7 }
  0x88   : > { %479 = vadd.xlane.f32.xlu0 %v478_v42  ;;  %1385 = vmatprep.subr.bf16.mxu1 %v7628_v10  ;;  %v7644_v42 = vld [vmem:[#allocation5 + $0x120] ss:$24 sps:$4 sm:$0xff]  }
  0x89   : > { %482 = vadd.xlane.f32.xlu1 %v481_v45  ;;  %1611 = vmatprep.subr.bf16.mxu0 %v7630_v11  ;;  %v7645_v45 = vld [vmem:[#allocation5 + $0x130] ss:$24 sps:$4 sm:$0xff]  }
  0x8b   : > { %1386 = vmatpush1.bf16.msra.mxu1 %v7632_v16  ;;  %1612 = vmatpush1.bf16.msra.mxu0 %v7633_v17 }
  0x8c   : > { %485 = vadd.xlane.f32.xlu0 %v484_v46  ;;  %1387 = vmatprep.subr.bf16.mxu1 %v7634_v24  ;;  %v7646_v46 = vld [vmem:[#allocation5 + $0x154] ss:$24 sps:$4 sm:$0xff]  }
  0x8d   : > { %488 = vadd.xlane.f32.xlu1 %v487_v47  ;;  %1613 = vmatprep.subr.bf16.mxu0 %v7636_v27  ;;  %v7648_v47 = vld [vmem:[#allocation5 + $0x164] ss:$24 sps:$4 sm:$0xff]  }
  0x8f   : > { %1388 = vmatpush1.bf16.msra.mxu1 %v7638_v30  ;;  %1614 = vmatpush1.bf16.msra.mxu0 %v7639_v33 }
  0x90   : > { %1389 = vmatprep.subr.bf16.mxu1 %v7640_v36  ;;  %1615 = vmatprep.subr.bf16.mxu0 %v7642_v39 }
  0x93   : > { %1390 = vmatpush1.bf16.msra.mxu1 %v7644_v42  ;;  %1616 = vmatpush1.bf16.msra.mxu0 %v7645_v45 }
  0x94   : > { %1391 = vmatprep.subr.bf16.mxu1 %v7646_v46  ;;  %1617 = vmatprep.subr.bf16.mxu0 %v7648_v47 }
  0x9e   : > { %3448 = vrot.lane.b32.xlu1 %v7040_v48, %s8549_s27  ;;  %v7650_v48 = vld [vmem:[#allocation5 + $0x150] ss:$24 sps:$4 sm:$0xff]  }
  0x9f   : > { %1392 = vmatpush1.bf16.msra.mxu1 %v7650_v48 }
  0xa0   : > { %1393 = vmatprep.subr.bf16.mxu1 %v7652_v50 }
  0xa2   : > { %3429 = vrot.lane.b32.xlu0 %v7039_v49, %s8549_s27  ;;  %v7651_v49 = vld [vmem:[#allocation5 + $0x160] ss:$24 sps:$4 sm:$0xff]  }
  0xa3   : > { %1618 = vmatpush1.bf16.msra.mxu0 %v7651_v49  ;;  %1394 = vmatpush1.bf16.msra.mxu1 %v7656_v52 }
  0xa4   : > { %1619 = vmatprep.subr.bf16.mxu0 %v7654_v51 }
  0xa7   : > { %1620 = vmatpush1.bf16.msra.mxu0 %v7657_v53 }
  0xfd   : > { %v444_v54 = vpop.xlane.xlu0 %443 }
  0xfe   : > { %v491_v55 = vmul.f32 0.00390625, %v444_v54  ;;  %v450_v56 = vpop.xlane.xlu1 %449 }
  0xff   : > { %v493_v57 = vmul.f32 0.00390625, %v450_v56 }
 0x100   : > { %v8933_v58 = vsub.f32 %v8797_v0, %v491_v55  ;;  %v8936_v59 = vsub.f32 %v8800_v1, %v491_v55 }
 0x101   : > { %v8939_v60 = vsub.f32 %v8803_v2, %v493_v57  ;;  %v8942_v61 = vsub.f32 %v8808_v4, %v493_v57  ;;  %v447_v62 = vpop.xlane.xlu0 %446 }
 0x102   : > { %v492_v63 = vmul.f32 0.00390625, %v447_v62  ;;  %v453_v3 = vpop.xlane.xlu1 %452  ;;  %v539_v7 = vmul.f32 %v8933_v58, %v8933_v58  ;;  %v540_v10 = vmul.f32 %v8936_v59, %v8936_v59 }
 0x103   : > { %v494_v0 = vmul.f32 0.00390625, %v453_v3  ;;  %v543_v1 = vmul.f32 %v8939_v60, %v8939_v60  ;;  %v544_v2 = vmul.f32 %v8942_v61, %v8942_v61 }
 0x104   : > { %v8953_v11 = vsub.f32 %v8811_v5, %v492_v63  ;;  %v8956_v4 = vsub.f32 %v8814_v6, %v492_v63  ;;  %v571_v16 = vadd.f32 %v540_v10, %v539_v7 }
 0x105   : > { %v8959_v17 = vsub.f32 %v8819_v8, %v494_v0  ;;  %v8962_v24 = vsub.f32 %v8822_v9, %v494_v0  ;;  %v456_v27 = vpop.xlane.xlu0 %455  ;;  %v577_v36 = vadd.f32 %v544_v2, %v543_v1 }
 0x106   : > { %v495_v30 = vmul.f32 0.00390625, %v456_v27  ;;  %572 = vadd.xlane.f32.xlu0 %v571_v16  ;;  %v459_v33 = vpop.xlane.xlu1 %458  ;;  %v541_v39 = vmul.f32 %v8953_v11, %v8953_v11  ;;  %v542_v5 = vmul.f32 %v8956_v4, %v8956_v4 }
 0x107   : > { %v496_v6 = vmul.f32 0.00390625, %v459_v33  ;;  %v545_v42 = vmul.f32 %v8959_v17, %v8959_v17  ;;  %v546_v8 = vmul.f32 %v8962_v24, %v8962_v24 }
 0x108   : > { %v8973_v9 = vsub.f32 %v8829_v12, %v495_v30  ;;  %v8976_v45 = vsub.f32 %v8832_v13, %v495_v30  ;;  %v574_v46 = vadd.f32 %v542_v5, %v541_v39 }
 0x109   : > { %v8979_v47 = vsub.f32 %v8835_v14, %v496_v6  ;;  %v8982_v48 = vsub.f32 %v8838_v15, %v496_v6  ;;  %v462_v49 = vpop.xlane.xlu0 %461  ;;  %v580_v52 = vadd.f32 %v546_v8, %v545_v42  ;;  %v7658_v6 = vld [vmem:[#allocation5 + $0x1b4] ss:$24 sps:$4 sm:$0xff]   ;;  %v7660_v42 = vld [vmem:[#allocation5 + $0x1c4] ss:$24 sps:$4 sm:$0xff]  }
 0x10a   : > { %v497_v50 = vmul.f32 0.00390625, %v462_v49  ;;  %578 = vadd.xlane.f32.xlu0 %v577_v36  ;;  %575 = vadd.xlane.f32.xlu1 %v574_v46  ;;  %v465_v51 = vpop.xlane.xlu1 %464  ;;  %v547_v12 = vmul.f32 %v8973_v9, %v8973_v9  ;;  %v548_v13 = vmul.f32 %v8976_v45, %v8976_v45  ;;  %v7662_v46 = vld [vmem:[#allocation5 + $0x1b0] ss:$24 sps:$4 sm:$0xff]   ;;  %v7663_v49 = vld [vmem:[#allocation5 + $0x1c0] ss:$24 sps:$4 sm:$0xff]  }
 0x10b   : > { %v498_v53 = vmul.f32 0.00390625, %v465_v51  ;;  %v549_v14 = vmul.f32 %v8979_v47, %v8979_v47  ;;  %v550_v15 = vmul.f32 %v8982_v48, %v8982_v48  ;;  %1395 = vmatprep.subr.bf16.mxu1 %v7658_v6  ;;  %1621 = vmatprep.subr.bf16.mxu0 %v7660_v42  ;;  %v7672_v6 = vld [vmem:[#allocation5 + $0x224] ss:$24 sps:$4 sm:$0xff]  }
 0x10c   : > { %v8993_v54 = vsub.f32 %v8845_v18, %v497_v50  ;;  %v8996_v55 = vsub.f32 %v8848_v19, %v497_v50  ;;  %v583_v56 = vadd.f32 %v548_v13, %v547_v12  ;;  %1396 = vmatpush1.bf16.msra.mxu1 %v7662_v46  ;;  %1622 = vmatpush1.bf16.msra.mxu0 %v7663_v49  ;;  %v7675_v46 = vld [vmem:[#allocation5 + $0x220] ss:$24 sps:$4 sm:$0xff]  }
 0x10d   : > { %v8999_v57 = vsub.f32 %v8851_v20, %v498_v53  ;;  %v9002_v62 = vsub.f32 %v8854_v21, %v498_v53  ;;  %v468_v63 = vpop.xlane.xlu0 %467  ;;  %v586_v10 = vadd.f32 %v550_v15, %v549_v14 }
 0x10e   : > { %v499_v3 = vmul.f32 0.00390625, %v468_v63  ;;  %581 = vadd.xlane.f32.xlu1 %v580_v52  ;;  %584 = vadd.xlane.f32.xlu0 %v583_v56  ;;  %v471_v7 = vpop.xlane.xlu1 %470  ;;  %v551_v18 = vmul.f32 %v8993_v54, %v8993_v54  ;;  %v552_v19 = vmul.f32 %v8996_v55, %v8996_v55 }
 0x10f   : > { %v500_v0 = vmul.f32 0.00390625, %v471_v7  ;;  %v553_v20 = vmul.f32 %v8999_v57, %v8999_v57  ;;  %v554_v21 = vmul.f32 %v9002_v62, %v9002_v62  ;;  %v7666_v7 = vld [vmem:[#allocation5 + $0x1f4] ss:$24 sps:$4 sm:$0xff]  }
 0x110   : > { %v9013_v1 = vsub.f32 %v8857_v22, %v499_v3  ;;  %v9016_v2 = vsub.f32 %v8860_v23, %v499_v3  ;;  %v589_v16 = vadd.f32 %v552_v19, %v551_v18  ;;  %v7664_v3 = vld [vmem:[#allocation5 + $0x1e4] ss:$24 sps:$4 sm:$0xff]   ;;  %1623 = vmatprep.subr.bf16.mxu0 %v7666_v7  ;;  %v7687_v7 = vld [vmem:[#allocation5 + $0x280] ss:$24 sps:$4 sm:$0xff]  }
 0x111   : > { %v9019_v27 = vsub.f32 %v8865_v25, %v500_v0  ;;  %v9022_v30 = vsub.f32 %v8868_v26, %v500_v0  ;;  %v474_v33 = vpop.xlane.xlu0 %473  ;;  %v592_v5 = vadd.f32 %v554_v21, %v553_v20  ;;  %v7668_v0 = vld [vmem:[#allocation5 + $0x1e0] ss:$24 sps:$4 sm:$0xff]   ;;  %v7669_v20 = vld [vmem:[#allocation5 + $0x1f0] ss:$24 sps:$4 sm:$0xff]   ;;  %1397 = vmatprep.subr.bf16.mxu1 %v7664_v3 }
 0x112   : > { %v501_v36 = vmul.f32 0.00390625, %v474_v33  ;;  %587 = vadd.xlane.f32.xlu1 %v586_v10  ;;  %590 = vadd.xlane.f32.xlu0 %v589_v16  ;;  %v477_v39 = vpop.xlane.xlu1 %476  ;;  %v555_v22 = vmul.f32 %v9013_v1, %v9013_v1  ;;  %v556_v23 = vmul.f32 %v9016_v2, %v9016_v2  ;;  %v7686_v3 = vld [vmem:[#allocation5 + $0x270] ss:$24 sps:$4 sm:$0xff]  }
 0x113   : > { %v502_v8 = vmul.f32 0.00390625, %v477_v39  ;;  %v557_v25 = vmul.f32 %v9019_v27, %v9019_v27  ;;  %v558_v26 = vmul.f32 %v9022_v30, %v9022_v30  ;;  %1398 = vmatpush1.bf16.msra.mxu1 %v7668_v0  ;;  %1624 = vmatpush1.bf16.msra.mxu0 %v7669_v20  ;;  %v7690_v0 = vld [vmem:[#allocation5 + $0x2b4] ss:$24 sps:$4 sm:$0xff]   ;;  %v7692_v20 = vld [vmem:[#allocation5 + $0x2a0] ss:$24 sps:$4 sm:$0xff]  }
 0x114   : > { %v9033_v50 = vsub.f32 %v8873_v28, %v501_v36  ;;  %v9036_v51 = vsub.f32 %v8876_v29, %v501_v36  ;;  %v595_v52 = vadd.f32 %v556_v23, %v555_v22  ;;  %v7670_v23 = vld [vmem:[#allocation5 + $0x214] ss:$24 sps:$4 sm:$0xff]   ;;  %1625 = vmatprep.subr.bf16.mxu0 %v7672_v6 }
 0x115   : > { %v9039_v12 = vsub.f32 %v8881_v31, %v502_v8  ;;  %v9042_v13 = vsub.f32 %v8884_v32, %v502_v8  ;;  %v480_v53 = vpop.xlane.xlu0 %479  ;;  %v598_v15 = vadd.f32 %v558_v26, %v557_v25  ;;  %v7674_v26 = vld [vmem:[#allocation5 + $0x210] ss:$24 sps:$4 sm:$0xff]   ;;  %1399 = vmatprep.subr.bf16.mxu1 %v7670_v23 }
 0x116   : > { %v503_v14 = vmul.f32 0.00390625, %v480_v53  ;;  %593 = vadd.xlane.f32.xlu1 %v592_v5  ;;  %596 = vadd.xlane.f32.xlu0 %v595_v52  ;;  %v483_v28 = vpop.xlane.xlu1 %482  ;;  %v559_v29 = vmul.f32 %v9033_v50, %v9033_v50  ;;  %v560_v56 = vmul.f32 %v9036_v51, %v9036_v51 }
 0x117   : > { %v504_v63 = vmul.f32 0.00390625, %v483_v28  ;;  %v561_v31 = vmul.f32 %v9039_v12, %v9039_v12  ;;  %v562_v32 = vmul.f32 %v9042_v13, %v9042_v13  ;;  %1400 = vmatpush1.bf16.msra.mxu1 %v7674_v26  ;;  %1626 = vmatpush1.bf16.msra.mxu0 %v7675_v46  ;;  %v7678_v28 = vld [vmem:[#allocation5 + $0x254] ss:$24 sps:$4 sm:$0xff]  }
 0x118   : > { %v9053_v10 = vsub.f32 %v8889_v34, %v503_v14  ;;  %v9056_v18 = vsub.f32 %v8892_v35, %v503_v14  ;;  %v601_v19 = vadd.f32 %v560_v56, %v559_v29  ;;  %v7680_v29 = vld [vmem:[#allocation5 + $0x240] ss:$24 sps:$4 sm:$0xff]   ;;  %v7681_v56 = vld [vmem:[#allocation5 + $0x250] ss:$24 sps:$4 sm:$0xff]   ;;  %1627 = vmatprep.subr.bf16.mxu0 %v7678_v28 }
 0x119   : > { %v9059_v21 = vsub.f32 %v8897_v37, %v504_v63  ;;  %v9062_v16 = vsub.f32 %v8900_v38, %v504_v63  ;;  %v486_v33 = vpop.xlane.xlu0 %485  ;;  %v604_v39 = vadd.f32 %v562_v32, %v561_v31  ;;  %v7682_v31 = vld [vmem:[#allocation5 + $0x274] ss:$24 sps:$4 sm:$0xff]   ;;  %v7684_v32 = vld [vmem:[#allocation5 + $0x284] ss:$24 sps:$4 sm:$0xff]  }
 0x11a   : > { %v505_v36 = vmul.f32 0.00390625, %v486_v33  ;;  %599 = vadd.xlane.f32.xlu1 %v598_v15  ;;  %602 = vadd.xlane.f32.xlu0 %v601_v19  ;;  %v489_v34 = vpop.xlane.xlu1 %488  ;;  %v563_v35 = vmul.f32 %v9053_v10, %v9053_v10  ;;  %v564_v5 = vmul.f32 %v9056_v18, %v9056_v18  ;;  %v7688_v19 = vld [vmem:[#allocation5 + $0x2a4] ss:$24 sps:$4 sm:$0xff]   ;;  %v7693_v33 = vld [vmem:[#allocation5 + $0x2b0] ss:$24 sps:$4 sm:$0xff]  }
 0x11b   : > { %v506_v22 = vmul.f32 0.00390625, %v489_v34  ;;  %v565_v37 = vmul.f32 %v9059_v21, %v9059_v21  ;;  %v566_v38 = vmul.f32 %v9062_v16, %v9062_v16  ;;  %1628 = vmatpush1.bf16.msra.mxu0 %v7681_v56  ;;  %v7696_v34 = vld [vmem:[#allocation5 + $0x2e4] ss:$24 sps:$4 sm:$0xff]  }
 0x11c   : > { %v9073_v42 = vsub.f32 %v8905_v40, %v505_v36  ;;  %v9076_v8 = vsub.f32 %v8908_v41, %v505_v36  ;;  %v607_v25 = vadd.f32 %v564_v5, %v563_v35  ;;  %1629 = vmatprep.subr.bf16.mxu0 %v7684_v32  ;;  %v7694_v36 = vld [vmem:[#allocation5 + $0x2d4] ss:$24 sps:$4 sm:$0xff]   ;;  %v7699_v35 = vld [vmem:[#allocation5 + $0x2e0] ss:$24 sps:$4 sm:$0xff]  }
 0x11d   : > { %v9079_v49 = vsub.f32 %v8913_v43, %v506_v22  ;;  %v9082_v52 = vsub.f32 %v8916_v44, %v506_v22  ;;  %v610_v53 = vadd.f32 %v566_v38, %v565_v37  ;;  %v7676_v44 = vld [vmem:[#allocation5 + $0x244] ss:$24 sps:$4 sm:$0xff]   ;;  %v9092_v22 = vpop.permute.xlu0 %3429 }
 0x11e   : > { %605 = vadd.xlane.f32.xlu1 %v604_v39  ;;  %608 = vadd.xlane.f32.xlu0 %v607_v25  ;;  %v567_v40 = vmul.f32 %v9073_v42, %v9073_v42  ;;  %v568_v41 = vmul.f32 %v9076_v8, %v9076_v8  ;;  %v7698_v39 = vld [vmem:[#allocation5 + $0x2d0] ss:$24 sps:$4 sm:$0xff]   ;;  %v7702_v5 = vld [vmem:[#allocation5 + $0xc] ss:$24 sps:$4 sm:$0xff]   ;;  %13413 = vst [vmem:[#allocation14_spill] sm:$0xff] %v9092_v22  ;;  %v9094_v37 = vpop.permute.xlu1 %3448  ;;  %v13168_v25 = vlaneseq }
 0x11f   : > { %v569_v14 = vmul.f32 %v9079_v49, %v9079_v49  ;;  %v570_v43 = vmul.f32 %v9082_v52, %v9082_v52  ;;  %1401 = vmatprep.subr.bf16.mxu1 %v7676_v44  ;;  %1630 = vmatpush1.bf16.msra.mxu0 %v7687_v7  ;;  %13414 = vst [vmem:[#allocation15_spill] sm:$0xff] %v9094_v37 }
 0x120   : > { %v613_v15 = vadd.f32 %v568_v41, %v567_v40  ;;  %1402 = vmatpush1.bf16.msra.mxu1 %v7680_v29  ;;  %1631 = vmatprep.subr.bf16.mxu0 %v7690_v0 }
 0x121   : > { %v616_v63 = vadd.f32 %v570_v43, %v569_v14  ;;  %1403 = vmatprep.subr.bf16.mxu1 %v7682_v31  ;;  %v701_v43 = vshrl.u32 %v13168_v25, 7 }
 0x122   : > { %611 = vadd.xlane.f32.xlu1 %v610_v53  ;;  %614 = vadd.xlane.f32.xlu0 %v613_v15 }
 0x123   : > { %1632 = vmatpush1.bf16.msra.mxu0 %v7693_v33  ;;  %v9097_v31 = vsub.s32 1, %v701_v43  ;;  %v9099_v32 = vsub.s32 0, %v701_v43 }
 0x124   : > { %1404 = vmatpush1.bf16.msra.mxu1 %v7686_v3  ;;  %1633 = vmatprep.subr.bf16.mxu0 %v7696_v34  ;;  %v441_v34 = vld [vmem:[%s13154_s2] sm:$0x3] }
 0x125   : > { %1405 = vmatprep.subr.bf16.mxu1 %v7688_v19  ;;  %13415 = vst [vmem:[#allocation16_spill] sm:$0xff] %v9097_v31  ;;  %13416 = vst [vmem:[#allocation17_spill] sm:$0xff] %v9099_v32  ;;  %v440_v19 = vld [vmem:[%s13153_s1] sm:$0x3] }
 0x126   : > { %617 = vadd.xlane.f32.xlu1 %v616_v63 }
 0x127   : > { %1634 = vmatpush1.bf16.msra.mxu0 %v7699_v35  ;;  %v9111_v35 = vrot.slane %v440_v19, %v9099_v32 }
 0x128   : > { %1406 = vmatpush1.bf16.msra.mxu1 %v7692_v20 }
 0x129   : > { %1407 = vmatprep.subr.bf16.mxu1 %v7694_v36 }
 0x12c   : > { %1408 = vmatpush1.bf16.msra.mxu1 %v7698_v39  ;;  %v9108_v39 = vrot.slane %v440_v19, %v9097_v31 }
 0x12d   : > { %1490 = vmatprep.subr.bf16.mxu1 %v7702_v5 }
 0x193   : > { %v573_v38 = vpop.xlane.xlu0 %572 }
 0x194   : > { %v619_v23 = vmul.f32 0.00390625, %v573_v38 }
 0x196   : > { %v635_v6 = vadd.f32 1e-05, %v619_v23 }
 0x197   : > { %v576_v26 = vpop.xlane.xlu1 %575  ;;  %v579_v46 = vpop.xlane.xlu0 %578 }
 0x198   : > { %7796 = vrsqrt.f32 %v635_v6  ;;  %v620_v53 = vmul.f32 0.00390625, %v576_v26  ;;  %v621_v40 = vmul.f32 0.00390625, %v579_v46 }
 0x19a   : > { %v636_v41 = vadd.f32 1e-05, %v620_v53  ;;  %v637_v14 = vadd.f32 1e-05, %v621_v40  ;;  %v9116_v53 = vrot.slane %v441_v34, %v9097_v31 }
 0x19b   : > { %v582_v44 = vpop.xlane.xlu1 %581  ;;  %v585_v28 = vpop.xlane.xlu0 %584 }
 0x19c   : > { %7798 = vrsqrt.f32 %v636_v41  ;;  %v622_v15 = vmul.f32 0.00390625, %v582_v44  ;;  %v623_v29 = vmul.f32 0.00390625, %v585_v28  ;;  %v9121_v44 = vrot.slane %v441_v34, %v9099_v32 }
 0x19d   : > { %7800 = vrsqrt.f32 %v637_v14 }
 0x19e   : > { %v638_v56 = vadd.f32 1e-05, %v622_v15  ;;  %v639_v63 = vadd.f32 1e-05, %v623_v29 }
 0x19f   : > { %v588_v3 = vpop.xlane.xlu1 %587  ;;  %v591_v7 = vpop.xlane.xlu0 %590 }
 0x1a0   : > { %7802 = vrsqrt.f32 %v638_v56  ;;  %v624_v0 = vmul.f32 0.00390625, %v588_v3  ;;  %v625_v20 = vmul.f32 0.00390625, %v591_v7 }
 0x1a1   : > { %7804 = vrsqrt.f32 %v639_v63 }
 0x1a2   : > { %v7797_v33 = vpop.eup %7796  ;;  %v640_v36 = vadd.f32 1e-05, %v624_v0  ;;  %v641_v5 = vadd.f32 1e-05, %v625_v20 }
 0x1a3   : > { %v594_v38 = vpop.xlane.xlu1 %593  ;;  %v668_v23 = vmul.f32 %v7797_v33, %v8936_v59  ;;  %v667_v6 = vmul.f32 %v7797_v33, %v8933_v58  ;;  %v597_v46 = vpop.xlane.xlu0 %596 }
 0x1a4   : > { %7806 = vrsqrt.f32 %v640_v36  ;;  %v626_v26 = vmul.f32 0.00390625, %v594_v38  ;;  %v627_v29 = vmul.f32 0.00390625, %v597_v46 }
 0x1a5   : > { %v711_v14 = vmul.f32 %v9108_v39, %v668_v23  ;;  %v710_v43 = vmul.f32 %v9111_v35, %v667_v6  ;;  %7808 = vrsqrt.f32 %v641_v5 }
 0x1a6   : > { %v7799_v40 = vpop.eup %7798  ;;  %v642_v41 = vadd.f32 1e-05, %v626_v26  ;;  %v643_v23 = vadd.f32 1e-05, %v627_v29 }
 0x1a7   : > { %v7801_v28 = vpop.eup %7800  ;;  %v600_v59 = vpop.xlane.xlu1 %599  ;;  %v670_v58 = vmul.f32 %v7799_v40, %v8956_v4  ;;  %v669_v15 = vmul.f32 %v7799_v40, %v8953_v11  ;;  %v754_v20 = vadd.f32 %v9116_v53, %v711_v14  ;;  %v753_v33 = vadd.f32 %v9121_v44, %v710_v43 }
 0x1a8   : > { %7810 = vrsqrt.f32 %v642_v41  ;;  %v628_v56 = vmul.f32 0.00390625, %v600_v59  ;;  %v672_v63 = vmul.f32 %v7801_v28, %v8942_v61  ;;  %v671_v6 = vmul.f32 %v7801_v28, %v8939_v60  ;;  %v603_v26 = vpop.xlane.xlu0 %602  ;;  %v7700_v41 = vld [vmem:[#allocation5 + $0x8] ss:$24 sps:$4 sm:$0xff]  }
 0x1a9   : > { %v713_v3 = vmul.f32 %v9108_v39, %v670_v58  ;;  %v712_v7 = vmul.f32 %v9111_v35, %v669_v15  ;;  %v629_v29 = vmul.f32 0.00390625, %v603_v26 }
 0x1aa   : > { %v7803_v19 = vpop.eup %7802  ;;  %v644_v0 = vadd.f32 1e-05, %v628_v56  ;;  %v715_v36 = vmul.f32 %v9108_v39, %v672_v63  ;;  %v714_v56 = vmul.f32 %v9111_v35, %v671_v6  ;;  %v7706_v6 = vld [vmem:[#allocation5 + $0x68] ss:$24 sps:$4 sm:$0xff]  }
 0x1ab   : > { %v606_v4 = vpop.xlane.xlu1 %605  ;;  %v756_v11 = vadd.f32 %v9116_v53, %v713_v3  ;;  %v755_v34 = vadd.f32 %v9121_v44, %v712_v7  ;;  %v674_v5 = vmul.f32 %v7803_v19, %v8962_v24  ;;  %v673_v61 = vmul.f32 %v7803_v19, %v8959_v17  ;;  %v7805_v38 = vpop.eup %7804  ;;  %v7705_v24 = vld [vmem:[#allocation5 + $0x3c] ss:$24 sps:$4 sm:$0xff]   ;;  %v7703_v7 = vld [vmem:[#allocation5 + $0x38] ss:$24 sps:$4 sm:$0xff]  }
 0x1ac   : > { %7812 = vrsqrt.f32 %v644_v0  ;;  %v630_v59 = vmul.f32 0.00390625, %v606_v4  ;;  %v758_v58 = vadd.f32 %v9116_v53, %v715_v36  ;;  %v676_v28 = vmul.f32 %v7805_v38, %v8976_v45 }
 0x1ad   : > { %v9136_v46 = vpack.c.bf16 %v756_v11, %v754_v20  ;;  %v9138_v40 = vpack.c.bf16 %v755_v34, %v753_v33  ;;  %v717_v14 = vmul.f32 %v9108_v39, %v674_v5  ;;  %v716_v17 = vmul.f32 %v9111_v35, %v673_v61 }
 0x1ae   : > { %v7807_v43 = vpop.eup %7806  ;;  %7814 = vrsqrt.f32 %v643_v23  ;;  %v719_v19 = vmul.f32 %v9108_v39, %v676_v28  ;;  %v646_v20 = vadd.f32 1e-05, %v630_v59  ;;  %v645_v11 = vadd.f32 1e-05, %v629_v29  ;;  %v609_v23 = vpop.xlane.xlu0 %608 }
 0x1af   : > { %1409 = vmatprep.mubr.bf16.mxu1 %v9136_v46  ;;  %1635 = vmatprep.mubr.bf16.mxu0 %v9136_v46  ;;  %v760_v60 = vadd.f32 %v9116_v53, %v717_v14  ;;  %v678_v15 = vmul.f32 %v7807_v43, %v8982_v48  ;;  %v7809_v63 = vpop.eup %7808  ;;  %v759_v45 = vadd.f32 %v9121_v44, %v716_v17  ;;  %v7708_v48 = vld [vmem:[#allocation5 + $0x6c] ss:$24 sps:$4 sm:$0xff]   ;;  %v612_v36 = vpop.xlane.xlu1 %611  ;;  %v631_v17 = vmul.f32 0.00390625, %v609_v23 }
 0x1b0   : > { %1410 = vmatmul.mubr.bf16.vlgmr.msra.gmra.mrb[0].mxu1 %v9138_v40  ;;  %1636 = vmatmul.mubr.bf16.vlgmr.msra.gmra.mrb[0].mxu0 %v9138_v40  ;;  %v677_v4 = vmul.f32 %v7807_v43, %v8979_v47  ;;  %v757_v34 = vadd.f32 %v9121_v44, %v714_v56  ;;  %v675_v61 = vmul.f32 %v7805_v38, %v8973_v9  ;;  %7816 = vrsqrt.f32 %v646_v20  ;;  %v7711_v47 = vld [vmem:[#allocation5 + $0x9c] ss:$24 sps:$4 sm:$0xff]   ;;  %v7714_v56 = vld [vmem:[#allocation5 + $0xcc] ss:$24 sps:$4 sm:$0xff]  }
 0x1b1   : > { %1491 = vmatpush1.bf16.msra.mxu1 %v7700_v41  ;;  %v9151_v3 = vpack.c.bf16 %v760_v60, %v758_v58  ;;  %v721_v33 = vmul.f32 %v9108_v39, %v678_v15  ;;  %v762_v26 = vadd.f32 %v9116_v53, %v719_v19  ;;  %v680_v41 = vmul.f32 %v7809_v63, %v8996_v55 }
 0x1b2   : > { %v7811_v0 = vpop.eup %7810  ;;  %1492 = vmatprep.subr.bf16.mxu1 %v7705_v24  ;;  %v632_v59 = vmul.f32 0.00390625, %v612_v36  ;;  %v9165_v58 = vpack.c.bf16 %v759_v45, %v757_v34  ;;  %v720_v43 = vmul.f32 %v9111_v35, %v677_v4  ;;  %7818 = vrsqrt.f32 %v645_v11  ;;  %v615_v4 = vpop.xlane.xlu0 %614  ;;  %v7712_v11 = vld [vmem:[#allocation5 + $0xc8] ss:$24 sps:$4 sm:$0xff]  }
 0x1b3   : > { %1419 = vmatprep.mubr.bf16.mxu1 %v9151_v3  ;;  %1645 = vmatprep.mubr.bf16.mxu0 %v9151_v3  ;;  %v764_v5 = vadd.f32 %v9116_v53, %v721_v33  ;;  %v682_v14 = vmul.f32 %v7811_v0, %v9002_v62  ;;  %v718_v55 = vmul.f32 %v9111_v35, %v675_v61  ;;  %v7709_v62 = vld [vmem:[#allocation5 + $0x98] ss:$24 sps:$4 sm:$0xff]   ;;  %v618_v19 = vpop.xlane.xlu1 %617 }
 0x1b4   : > { %v723_v60 = vmul.f32 %v9108_v39, %v680_v41  ;;  %v648_v15 = vadd.f32 1e-05, %v632_v59  ;;  %v763_v29 = vadd.f32 %v9121_v44, %v720_v43  ;;  %v679_v36 = vmul.f32 %v7809_v63, %v8993_v54  ;;  %v7720_v43 = vld [vmem:[#allocation5 + $0x12c] ss:$24 sps:$4 sm:$0xff]  }
 0x1b5   : > { %1493 = vmatpush1.bf16.msra.mxu1 %v7703_v7  ;;  %v9168_v24 = vpack.c.bf16 %v764_v5, %v762_v26  ;;  %v725_v9 = vmul.f32 %v9108_v39, %v682_v14  ;;  %v681_v7 = vmul.f32 %v7811_v0, %v8999_v57  ;;  %v761_v33 = vadd.f32 %v9121_v44, %v718_v55  ;;  %v7717_v0 = vld [vmem:[#allocation5 + $0xfc] ss:$24 sps:$4 sm:$0xff]   ;;  %v7715_v26 = vld [vmem:[#allocation5 + $0xf8] ss:$24 sps:$4 sm:$0xff]  }
 0x1b6   : > { %1494 = vmatprep.subr.bf16.mxu1 %v7708_v48  ;;  %v7813_v38 = vpop.eup %7812  ;;  %v647_v48 = vadd.f32 1e-05, %v631_v17  ;;  %v766_v34 = vadd.f32 %v9116_v53, %v723_v60  ;;  %7820 = vrsqrt.f32 %v648_v15  ;;  %v634_v61 = vmul.f32 0.00390625, %v618_v19 }
 0x1b7   : > { %v768_v20 = vadd.f32 %v9116_v53, %v725_v9  ;;  %v686_v45 = vmul.f32 %v7813_v38, %v9022_v30  ;;  %v9185_v57 = vpack.c.bf16 %v763_v29, %v761_v33  ;;  %v724_v30 = vmul.f32 %v9111_v35, %v681_v7  ;;  %v7718_v29 = vld [vmem:[#allocation5 + $0x128] ss:$24 sps:$4 sm:$0xff]  }
 0x1b8   : > { %1420 = vmatmul.mubr.bf16.gmra.mrb[4].mxu1 %v9165_v58  ;;  %1646 = vmatmul.mubr.bf16.gmra.mrb[4].mxu0 %v9165_v58  ;;  %v7815_v28 = vpop.eup %7814  ;;  %7822 = vrsqrt.f32 %v647_v48  ;;  %v633_v63 = vmul.f32 0.00390625, %v615_v4  ;;  %v650_v59 = vadd.f32 1e-05, %v634_v61  ;;  %v685_v9 = vmul.f32 %v7813_v38, %v9019_v27  ;;  %v7723_v27 = vld [vmem:[#allocation5 + $0x15c] ss:$24 sps:$4 sm:$0xff]  }
 0x1b9   : > { %1429 = vmatprep.mubr.bf16.mxu1 %v9168_v24  ;;  %1495 = vmatpush1.bf16.msra.mxu1 %v7706_v6  ;;  %v684_v5 = vmul.f32 %v7815_v28, %v9016_v2  ;;  %v9188_v23 = vpack.c.bf16 %v768_v20, %v766_v34  ;;  %v729_v6 = vmul.f32 %v9108_v39, %v686_v45 }
 0x1ba   : > { %1655 = vmatprep.mubr.bf16.mxu0 %v9168_v24  ;;  %1496 = vmatprep.subr.bf16.mxu1 %v7711_v47  ;;  %v7817_v54 = vpop.eup %7816  ;;  %v722_v2 = vmul.f32 %v9111_v35, %v679_v36  ;;  %v767_v47 = vadd.f32 %v9121_v44, %v724_v30  ;;  %v683_v15 = vmul.f32 %v7815_v28, %v9013_v1  ;;  %7824 = vrsqrt.f32 %v650_v59  ;;  %v7726_v36 = vld [vmem:[#allocation5 + $0x18c] ss:$24 sps:$4 sm:$0xff]  }
 0x1bb   : > { %v727_v41 = vmul.f32 %v9108_v39, %v684_v5  ;;  %v772_v17 = vadd.f32 %v9116_v53, %v729_v6  ;;  %v690_v55 = vmul.f32 %v7817_v54, %v9042_v13  ;;  %v728_v38 = vmul.f32 %v9111_v35, %v685_v9 }
 0x1bc   : > { %v7819_v14 = vpop.eup %7818  ;;  %v765_v60 = vadd.f32 %v9121_v44, %v722_v2  ;;  %v726_v1 = vmul.f32 %v9111_v35, %v683_v15  ;;  %v689_v4 = vmul.f32 %v7817_v54, %v9039_v12  ;;  %v7729_v2 = vld [vmem:[#allocation5 + $0x1bc] ss:$24 sps:$4 sm:$0xff]  }
 0x1bd   : > { %1497 = vmatpush1.bf16.msra.mxu1 %v7709_v62  ;;  %v649_v62 = vadd.f32 1e-05, %v633_v63  ;;  %v688_v7 = vmul.f32 %v7819_v14, %v9036_v51  ;;  %v733_v13 = vmul.f32 %v9108_v39, %v690_v55  ;;  %v7721_v51 = vld [vmem:[#allocation5 + $0x158] ss:$24 sps:$4 sm:$0xff]   ;;  %v771_v33 = vadd.f32 %v9121_v44, %v728_v38 }
 0x1be   : > { %1498 = vmatprep.subr.bf16.mxu1 %v7714_v56  ;;  %v770_v56 = vadd.f32 %v9116_v53, %v727_v41  ;;  %v9205_v19 = vpack.c.bf16 %v767_v47, %v765_v60  ;;  %v769_v5 = vadd.f32 %v9121_v44, %v726_v1  ;;  %v687_v61 = vmul.f32 %v7819_v14, %v9033_v50  ;;  %v7732_v47 = vld [vmem:[#allocation5 + $0x1ec] ss:$24 sps:$4 sm:$0xff]   ;;  %v7730_v60 = vld [vmem:[#allocation5 + $0x1e8] ss:$24 sps:$4 sm:$0xff]  }
 0x1bf   : > { %7826 = vrsqrt.f32 %v649_v62  ;;  %v731_v28 = vmul.f32 %v9108_v39, %v688_v7  ;;  %v732_v12 = vmul.f32 %v9111_v35, %v689_v4  ;;  %v7735_v7 = vld [vmem:[#allocation5 + $0x21c] ss:$24 sps:$4 sm:$0xff]  }
 0x1c0   : > { %1430 = vmatmul.mubr.bf16.gmra.mrb[8].mxu1 %v9185_v57  ;;  %1656 = vmatmul.mubr.bf16.gmra.mrb[8].mxu0 %v9185_v57  ;;  %v9208_v20 = vpack.c.bf16 %v772_v17, %v770_v56  ;;  %v7821_v45 = vpop.eup %7820  ;;  %v9225_v63 = vpack.c.bf16 %v771_v33, %v769_v5  ;;  %v730_v50 = vmul.f32 %v9111_v35, %v687_v61  ;;  %v7736_v33 = vld [vmem:[#allocation5 + $0x248] ss:$24 sps:$4 sm:$0xff]   ;;  %v7739_v5 = vld [vmem:[#allocation5 + $0x278] ss:$24 sps:$4 sm:$0xff]   ;;  %v7744_v61 = vld [vmem:[#allocation5 + $0x2ac] ss:$24 sps:$4 sm:$0xff]  }
 0x1c1   : > { %1439 = vmatprep.mubr.bf16.mxu1 %v9188_v23  ;;  %1499 = vmatpush1.bf16.msra.mxu1 %v7712_v11  ;;  %v776_v11 = vadd.f32 %v9116_v53, %v733_v13  ;;  %v694_v34 = vmul.f32 %v7821_v45, %v9062_v16  ;;  %v774_v30 = vadd.f32 %v9116_v53, %v731_v28 }
 0x1c2   : > { %1665 = vmatprep.mubr.bf16.mxu0 %v9188_v23  ;;  %1500 = vmatprep.subr.bf16.mxu1 %v7717_v0  ;;  %v7823_v48 = vpop.eup %7822  ;;  %v7724_v0 = vld [vmem:[#allocation5 + $0x188] ss:$24 sps:$4 sm:$0xff]   ;;  %v775_v59 = vadd.f32 %v9121_v44, %v732_v12  ;;  %v773_v55 = vadd.f32 %v9121_v44, %v730_v50 }
 0x1c3   : > { %v692_v6 = vmul.f32 %v7823_v48, %v9056_v18  ;;  %v9228_v54 = vpack.c.bf16 %v776_v11, %v774_v30  ;;  %v737_v16 = vmul.f32 %v9108_v39, %v694_v34  ;;  %v7727_v18 = vld [vmem:[#allocation5 + $0x1b8] ss:$24 sps:$4 sm:$0xff]   ;;  %v691_v62 = vmul.f32 %v7823_v48, %v9053_v10 }
 0x1c4   : > { %v795_v56 = vpack.c.bf16 %v775_v59, %v773_v55  ;;  %v7733_v10 = vld [vmem:[#allocation5 + $0x218] ss:$24 sps:$4 sm:$0xff]  }
 0x1c5   : > { %1501 = vmatpush1.bf16.msra.mxu1 %v7715_v26  ;;  %v7825_v26 = vpop.eup %7824  ;;  %v735_v41 = vmul.f32 %v9108_v39, %v692_v6  ;;  %v780_v9 = vadd.f32 %v9116_v53, %v737_v16  ;;  %v7747_v6 = vld [vmem:[#allocation5 + $0x2dc] ss:$24 sps:$4 sm:$0xff]  }
 0x1c6   : > { %1502 = vmatprep.subr.bf16.mxu1 %v7720_v43  ;;  %v693_v43 = vmul.f32 %v7821_v45, %v9059_v21  ;;  %v698_v17 = vmul.f32 %v7825_v26, %v9082_v52  ;;  %v734_v52 = vmul.f32 %v9111_v35, %v691_v62  ;;  %v7738_v45 = vld [vmem:[#allocation5 + $0x24c] ss:$24 sps:$4 sm:$0xff]   ;;  %v697_v1 = vmul.f32 %v7825_v26, %v9079_v49 }
 0x1c7   : > { %v778_v15 = vadd.f32 %v9116_v53, %v735_v41 }
 0x1c8   : > { %1440 = vmatmul.mubr.bf16.gmra.mrb[12].mxu1 %v9205_v19  ;;  %1666 = vmatmul.mubr.bf16.gmra.mrb[12].mxu0 %v9205_v19  ;;  %v741_v38 = vmul.f32 %v9108_v39, %v698_v17  ;;  %v777_v28 = vadd.f32 %v9121_v44, %v734_v52  ;;  %v740_v11 = vmul.f32 %v9111_v35, %v697_v1 }
 0x1c9   : > { %1449 = vmatprep.mubr.bf16.mxu1 %v9208_v20  ;;  %1503 = vmatpush1.bf16.msra.mxu1 %v7718_v29  ;;  %v7827_v14 = vpop.eup %7826  ;;  %v798_v21 = vpack.c.bf16 %v780_v9, %v778_v15 }
 0x1ca   : > { %1675 = vmatprep.mubr.bf16.mxu0 %v9208_v20  ;;  %1504 = vmatprep.subr.bf16.mxu1 %v7723_v27  ;;  %v696_v29 = vmul.f32 %v7827_v14, %v9076_v8  ;;  %v736_v27 = vmul.f32 %v9111_v35, %v693_v43  ;;  %v695_v48 = vmul.f32 %v7827_v14, %v9073_v42 }
 0x1cb   : > { %v783_v42 = vadd.f32 %v9121_v44, %v740_v11 }
 0x1cc   : > { %v739_v13 = vmul.f32 %v9108_v39, %v696_v29  ;;  %v779_v8 = vadd.f32 %v9121_v44, %v736_v27  ;;  %v7741_v39 = vld [vmem:[#allocation5 + $0x27c] ss:$24 sps:$4 sm:$0xff]   ;;  %v738_v49 = vmul.f32 %v9111_v35, %v695_v48  ;;  %v7745_v35 = vld [vmem:[#allocation5 + $0x2d8] ss:$24 sps:$4 sm:$0xff]  }
 0x1cd   : > { %1505 = vmatpush1.bf16.msra.mxu1 %v7721_v51  ;;  %v784_v51 = vadd.f32 %v9116_v53, %v741_v38 }
 0x1ce   : > { %1506 = vmatprep.subr.bf16.mxu1 %v7726_v36  ;;  %v782_v36 = vadd.f32 %v9116_v53, %v739_v13  ;;  %v797_v4 = vpack.c.bf16 %v779_v8, %v777_v28  ;;  %v781_v53 = vadd.f32 %v9121_v44, %v738_v49 }
 0x1d0   : > { %1450 = vmatmul.mubr.bf16.gmra.mrb[16].mxu1 %v9225_v63  ;;  %1676 = vmatmul.mubr.bf16.gmra.mrb[16].mxu0 %v9225_v63  ;;  %v800_v34 = vpack.c.bf16 %v784_v51, %v782_v36  ;;  %v799_v30 = vpack.c.bf16 %v783_v42, %v781_v53 }
 0x1d1   : > { %1459 = vmatprep.mubr.bf16.mxu1 %v9228_v54  ;;  %1507 = vmatpush1.bf16.msra.mxu1 %v7724_v0  ;;  %v7742_v0 = vld [vmem:[#allocation5 + $0x2a8] ss:$24 sps:$4 sm:$0xff]  }
 0x1d2   : > { %1685 = vmatprep.mubr.bf16.mxu0 %v9228_v54  ;;  %1508 = vmatprep.subr.bf16.mxu1 %v7729_v2 }
 0x1d5   : > { %1509 = vmatpush1.bf16.msra.mxu1 %v7727_v18 }
 0x1d6   : > { %1510 = vmatprep.subr.bf16.mxu1 %v7732_v47 }
 0x1d8   : > { %1460 = vmatmul.mubr.bf16.gmra.mrb[20].mxu1 %v795_v56  ;;  %1686 = vmatmul.mubr.bf16.gmra.mrb[20].mxu0 %v795_v56 }
 0x1d9   : > { %1469 = vmatprep.mubr.bf16.mxu1 %v798_v21  ;;  %1511 = vmatpush1.bf16.msra.mxu1 %v7730_v60 }
 0x1da   : > { %1695 = vmatprep.mubr.bf16.mxu0 %v798_v21  ;;  %1512 = vmatprep.subr.bf16.mxu1 %v7735_v7 }
 0x1dd   : > { %1513 = vmatpush1.bf16.msra.mxu1 %v7733_v10 }
 0x1de   : > { %1514 = vmatprep.subr.bf16.mxu1 %v7738_v45 }
 0x1e0   : > { %1470 = vmatmul.mubr.bf16.gmra.mrb[24].mxu1 %v797_v4  ;;  %1696 = vmatmul.mubr.bf16.gmra.mrb[24].mxu0 %v797_v4 }
 0x1e1   : > { %1479 = vmatprep.mubr.bf16.mxu1 %v800_v34  ;;  %1515 = vmatpush1.bf16.msra.mxu1 %v7736_v33 }
 0x1e2   : > { %1705 = vmatprep.mubr.bf16.mxu0 %v800_v34  ;;  %1516 = vmatprep.subr.bf16.mxu1 %v7741_v39 }
 0x1e5   : > { %1517 = vmatpush1.bf16.msra.mxu1 %v7739_v5 }
 0x1e6   : > { %1518 = vmatprep.subr.bf16.mxu1 %v7744_v61 }
 0x1e8   : > { %1480 = vmatmul.mubr.bf16.gmra.mrb[28].mxu1 %v799_v30  ;;  %1706 = vmatmul.mubr.bf16.gmra.mrb[28].mxu0 %v799_v30 }
 0x1e9   : > { %1519 = vmatpush1.bf16.msra.mxu1 %v7742_v0  ;;  %1522 = vmatprep.mubr.bf16.mxu1 %v9136_v46 }
 0x1ea   : > { %1520 = vmatprep.subr.bf16.mxu1 %v7747_v6 }
 0x1ed   : > { %1521 = vmatpush1.bf16.msra.mxu1 %v7745_v35 }
 0x1f0   : > { %1523 = vmatmul.mubr.bf16.vlgmr.msra.gmra.mrb[32].mxu1 %v9138_v40 }
 0x1f1   : > { %1532 = vmatprep.mubr.bf16.mxu1 %v9151_v3 }
 0x1f8   : > { %1533 = vmatmul.mubr.bf16.gmra.mrb[36].mxu1 %v9165_v58 }
 0x1f9   : > { %1542 = vmatprep.mubr.bf16.mxu1 %v9168_v24 }
 0x200   : > { %1543 = vmatmul.mubr.bf16.gmra.mrb[40].mxu1 %v9185_v57 }
 0x201   : > { %1552 = vmatprep.mubr.bf16.mxu1 %v9188_v23 }
 0x208   : > { %1553 = vmatmul.mubr.bf16.gmra.mrb[44].mxu1 %v9205_v19 }
 0x209   : > { %1562 = vmatprep.mubr.bf16.mxu1 %v9208_v20 }
 0x210   : > { %1563 = vmatmul.mubr.bf16.gmra.mrb[48].mxu1 %v9225_v63 }
 0x211   : > { %1572 = vmatprep.mubr.bf16.mxu1 %v9228_v54 }
 0x218   : > { %1573 = vmatmul.mubr.bf16.gmra.mrb[52].mxu1 %v795_v56 }
 0x219   : > { %1582 = vmatprep.mubr.bf16.mxu1 %v798_v21 }
 0x220   : > { %1583 = vmatmul.mubr.bf16.gmra.mrb[56].mxu1 %v797_v4 }
 0x221   : > { %1592 = vmatprep.mubr.bf16.mxu1 %v800_v34 }
 0x228   : > { %1593 = vmatmul.mubr.bf16.gmra.mrb[60].mxu1 %v799_v30 }
 0x283   : > { %v9270_v44 = vpop.f32.mrb[0].mxu1  ;;  %v1637_v46 = vpop.f32.mrb[0].mxu0 }
 0x284   : > { %13417 = vst [vmem:[#allocation18_spill] sm:$0xff] %v9270_v44  ;;  %v1639_v40 = vpop.f32.mrb[1].mxu0  ;;  %2735 = vrot.lane.b32.xlu0 %v9270_v44, %s8549_s27  ;;  %v9274_v3 = vpop.f32.mrb[1].mxu1  ;;  %v1719_v1 = vsel %vm1718_vm0, %v9270_v44, 0.0 }
 0x285   : > { %13418 = vst [vmem:[#allocation19_spill] sm:$0xff] %v9274_v3  ;;  %v9276_v58 = vpop.f32.mrb[2].mxu1  ;;  %v1641_v24 = vpop.f32.mrb[2].mxu0 }
 0x286   : > { %13419 = vst [vmem:[#allocation20_spill] sm:$0xff] %v9276_v58  ;;  %v9278_v57 = vpack.c.bf16 %v1641_v24, %v1637_v46  ;;  %v1643_v23 = vpop.f32.mrb[3].mxu0  ;;  %2737 = vrot.lane.b32.xlu1 %v9276_v58, %s8549_s27  ;;  %v9282_v19 = vpop.f32.mrb[3].mxu1  ;;  %v1722_v5 = vsel %vm1718_vm0, %v9276_v58, 0.0 }
 0x287   : > { %13421 = vst [vmem:[#allocation22_spill] sm:$0xff] %v9282_v19  ;;  %v9284_v20 = vpack.c.bf16 %v1643_v23, %v1639_v40 }
 0x288   : > { %13420 = vst [vmem:[#allocation21_spill] sm:$0xff] %v9278_v57 }
 0x289   : > { %13422 = vst [vmem:[#allocation23_spill] sm:$0xff] %v9284_v20 }
 0x28b   : > { %v9286_v63 = vpop.f32.mrb[4].mxu1  ;;  %v1647_v2 = vpop.f32.mrb[4].mxu0 }
 0x28c   : > { %13423 = vst [vmem:[#allocation24_spill] sm:$0xff] %v9286_v63  ;;  %v9288_v12 = vpop.f32.mrb[5].mxu1  ;;  %v1649_v54 = vpop.f32.mrb[5].mxu0  ;;  %v1725_v31 = vsel %vm1718_vm0, %v9286_v63, 0.0 }
 0x28d   : > { %13424 = vst [vmem:[#allocation25_spill] sm:$0xff] %v9288_v12  ;;  %v9290_v16 = vpop.f32.mrb[6].mxu1  ;;  %v1651_v26 = vpop.f32.mrb[6].mxu0 }
 0x28e   : > { %13425 = vst [vmem:[#allocation26_spill] sm:$0xff] %v9290_v16  ;;  %v9292_v50 = vpack.c.bf16 %v1651_v26, %v1647_v2  ;;  %v9294_v18 = vpop.f32.mrb[7].mxu1  ;;  %v1653_v41 = vpop.f32.mrb[7].mxu0 }
 0x28f   : > { %13427 = vst [vmem:[#allocation28_spill] sm:$0xff] %v9294_v18  ;;  %v9296_v14 = vpack.c.bf16 %v1653_v41, %v1649_v54 }
 0x290   : > { %13426 = vst [vmem:[#allocation27_spill] sm:$0xff] %v9292_v50 }
 0x291   : > { %13428 = vst [vmem:[#allocation29_spill] sm:$0xff] %v9296_v14 }
 0x293   : > { %v9298_v59 = vpop.f32.mrb[8].mxu1  ;;  %v1657_v47 = vpop.f32.mrb[8].mxu0 }
 0x294   : > { %13429 = vst [vmem:[#allocation30_spill] sm:$0xff] %v9298_v59  ;;  %v9300_v43 = vpop.f32.mrb[9].mxu1  ;;  %v1659_v9 = vpop.f32.mrb[9].mxu0 }
 0x295   : > { %13430 = vst [vmem:[#allocation31_spill] sm:$0xff] %v9300_v43  ;;  %v9302_v17 = vpop.f32.mrb[10].mxu1  ;;  %v1661_v55 = vpop.f32.mrb[10].mxu0 }
 0x296   : > { %13431 = vst [vmem:[#allocation32_spill] sm:$0xff] %v9302_v17  ;;  %v9304_v62 = vpack.c.bf16 %v1661_v55, %v1657_v47  ;;  %v9306_v60 = vpop.f32.mrb[11].mxu1  ;;  %v1663_v15 = vpop.f32.mrb[11].mxu0 }
 0x297   : > { %13433 = vst [vmem:[#allocation34_spill] sm:$0xff] %v9306_v60  ;;  %v9308_v29 = vpack.c.bf16 %v1663_v15, %v1659_v9 }
 0x298   : > { %13432 = vst [vmem:[#allocation33_spill] sm:$0xff] %v9304_v62  ;;  %v1734_v62 = vsel %vm1718_vm0, %v9302_v17, 0.0 }
 0x299   : > { %13434 = vst [vmem:[#allocation35_spill] sm:$0xff] %v9308_v29 }
 0x29b   : > { %v9310_v56 = vpop.f32.mrb[12].mxu1  ;;  %v1667_v7 = vpop.f32.mrb[12].mxu0 }
 0x29c   : > { %13435 = vst [vmem:[#allocation36_spill] sm:$0xff] %v9310_v56  ;;  %v9312_v27 = vpop.f32.mrb[13].mxu1  ;;  %v1669_v21 = vpop.f32.mrb[13].mxu0 }
 0x29d   : > { %13436 = vst [vmem:[#allocation37_spill] sm:$0xff] %v9312_v27  ;;  %v9314_v38 = vpop.f32.mrb[14].mxu1  ;;  %v1671_v52 = vpop.f32.mrb[14].mxu0 }
 0x29e   : > { %13437 = vst [vmem:[#allocation38_spill] sm:$0xff] %v9314_v38  ;;  %v9316_v10 = vpack.c.bf16 %v1671_v52, %v1667_v7  ;;  %v9318_v13 = vpop.f32.mrb[15].mxu1  ;;  %v1673_v8 = vpop.f32.mrb[15].mxu0 }
 0x29f   : > { %13439 = vst [vmem:[#allocation40_spill] sm:$0xff] %v9318_v13  ;;  %v9320_v45 = vpack.c.bf16 %v1673_v8, %v1669_v21 }
 0x2a0   : > { %13438 = vst [vmem:[#allocation39_spill] sm:$0xff] %v9316_v10 }
 0x2a1   : > { %13440 = vst [vmem:[#allocation41_spill] sm:$0xff] %v9320_v45  ;;  %v1731_v45 = vsel %vm1718_vm0, %v9298_v59, 0.0 }
 0x2a3   : > { %1720 = vadd.xlane.f32.xlu0 %v1719_v1  ;;  %v9324_v51 = vpop.f32.mrb[16].mxu1  ;;  %v1677_v28 = vpop.f32.mrb[16].mxu0 }
 0x2a4   : > { %v9326_v48 = vpop.f32.mrb[17].mxu1  ;;  %v1679_v33 = vpop.f32.mrb[17].mxu0 }
 0x2a5   : > { %13441 = vst [vmem:[#allocation42_spill] sm:$0xff] %v9326_v48  ;;  %v9328_v36 = vpop.f32.mrb[18].mxu1  ;;  %v1681_v4 = vpop.f32.mrb[18].mxu0 }
 0x2a6   : > { %13442 = vst [vmem:[#allocation43_spill] sm:$0xff] %v9328_v36  ;;  %v9330_v39 = vpack.c.bf16 %v1681_v4, %v1677_v28  ;;  %v9332_v11 = vpop.f32.mrb[19].mxu1  ;;  %v1683_v34 = vpop.f32.mrb[19].mxu0 }
 0x2a7   : > { %13444 = vst [vmem:[#allocation45_spill] sm:$0xff] %v9332_v11  ;;  %v9334_v49 = vpack.c.bf16 %v1683_v34, %v1679_v33 }
 0x2a8   : > { %13443 = vst [vmem:[#allocation44_spill] sm:$0xff] %v9330_v39 }
 0x2a9   : > { %13445 = vst [vmem:[#allocation46_spill] sm:$0xff] %v9334_v49 }
 0x2aa   : > { %1723 = vadd.xlane.f32.xlu1 %v1722_v5 }
 0x2ab   : > { %v9338_v42 = vpop.f32.mrb[20].mxu1  ;;  %v1687_v61 = vpop.f32.mrb[20].mxu0 }
 0x2ac   : > { %13446 = vst [vmem:[#allocation47_spill] sm:$0xff] %v9338_v42  ;;  %v9340_v53 = vpop.f32.mrb[21].mxu1  ;;  %v1689_v0 = vpop.f32.mrb[21].mxu0 }
 0x2ad   : > { %13447 = vst [vmem:[#allocation48_spill] sm:$0xff] %v9340_v53  ;;  %v9342_v30 = vpop.f32.mrb[22].mxu1  ;;  %v1691_v6 = vpop.f32.mrb[22].mxu0 }
 0x2ae   : > { %13448 = vst [vmem:[#allocation49_spill] sm:$0xff] %v9342_v30  ;;  %v9344_v35 = vpack.c.bf16 %v1691_v6, %v1687_v61  ;;  %v9346_v46 = vpop.f32.mrb[23].mxu1  ;;  %v1693_v40 = vpop.f32.mrb[23].mxu0 }
 0x2af   : > { %13450 = vst [vmem:[#allocation51_spill] sm:$0xff] %v9346_v46  ;;  %v9348_v24 = vpack.c.bf16 %v1693_v40, %v1689_v0 }
 0x2b0   : > { %13449 = vst [vmem:[#allocation50_spill] sm:$0xff] %v9344_v35 }
 0x2b1   : > { %13451 = vst [vmem:[#allocation52_spill] sm:$0xff] %v9348_v24 }
 0x2b3   : > { %v9350_v23 = vpop.f32.mrb[24].mxu1  ;;  %v1697_v2 = vpop.f32.mrb[24].mxu0 }
 0x2b4   : > { %13452 = vst [vmem:[#allocation53_spill] sm:$0xff] %v9350_v23  ;;  %v9352_v54 = vpop.f32.mrb[25].mxu1  ;;  %v1699_v26 = vpop.f32.mrb[25].mxu0 }
 0x2b5   : > { %13453 = vst [vmem:[#allocation54_spill] sm:$0xff] %v9352_v54  ;;  %v9354_v41 = vpop.f32.mrb[26].mxu1  ;;  %v1701_v47 = vpop.f32.mrb[26].mxu0 }
 0x2b6   : > { %13454 = vst [vmem:[#allocation55_spill] sm:$0xff] %v9354_v41  ;;  %v9356_v9 = vpack.c.bf16 %v1701_v47, %v1697_v2  ;;  %v9358_v55 = vpop.f32.mrb[27].mxu1  ;;  %v1703_v15 = vpop.f32.mrb[27].mxu0 }
 0x2b7   : > { %13456 = vst [vmem:[#allocation57_spill] sm:$0xff] %v9358_v55  ;;  %v9360_v7 = vpack.c.bf16 %v1703_v15, %v1699_v26 }
 0x2b8   : > { %13455 = vst [vmem:[#allocation56_spill] sm:$0xff] %v9356_v9 }
 0x2b9   : > { %13457 = vst [vmem:[#allocation58_spill] sm:$0xff] %v9360_v7  ;;  %2739 = vrot.lane.b32.xlu0 %v9286_v63, %s8549_s27 }
 0x2bb   : > { %2741 = vrot.lane.b32.xlu1 %v9290_v16, %s8549_s27  ;;  %v9366_v21 = vpop.f32.mrb[28].mxu1  ;;  %v1707_v52 = vpop.f32.mrb[28].mxu0 }
 0x2bc   : > { %v9368_v8 = vpop.f32.mrb[29].mxu1  ;;  %v1709_v1 = vpop.f32.mrb[29].mxu0 }
 0x2bd   : > { %13458 = vst [vmem:[#allocation59_spill] sm:$0xff] %v9368_v8  ;;  %v9370_v28 = vpop.f32.mrb[30].mxu1  ;;  %v1711_v33 = vpop.f32.mrb[30].mxu0 }
 0x2be   : > { %v9372_v4 = vpack.c.bf16 %v1711_v33, %v1707_v52  ;;  %v9374_v34 = vpop.f32.mrb[31].mxu1  ;;  %v1713_v5 = vpop.f32.mrb[31].mxu0 }
 0x2bf   : > { %13460 = vst [vmem:[#allocation61_spill] sm:$0xff] %v9374_v34  ;;  %v9376_v61 = vpack.c.bf16 %v1713_v5, %v1709_v1 }
 0x2c0   : > { %13459 = vst [vmem:[#allocation60_spill] sm:$0xff] %v9372_v4 }
 0x2c1   : > { %13461 = vst [vmem:[#allocation62_spill] sm:$0xff] %v9376_v61  ;;  %v1728_v61 = vsel %vm1718_vm0, %v9290_v16, 0.0 }
 0x2c3   : > { %v9378_v0 = vpop.f32.mrb[32].mxu1 }
 0x2c4   : > { %v9380_v6 = vpop.f32.mrb[33].mxu1  ;;  %v1974_v50 = vsel %vm1718_vm0, %v9378_v0, 0.0 }
 0x2c5   : > { %13462 = vst [vmem:[#allocation63_spill] sm:$0xff] %v9380_v6  ;;  %v9382_v40 = vpop.f32.mrb[34].mxu1 }
 0x2c6   : > { %v9384_v2 = vpop.f32.mrb[35].mxu1  ;;  %v1977_v46 = vsel %vm1718_vm0, %v9382_v40, 0.0 }
 0x2c7   : > { %13463 = vst [vmem:[#allocation64_spill] sm:$0xff] %v9384_v2  ;;  %v4272_v53 = vsel %vm1718_vm0, %v9384_v2, 0.0 }
 0x2cb   : > { %v9386_v26 = vpop.f32.mrb[36].mxu1 }
 0x2cc   : > { %v9388_v47 = vpop.f32.mrb[37].mxu1 }
 0x2cd   : > { %13464 = vst [vmem:[#allocation65_spill] sm:$0xff] %v9388_v47  ;;  %v9390_v15 = vpop.f32.mrb[38].mxu1 }
 0x2ce   : > { %v9392_v52 = vpop.f32.mrb[39].mxu1 }
 0x2cf   : > { %13465 = vst [vmem:[#allocation66_spill] sm:$0xff] %v9392_v52 }
 0x2d3   : > { %v9394_v33 = vpop.f32.mrb[40].mxu1 }
 0x2d4   : > { %v9396_v1 = vpop.f32.mrb[41].mxu1 }
 0x2d5   : > { %13466 = vst [vmem:[#allocation67_spill] sm:$0xff] %v9396_v1  ;;  %v9398_v5 = vpop.f32.mrb[42].mxu1 }
 0x2d6   : > { %v9400_v25 = vpop.f32.mrb[43].mxu1 }
 0x2d7   : > { %13467 = vst [vmem:[#allocation68_spill] sm:$0xff] %v9400_v25 }
 0x2d8   : > { %1726 = vadd.xlane.f32.xlu0 %v1725_v31 }
 0x2db   : > { %v9404_v32 = vpop.f32.mrb[44].mxu1 }
 0x2dc   : > { %1729 = vadd.xlane.f32.xlu0 %v1728_v61  ;;  %v9408_v7 = vpop.f32.mrb[45].mxu1 }
 0x2dd   : > { %13468 = vst [vmem:[#allocation69_spill] sm:$0xff] %v9408_v7  ;;  %v9410_v24 = vpop.f32.mrb[46].mxu1 }
 0x2de   : > { %v9412_v49 = vpop.f32.mrb[47].mxu1 }
 0x2df   : > { %13469 = vst [vmem:[#allocation70_spill] sm:$0xff] %v9412_v49  ;;  %1732 = vadd.xlane.f32.xlu1 %v1731_v45 }
 0x2e3   : > { %v9416_v29 = vpop.f32.mrb[48].mxu1 }
 0x2e4   : > { %v9418_v14 = vpop.f32.mrb[49].mxu1 }
 0x2e5   : > { %13470 = vst [vmem:[#allocation71_spill] sm:$0xff] %v9418_v14  ;;  %v9420_v31 = vpop.f32.mrb[50].mxu1 }
 0x2e6   : > { %v9422_v20 = vpop.f32.mrb[51].mxu1 }
 0x2e7   : > { %13471 = vst [vmem:[#allocation72_spill] sm:$0xff] %v9422_v20 }
 0x2eb   : > { %v9424_v55 = vpop.f32.mrb[52].mxu1 }
 0x2ec   : > { %v9426_v61 = vpop.f32.mrb[53].mxu1 }
 0x2ed   : > { %13472 = vst [vmem:[#allocation73_spill] sm:$0xff] %v9426_v61  ;;  %v9428_v34 = vpop.f32.mrb[54].mxu1 }
 0x2ee   : > { %v9430_v8 = vpop.f32.mrb[55].mxu1 }
 0x2ef   : > { %13473 = vst [vmem:[#allocation74_spill] sm:$0xff] %v9430_v8 }
 0x2f0   : > { %2745 = vrot.lane.b32.xlu1 %v9302_v17, %s8549_s27 }
 0x2f2   : > { %2743 = vrot.lane.b32.xlu0 %v9298_v59, %s8549_s27 }
 0x2f3   : > { %v9436_v45 = vpop.f32.mrb[56].mxu1 }
 0x2f4   : > { %13474 = vst [vmem:[#allocation75_spill] sm:$0xff] %v9436_v45  ;;  %2747 = vrot.lane.b32.xlu1 %v9310_v56, %s8549_s27  ;;  %v9440_v54 = vpop.f32.mrb[57].mxu1 }
 0x2f5   : > { %13475 = vst [vmem:[#allocation76_spill] sm:$0xff] %v9440_v54  ;;  %v9442_v48 = vpop.f32.mrb[58].mxu1 }
 0x2f6   : > { %v9444_v4 = vpop.f32.mrb[59].mxu1 }
 0x2f7   : > { %13476 = vst [vmem:[#allocation77_spill] sm:$0xff] %v9444_v4 }
 0x2f8   : > { %2749 = vrot.lane.b32.xlu1 %v9314_v38, %s8549_s27  ;;  %v2738_v13 = vpop.permute.xlu1 %2737 }
 0x2f9   : > { %v2786_v22 = vsel %vm1718_vm0, %v2738_v13, 0.0 }
 0x2fb   : > { %v9448_v9 = vpop.f32.mrb[60].mxu1 }
 0x2fc   : > { %13477 = vst [vmem:[#allocation78_spill] sm:$0xff] %v9448_v9  ;;  %2753 = vrot.lane.b32.xlu1 %v9328_v36, %s8549_s27  ;;  %v9452_v35 = vpop.f32.mrb[61].mxu1  ;;  %v2016_v19 = vsel %vm1718_vm0, %v9448_v9, 0.0 }
 0x2fd   : > { %13478 = vst [vmem:[#allocation79_spill] sm:$0xff] %v9452_v35  ;;  %v9454_v39 = vpop.f32.mrb[62].mxu1 }
 0x2fe   : > { %13479 = vst [vmem:[#allocation80_spill] sm:$0xff] %v9454_v39  ;;  %v9456_v10 = vpop.f32.mrb[63].mxu1 }
 0x2ff   : > { %13480 = vst [vmem:[#allocation81_spill] sm:$0xff] %v9456_v10 }
 0x300   : > { %2757 = vrot.lane.b32.xlu1 %v9342_v30, %s8549_s27 }
 0x304   : > { %2761 = vrot.lane.b32.xlu1 %v9354_v41, %s8549_s27 }
 0x308   : > { %2765 = vrot.lane.b32.xlu1 %v9370_v28, %s8549_s27 }
 0x311   : > { %1735 = vadd.xlane.f32.xlu0 %v1734_v62  ;;  %v4269_v62 = vsel %vm1718_vm0, %v9380_v6, 0.0 }
 0x327   : > { %2751 = vrot.lane.b32.xlu0 %v9324_v51, %s8549_s27 }
 0x32b   : > { %2755 = vrot.lane.b32.xlu0 %v9338_v42, %s8549_s27 }
 0x32c   : > { %1975 = vadd.xlane.f32.xlu1 %v1974_v50  ;;  %v1983_v50 = vsel %vm1718_vm0, %v9390_v15, 0.0 }
 0x32f   : > { %2759 = vrot.lane.b32.xlu0 %v9350_v23, %s8549_s27 }
 0x333   : > { %2763 = vrot.lane.b32.xlu0 %v9366_v21, %s8549_s27 }
 0x337   : > { %3109 = vrot.lane.b32.xlu0 %v9378_v0, %s8549_s27  ;;  %v9533_v60 = vpop.xlane.xlu1 %1723 }
 0x338   : > { %13482 = vst [vmem:[#allocation83_spill] sm:$0xff] %v9533_v60 }
 0x33b   : > { %v2742_v57 = vpop.permute.xlu1 %2741 }
 0x33c   : > { %v2792_v4 = vsel %vm1718_vm0, %v2742_v57, 0.0 }
 0x33d   : > { %3111 = vrot.lane.b32.xlu1 %v9382_v40, %s8549_s27 }
 0x356   : > { %4270 = vadd.xlane.f32.xlu0 %v4269_v62  ;;  %v1989_v62 = vsel %vm1718_vm0, %v9398_v5, 0.0 }
 0x35a   : > { %1978 = vadd.xlane.f32.xlu0 %v1977_v46  ;;  %v1980_v46 = vsel %vm1718_vm0, %v9386_v26, 0.0 }
 0x35e   : > { %1984 = vadd.xlane.f32.xlu0 %v1983_v50  ;;  %v1986_v50 = vsel %vm1718_vm0, %v9394_v33, 0.0 }
 0x361   : > { %4273 = vadd.xlane.f32.xlu1 %v4272_v53  ;;  %v1995_v53 = vsel %vm1718_vm0, %v9410_v24, 0.0 }
 0x36c   : > { %v9539_v2 = vpop.xlane.xlu1 %1732 }
 0x36d   : > { %13485 = vst [vmem:[#allocation86_spill] sm:$0xff] %v9539_v2 }
 0x372   : > { %3113 = vrot.lane.b32.xlu1 %v9386_v26, %s8549_s27 }
 0x374   : > { %3117 = vrot.lane.b32.xlu0 %v9394_v33, %s8549_s27 }
 0x393   : > { %1990 = vadd.xlane.f32.xlu0 %v1989_v62  ;;  %v2001_v62 = vsel %vm1718_vm0, %v9420_v31, 0.0 }
 0x396   : > { %1981 = vadd.xlane.f32.xlu1 %v1980_v46  ;;  %v1992_v46 = vsel %vm1718_vm0, %v9404_v32, 0.0 }
 0x3a7   : > { %3115 = vrot.lane.b32.xlu1 %v9390_v15, %s8549_s27 }
 0x3a9   : > { %3121 = vrot.lane.b32.xlu0 %v9404_v32, %s8549_s27 }
 0x3c8   : > { %1996 = vadd.xlane.f32.xlu0 %v1995_v53  ;;  %v2004_v53 = vsel %vm1718_vm0, %v9424_v55, 0.0 }
 0x3cb   : > { %1987 = vadd.xlane.f32.xlu1 %v1986_v50  ;;  %v1998_v50 = vsel %vm1718_vm0, %v9416_v29, 0.0 }
 0x3dc   : > { %3119 = vrot.lane.b32.xlu1 %v9398_v5, %s8549_s27 }
 0x3de   : > { %3125 = vrot.lane.b32.xlu0 %v9416_v29, %s8549_s27 }
 0x3fd   : > { %2002 = vadd.xlane.f32.xlu0 %v2001_v62  ;;  %v2736_v62 = vpop.permute.xlu0 %2735 }
 0x400   : > { %1993 = vadd.xlane.f32.xlu1 %v1992_v46  ;;  %v2010_v46 = vsel %vm1718_vm0, %v9436_v45, 0.0 }
 0x401   : > { %v9528_v11 = vpop.xlane.xlu0 %1720 }
 0x402   : > { %13481 = vst [vmem:[#allocation82_spill] sm:$0xff] %v9528_v11 }
 0x405   : > { %v2740_v27 = vpop.permute.xlu0 %2739 }
 0x406   : > { %v2789_v10 = vsel %vm1718_vm0, %v2740_v27, 0.0 }
 0x409   : > { %v9535_v43 = vpop.xlane.xlu0 %1726 }
 0x40a   : > { %13483 = vst [vmem:[#allocation84_spill] sm:$0xff] %v9535_v43 }
 0x40d   : > { %v9537_v6 = vpop.xlane.xlu0 %1729 }
 0x40e   : > { %13484 = vst [vmem:[#allocation85_spill] sm:$0xff] %v9537_v6 }
 0x411   : > { %3123 = vrot.lane.b32.xlu1 %v9410_v24, %s8549_s27 }
 0x413   : > { %3129 = vrot.lane.b32.xlu0 %v9424_v55, %s8549_s27 }
 0x432   : > { %2005 = vadd.xlane.f32.xlu0 %v2004_v53  ;;  %v2783_v53 = vsel %vm1718_vm0, %v2736_v62, 0.0  ;;  %v2744_v62 = vpop.permute.xlu0 %2743 }
 0x435   : > { %1999 = vadd.xlane.f32.xlu1 %v1998_v50  ;;  %v2007_v50 = vsel %vm1718_vm0, %v9428_v34, 0.0 }
 0x446   : > { %3127 = vrot.lane.b32.xlu1 %v9420_v31, %s8549_s27 }
 0x448   : > { %3133 = vrot.lane.b32.xlu0 %v9436_v45, %s8549_s27 }
 0x44a   : > { %3131 = vrot.lane.b32.xlu1 %v9428_v34, %s8549_s27 }
 0x467   : > { %2011 = vadd.xlane.f32.xlu0 %v2010_v46  ;;  %v9545_v46 = vpop.permute.xlu1 %2745 }
 0x46b   : > { %2784 = vadd.xlane.f32.xlu0 %v2783_v53  ;;  %v9547_v53 = vpop.xlane.xlu0 %1735 }
 0x46c   : > { %13486 = vst [vmem:[#allocation87_spill] sm:$0xff] %v9547_v53  ;;  %v2013_v53 = vsel %vm1718_vm0, %v9442_v48, 0.0 }
 0x46e   : > { %2008 = vadd.xlane.f32.xlu1 %v2007_v50  ;;  %v2748_v50 = vpop.permute.xlu1 %2747 }
 0x46f   : > { %v2752_v60 = vpop.permute.xlu0 %2751  ;;  %v2801_v27 = vsel %vm1718_vm0, %v2748_v50, 0.0 }
 0x470   : > { %v2807_v13 = vsel %vm1718_vm0, %v2752_v60, 0.0 }
 0x472   : > { %v2750_v12 = vpop.permute.xlu1 %2749 }
 0x473   : > { %v2756_v43 = vpop.permute.xlu0 %2755 }
 0x476   : > { %v9549_v11 = vpop.permute.xlu1 %2753 }
 0x477   : > { %v2760_v6 = vpop.permute.xlu0 %2759 }
 0x47a   : > { %v9551_v18 = vpop.permute.xlu1 %2757 }
 0x47b   : > { %v2764_v2 = vpop.permute.xlu0 %2763 }
 0x47e   : > { %v9555_v3 = vpop.permute.xlu1 %2761 }
 0x47f   : > { %3135 = vrot.lane.b32.xlu1 %v9442_v48, %s8549_s27  ;;  %v3110_v35 = vpop.permute.xlu0 %3109 }
 0x481   : > { %3137 = vrot.lane.b32.xlu0 %v9448_v9, %s8549_s27 }
 0x482   : > { %v9564_v54 = vpop.permute.xlu1 %2765 }
 0x483   : > { %v9560_v37 = vpop.xlane.xlu0 %4270 }
 0x484   : > { %13487 = vst [vmem:[#allocation88_spill] sm:$0xff] %v9560_v37 }
 0x486   : > { %v9567_v8 = vpop.xlane.xlu1 %1975 }
 0x487   : > { %v9569_v61 = vpop.xlane.xlu0 %1978 }
 0x4a0   : > { %2017 = vadd.xlane.f32.xlu0 %v2016_v19  ;;  %v2795_v19 = vsel %vm1718_vm0, %v2744_v62, 0.0  ;;  %v2813_v62 = vsel %vm1718_vm0, %v2756_v43, 0.0 }
 0x4a3   : > { %2014 = vadd.xlane.f32.xlu1 %v2013_v53  ;;  %v9572_v53 = vpop.xlane.xlu0 %1984 }
 0x4a4   : > { %2790 = vadd.xlane.f32.xlu0 %v2789_v10  ;;  %v3112_v10 = vpop.permute.xlu1 %3111 }
 0x4a7   : > { %2787 = vadd.xlane.f32.xlu1 %v2786_v22  ;;  %v2804_v22 = vsel %vm1718_vm0, %v2750_v12, 0.0 }
 0x4a8   : > { %2793 = vadd.xlane.f32.xlu0 %v2792_v4  ;;  %v9575_v57 = vpop.xlane.xlu1 %4273  ;;  %v3118_v4 = vpop.permute.xlu0 %3117 }
 0x4a9   : > { %13488 = vst [vmem:[#allocation89_spill] sm:$0xff] %v9575_v57 }
 0x4ac   : > { %2796 = vadd.xlane.f32.xlu0 %v2795_v19  ;;  %v3114_v19 = vpop.permute.xlu1 %3113  ;;  %v9581_v50 = vpop.xlane.xlu0 %1990 }
 0x4ad   : > { %v3163_v20 = vsel %vm1718_vm0, %v3114_v19, 0.0  ;;  %v2019_v19 = vsel %vm1718_vm0, %v9454_v39, 0.0 }
 0x4b0   : > { %2802 = vadd.xlane.f32.xlu0 %v2801_v27  ;;  %v2819_v27 = vsel %vm1718_vm0, %v2760_v6, 0.0  ;;  %v9584_v37 = vpop.xlane.xlu1 %1981  ;;  %v3122_v12 = vpop.permute.xlu0 %3121  ;;  %v3169_v6 = vsel %vm1718_vm0, %v3118_v4, 0.0  ;;  %v2798_v4 = vsel %vm1718_vm0, %v9545_v46, 0.0  ;;  %v2822_v46 = vsel %vm1718_vm0, %v9555_v3, 0.0 }
 0x4b4   : > { %2805 = vadd.xlane.f32.xlu0 %v2804_v22  ;;  %v2825_v22 = vsel %vm1718_vm0, %v2764_v2, 0.0  ;;  %v3116_v60 = vpop.permute.xlu1 %3115  ;;  %v9587_v57 = vpop.xlane.xlu0 %1996 }
 0x4b5   : > { %13489 = vst [vmem:[#allocation90_spill] sm:$0xff] %v9587_v57  ;;  %v3175_v57 = vsel %vm1718_vm0, %v3122_v12, 0.0 }
 0x4b8   : > { %3139 = vrot.lane.b32.xlu1 %v9454_v39, %s8549_s27  ;;  %2808 = vadd.xlane.f32.xlu0 %v2807_v13  ;;  %v3157_v13 = vsel %vm1718_vm0, %v3110_v35, 0.0  ;;  %v9590_v43 = vpop.xlane.xlu1 %1987 }
 0x4bc   : > { %2814 = vadd.xlane.f32.xlu0 %v2813_v62  ;;  %v3126_v62 = vpop.permute.xlu0 %3125  ;;  %v3120_v14 = vpop.permute.xlu1 %3119 }
 0x4bd   : > { %v3172_v2 = vsel %vm1718_vm0, %v3120_v14, 0.0 }
 0x4c0   : > { %2820 = vadd.xlane.f32.xlu0 %v2819_v27  ;;  %v9594_v27 = vpop.xlane.xlu0 %2002 }
 0x4c4   : > { %2826 = vadd.xlane.f32.xlu0 %v2825_v22  ;;  %v3130_v22 = vpop.permute.xlu0 %3129 }
 0x4c8   : > { %3158 = vadd.xlane.f32.xlu0 %v3157_v13  ;;  %v9598_v35 = vpop.xlane.xlu0 %2005  ;;  %v3187_v13 = vsel %vm1718_vm0, %v3130_v22, 0.0 }
 0x4cc   : > { %3164 = vadd.xlane.f32.xlu0 %v3163_v20  ;;  %v3181_v20 = vsel %vm1718_vm0, %v3126_v62, 0.0  ;;  %v3134_v14 = vpop.permute.xlu0 %3133  ;;  %v2816_v62 = vsel %vm1718_vm0, %v9551_v18, 0.0  ;;  %v3166_v18 = vsel %vm1718_vm0, %v3116_v60, 0.0 }
 0x4cd   : > { %v3193_v12 = vsel %vm1718_vm0, %v3134_v14, 0.0 }
 0x4d0   : > { %3170 = vadd.xlane.f32.xlu0 %v3169_v6  ;;  %v9609_v6 = vpop.xlane.xlu1 %1993 }
 0x4d4   : > { %3173 = vadd.xlane.f32.xlu0 %v3172_v2  ;;  %v3124_v2 = vpop.permute.xlu1 %3123 }
 0x4d5   : > { %v3178_v3 = vsel %vm1718_vm0, %v3124_v2, 0.0 }
 0x4d8   : > { %3176 = vadd.xlane.f32.xlu0 %v3175_v57  ;;  %v2810_v57 = vsel %vm1718_vm0, %v9549_v11, 0.0  ;;  %v9615_v22 = vpop.xlane.xlu1 %1999  ;;  %v2828_v11 = vsel %vm1718_vm0, %v9564_v54, 0.0 }
 0x4dc   : > { %2020 = vadd.xlane.f32.xlu1 %v2019_v19  ;;  %3182 = vadd.xlane.f32.xlu0 %v3181_v20  ;;  %v3160_v19 = vsel %vm1718_vm0, %v3112_v10, 0.0  ;;  %v3128_v20 = vpop.permute.xlu1 %3127 }
 0x4dd   : > { %v3184_v54 = vsel %vm1718_vm0, %v3128_v20, 0.0 }
 0x4e0   : > { %2799 = vadd.xlane.f32.xlu1 %v2798_v4  ;;  %3188 = vadd.xlane.f32.xlu0 %v3187_v13  ;;  %v3132_v14 = vpop.permute.xlu1 %3131 }
 0x4e1   : > { %v3190_v10 = vsel %vm1718_vm0, %v3132_v14, 0.0 }
 0x4e4   : > { %2811 = vadd.xlane.f32.xlu1 %v2810_v57  ;;  %3194 = vadd.xlane.f32.xlu0 %v3193_v12 }
 0x4e8   : > { %2817 = vadd.xlane.f32.xlu1 %v2816_v62 }
 0x4ec   : > { %2823 = vadd.xlane.f32.xlu1 %v2822_v46 }
 0x4f0   : > { %2829 = vadd.xlane.f32.xlu1 %v2828_v11 }
 0x4f4   : > { %3161 = vadd.xlane.f32.xlu1 %v3160_v19  ;;  %v9620_v4 = vpop.xlane.xlu0 %2011 }
 0x4f5   : > { %13490 = vst [vmem:[#allocation91_spill] sm:$0xff] %v9620_v4 }
 0x4f8   : > { %3167 = vadd.xlane.f32.xlu1 %v3166_v18  ;;  %v2785_v13 = vpop.xlane.xlu0 %2784 }
 0x4f9   : > { %v2831_v11 = vmul.f32 0.015625, %v2785_v13 }
 0x4fb   : > { %v9625_v62 = vpop.xlane.xlu1 %2008  ;;  %v9631_v2 = vsub.f32 %v9270_v44, %v2831_v11 }
 0x4fc   : > { %3179 = vadd.xlane.f32.xlu1 %v3178_v3  ;;  %v3138_v57 = vpop.permute.xlu0 %3137 }
 0x4fd   : > { %v3199_v12 = vsel %vm1718_vm0, %v3138_v57, 0.0  ;;  %13491 = vst [vmem:[#allocation92_spill] sm:$0xff] %v9631_v2  ;;  %v2863_v19 = vmul.f32 %v9631_v2, %v9631_v2 }
 0x4fe   : > { %3200 = vadd.xlane.f32.xlu0 %v3199_v12 }
 0x4ff   : > { %v3136_v46 = vpop.permute.xlu1 %3135 }
 0x500   : > { %3185 = vadd.xlane.f32.xlu1 %v3184_v54  ;;  %v3196_v60 = vsel %vm1718_vm0, %v3136_v46, 0.0 }
 0x504   : > { %3191 = vadd.xlane.f32.xlu1 %v3190_v10 }
 0x508   : > { %3197 = vadd.xlane.f32.xlu1 %v3196_v60 }
 0x514   : > { %2895 = vrot.lane.b32.xlu0 %v2863_v19, %s8549_s27 }
 0x52d   : > { %v9636_v18 = vpop.xlane.xlu0 %2017 }
 0x52e   : > { %13492 = vst [vmem:[#allocation93_spill] sm:$0xff] %v9636_v18 }
 0x530   : > { %v9638_v20 = vpop.xlane.xlu1 %2014 }
 0x531   : > { %13493 = vst [vmem:[#allocation94_spill] sm:$0xff] %v9638_v20  ;;  %v2791_v3 = vpop.xlane.xlu0 %2790 }
 0x532   : > { %v2833_v14 = vmul.f32 0.015625, %v2791_v3 }
 0x534   : > { %v9641_v57 = vsub.f32 %v9286_v63, %v2833_v14  ;;  %v2788_v12 = vpop.xlane.xlu1 %2787 }
 0x535   : > { %v2794_v54 = vpop.xlane.xlu0 %2793 }
 0x536   : > { %13494 = vst [vmem:[#allocation95_spill] sm:$0xff] %v9641_v57  ;;  %v2865_v13 = vmul.f32 %v9641_v57, %v9641_v57  ;;  %v2832_v57 = vmul.f32 0.015625, %v2788_v12 }
 0x538   : > { %v3140_v10 = vpop.permute.xlu1 %3139  ;;  %2899 = vrot.lane.b32.xlu0 %v2865_v13, %s8549_s27 }
 0x539   : > { %v2797_v46 = vpop.xlane.xlu0 %2796  ;;  %v3202_v60 = vsel %vm1718_vm0, %v3140_v10, 0.0 }
 0x53a   : > { %v2835_v11 = vmul.f32 0.015625, %v2797_v46  ;;  %3203 = vadd.xlane.f32.xlu1 %v3202_v60  ;;  %v9660_v46 = vsub.f32 %v9276_v58, %v2832_v57  ;;  %v2834_v60 = vmul.f32 0.015625, %v2794_v54 }
 0x53c   : > { %v9648_v19 = vsub.f32 %v9298_v59, %v2835_v11  ;;  %13497 = vst [vmem:[#allocation98_spill] sm:$0xff] %v9660_v46 }
 0x53d   : > { %v2803_v3 = vpop.xlane.xlu0 %2802 }
 0x53e   : > { %13495 = vst [vmem:[#allocation96_spill] sm:$0xff] %v9648_v19  ;;  %v2867_v14 = vmul.f32 %v9648_v19, %v9648_v19  ;;  %v2837_v2 = vmul.f32 0.015625, %v2803_v3  ;;  %v2864_v3 = vmul.f32 %v9660_v46, %v9660_v46 }
 0x540   : > { %v9653_v63 = vsub.f32 %v9310_v56, %v2837_v2  ;;  %2903 = vrot.lane.b32.xlu0 %v2867_v14, %s8549_s27  ;;  %v9667_v2 = vsub.f32 %v9290_v16, %v2834_v60 }
 0x541   : > { %v2806_v13 = vpop.xlane.xlu0 %2805 }
 0x542   : > { %13496 = vst [vmem:[#allocation97_spill] sm:$0xff] %v9653_v63  ;;  %v2869_v10 = vmul.f32 %v9653_v63, %v9653_v63  ;;  %13498 = vst [vmem:[#allocation99_spill] sm:$0xff] %v9667_v2  ;;  %v2866_v12 = vmul.f32 %v9667_v2, %v9667_v2 }
 0x544   : > { %2907 = vrot.lane.b32.xlu0 %v2869_v10, %s8549_s27 }
 0x545   : > { %v9662_v11 = vpop.xlane.xlu0 %2808 }
 0x549   : > { %v9669_v14 = vpop.xlane.xlu0 %2814 }
 0x54b   : > { %2897 = vrot.lane.b32.xlu1 %v2864_v3, %s8549_s27 }
 0x54d   : > { %v9674_v10 = vpop.xlane.xlu0 %2820 }
 0x54f   : > { %2901 = vrot.lane.b32.xlu1 %v2866_v12, %s8549_s27 }
 0x551   : > { %v9677_v57 = vpop.xlane.xlu0 %2826 }
 0x555   : > { %v3159_v54 = vpop.xlane.xlu0 %3158 }
 0x556   : > { %v3205_v63 = vmul.f32 0.015625, %v3159_v54 }
 0x558   : > { %v9680_v19 = vsub.f32 %v9378_v0, %v3205_v63 }
 0x559   : > { %v3165_v60 = vpop.xlane.xlu0 %3164 }
 0x55a   : > { %13499 = vst [vmem:[#allocation100_spill] sm:$0xff] %v9680_v19  ;;  %v3237_v46 = vmul.f32 %v9680_v19, %v9680_v19 }
 0x55c   : > { %3269 = vrot.lane.b32.xlu0 %v3237_v46, %s8549_s27 }
 0x55d   : > { %v3171_v3 = vpop.xlane.xlu0 %3170 }
 0x55e   : > { %v3209_v59 = vmul.f32 0.015625, %v3171_v3 }
 0x560   : > { %v9686_v2 = vsub.f32 %v9394_v33, %v3209_v59 }
 0x561   : > { %v3174_v58 = vpop.xlane.xlu0 %3173 }
 0x562   : > { %13500 = vst [vmem:[#allocation101_spill] sm:$0xff] %v9686_v2  ;;  %v3241_v12 = vmul.f32 %v9686_v2, %v9686_v2 }
 0x564   : > { %3277 = vrot.lane.b32.xlu0 %v3241_v12, %s8549_s27  ;;  %v2838_v12 = vmul.f32 0.015625, %v2806_v13 }
 0x565   : > { %v3177_v54 = vpop.xlane.xlu0 %3176 }
 0x566   : > { %v3211_v63 = vmul.f32 0.015625, %v3177_v54 }
 0x568   : > { %v9692_v16 = vsub.f32 %v9404_v32, %v3211_v63 }
 0x569   : > { %v9694_v44 = vpop.xlane.xlu1 %2020  ;;  %v3183_v18 = vpop.xlane.xlu0 %3182 }
 0x56a   : > { %13501 = vst [vmem:[#allocation102_spill] sm:$0xff] %v9692_v16  ;;  %13502 = vst [vmem:[#allocation103_spill] sm:$0xff] %v9694_v44  ;;  %v3243_v46 = vmul.f32 %v9692_v16, %v9692_v16  ;;  %v3213_v3 = vmul.f32 0.015625, %v3183_v18  ;;  %v3210_v16 = vmul.f32 0.015625, %v3174_v58 }
 0x56c   : > { %v9699_v59 = vsub.f32 %v9416_v29, %v3213_v3  ;;  %3281 = vrot.lane.b32.xlu0 %v3243_v46, %s8549_s27  ;;  %v9714_v46 = vsub.f32 %v9314_v38, %v2838_v12 }
 0x56d   : > { %v2800_v2 = vpop.xlane.xlu1 %2799  ;;  %v3189_v20 = vpop.xlane.xlu0 %3188 }
 0x56e   : > { %13503 = vst [vmem:[#allocation104_spill] sm:$0xff] %v9699_v59  ;;  %v3245_v54 = vmul.f32 %v9699_v59, %v9699_v59  ;;  %v2836_v63 = vmul.f32 0.015625, %v2800_v2  ;;  %v3215_v4 = vmul.f32 0.015625, %v3189_v20  ;;  %13506 = vst [vmem:[#allocation107_spill] sm:$0xff] %v9714_v46  ;;  %v2870_v12 = vmul.f32 %v9714_v46, %v9714_v46 }
 0x570   : > { %v9705_v44 = vsub.f32 %v9302_v17, %v2836_v63  ;;  %v9708_v19 = vsub.f32 %v9424_v55, %v3215_v4  ;;  %3285 = vrot.lane.b32.xlu0 %v3245_v54, %s8549_s27 }
 0x571   : > { %v9711_v18 = vpop.xlane.xlu1 %2811  ;;  %v3195_v3 = vpop.xlane.xlu0 %3194 }
 0x572   : > { %13504 = vst [vmem:[#allocation105_spill] sm:$0xff] %v9705_v44  ;;  %13505 = vst [vmem:[#allocation106_spill] sm:$0xff] %v9708_v19  ;;  %v2868_v13 = vmul.f32 %v9705_v44, %v9705_v44  ;;  %v3247_v20 = vmul.f32 %v9708_v19, %v9708_v19  ;;  %v3217_v2 = vmul.f32 0.015625, %v3195_v3 }
 0x574   : > { %v9721_v63 = vsub.f32 %v9436_v45, %v3217_v2  ;;  %2905 = vrot.lane.b32.xlu1 %v2868_v13, %s8549_s27  ;;  %3289 = vrot.lane.b32.xlu0 %v3247_v20, %s8549_s27  ;;  %v3207_v13 = vmul.f32 0.015625, %v3165_v60  ;;  %v9753_v45 = vsub.f32 %v9398_v5, %v3210_v16 }
 0x575   : > { %v9725_v4 = vpop.xlane.xlu1 %2817 }
 0x576   : > { %13507 = vst [vmem:[#allocation108_spill] sm:$0xff] %v9721_v63  ;;  %v3249_v54 = vmul.f32 %v9721_v63, %v9721_v63  ;;  %v9741_v46 = vsub.f32 %v9386_v26, %v3207_v13  ;;  %13511 = vst [vmem:[#allocation112_spill] sm:$0xff] %v9753_v45 }
 0x578   : > { %2909 = vrot.lane.b32.xlu1 %v2870_v12, %s8549_s27  ;;  %3293 = vrot.lane.b32.xlu0 %v3249_v54, %s8549_s27  ;;  %13509 = vst [vmem:[#allocation110_spill] sm:$0xff] %v9741_v46  ;;  %v3239_v17 = vmul.f32 %v9741_v46, %v9741_v46 }
 0x579   : > { %v9733_v3 = vpop.xlane.xlu1 %2823 }
 0x57d   : > { %v9735_v2 = vpop.xlane.xlu1 %2829 }
 0x581   : > { %v3162_v44 = vpop.xlane.xlu1 %3161 }
 0x582   : > { %v3206_v19 = vmul.f32 0.015625, %v3162_v44 }
 0x584   : > { %v9738_v20 = vsub.f32 %v9382_v40, %v3206_v19 }
 0x585   : > { %v3168_v59 = vpop.xlane.xlu1 %3167 }
 0x586   : > { %13508 = vst [vmem:[#allocation109_spill] sm:$0xff] %v9738_v20  ;;  %v3238_v63 = vmul.f32 %v9738_v20, %v9738_v20  ;;  %v3208_v12 = vmul.f32 0.015625, %v3168_v59 }
 0x588   : > { %3271 = vrot.lane.b32.xlu1 %v3238_v63, %s8549_s27  ;;  %v9749_v44 = vsub.f32 %v9390_v15, %v3208_v12 }
 0x589   : > { %v3180_v54 = vpop.xlane.xlu1 %3179 }
 0x58a   : > { %13510 = vst [vmem:[#allocation111_spill] sm:$0xff] %v9749_v44  ;;  %v3240_v59 = vmul.f32 %v9749_v44, %v9749_v44  ;;  %v3212_v63 = vmul.f32 0.015625, %v3180_v54 }
 0x58b   : > { %v3201_v19 = vpop.xlane.xlu0 %3200 }
 0x58c   : > { %v3219_v60 = vmul.f32 0.015625, %v3201_v19  ;;  %3273 = vrot.lane.b32.xlu1 %v3239_v17, %s8549_s27  ;;  %v3242_v17 = vmul.f32 %v9753_v45, %v9753_v45  ;;  %v9766_v19 = vsub.f32 %v9410_v24, %v3212_v63 }
 0x58d   : > { %v3186_v13 = vpop.xlane.xlu1 %3185 }
 0x58e   : > { %v9758_v20 = vsub.f32 %v9448_v9, %v3219_v60  ;;  %13513 = vst [vmem:[#allocation114_spill] sm:$0xff] %v9766_v19  ;;  %v3214_v16 = vmul.f32 0.015625, %v3186_v13  ;;  %v3244_v54 = vmul.f32 %v9766_v19, %v9766_v19 }
 0x590   : > { %13512 = vst [vmem:[#allocation113_spill] sm:$0xff] %v9758_v20  ;;  %v3251_v58 = vmul.f32 %v9758_v20, %v9758_v20  ;;  %3275 = vrot.lane.b32.xlu1 %v3240_v59, %s8549_s27  ;;  %v9773_v60 = vsub.f32 %v9420_v31, %v3214_v16  ;;  %v9795_v16 = vpop.permute.xlu0 %2895 }
 0x591   : > { %v3192_v12 = vpop.xlane.xlu1 %3191 }
 0x592   : > { %3297 = vrot.lane.b32.xlu0 %v3251_v58, %s8549_s27  ;;  %13514 = vst [vmem:[#allocation115_spill] sm:$0xff] %v9773_v60  ;;  %v3216_v20 = vmul.f32 0.015625, %v3192_v12  ;;  %v3246_v45 = vmul.f32 %v9773_v60, %v9773_v60 }
 0x594   : > { %3279 = vrot.lane.b32.xlu1 %v3242_v17, %s8549_s27  ;;  %v9779_v63 = vsub.f32 %v9428_v34, %v3216_v20  ;;  %v1740_v20 = vsel %vm1718_vm0, %v9314_v38, 0.0 }
 0x595   : > { %v3198_v59 = vpop.xlane.xlu1 %3197 }
 0x596   : > { %13515 = vst [vmem:[#allocation116_spill] sm:$0xff] %v9779_v63  ;;  %v3218_v13 = vmul.f32 0.015625, %v3198_v59  ;;  %v3248_v58 = vmul.f32 %v9779_v63, %v9779_v63 }
 0x598   : > { %3283 = vrot.lane.b32.xlu1 %v3244_v54, %s8549_s27  ;;  %v9785_v17 = vsub.f32 %v9442_v48, %v3218_v13 }
 0x59a   : > { %13516 = vst [vmem:[#allocation117_spill] sm:$0xff] %v9785_v17  ;;  %v3250_v12 = vmul.f32 %v9785_v17, %v9785_v17 }
 0x59c   : > { %3287 = vrot.lane.b32.xlu1 %v3246_v45, %s8549_s27  ;;  %v4275_v45 = vsel %vm1718_vm0, %v9388_v47, 0.0 }
 0x5a0   : > { %3291 = vrot.lane.b32.xlu1 %v3248_v58, %s8549_s27 }
 0x5a4   : > { %3295 = vrot.lane.b32.xlu1 %v3250_v12, %s8549_s27 }
 0x5aa   : > { %v9797_v54 = vpop.permute.xlu0 %2899 }
 0x5b1   : > { %1741 = vadd.xlane.f32.xlu0 %v1740_v20 }
 0x5b2   : > { %v9799_v59 = vpop.permute.xlu0 %2903 }
 0x5b5   : > { %4276 = vadd.xlane.f32.xlu0 %v4275_v45 }
 0x5b6   : > { %v9801_v63 = vpop.permute.xlu0 %2907 }
 0x5c7   : > { %v3204_v13 = vpop.xlane.xlu1 %3203 }
 0x5c8   : > { %v3220_v58 = vmul.f32 0.015625, %v3204_v13  ;;  %v1737_v13 = vsel %vm1718_vm0, %v9310_v56, 0.0 }
 0x5ca   : > { %v9804_v12 = vsub.f32 %v9454_v39, %v3220_v58  ;;  %v4278_v58 = vsel %vm1718_vm0, %v9392_v52, 0.0 }
 0x5cb   : > { %v9810_v47 = vpop.permute.xlu1 %2897 }
 0x5cc   : > { %13517 = vst [vmem:[#allocation118_spill] sm:$0xff] %v9804_v12  ;;  %v3252_v20 = vmul.f32 %v9804_v12, %v9804_v12 }
 0x5ce   : > { %3299 = vrot.lane.b32.xlu1 %v3252_v20, %s8549_s27  ;;  %v3270_v17 = vpop.permute.xlu0 %3269 }
 0x5cf   : > { %v3317_v45 = vsel %vm1718_vm0, %v3270_v17, 0.0  ;;  %v9812_v60 = vpop.permute.xlu1 %2901 }
 0x5d0   : > { %3318 = vadd.xlane.f32.xlu0 %v3317_v45 }
 0x5d6   : > { %v3278_v46 = vpop.permute.xlu0 %3277 }
 0x5d7   : > { %v3329_v52 = vsel %vm1718_vm0, %v3278_v46, 0.0 }
 0x5de   : > { %v3282_v44 = vpop.permute.xlu0 %3281 }
 0x5e6   : > { %v9814_v38 = vpop.permute.xlu1 %2905 }
 0x5ea   : > { %v9820_v12 = vpop.permute.xlu1 %2909 }
 0x5f2   : > { %1738 = vadd.xlane.f32.xlu1 %v1737_v13 }
 0x5f6   : > { %4279 = vadd.xlane.f32.xlu1 %v4278_v58  ;;  %v3335_v58 = vsel %vm1718_vm0, %v3282_v44, 0.0 }
 0x5fa   : > { %v3272_v20 = vpop.permute.xlu1 %3271 }
 0x5fb   : > { %v3320_v17 = vsel %vm1718_vm0, %v3272_v20, 0.0  ;;  %v2840_v20 = vmul.f32 0.015625, %v9711_v18 }
 0x5fc   : > { %3321 = vadd.xlane.f32.xlu1 %v3320_v17 }
 0x5fe   : > { %v3274_v45 = vpop.permute.xlu1 %3273 }
 0x5ff   : > { %v3323_v19 = vsel %vm1718_vm0, %v3274_v45, 0.0 }
 0x600   : > { %3324 = vadd.xlane.f32.xlu1 %v3323_v19  ;;  %v9830_v19 = vsub.f32 %v9328_v36, %v2840_v20 }
 0x602   : > { %v3276_v39 = vpop.permute.xlu1 %3275  ;;  %13518 = vst [vmem:[#allocation119_spill] sm:$0xff] %v9830_v19 }
 0x603   : > { %v3326_v9 = vsel %vm1718_vm0, %v3276_v39, 0.0  ;;  %v2872_v39 = vmul.f32 %v9830_v19, %v9830_v19  ;;  %v2846_v19 = vmul.f32 0.015625, %v9735_v2 }
 0x604   : > { %3327 = vadd.xlane.f32.xlu0 %v3326_v9  ;;  %v2839_v9 = vmul.f32 0.015625, %v9662_v11 }
 0x606   : > { %v3280_v13 = vpop.permute.xlu1 %3279  ;;  %v9837_v46 = vsub.f32 %v9324_v51, %v2839_v9 }
 0x607   : > { %v3332_v56 = vsel %vm1718_vm0, %v3280_v13, 0.0  ;;  %v2022_v13 = vmul.f32 0.015625, %v9567_v8 }
 0x608   : > { %3333 = vadd.xlane.f32.xlu1 %v3332_v56  ;;  %3330 = vadd.xlane.f32.xlu0 %v3329_v52  ;;  %13519 = vst [vmem:[#allocation120_spill] sm:$0xff] %v9837_v46  ;;  %v2871_v56 = vmul.f32 %v9837_v46, %v9837_v46  ;;  %v3286_v52 = vpop.permute.xlu0 %3285 }
 0x609   : > { %v3341_v11 = vsel %vm1718_vm0, %v3286_v52, 0.0  ;;  %v9847_v9 = vsub.f32 %v9378_v0, %v2022_v13  ;;  %v1746_v52 = vsel %vm1718_vm0, %v9328_v36, 0.0 }
 0x60a   : > { %v3284_v18 = vpop.permute.xlu1 %3283 }
 0x60b   : > { %v3338_v17 = vsel %vm1718_vm0, %v3284_v18, 0.0  ;;  %v2023_v18 = vmul.f32 0.015625, %v9569_v61  ;;  %v1743_v61 = vsel %vm1718_vm0, %v9324_v51, 0.0 }
 0x60c   : > { %3336 = vadd.xlane.f32.xlu0 %v3335_v58  ;;  %v3290_v44 = vpop.permute.xlu0 %3289 }
 0x60d   : > { %v3347_v58 = vsel %vm1718_vm0, %v3290_v44, 0.0  ;;  %v2054_v44 = vmul.f32 %v9847_v9, %v9847_v9  ;;  %v9858_v0 = vsub.f32 %v9382_v40, %v2023_v18  ;;  %v2842_v40 = vmul.f32 0.015625, %v9725_v4 }
 0x60e   : > { %v3288_v45 = vpop.permute.xlu1 %3287 }
 0x60f   : > { %v2055_v13 = vmul.f32 %v9858_v0, %v9858_v0 }
 0x610   : > { %v3294_v20 = vpop.permute.xlu0 %3293 }
 0x611   : > { %v3353_v46 = vsel %vm1718_vm0, %v3294_v20, 0.0 }
 0x614   : > { %v3298_v4 = vpop.permute.xlu0 %3297 }
 0x619   : > { %2913 = vrot.lane.b32.xlu1 %v2872_v39, %s8549_s27  ;;  %v3292_v39 = vpop.permute.xlu1 %3291 }
 0x61a   : > { %v3350_v8 = vsel %vm1718_vm0, %v3292_v39, 0.0  ;;  %v9873_v39 = vsub.f32 %v9342_v30, %v2842_v40 }
 0x61c   : > { %13521 = vst [vmem:[#allocation122_spill] sm:$0xff] %v9873_v39  ;;  %v2874_v18 = vmul.f32 %v9873_v39, %v9873_v39 }
 0x622   : > { %2911 = vrot.lane.b32.xlu0 %v2871_v56, %s8549_s27  ;;  %v3344_v56 = vsel %vm1718_vm0, %v3288_v45, 0.0 }
 0x63d   : > { %3339 = vadd.xlane.f32.xlu1 %v3338_v17  ;;  %v3296_v17 = vpop.permute.xlu1 %3295 }
 0x63e   : > { %v3356_v45 = vsel %vm1718_vm0, %v3296_v17, 0.0 }
 0x641   : > { %3342 = vadd.xlane.f32.xlu1 %v3341_v11  ;;  %3348 = vadd.xlane.f32.xlu0 %v3347_v58  ;;  %v2073_v11 = vsel %vm1718_vm0, %v2055_v13, 0.0  ;;  %v2841_v58 = vmul.f32 0.015625, %v9669_v14  ;;  %v1752_v14 = vsel %vm1718_vm0, %v9342_v30, 0.0  ;;  %v3300_v17 = vpop.permute.xlu1 %3299  ;;  %v2844_v13 = vmul.f32 0.015625, %v9733_v3 }
 0x643   : > { %v9870_v20 = vsub.f32 %v9338_v42, %v2841_v58  ;;  %v9897_v58 = vsub.f32 %v9354_v41, %v2844_v13  ;;  %v1758_v13 = vsel %vm1718_vm0, %v9354_v41, 0.0  ;;  %v9965_v41 = vsub.f32 %v9370_v28, %v2846_v19 }
 0x645   : > { %3345 = vadd.xlane.f32.xlu1 %v3344_v56  ;;  %3354 = vadd.xlane.f32.xlu0 %v3353_v46  ;;  %v2070_v46 = vsel %vm1718_vm0, %v2054_v44, 0.0  ;;  %13520 = vst [vmem:[#allocation121_spill] sm:$0xff] %v9870_v20  ;;  %v2873_v56 = vmul.f32 %v9870_v20, %v9870_v20  ;;  %v4281_v44 = vsel %vm1718_vm0, %v9396_v1, 0.0  ;;  %13523 = vst [vmem:[#allocation124_spill] sm:$0xff] %v9897_v58  ;;  %v1755_v20 = vsel %vm1718_vm0, %v9350_v23, 0.0 }
 0x646   : > { %13526 = vst [vmem:[#allocation127_spill] sm:$0xff] %v9965_v41 }
 0x649   : > { %3351 = vadd.xlane.f32.xlu1 %v3350_v8  ;;  %1747 = vadd.xlane.f32.xlu0 %v1746_v52  ;;  %v3359_v8 = vsel %vm1718_vm0, %v3298_v4, 0.0  ;;  %v1749_v52 = vsel %vm1718_vm0, %v9338_v42, 0.0 }
 0x64d   : > { %3357 = vadd.xlane.f32.xlu1 %v3356_v45  ;;  %2071 = vadd.xlane.f32.xlu0 %v2070_v46  ;;  %v3362_v45 = vsel %vm1718_vm0, %v3300_v17, 0.0  ;;  %v4284_v46 = vsel %vm1718_vm0, %v9400_v25, 0.0 }
 0x651   : > { %1744 = vadd.xlane.f32.xlu1 %v1743_v61  ;;  %v2843_v61 = vmul.f32 0.015625, %v9674_v10 }
 0x655   : > { %2074 = vadd.xlane.f32.xlu1 %v2073_v11  ;;  %v9894_v11 = vsub.f32 %v9350_v23, %v2843_v61 }
 0x657   : > { %13522 = vst [vmem:[#allocation123_spill] sm:$0xff] %v9894_v11  ;;  %v2875_v40 = vmul.f32 %v9894_v11, %v9894_v11 }
 0x663   : > { %2915 = vrot.lane.b32.xlu0 %v2873_v56, %s8549_s27  ;;  %v2876_v56 = vmul.f32 %v9897_v58, %v9897_v58 }
 0x666   : > { %2917 = vrot.lane.b32.xlu1 %v2874_v18, %s8549_s27  ;;  %v9905_v18 = vpop.xlane.xlu0 %1741 }
 0x66a   : > { %v9909_v3 = vpop.xlane.xlu0 %4276 }
 0x66e   : > { %v9913_v4 = vpop.xlane.xlu0 %3318 }
 0x67f   : > { %v9907_v10 = vpop.xlane.xlu1 %1738 }
 0x682   : > { %1753 = vadd.xlane.f32.xlu0 %v1752_v14 }
 0x683   : > { %v9911_v14 = vpop.xlane.xlu1 %4279 }
 0x686   : > { %3360 = vadd.xlane.f32.xlu0 %v3359_v8  ;;  %v2024_v8 = vmul.f32 0.015625, %v9584_v37 }
 0x688   : > { %v9921_v17 = vsub.f32 %v9386_v26, %v2024_v8 }
 0x68a   : > { %1750 = vadd.xlane.f32.xlu1 %v1749_v52  ;;  %4282 = vadd.xlane.f32.xlu0 %v4281_v44  ;;  %v9916_v52 = vpop.xlane.xlu1 %3321 }
 0x68e   : > { %3363 = vadd.xlane.f32.xlu1 %v3362_v45  ;;  %v9923_v45 = vpop.xlane.xlu1 %3324 }
 0x691   : > { %v9918_v44 = vpop.xlane.xlu0 %3327 }
 0x692   : > { %4285 = vadd.xlane.f32.xlu1 %v4284_v46  ;;  %v2025_v46 = vmul.f32 0.015625, %v9572_v53 }
 0x695   : > { %v9926_v61 = vpop.xlane.xlu0 %3330  ;;  %v9932_v37 = vpop.xlane.xlu1 %3333 }
 0x699   : > { %v9938_v8 = vpop.xlane.xlu0 %3336  ;;  %v9940_v53 = vpop.permute.xlu1 %2913 }
 0x6a0   : > { %2919 = vrot.lane.b32.xlu0 %v2875_v40, %s8549_s27  ;;  %v2056_v40 = vmul.f32 %v9921_v17, %v9921_v17 }
 0x6a2   : > { %v2076_v26 = vsel %vm1718_vm0, %v2056_v40, 0.0 }
 0x6a3   : > { %2921 = vrot.lane.b32.xlu1 %v2876_v56, %s8549_s27  ;;  %v9935_v56 = vsub.f32 %v9390_v15, %v2025_v46 }
 0x6a5   : > { %v2057_v39 = vmul.f32 %v9935_v56, %v9935_v56 }
 0x6a7   : > { %v2079_v15 = vsel %vm1718_vm0, %v2057_v39, 0.0 }
 0x6bf   : > { %1759 = vadd.xlane.f32.xlu0 %v1758_v13  ;;  %v9946_v13 = vpop.permute.xlu0 %2911 }
 0x6c3   : > { %2077 = vadd.xlane.f32.xlu0 %v2076_v26  ;;  %v2845_v26 = vmul.f32 0.015625, %v9677_v57  ;;  %v2878_v57 = vmul.f32 %v9965_v41, %v9965_v41 }
 0x6c7   : > { %1756 = vadd.xlane.f32.xlu1 %v1755_v20  ;;  %v9962_v20 = vsub.f32 %v9366_v21, %v2845_v26 }
 0x6c9   : > { %13525 = vst [vmem:[#allocation126_spill] sm:$0xff] %v9962_v20  ;;  %v2877_v23 = vmul.f32 %v9962_v20, %v9962_v20 }
 0x6ca   : > { %v9948_v11 = vpop.xlane.xlu1 %3339 }
 0x6cb   : > { %2080 = vadd.xlane.f32.xlu1 %v2079_v15 }
 0x6ce   : > { %v9951_v46 = vpop.xlane.xlu1 %3342  ;;  %v9953_v40 = vpop.xlane.xlu0 %3348 }
 0x6d2   : > { %v9957_v58 = vpop.xlane.xlu1 %3345  ;;  %v9959_v1 = vpop.xlane.xlu0 %3354 }
 0x6d3   : > { %13524 = vst [vmem:[#allocation125_spill] sm:$0xff] %v9959_v1 }
 0x6d6   : > { %v9967_v39 = vpop.xlane.xlu1 %3351  ;;  %v9969_v15 = vpop.xlane.xlu0 %1747 }
 0x6d7   : > { %13527 = vst [vmem:[#allocation128_spill] sm:$0xff] %v9969_v15 }
 0x6d9   : > { %2923 = vrot.lane.b32.xlu0 %v2877_v23, %s8549_s27 }
 0x6da   : > { %v9976_v2 = vpop.xlane.xlu1 %3357  ;;  %v2072_v1 = vpop.xlane.xlu0 %2071 }
 0x6db   : > { %v2118_v26 = vmul.f32 0.015625, %v2072_v1  ;;  %v9986_v1 = vld [vmem:[%s13158_s6] ss:$0 sm:$0xff] }
 0x6dc   : > { %2925 = vrot.lane.b32.xlu1 %v2878_v57, %s8549_s27 }
 0x6dd   : > { %v2134_v19 = vadd.f32 1e-05, %v2118_v26 }
 0x6de   : > { %v9979_v25 = vpop.xlane.xlu1 %1744 }
 0x6df   : > { %7828 = vrsqrt.f32 %v2134_v19 }
 0x6e2   : > { %v2075_v36 = vpop.xlane.xlu1 %2074 }
 0x6e3   : > { %v2119_v15 = vmul.f32 0.015625, %v2075_v36  ;;  %v9993_v36 = vld [vmem:[%s13159_s7] ss:$0 sm:$0xff] }
 0x6e5   : > { %v2135_v30 = vadd.f32 1e-05, %v2119_v15  ;;  %v2943_v15 = vsel %vm1718_vm0, %v9795_v16, 0.0  ;;  %v2946_v16 = vsel %vm1718_vm0, %v9810_v47, 0.0  ;;  %v4290_v47 = vsel %vm1718_vm0, %v9412_v49, 0.0 }
 0x6e6   : > { %v3367_v49 = vmul.f32 0.015625, %v9923_v45 }
 0x6e7   : > { %7830 = vrsqrt.f32 %v2135_v30 }
 0x6e9   : > { %v7829_v20 = vpop.eup %7828 }
 0x6ea   : > { %v2166_v23 = vmul.f32 %v7829_v20, %v9847_v9 }
 0x6ec   : > { %v2188_v57 = vmul.f32 %v9986_v1, %v2166_v23  ;;  %v1761_v23 = vsel %vm1718_vm0, %v9366_v21, 0.0 }
 0x6ee   : > { %v2210_v30 = vadd.f32 %v9993_v36, %v2188_v57  ;;  %v2949_v57 = vsel %vm1718_vm0, %v9797_v54, 0.0 }
 0x6f1   : > { %v7831_v42 = vpop.eup %7830 }
 0x6f2   : > { %v2167_v41 = vmul.f32 %v7831_v42, %v9858_v0  ;;  %v1764_v42 = vsel %vm1718_vm0, %v9370_v28, 0.0 }
 0x6f4   : > { %v2189_v26 = vmul.f32 %v9986_v1, %v2167_v41  ;;  %v2026_v41 = vmul.f32 0.015625, %v9590_v43  ;;  %v2027_v43 = vmul.f32 0.015625, %v9581_v50 }
 0x6f6   : > { %v2211_v9 = vadd.f32 %v9993_v36, %v2189_v26  ;;  %v10005_v19 = vsub.f32 %v9394_v33, %v2026_v41  ;;  %v4287_v26 = vsel %vm1718_vm0, %v9408_v7, 0.0  ;;  %v13543_v7 = vld [vmem:[#allocation81_spill] sm:$0xff] }
 0x6f8   : > { %1765 = vadd.xlane.f32.xlu0 %v1764_v42  ;;  %v2234_v0 = vpack.c.bf16 %v2211_v9, %v2210_v30  ;;  %v2028_v30 = vmul.f32 0.015625, %v9609_v6  ;;  %v2058_v33 = vmul.f32 %v10005_v19, %v10005_v19  ;;  %v10020_v9 = vsub.f32 %v9398_v5, %v2027_v43  ;;  %v13528_v6 = vld [vmem:[#allocation71_spill] sm:$0xff] }
 0x6f9   : > { %v2952_v42 = vsel %vm1718_vm0, %v9812_v60, 0.0  ;;  %v2030_v5 = vmul.f32 0.015625, %v9615_v22  ;;  %v13530_v22 = vld [vmem:[#allocation72_spill] sm:$0xff] }
 0x6fa   : > { %7496 = vmatprep.subr.msk.bf16.mxu1 %vm1718_vm0, %v2234_v0  ;;  %v2267_v20 = vsel %vm1718_vm0, %v2234_v0, 0  ;;  %v10023_v54 = vsub.f32 %v9404_v32, %v2028_v30  ;;  %v2082_v50 = vsel %vm1718_vm0, %v2058_v33, 0.0  ;;  %v4293_v0 = vsel %vm1718_vm0, %v13528_v6, 0.0  ;;  %v13531_v30 = vld [vmem:[#allocation73_spill] sm:$0xff] }
 0x6fb   : > { %7241 = vmatpush3.bf16.xpose.msra.mxu1 %v2267_v20  ;;  %v13529_v20 = vld [vmem:[#allocation90_spill] sm:$0xff]  ;;  %v2059_v32 = vmul.f32 %v10020_v9, %v10020_v9  ;;  %v4296_v43 = vsel %vm1718_vm0, %v13530_v22, 0.0  ;;  %v2031_v33 = vmul.f32 0.015625, %v9594_v27 }
 0x6fc   : > { %2944 = vadd.xlane.f32.xlu0 %v2943_v15  ;;  %v2029_v41 = vmul.f32 0.015625, %v13529_v20  ;;  %v2060_v60 = vmul.f32 %v10023_v54, %v10023_v54  ;;  %v3365_v20 = vmul.f32 0.015625, %v9913_v4 }
 0x6fe   : > { %v10039_v15 = vsub.f32 %v9410_v24, %v2029_v41  ;;  %v2032_v24 = vmul.f32 0.015625, %v9598_v35 }
 0x700   : > { %1762 = vadd.xlane.f32.xlu1 %v1761_v23  ;;  %2950 = vadd.xlane.f32.xlu0 %v2949_v57  ;;  %v10042_v23 = vsub.f32 %v9416_v29, %v2030_v5  ;;  %v2085_v57 = vsel %vm1718_vm0, %v2059_v32, 0.0  ;;  %v2061_v29 = vmul.f32 %v10039_v15, %v10039_v15  ;;  %v13532_v5 = vld [vmem:[#allocation74_spill] sm:$0xff] }
 0x701   : > { %v4302_v32 = vsel %vm1718_vm0, %v13532_v5, 0.0 }
 0x702   : > { %v2091_v27 = vsel %vm1718_vm0, %v2061_v29, 0.0 }
 0x704   : > { %2947 = vadd.xlane.f32.xlu1 %v2946_v16  ;;  %4288 = vadd.xlane.f32.xlu0 %v4287_v26  ;;  %v2088_v26 = vsel %vm1718_vm0, %v2060_v60, 0.0  ;;  %v4299_v16 = vsel %vm1718_vm0, %v13531_v30, 0.0  ;;  %v13533_v60 = vld [vmem:[#allocation76_spill] sm:$0xff]  ;;  %v3368_v30 = vmul.f32 0.015625, %v9918_v44 }
 0x708   : > { %2953 = vadd.xlane.f32.xlu1 %v2952_v42  ;;  %2083 = vadd.xlane.f32.xlu0 %v2082_v50  ;;  %v2062_v42 = vmul.f32 %v10042_v23, %v10042_v23  ;;  %v3366_v50 = vmul.f32 0.015625, %v9916_v52  ;;  %v2033_v52 = vmul.f32 0.015625, %v9625_v62 }
 0x70a   : > { %v2094_v35 = vsel %vm1718_vm0, %v2062_v42, 0.0  ;;  %v3382_v41 = vadd.f32 1e-05, %v3366_v50  ;;  %v10076_v4 = vsub.f32 %v9428_v34, %v2033_v52  ;;  %v13535_v50 = vld [vmem:[#allocation109_spill] sm:$0xff] }
 0x70c   : > { %4291 = vadd.xlane.f32.xlu1 %v4290_v47  ;;  %4294 = vadd.xlane.f32.xlu0 %v4293_v0  ;;  %v10058_v47 = vsub.f32 %v9420_v31, %v2031_v33  ;;  %v10061_v0 = vsub.f32 %v9424_v55, %v2032_v24  ;;  %v4305_v31 = vsel %vm1718_vm0, %v13533_v60, 0.0  ;;  %7832 = vrsqrt.f32 %v3382_v41  ;;  %v13537_v41 = vld [vmem:[#allocation14_spill] sm:$0xff] }
 0x70d   : > { %v2065_v24 = vmul.f32 %v10076_v4, %v10076_v4 }
 0x70e   : > { %v2063_v55 = vmul.f32 %v10058_v47, %v10058_v47 }
 0x70f   : > { %v2103_v29 = vsel %vm1718_vm0, %v2065_v24, 0.0  ;;  %v10100_v24 = vpop.permute.xlu1 %2917 }
 0x710   : > { %2086 = vadd.xlane.f32.xlu1 %v2085_v57  ;;  %2089 = vadd.xlane.f32.xlu0 %v2088_v26  ;;  %v2064_v57 = vmul.f32 %v10061_v0, %v10061_v0  ;;  %v3381_v26 = vadd.f32 1e-05, %v3365_v20 }
 0x712   : > { %v2100_v62 = vsel %vm1718_vm0, %v2064_v57, 0.0  ;;  %7834 = vrsqrt.f32 %v3381_v26  ;;  %v13538_v57 = vld [vmem:[#allocation15_spill] sm:$0xff] }
 0x714   : > { %4297 = vadd.xlane.f32.xlu1 %v4296_v43  ;;  %4300 = vadd.xlane.f32.xlu0 %v4299_v16  ;;  %v2097_v43 = vsel %vm1718_vm0, %v2063_v55, 0.0  ;;  %v13534_v16 = vld [vmem:[#allocation77_spill] sm:$0xff]  ;;  %v7037_v55 = vld [vmem:[%s13156_s4] ss:$0 sm:$0xff] }
 0x715   : > { %v4308_v33 = vsel %vm1718_vm0, %v13534_v16, 0.0 }
 0x716   : > { %v7833_v42 = vpop.eup %7832 }
 0x718   : > { %2092 = vadd.xlane.f32.xlu1 %v2091_v27  ;;  %2095 = vadd.xlane.f32.xlu0 %v2094_v35  ;;  %v3414_v27 = vmul.f32 %v7833_v42, %v13535_v50  ;;  %v13536_v35 = vld [vmem:[#allocation100_spill] sm:$0xff] }
 0x71c   : > { %4303 = vadd.xlane.f32.xlu1 %v4302_v32  ;;  %4306 = vadd.xlane.f32.xlu0 %v4305_v31  ;;  %v7835_v34 = vpop.eup %7834  ;;  %v3433_v32 = vmul.f32 %v13537_v41, %v3414_v27  ;;  %v10089_v31 = vpop.permute.xlu0 %2915 }
 0x71d   : > { %v3413_v20 = vmul.f32 %v7835_v34, %v13536_v35  ;;  %v10108_v34 = vpop.xlane.xlu1 %1750 }
 0x71e   : > { %v3452_v26 = vadd.f32 %v13538_v57, %v3433_v32  ;;  %v13540_v32 = vld [vmem:[#allocation91_spill] sm:$0xff] }
 0x71f   : > { %v3432_v52 = vmul.f32 %v13537_v41, %v3413_v20 }
 0x720   : > { %2098 = vadd.xlane.f32.xlu1 %v2097_v43  ;;  %2101 = vadd.xlane.f32.xlu0 %v2100_v62  ;;  %v10096_v62 = vpop.xlane.xlu0 %1753 }
 0x721   : > { %v3451_v43 = vadd.f32 %v13538_v57, %v3432_v52  ;;  %v10112_v27 = vpop.xlane.xlu1 %3363  ;;  %v2034_v52 = vmul.f32 0.015625, %v13540_v32 }
 0x724   : > { %4309 = vadd.xlane.f32.xlu1 %v4308_v33  ;;  %v3475_v33 = vpack.c.bf16 %v3452_v26, %v3451_v43  ;;  %v10105_v42 = vpop.xlane.xlu0 %3360  ;;  %v13541_v26 = vld [vmem:[#allocation75_spill] sm:$0xff] }
 0x725   : > { %13539 = vst [vmem:[#allocation90_spill] sm:$0xff] %v10105_v42  ;;  %v10116_v20 = vpop.xlane.xlu1 %4285  ;;  %v10122_v43 = vsub.f32 %v13541_v26, %v2034_v52  ;;  %v4314_v52 = vsel %vm1718_vm0, %v13543_v7, 0.0 }
 0x727   : > { %v2066_v26 = vmul.f32 %v10122_v43, %v10122_v43 }
 0x728   : > { %2104 = vadd.xlane.f32.xlu1 %v2103_v29  ;;  %v7038_v29 = vld [vmem:[%s13157_s5] ss:$0 sm:$0xff]  ;;  %v10110_v50 = vpop.xlane.xlu0 %4282 }
 0x729   : > { %v2106_v44 = vsel %vm1718_vm0, %v2066_v26, 0.0  ;;  %v2955_v26 = vsel %vm1718_vm0, %v9799_v59, 0.0  ;;  %v13546_v59 = vld [vmem:[#allocation110_spill] sm:$0xff] }
 0x72c   : > { %v10114_v35 = vpop.permute.xlu0 %2919 }
 0x736   : > { %3055 = vrot.lane.b32.xlu0 %v7037_v55, %s8549_s27 }
 0x739   : > { %3515 = vrot.lane.b32.xlu1 %v3475_v33, %s8549_s27  ;;  %v13542_v33 = vld [vmem:[#allocation94_spill] sm:$0xff] }
 0x73a   : > { %v2035_v16 = vmul.f32 0.015625, %v13542_v33  ;;  %v3384_v33 = vadd.f32 1e-05, %v3368_v30  ;;  %v2958_v30 = vsel %vm1718_vm0, %v9814_v38, 0.0  ;;  %v2964_v38 = vsel %vm1718_vm0, %v9820_v12, 0.0 }
 0x73c   : > { %v10129_v6 = vsub.f32 %v9442_v48, %v2035_v16 }
 0x73d   : > { %3074 = vrot.lane.b32.xlu1 %v7038_v29, %s8549_s27  ;;  %v10125_v29 = vpop.permute.xlu1 %2921 }
 0x73e   : > { %v2067_v48 = vmul.f32 %v10129_v6, %v10129_v6 }
 0x740   : > { %v2109_v16 = vsel %vm1718_vm0, %v2067_v48, 0.0 }
 0x74c   : > { %v10119_v55 = vpop.xlane.xlu0 %1759 }
 0x750   : > { %v2078_v60 = vpop.xlane.xlu0 %2077 }
 0x751   : > { %v2120_v5 = vmul.f32 0.015625, %v2078_v60  ;;  %v3383_v60 = vadd.f32 1e-05, %v3367_v49 }
 0x753   : > { %v2136_v22 = vadd.f32 1e-05, %v2120_v5 }
 0x754   : > { %v10132_v32 = vpop.xlane.xlu1 %1756 }
 0x755   : > { %4315 = vadd.xlane.f32.xlu0 %v4314_v52  ;;  %7836 = vrsqrt.f32 %v2136_v22  ;;  %v13544_v22 = vld [vmem:[#allocation79_spill] sm:$0xff] }
 0x756   : > { %7838 = vrsqrt.f32 %v3384_v33  ;;  %v4311_v49 = vsel %vm1718_vm0, %v13544_v22, 0.0 }
 0x757   : > { %7840 = vrsqrt.f32 %v3383_v60 }
 0x758   : > { %v2081_v42 = vpop.xlane.xlu1 %2080 }
 0x759   : > { %v2121_v5 = vmul.f32 0.015625, %v2081_v42  ;;  %2107 = vadd.xlane.f32.xlu0 %v2106_v44  ;;  %v2961_v42 = vsel %vm1718_vm0, %v9801_v63, 0.0 }
 0x75b   : > { %v2137_v45 = vadd.f32 1e-05, %v2121_v5 }
 0x75d   : > { %7842 = vrsqrt.f32 %v2137_v45  ;;  %2110 = vadd.xlane.f32.xlu0 %v2109_v16  ;;  %v13545_v16 = vld [vmem:[#allocation111_spill] sm:$0xff] }
 0x75f   : > { %v7837_v52 = vpop.eup %7836 }
 0x760   : > { %v2168_v33 = vmul.f32 %v7837_v52, %v9921_v17  ;;  %v7839_v60 = vpop.eup %7838  ;;  %v13547_v17 = vld [vmem:[#allocation19_spill] sm:$0xff] }
 0x761   : > { %2959 = vadd.xlane.f32.xlu0 %v2958_v30  ;;  %4312 = vadd.xlane.f32.xlu1 %v4311_v49  ;;  %v7841_v44 = vpop.eup %7840  ;;  %v3416_v30 = vmul.f32 %v7839_v60, %v13545_v16  ;;  %v4029_v52 = vsel %vm1718_vm0, %v13547_v17, 0.0  ;;  %v13551_v16 = vld [vmem:[#allocation103_spill] sm:$0xff] }
 0x762   : > { %v2190_v45 = vmul.f32 %v9986_v1, %v2168_v33  ;;  %v3415_v49 = vmul.f32 %v7841_v44, %v13546_v59  ;;  %v2037_v59 = vmul.f32 0.015625, %v13551_v16 }
 0x764   : > { %v2212_v22 = vadd.f32 %v9993_v36, %v2190_v45  ;;  %v3434_v60 = vmul.f32 %v13537_v41, %v3415_v49 }
 0x765   : > { %2962 = vadd.xlane.f32.xlu0 %v2961_v42  ;;  %2956 = vadd.xlane.f32.xlu1 %v2955_v26  ;;  %v13548_v42 = vld [vmem:[#allocation93_spill] sm:$0xff] }
 0x766   : > { %v2036_v26 = vmul.f32 0.015625, %v13548_v42 }
 0x767   : > { %v7843_v48 = vpop.eup %7842 }
 0x768   : > { %v2169_v5 = vmul.f32 %v7843_v48, %v9935_v56  ;;  %v3435_v56 = vmul.f32 %v13537_v41, %v3416_v30  ;;  %v13549_v48 = vld [vmem:[#allocation22_spill] sm:$0xff]  ;;  %v13552_v30 = vld [vmem:[#allocation80_spill] sm:$0xff] }
 0x769   : > { %2965 = vadd.xlane.f32.xlu0 %v2964_v38  ;;  %v4032_v38 = vsel %vm1718_vm0, %v13549_v48, 0.0  ;;  %v10176_v49 = vsub.f32 %v13552_v30, %v2037_v59  ;;  %v10197_v30 = vpop.permute.xlu1 %2925 }
 0x76a   : > { %v2191_v63 = vmul.f32 %v9986_v1, %v2169_v5  ;;  %v13550_v5 = vld [vmem:[#allocation78_spill] sm:$0xff] }
 0x76b   : > { %v10168_v44 = vsub.f32 %v13550_v5, %v2036_v26 }
 0x76c   : > { %v2213_v12 = vadd.f32 %v9993_v36, %v2191_v63  ;;  %v3454_v63 = vadd.f32 %v13538_v57, %v3435_v56  ;;  %v3369_v56 = vmul.f32 0.015625, %v9926_v61  ;;  %v2970_v61 = vsel %vm1718_vm0, %v9940_v53, 0.0 }
 0x76d   : > { %4030 = vadd.xlane.f32.xlu0 %v4029_v52  ;;  %v13553_v52 = vld [vmem:[#allocation28_spill] sm:$0xff] }
 0x76e   : > { %v2235_v33 = vpack.c.bf16 %v2213_v12, %v2212_v22  ;;  %v3453_v22 = vadd.f32 %v13538_v57, %v3434_v60  ;;  %v4038_v42 = vsel %vm1718_vm0, %v13553_v52, 0.0  ;;  %v2068_v12 = vmul.f32 %v10168_v44, %v10168_v44 }
 0x76f   : > { %v2069_v60 = vmul.f32 %v10176_v49, %v10176_v49  ;;  %v3385_v16 = vadd.f32 1e-05, %v3369_v56 }
 0x770   : > { %7497 = vmatprep.subr.msk.bf16.mxu1 %vm1718_vm0, %v2235_v33  ;;  %v2270_v45 = vsel %vm1718_vm0, %v2235_v33, 0  ;;  %v3476_v26 = vpack.c.bf16 %v3454_v63, %v3453_v22  ;;  %v3370_v33 = vmul.f32 0.015625, %v9932_v37  ;;  %v10191_v63 = vpop.permute.xlu0 %2923 }
 0x771   : > { %4033 = vadd.xlane.f32.xlu0 %v4032_v38  ;;  %7243 = vmatpush3.bf16.xpose.msra.mxu1 %v2270_v45  ;;  %v2112_v38 = vsel %vm1718_vm0, %v2068_v12, 0.0  ;;  %v2115_v59 = vsel %vm1718_vm0, %v2069_v60, 0.0  ;;  %v2967_v45 = vsel %vm1718_vm0, %v9946_v13, 0.0  ;;  %v13556_v13 = vld [vmem:[#allocation101_spill] sm:$0xff] }
 0x772   : > { %v3386_v5 = vadd.f32 1e-05, %v3370_v33 }
 0x774   : > { %7844 = vrsqrt.f32 %v3386_v5 }
 0x775   : > { %4039 = vadd.xlane.f32.xlu0 %v4038_v42  ;;  %7846 = vrsqrt.f32 %v3385_v16 }
 0x776   : > { %3517 = vrot.lane.b32.xlu1 %v3476_v26, %s8549_s27 }
 0x779   : > { %2113 = vadd.xlane.f32.xlu0 %v2112_v38  ;;  %v13557_v38 = vld [vmem:[#allocation112_spill] sm:$0xff] }
 0x77d   : > { %2116 = vadd.xlane.f32.xlu0 %v2115_v59 }
 0x77e   : > { %v7845_v22 = vpop.eup %7844 }
 0x77f   : > { %v7847_v26 = vpop.eup %7846  ;;  %v3418_v60 = vmul.f32 %v7845_v22, %v13557_v38 }
 0x780   : > { %v3417_v56 = vmul.f32 %v7847_v26, %v13556_v13  ;;  %v13560_v26 = vld [vmem:[#allocation82_spill] sm:$0xff] }
 0x781   : > { %2968 = vadd.xlane.f32.xlu0 %v2967_v45  ;;  %v3437_v59 = vmul.f32 %v13537_v41, %v3418_v60  ;;  %v1768_v13 = vmul.f32 0.015625, %v13560_v26  ;;  %v13564_v60 = vld [vmem:[#allocation18_spill] sm:$0xff]  ;;  %v2973_v26 = vsel %vm1718_vm0, %v10089_v31, 0.0 }
 0x782   : > { %v3436_v16 = vmul.f32 %v13537_v41, %v3417_v56 }
 0x783   : > { %v3456_v52 = vadd.f32 %v13538_v57, %v3437_v59  ;;  %v13565_v59 = vld [vmem:[#allocation84_spill] sm:$0xff] }
 0x784   : > { %v3455_v17 = vadd.f32 %v13538_v57, %v3436_v16  ;;  %v10226_v16 = vsub.f32 %v13564_v60, %v1768_v13  ;;  %v2976_v60 = vsel %vm1718_vm0, %v10100_v24, 0.0  ;;  %v3371_v24 = vmul.f32 0.015625, %v9938_v8 }
 0x785   : > { %2971 = vadd.xlane.f32.xlu0 %v2970_v61  ;;  %v10195_v37 = vpop.xlane.xlu0 %1765 }
 0x786   : > { %v1800_v31 = vmul.f32 %v10226_v16, %v10226_v16 }
 0x789   : > { %v10199_v42 = vpop.xlane.xlu0 %2944 }
 0x78a   : > { %13554 = vst [vmem:[#allocation109_spill] sm:$0xff] %v10199_v42 }
 0x78d   : > { %v10201_v12 = vpop.xlane.xlu1 %1762  ;;  %v10203_v33 = vpop.xlane.xlu0 %2950 }
 0x78e   : > { %13555 = vst [vmem:[#allocation100_spill] sm:$0xff] %v10203_v33  ;;  %v13563_v33 = vld [vmem:[#allocation25_spill] sm:$0xff] }
 0x78f   : > { %v4035_v56 = vsel %vm1718_vm0, %v13563_v33, 0.0 }
 0x791   : > { %v10207_v5 = vpop.xlane.xlu1 %2947  ;;  %v10209_v53 = vpop.xlane.xlu0 %4288 }
 0x792   : > { %13558 = vst [vmem:[#allocation91_spill] sm:$0xff] %v10207_v5  ;;  %v3477_v5 = vpack.c.bf16 %v3456_v52, %v3455_v17  ;;  %v13566_v17 = vld [vmem:[#allocation24_spill] sm:$0xff] }
 0x795   : > { %v10213_v45 = vpop.xlane.xlu1 %2953  ;;  %v2084_v61 = vpop.xlane.xlu0 %2083 }
 0x796   : > { %13559 = vst [vmem:[#allocation75_spill] sm:$0xff] %v10213_v45  ;;  %v2122_v48 = vmul.f32 0.015625, %v2084_v61  ;;  %v1770_v61 = vmul.f32 0.015625, %v13565_v59 }
 0x798   : > { %v2138_v7 = vadd.f32 1e-05, %v2122_v48  ;;  %v10232_v52 = vsub.f32 %v13566_v17, %v1770_v61 }
 0x799   : > { %v10218_v22 = vpop.xlane.xlu1 %4291  ;;  %v10220_v38 = vpop.xlane.xlu0 %4294 }
 0x79a   : > { %13561 = vst [vmem:[#allocation94_spill] sm:$0xff] %v10218_v22  ;;  %13562 = vst [vmem:[#allocation111_spill] sm:$0xff] %v10220_v38  ;;  %4036 = vadd.xlane.f32.xlu1 %v4035_v56  ;;  %7848 = vrsqrt.f32 %v2138_v7 }
 0x79b   : > { %3519 = vrot.lane.b32.xlu0 %v3477_v5, %s8549_s27  ;;  %13567 = vst [vmem:[#allocation110_spill] sm:$0xff] %v10232_v52  ;;  %v13568_v5 = vld [vmem:[#allocation85_spill] sm:$0xff] }
 0x79c   : > { %v1771_v7 = vmul.f32 0.015625, %v13568_v5 }
 0x79d   : > { %v2087_v48 = vpop.xlane.xlu1 %2086  ;;  %v2090_v45 = vpop.xlane.xlu0 %2089 }
 0x79e   : > { %v2123_v42 = vmul.f32 0.015625, %v2087_v48  ;;  %v2124_v38 = vmul.f32 0.015625, %v2090_v45  ;;  %2974 = vadd.xlane.f32.xlu1 %v2973_v26  ;;  %v13571_v45 = vld [vmem:[#allocation26_spill] sm:$0xff]  ;;  %v1816_v48 = vsel %vm1718_vm0, %v1800_v31, 0.0  ;;  %v1802_v26 = vmul.f32 %v10232_v52, %v10232_v52 }
 0x79f   : > { %v3387_v52 = vadd.f32 1e-05, %v3371_v24  ;;  %v13575_v24 = vld [vmem:[#allocation20_spill] sm:$0xff] }
 0x7a0   : > { %v2139_v22 = vadd.f32 1e-05, %v2123_v42  ;;  %v2140_v33 = vadd.f32 1e-05, %v2124_v38  ;;  %v3372_v42 = vmul.f32 0.015625, %v9948_v11  ;;  %v10245_v38 = vsub.f32 %v13571_v45, %v1771_v7 }
 0x7a1   : > { %v10235_v56 = vpop.xlane.xlu1 %4297  ;;  %v10237_v13 = vpop.xlane.xlu0 %4300  ;;  %v1822_v45 = vsel %vm1718_vm0, %v1802_v26, 0.0 }
 0x7a2   : > { %13569 = vst [vmem:[#allocation93_spill] sm:$0xff] %v10235_v56  ;;  %13570 = vst [vmem:[#allocation78_spill] sm:$0xff] %v10237_v13  ;;  %7850 = vrsqrt.f32 %v2139_v22  ;;  %2977 = vadd.xlane.f32.xlu1 %v2976_v60  ;;  %v3388_v22 = vadd.f32 1e-05, %v3372_v42  ;;  %v1803_v31 = vmul.f32 %v10245_v38, %v10245_v38 }
 0x7a3   : > { %7852 = vrsqrt.f32 %v2140_v33 }
 0x7a4   : > { %v7849_v17 = vpop.eup %7848 }
 0x7a5   : > { %v2093_v59 = vpop.xlane.xlu1 %2092  ;;  %v2096_v61 = vpop.xlane.xlu0 %2095  ;;  %v2170_v56 = vmul.f32 %v7849_v17, %v10005_v19 }
 0x7a6   : > { %v2125_v5 = vmul.f32 0.015625, %v2093_v59  ;;  %v2126_v13 = vmul.f32 0.015625, %v2096_v61  ;;  %1817 = vadd.xlane.f32.xlu1 %v1816_v48  ;;  %v13574_v59 = vld [vmem:[#allocation83_spill] sm:$0xff]  ;;  %v1825_v48 = vsel %vm1718_vm0, %v1803_v31, 0.0  ;;  %v2979_v31 = vsel %vm1718_vm0, %v10114_v35, 0.0 }
 0x7a7   : > { %v1769_v42 = vmul.f32 0.015625, %v13574_v59  ;;  %v2192_v26 = vmul.f32 %v9986_v1, %v2170_v56  ;;  %v2982_v35 = vsel %vm1718_vm0, %v10125_v29, 0.0 }
 0x7a8   : > { %v2141_v60 = vadd.f32 1e-05, %v2125_v5  ;;  %v2142_v11 = vadd.f32 1e-05, %v2126_v13 }
 0x7a9   : > { %v10251_v33 = vpop.xlane.xlu1 %4303  ;;  %v10253_v7 = vpop.xlane.xlu0 %4306 }
 0x7aa   : > { %13572 = vst [vmem:[#allocation103_spill] sm:$0xff] %v10251_v33  ;;  %13573 = vst [vmem:[#allocation80_spill] sm:$0xff] %v10253_v7  ;;  %7854 = vrsqrt.f32 %v2141_v60  ;;  %1823 = vadd.xlane.f32.xlu1 %v1822_v45 }
 0x7ab   : > { %7856 = vrsqrt.f32 %v3388_v22  ;;  %v10265_v22 = vsub.f32 %v13575_v24, %v1769_v42 }
 0x7ac   : > { %v7851_v8 = vpop.eup %7850  ;;  %7858 = vrsqrt.f32 %v2142_v11 }
 0x7ad   : > { %v2099_v13 = vpop.xlane.xlu1 %2098  ;;  %v2102_v61 = vpop.xlane.xlu0 %2101  ;;  %v2171_v5 = vmul.f32 %v7851_v8, %v10020_v9  ;;  %7860 = vrsqrt.f32 %v3387_v52  ;;  %v2214_v9 = vadd.f32 %v9993_v36, %v2192_v26 }
 0x7ae   : > { %v7853_v7 = vpop.eup %7852  ;;  %v2127_v33 = vmul.f32 0.015625, %v2099_v13  ;;  %v2128_v19 = vmul.f32 0.015625, %v2102_v61  ;;  %1826 = vadd.xlane.f32.xlu1 %v1825_v48 }
 0x7af   : > { %v2193_v17 = vmul.f32 %v9986_v1, %v2171_v5  ;;  %v2172_v52 = vmul.f32 %v7853_v7, %v10023_v54 }
 0x7b0   : > { %v2143_v60 = vadd.f32 1e-05, %v2127_v33  ;;  %v2144_v11 = vadd.f32 1e-05, %v2128_v19  ;;  %v1801_v33 = vmul.f32 %v10265_v22, %v10265_v22 }
 0x7b1   : > { %v10267_v45 = vpop.xlane.xlu1 %4309  ;;  %v2215_v56 = vadd.f32 %v9993_v36, %v2193_v17  ;;  %v2194_v54 = vmul.f32 %v9986_v1, %v2172_v52  ;;  %v13576_v17 = vld [vmem:[#allocation89_spill] sm:$0xff] }
 0x7b2   : > { %7862 = vrsqrt.f32 %v2143_v60  ;;  %2980 = vadd.xlane.f32.xlu1 %v2979_v31  ;;  %v4318_v24 = vmul.f32 0.015625, %v13576_v17  ;;  %v1819_v29 = vsel %vm1718_vm0, %v1801_v33, 0.0  ;;  %v13580_v33 = vld [vmem:[#allocation64_spill] sm:$0xff] }
 0x7b3   : > { %v2236_v8 = vpack.c.bf16 %v2215_v56, %v2214_v9  ;;  %7864 = vrsqrt.f32 %v2144_v11  ;;  %v13577_v11 = vld [vmem:[#allocation114_spill] sm:$0xff]  ;;  %v2216_v56 = vadd.f32 %v9993_v36, %v2194_v54 }
 0x7b4   : > { %v7855_v59 = vpop.eup %7854 }
 0x7b5   : > { %v7857_v42 = vpop.eup %7856  ;;  %v2105_v13 = vpop.xlane.xlu1 %2104  ;;  %7498 = vmatprep.subr.msk.bf16.mxu1 %vm1718_vm0, %v2236_v8  ;;  %v2273_v61 = vsel %vm1718_vm0, %v2236_v8, 0  ;;  %v2173_v48 = vmul.f32 %v7855_v59, %v10039_v15 }
 0x7b6   : > { %v7859_v7 = vpop.eup %7858  ;;  %v2129_v5 = vmul.f32 0.015625, %v2105_v13  ;;  %2983 = vadd.xlane.f32.xlu1 %v2982_v35  ;;  %7245 = vmatpush3.bf16.xpose.msra.mxu1 %v2273_v61  ;;  %v3420_v31 = vmul.f32 %v7857_v42, %v13577_v11  ;;  %v13578_v13 = vld [vmem:[#allocation102_spill] sm:$0xff] }
 0x7b7   : > { %v2195_v26 = vmul.f32 %v9986_v1, %v2173_v48  ;;  %v7861_v19 = vpop.eup %7860  ;;  %v2174_v52 = vmul.f32 %v7859_v7, %v10042_v23  ;;  %v13579_v61 = vld [vmem:[#allocation86_spill] sm:$0xff]  ;;  %v2985_v23 = vsel %vm1718_vm0, %v10191_v63, 0.0 }
 0x7b8   : > { %v2145_v60 = vadd.f32 1e-05, %v2129_v5  ;;  %v3419_v35 = vmul.f32 %v7861_v19, %v13578_v13  ;;  %v1772_v48 = vmul.f32 0.015625, %v13579_v61  ;;  %v10294_v5 = vsub.f32 %v13580_v33, %v4318_v24  ;;  %v13581_v11 = vld [vmem:[#allocation30_spill] sm:$0xff] }
 0x7b9   : > { %v3516_v9 = vpop.permute.xlu1 %3515  ;;  %v2217_v15 = vadd.f32 %v9993_v36, %v2195_v26  ;;  %v3439_v54 = vmul.f32 %v13537_v41, %v3420_v31  ;;  %v2196_v17 = vmul.f32 %v9986_v1, %v2174_v52 }
 0x7ba   : > { %7866 = vrsqrt.f32 %v2145_v60  ;;  %7504 = vmatprep.subr.msk.bf16.mxu0 %vm1718_vm0, %v3516_v9  ;;  %1820 = vadd.xlane.f32.xlu0 %v1819_v29  ;;  %v3556_v8 = vsel %vm1718_vm0, %v3516_v9, 0  ;;  %v3438_v24 = vmul.f32 %v13537_v41, %v3419_v35  ;;  %v10306_v31 = vsub.f32 %v13581_v11, %v1772_v48  ;;  %v13582_v9 = vld [vmem:[#allocation87_spill] sm:$0xff] }
 0x7bb   : > { %7305 = vmatpush3.bf16.xpose.msra.mxu0 %v3556_v8  ;;  %v2237_v59 = vpack.c.bf16 %v2217_v15, %v2216_v56  ;;  %v1773_v29 = vmul.f32 0.015625, %v13582_v9  ;;  %v4350_v63 = vmul.f32 %v10294_v5, %v10294_v5  ;;  %v3458_v56 = vadd.f32 %v13538_v57, %v3439_v54 }
 0x7bc   : > { %v7863_v42 = vpop.eup %7862  ;;  %v2218_v15 = vadd.f32 %v9993_v36, %v2196_v17  ;;  %v3457_v13 = vadd.f32 %v13538_v57, %v3438_v24  ;;  %v1774_v48 = vmul.f32 0.015625, %v9907_v10  ;;  %v1775_v17 = vmul.f32 0.015625, %v9905_v18  ;;  %v13584_v24 = vld [vmem:[#allocation36_spill] sm:$0xff] }
 0x7bd   : > { %7499 = vmatprep.subr.msk.bf16.mxu1 %vm1718_vm0, %v2237_v59  ;;  %v2276_v7 = vsel %vm1718_vm0, %v2237_v59, 0  ;;  %v2175_v26 = vmul.f32 %v7863_v42, %v10058_v47  ;;  %v7865_v19 = vpop.eup %7864  ;;  %v2988_v47 = vsel %vm1718_vm0, %v10197_v30, 0.0  ;;  %v13583_v42 = vld [vmem:[#allocation32_spill] sm:$0xff]  ;;  %v4368_v54 = vsel %vm1718_vm0, %v4350_v63, 0.0 }
 0x7be   : > { %2986 = vadd.xlane.f32.xlu0 %v2985_v23  ;;  %7247 = vmatpush3.bf16.xpose.msra.mxu1 %v2276_v7  ;;  %v2176_v8 = vmul.f32 %v7865_v19, %v10061_v0  ;;  %v10319_v61 = vsub.f32 %v13583_v42, %v1773_v29  ;;  %v1804_v30 = vmul.f32 %v10306_v31, %v10306_v31  ;;  %v3373_v63 = vmul.f32 0.015625, %v9951_v46 }
 0x7bf   : > { %v2197_v60 = vmul.f32 %v9986_v1, %v2175_v26  ;;  %v3478_v0 = vpack.c.bf16 %v3458_v56, %v3457_v13  ;;  %v10336_v11 = vsub.f32 %v13584_v24, %v1774_v48 }
 0x7c0   : > { %v2198_v26 = vmul.f32 %v9986_v1, %v2176_v8  ;;  %v1828_v19 = vsel %vm1718_vm0, %v1804_v30, 0.0 }
 0x7c1   : > { %v2219_v52 = vadd.f32 %v9993_v36, %v2197_v60  ;;  %v1805_v60 = vmul.f32 %v10319_v61, %v10319_v61 }
 0x7c2   : > { %2989 = vadd.xlane.f32.xlu0 %v2988_v47  ;;  %v2220_v9 = vadd.f32 %v9993_v36, %v2198_v26  ;;  %v13585_v47 = vld [vmem:[#allocation38_spill] sm:$0xff]  ;;  %v13589_v26 = vld [vmem:[#allocation104_spill] sm:$0xff] }
 0x7c3   : > { %v2238_v59 = vpack.c.bf16 %v2219_v52, %v2218_v15  ;;  %v1831_v18 = vsel %vm1718_vm0, %v1805_v60, 0.0  ;;  %v10344_v15 = vsub.f32 %v13585_v47, %v1775_v17  ;;  %v13590_v17 = vld [vmem:[#allocation63_spill] sm:$0xff]  ;;  %v4319_v60 = vmul.f32 0.015625, %v9909_v3 }
 0x7c4   : > { %v7867_v35 = vpop.eup %7866 }
 0x7c5   : > { %7500 = vmatprep.subr.msk.bf16.mxu1 %vm1718_vm0, %v2238_v59  ;;  %v2279_v23 = vsel %vm1718_vm0, %v2238_v59, 0  ;;  %v2177_v7 = vmul.f32 %v7867_v35, %v10076_v4  ;;  %v3374_v4 = vmul.f32 0.015625, %v9957_v58  ;;  %v1806_v58 = vmul.f32 %v10336_v11, %v10336_v11 }
 0x7c6   : > { %4369 = vadd.xlane.f32.xlu0 %v4368_v54  ;;  %7249 = vmatpush3.bf16.xpose.msra.mxu1 %v2279_v23  ;;  %v3389_v59 = vadd.f32 1e-05, %v3373_v63  ;;  %v1807_v13 = vmul.f32 %v10344_v15, %v10344_v15  ;;  %v13586_v54 = vld [vmem:[#allocation88_spill] sm:$0xff]  ;;  %v10355_v23 = vpop.permute.xlu0 %3055  ;;  %v13591_v63 = vld [vmem:[#allocation65_spill] sm:$0xff] }
 0x7c7   : > { %3521 = vrot.lane.b32.xlu1 %v3478_v0, %s8549_s27  ;;  %v2199_v10 = vmul.f32 %v9986_v1, %v2177_v7  ;;  %v3390_v52 = vadd.f32 1e-05, %v3374_v4  ;;  %v1834_v46 = vsel %vm1718_vm0, %v1806_v58, 0.0  ;;  %v4317_v30 = vmul.f32 0.015625, %v13586_v54  ;;  %13587 = vst [vmem:[#allocation101_spill] sm:$0xff] %v10355_v23  ;;  %v13588_v0 = vld [vmem:[#allocation115_spill] sm:$0xff] }
 0x7c8   : > { %v1837_v35 = vsel %vm1718_vm0, %v1807_v13, 0.0 }
 0x7c9   : > { %v2221_v29 = vadd.f32 %v9993_v36, %v2199_v10  ;;  %7868 = vrsqrt.f32 %v3390_v52 }
 0x7ca   : > { %1829 = vadd.xlane.f32.xlu0 %v1828_v19  ;;  %7870 = vrsqrt.f32 %v3389_v59  ;;  %v10360_v19 = vsub.f32 %v13590_v17, %v4317_v30 }
 0x7cb   : > { %v2239_v56 = vpack.c.bf16 %v2221_v29, %v2220_v9 }
 0x7cc   : > { %v4349_v29 = vmul.f32 %v10360_v19, %v10360_v19 }
 0x7cd   : > { %7501 = vmatprep.subr.msk.bf16.mxu1 %vm1718_vm0, %v2239_v56  ;;  %v2282_v8 = vsel %vm1718_vm0, %v2239_v56, 0  ;;  %v10370_v56 = vsub.f32 %v13591_v63, %v4319_v60  ;;  %v13618_v63 = vld [vmem:[#allocation70_spill] sm:$0xff] }
 0x7ce   : > { %1832 = vadd.xlane.f32.xlu0 %v1831_v18  ;;  %7251 = vmatpush3.bf16.xpose.msra.mxu1 %v2282_v8  ;;  %v4320_v18 = vmul.f32 0.015625, %v9911_v14  ;;  %v4365_v59 = vsel %vm1718_vm0, %v4349_v29, 0.0 }
 0x7cf   : > { %13592 = vst [vmem:[#allocation112_spill] sm:$0xff] %v10370_v56  ;;  %v4351_v14 = vmul.f32 %v10370_v56, %v10370_v56  ;;  %v13626_v56 = vld [vmem:[#allocation111_spill] sm:$0xff] }
 0x7d2   : > { %1835 = vadd.xlane.f32.xlu0 %v1834_v46  ;;  %v13593_v46 = vld [vmem:[#allocation66_spill] sm:$0xff] }
 0x7d3   : > { %v7869_v42 = vpop.eup %7868  ;;  %v10377_v13 = vsub.f32 %v13593_v46, %v4320_v18 }
 0x7d4   : > { %v7871_v48 = vpop.eup %7870  ;;  %v3422_v7 = vmul.f32 %v7869_v42, %v13588_v0  ;;  %v10380_v42 = vpop.permute.xlu1 %3074  ;;  %v3376_v0 = vmul.f32 0.015625, %v9967_v39 }
 0x7d5   : > { %v3421_v10 = vmul.f32 %v7871_v48, %v13589_v26  ;;  %13594 = vst [vmem:[#allocation82_spill] sm:$0xff] %v10377_v13  ;;  %13595 = vst [vmem:[#allocation18_spill] sm:$0xff] %v10380_v42  ;;  %v4352_v29 = vmul.f32 %v10377_v13, %v10377_v13 }
 0x7d6   : > { %1838 = vadd.xlane.f32.xlu0 %v1837_v35  ;;  %v3441_v4 = vmul.f32 %v13537_v41, %v3422_v7  ;;  %v1776_v35 = vmul.f32 0.015625, %v9979_v25  ;;  %v3375_v7 = vmul.f32 0.015625, %v9953_v40  ;;  %v1778_v25 = vmul.f32 0.015625, %v10108_v34 }
 0x7d7   : > { %v3440_v9 = vmul.f32 %v13537_v41, %v3421_v10  ;;  %v3392_v39 = vadd.f32 1e-05, %v3376_v0  ;;  %v1779_v40 = vmul.f32 0.015625, %v10096_v62 }
 0x7d8   : > { %v3460_v52 = vadd.f32 %v13538_v57, %v3441_v4  ;;  %v10388_v10 = vsub.f32 %v9324_v51, %v1776_v35  ;;  %v3391_v18 = vadd.f32 1e-05, %v3375_v7 }
 0x7d9   : > { %v3459_v3 = vadd.f32 %v13538_v57, %v3440_v9  ;;  %v4371_v9 = vsel %vm1718_vm0, %v4351_v14, 0.0 }
 0x7db   : > { %v3479_v54 = vpack.c.bf16 %v3460_v52, %v3459_v3  ;;  %v1808_v3 = vmul.f32 %v10388_v10, %v10388_v10 }
 0x7e2   : > { %v10363_v24 = vpop.xlane.xlu0 %4315 }
 0x7e6   : > { %v2108_v47 = vpop.xlane.xlu0 %2107 }
 0x7e7   : > { %v2130_v8 = vmul.f32 0.015625, %v2108_v47  ;;  %v13596_v47 = vld [vmem:[#allocation47_spill] sm:$0xff] }
 0x7e8   : > { %v10400_v51 = vsub.f32 %v13596_v47, %v1778_v25 }
 0x7e9   : > { %v2146_v58 = vadd.f32 1e-05, %v2130_v8  ;;  %v4374_v8 = vsel %vm1718_vm0, %v4352_v29, 0.0 }
 0x7ea   : > { %v2111_v48 = vpop.xlane.xlu0 %2110  ;;  %v1810_v14 = vmul.f32 %v10400_v51, %v10400_v51 }
 0x7eb   : > { %7872 = vrsqrt.f32 %v2146_v58  ;;  %v2131_v30 = vmul.f32 0.015625, %v2111_v48  ;;  %4366 = vadd.xlane.f32.xlu1 %v4365_v59  ;;  %v13597_v59 = vld [vmem:[#allocation49_spill] sm:$0xff] }
 0x7ec   : > { %3523 = vrot.lane.b32.xlu0 %v3479_v54, %s8549_s27  ;;  %v10410_v35 = vsub.f32 %v13597_v59, %v1779_v40  ;;  %v1840_v54 = vsel %vm1718_vm0, %v1808_v3, 0.0  ;;  %v1846_v25 = vsel %vm1718_vm0, %v1810_v14, 0.0  ;;  %v13598_v40 = vld [vmem:[#allocation128_spill] sm:$0xff] }
 0x7ed   : > { %v2147_v26 = vadd.f32 1e-05, %v2131_v30  ;;  %v1777_v47 = vmul.f32 0.015625, %v13598_v40 }
 0x7ee   : > { %v10391_v60 = vpop.xlane.xlu1 %4312  ;;  %v10393_v4 = vpop.xlane.xlu0 %2959 }
 0x7ef   : > { %7874 = vrsqrt.f32 %v2147_v26  ;;  %4372 = vadd.xlane.f32.xlu1 %v4371_v9  ;;  %v1811_v9 = vmul.f32 %v10410_v35, %v10410_v35 }
 0x7f0   : > { %7876 = vrsqrt.f32 %v3392_v39 }
 0x7f1   : > { %7878 = vrsqrt.f32 %v3391_v18  ;;  %v1849_v3 = vsel %vm1718_vm0, %v1811_v9, 0.0  ;;  %v13601_v9 = vld [vmem:[#allocation106_spill] sm:$0xff] }
 0x7f2   : > { %v10402_v52 = vpop.xlane.xlu1 %2956  ;;  %v10404_v34 = vpop.xlane.xlu0 %2962 }
 0x7f3   : > { %4375 = vadd.xlane.f32.xlu1 %v4374_v8 }
 0x7f5   : > { %v7873_v58 = vpop.eup %7872 }
 0x7f6   : > { %v3518_v62 = vpop.permute.xlu1 %3517  ;;  %v10412_v48 = vpop.xlane.xlu0 %2965  ;;  %v2178_v30 = vmul.f32 %v7873_v58, %v10122_v43 }
 0x7f7   : > { %7505 = vmatprep.subr.msk.bf16.mxu0 %vm1718_vm0, %v3518_v62  ;;  %1841 = vadd.xlane.f32.xlu1 %v1840_v54  ;;  %v3559_v0 = vsel %vm1718_vm0, %v3518_v62, 0 }
 0x7f8   : > { %7307 = vmatpush3.bf16.xpose.msra.mxu0 %v3559_v0  ;;  %v2200_v39 = vmul.f32 %v9986_v1, %v2178_v30  ;;  %v13600_v30 = vld [vmem:[#allocation43_spill] sm:$0xff] }
 0x7f9   : > { %v7875_v7 = vpop.eup %7874  ;;  %v10436_v0 = vsub.f32 %v13600_v30, %v1777_v47 }
 0x7fa   : > { %v10420_v26 = vpop.xlane.xlu0 %4030  ;;  %v2179_v29 = vmul.f32 %v7875_v7, %v10129_v6  ;;  %v7877_v18 = vpop.eup %7876  ;;  %v2222_v58 = vadd.f32 %v9993_v36, %v2200_v39  ;;  %v13599_v6 = vld [vmem:[#allocation116_spill] sm:$0xff] }
 0x7fb   : > { %1847 = vadd.xlane.f32.xlu1 %v1846_v25  ;;  %v7879_v62 = vpop.eup %7878  ;;  %v3424_v14 = vmul.f32 %v7877_v18, %v13599_v6  ;;  %v13602_v39 = vld [vmem:[#allocation68_spill] sm:$0xff]  ;;  %v1780_v18 = vmul.f32 0.015625, %v10132_v32 }
 0x7fc   : > { %v2201_v43 = vmul.f32 %v9986_v1, %v2179_v29  ;;  %v4322_v1 = vmul.f32 0.015625, %v10116_v20  ;;  %v3423_v29 = vmul.f32 %v7879_v62, %v13601_v9  ;;  %v1809_v20 = vmul.f32 %v10436_v0, %v10436_v0  ;;  %v13604_v62 = vld [vmem:[#allocation53_spill] sm:$0xff] }
 0x7fd   : > { %v10455_v6 = vsub.f32 %v13604_v62, %v1780_v18 }
 0x7fe   : > { %v10429_v8 = vpop.xlane.xlu0 %4033  ;;  %v2223_v59 = vadd.f32 %v9993_v36, %v2201_v43  ;;  %v3443_v36 = vmul.f32 %v13537_v41, %v3424_v14  ;;  %v10446_v43 = vsub.f32 %v13602_v39, %v4322_v1  ;;  %v1843_v30 = vsel %vm1718_vm0, %v1809_v20, 0.0 }
 0x7ff   : > { %1850 = vadd.xlane.f32.xlu1 %v1849_v3  ;;  %v3442_v3 = vmul.f32 %v13537_v41, %v3423_v29  ;;  %v1812_v20 = vmul.f32 %v10455_v6, %v10455_v6 }
 0x800   : > { %v2240_v54 = vpack.c.bf16 %v2223_v59, %v2222_v58  ;;  %13603 = vst [vmem:[#allocation84_spill] sm:$0xff] %v10446_v43  ;;  %v3462_v59 = vadd.f32 %v13538_v57, %v3443_v36  ;;  %v4354_v32 = vmul.f32 %v10446_v43, %v10446_v43 }
 0x802   : > { %7502 = vmatprep.subr.msk.bf16.mxu1 %vm1718_vm0, %v2240_v54  ;;  %v10440_v7 = vpop.xlane.xlu0 %4039  ;;  %v2285_v25 = vsel %vm1718_vm0, %v2240_v54, 0  ;;  %v1781_v54 = vmul.f32 0.015625, %v10119_v55  ;;  %v1782_v55 = vmul.f32 0.015625, %v10201_v12  ;;  %v1852_v12 = vsel %vm1718_vm0, %v1812_v20, 0.0 }
 0x803   : > { %7253 = vmatpush3.bf16.xpose.msra.mxu1 %v2285_v25  ;;  %v3461_v25 = vadd.f32 %v13538_v57, %v3442_v3  ;;  %v3378_v3 = vmul.f32 0.015625, %v9976_v2 }
 0x805   : > { %v3480_v29 = vpack.c.bf16 %v3462_v59, %v3461_v25  ;;  %v10474_v59 = vsub.f32 %v9366_v21, %v1782_v55 }
 0x806   : > { %v2114_v40 = vpop.xlane.xlu0 %2113 }
 0x807   : > { %v2132_v47 = vmul.f32 0.015625, %v2114_v40  ;;  %v13605_v40 = vld [vmem:[#allocation55_spill] sm:$0xff]  ;;  %v1814_v21 = vmul.f32 %v10474_v59, %v10474_v59 }
 0x808   : > { %v10462_v36 = vsub.f32 %v13605_v40, %v1781_v54 }
 0x809   : > { %v2148_v58 = vadd.f32 1e-05, %v2132_v47  ;;  %v4380_v47 = vsel %vm1718_vm0, %v4354_v32, 0.0 }
 0x80a   : > { %v2117_v14 = vpop.xlane.xlu0 %2116  ;;  %v1813_v62 = vmul.f32 %v10462_v36, %v10462_v36 }
 0x80b   : > { %7880 = vrsqrt.f32 %v2148_v58  ;;  %v2133_v1 = vmul.f32 0.015625, %v2117_v14  ;;  %1844 = vadd.xlane.f32.xlu0 %v1843_v30  ;;  %v1783_v58 = vmul.f32 0.015625, %v10195_v37  ;;  %v13606_v14 = vld [vmem:[#allocation125_spill] sm:$0xff] }
 0x80c   : > { %v3377_v30 = vmul.f32 0.015625, %v13606_v14  ;;  %v1855_v37 = vsel %vm1718_vm0, %v1813_v62, 0.0  ;;  %v10506_v62 = vld [vmem:[%s13159_s7] ss:$0 sm:$0xff] }
 0x80d   : > { %v2149_v9 = vadd.f32 1e-05, %v2133_v1  ;;  %v3394_v1 = vadd.f32 1e-05, %v3378_v3  ;;  %v10483_v25 = vsub.f32 %v9370_v28, %v1783_v58  ;;  %v1858_v28 = vsel %vm1718_vm0, %v1814_v21, 0.0 }
 0x80e   : > { %v10465_v18 = vpop.xlane.xlu0 %2968  ;;  %v3393_v40 = vadd.f32 1e-05, %v3377_v30  ;;  %v4321_v21 = vmul.f32 0.015625, %v10110_v50 }
 0x80f   : > { %7882 = vrsqrt.f32 %v2149_v9  ;;  %4381 = vadd.xlane.f32.xlu0 %v4380_v47  ;;  %v1815_v47 = vmul.f32 %v10483_v25, %v10483_v25 }
 0x810   : > { %3525 = vrot.lane.b32.xlu1 %v3480_v29, %s8549_s27  ;;  %7884 = vrsqrt.f32 %v3394_v1 }
 0x811   : > { %7886 = vrsqrt.f32 %v3393_v40 }
 0x812   : > { %v10476_v54 = vpop.xlane.xlu0 %2971 }
 0x813   : > { %1853 = vadd.xlane.f32.xlu0 %v1852_v12  ;;  %v1861_v12 = vsel %vm1718_vm0, %v1815_v47, 0.0  ;;  %v13610_v47 = vld [vmem:[#allocation67_spill] sm:$0xff] }
 0x815   : > { %v7881_v32 = vpop.eup %7880 }
 0x816   : > { %v3520_v2 = vpop.permute.xlu0 %3519  ;;  %v2180_v9 = vmul.f32 %v7881_v32, %v10168_v44  ;;  %v10498_v44 = vld [vmem:[%s13158_s6] ss:$0 sm:$0xff] }
 0x817   : > { %1856 = vadd.xlane.f32.xlu0 %v1855_v37  ;;  %7506 = vmatprep.subr.msk.bf16.mxu0 %vm1718_vm0, %v3520_v2  ;;  %v3562_v29 = vsel %vm1718_vm0, %v3520_v2, 0  ;;  %v13607_v2 = vld [vmem:[#allocation21_spill] sm:$0xff] }
 0x818   : > { %7309 = vmatpush3.bf16.xpose.msra.mxu0 %v3562_v29  ;;  %v2202_v3 = vmul.f32 %v10498_v44, %v2180_v9  ;;  %v13608_v29 = vld [vmem:[#allocation117_spill] sm:$0xff] }
 0x819   : > { %v7883_v55 = vpop.eup %7882 }
 0x81a   : > { %v2181_v20 = vmul.f32 %v7883_v55, %v10176_v49  ;;  %v2224_v49 = vadd.f32 %v10506_v62, %v2202_v3  ;;  %v7885_v1 = vpop.eup %7884  ;;  %v13609_v55 = vld [vmem:[#allocation108_spill] sm:$0xff] }
 0x81b   : > { %1859 = vadd.xlane.f32.xlu0 %v1858_v28  ;;  %v7887_v37 = vpop.eup %7886  ;;  %v3426_v40 = vmul.f32 %v7885_v1, %v13608_v29  ;;  %v4323_v29 = vmul.f32 0.015625, %v10209_v53 }
 0x81c   : > { %v2203_v58 = vmul.f32 %v10498_v44, %v2181_v20  ;;  %v3425_v28 = vmul.f32 %v7887_v37, %v13609_v55  ;;  %v10519_v20 = vsub.f32 %v13610_v47, %v4321_v21  ;;  %v3380_v21 = vmul.f32 0.015625, %v10112_v27  ;;  %v13612_v55 = vld [vmem:[#allocation31_spill] sm:$0xff]  ;;  %v13613_v47 = vld [vmem:[#allocation90_spill] sm:$0xff] }
 0x81d   : > { %v3379_v33 = vmul.f32 0.015625, %v13613_v47 }
 0x81e   : > { %v2225_v14 = vadd.f32 %v10506_v62, %v2203_v58  ;;  %13611 = vst [vmem:[#allocation24_spill] sm:$0xff] %v10519_v20  ;;  %v3445_v58 = vmul.f32 %v13537_v41, %v3426_v40  ;;  %v4353_v50 = vmul.f32 %v10519_v20, %v10519_v20 }
 0x81f   : > { %1862 = vadd.xlane.f32.xlu0 %v1861_v12  ;;  %v3444_v12 = vmul.f32 %v13537_v41, %v3425_v28  ;;  %v4041_v28 = vsel %vm1718_vm0, %v13612_v55, 0.0  ;;  %v3395_v27 = vadd.f32 1e-05, %v3379_v33 }
 0x820   : > { %v2241_v30 = vpack.c.bf16 %v2225_v14, %v2224_v49  ;;  %v3464_v14 = vadd.f32 %v13538_v57, %v3445_v58  ;;  %v4377_v1 = vsel %vm1718_vm0, %v4353_v50, 0.0  ;;  %v3396_v58 = vadd.f32 1e-05, %v3380_v21  ;;  %v13616_v50 = vld [vmem:[#allocation94_spill] sm:$0xff]  ;;  %v13620_v21 = vld [vmem:[#allocation37_spill] sm:$0xff] }
 0x822   : > { %7503 = vmatprep.subr.msk.bf16.mxu1 %vm1718_vm0, %v2241_v30  ;;  %v2288_v32 = vsel %vm1718_vm0, %v2241_v30, 0  ;;  %v3463_v30 = vadd.f32 %v13538_v57, %v3444_v12  ;;  %v13614_v12 = vld [vmem:[#allocation69_spill] sm:$0xff]  ;;  %7888 = vrsqrt.f32 %v3396_v58 }
 0x823   : > { %7255 = vmatpush3.bf16.xpose.msra.mxu1 %v2288_v32  ;;  %v10539_v39 = vsub.f32 %v13614_v12, %v4323_v29  ;;  %v4047_v29 = vsel %vm1718_vm0, %v13620_v21, 0.0  ;;  %7890 = vrsqrt.f32 %v3395_v27  ;;  %v13631_v21 = vld [vmem:[#allocation91_spill] sm:$0xff] }
 0x824   : > { %7272 = vmatprep.subr.bf16.mxu1 %v13607_v2  ;;  %v3481_v37 = vpack.c.bf16 %v3464_v14, %v3463_v30  ;;  %v4324_v14 = vmul.f32 0.015625, %v13616_v50 }
 0x825   : > { %13615 = vst [vmem:[#allocation85_spill] sm:$0xff] %v10539_v39  ;;  %v4355_v50 = vmul.f32 %v10539_v39, %v10539_v39 }
 0x826   : > { %v10545_v17 = vsub.f32 %v13618_v63, %v4324_v14 }
 0x827   : > { %v10514_v9 = vpop.xlane.xlu1 %4036 }
 0x828   : > { %13619 = vst [vmem:[#allocation26_spill] sm:$0xff] %v10545_v17 }
 0x82b   : > { %v10521_v3 = vpop.xlane.xlu1 %2974 }
 0x82c   : > { %v7889_v27 = vpop.eup %7888 }
 0x82f   : > { %v10525_v49 = vpop.xlane.xlu1 %2977 }
 0x833   : > { %v1818_v32 = vpop.xlane.xlu1 %1817 }
 0x834   : > { %4378 = vadd.xlane.f32.xlu1 %v4377_v1  ;;  %v13617_v1 = vld [vmem:[#allocation34_spill] sm:$0xff]  ;;  %v1864_v46 = vmul.f32 0.015625, %v1818_v32  ;;  %v4383_v32 = vsel %vm1718_vm0, %v4355_v50, 0.0 }
 0x835   : > { %3527 = vrot.lane.b32.xlu0 %v3481_v37, %s8549_s27  ;;  %v4044_v37 = vsel %vm1718_vm0, %v13617_v1, 0.0 }
 0x836   : > { %v1880_v33 = vadd.f32 1e-05, %v1864_v46 }
 0x837   : > { %v1824_v40 = vpop.xlane.xlu1 %1823 }
 0x838   : > { %4042 = vadd.xlane.f32.xlu1 %v4041_v28  ;;  %v1866_v47 = vmul.f32 0.015625, %v1824_v40  ;;  %v4356_v40 = vmul.f32 %v10545_v17, %v10545_v17 }
 0x83a   : > { %v4386_v63 = vsel %vm1718_vm0, %v4356_v40, 0.0 }
 0x83b   : > { %v1827_v30 = vpop.xlane.xlu1 %1826 }
 0x83c   : > { %4045 = vadd.xlane.f32.xlu1 %v4044_v37  ;;  %v1867_v53 = vmul.f32 0.015625, %v1827_v30  ;;  %v1882_v37 = vadd.f32 1e-05, %v1866_v47 }
 0x83e   : > { %v1883_v12 = vadd.f32 1e-05, %v1867_v53  ;;  %v7891_v53 = vpop.eup %7890 }
 0x83f   : > { %v10547_v28 = vpop.xlane.xlu1 %2980 }
 0x840   : > { %4048 = vadd.xlane.f32.xlu1 %v4047_v29  ;;  %7892 = vrsqrt.f32 %v1883_v12 }
 0x841   : > { %7894 = vrsqrt.f32 %v1880_v33  ;;  %v13622_v33 = vld [vmem:[#allocation113_spill] sm:$0xff] }
 0x842   : > { %7896 = vrsqrt.f32 %v1882_v37  ;;  %v3427_v37 = vmul.f32 %v7891_v53, %v13622_v33 }
 0x843   : > { %v10553_v30 = vpop.xlane.xlu1 %2983 }
 0x844   : > { %4384 = vadd.xlane.f32.xlu1 %v4383_v32  ;;  %v13621_v32 = vld [vmem:[#allocation118_spill] sm:$0xff]  ;;  %v3446_v43 = vmul.f32 %v13537_v41, %v3427_v37 }
 0x845   : > { %v3428_v12 = vmul.f32 %v7889_v27, %v13621_v32  ;;  %v10581_v37 = vld [vmem:[%s13156_s4] ss:$0 sm:$0xff] }
 0x847   : > { %v3522_v58 = vpop.permute.xlu1 %3521  ;;  %v1821_v14 = vpop.xlane.xlu0 %1820  ;;  %v3447_v40 = vmul.f32 %v13537_v41, %v3428_v12  ;;  %v3465_v12 = vadd.f32 %v13538_v57, %v3446_v43 }
 0x848   : > { %v1865_v29 = vmul.f32 0.015625, %v1821_v14  ;;  %4387 = vadd.xlane.f32.xlu1 %v4386_v63  ;;  %7507 = vmatprep.subr.msk.bf16.mxu0 %vm1718_vm0, %v3522_v58  ;;  %v3565_v46 = vsel %vm1718_vm0, %v3522_v58, 0 }
 0x849   : > { %7311 = vmatpush3.bf16.xpose.msra.mxu0 %v3565_v46  ;;  %v3466_v27 = vadd.f32 %v13538_v57, %v3447_v40  ;;  %v4325_v40 = vmul.f32 0.015625, %v13626_v56 }
 0x84a   : > { %v1881_v47 = vadd.f32 1e-05, %v1865_v29  ;;  %v7893_v39 = vpop.eup %7892  ;;  %v13623_v29 = vld [vmem:[#allocation40_spill] sm:$0xff] }
 0x84b   : > { %v10561_v50 = vpop.xlane.xlu0 %2986  ;;  %v7895_v63 = vpop.eup %7894  ;;  %v1915_v58 = vmul.f32 %v7893_v39, %v10245_v38  ;;  %v4050_v20 = vsel %vm1718_vm0, %v13623_v29, 0.0  ;;  %v13625_v39 = vld [vmem:[#allocation45_spill] sm:$0xff] }
 0x84c   : > { %7898 = vrsqrt.f32 %v1881_v47  ;;  %v7897_v14 = vpop.eup %7896  ;;  %v1912_v53 = vmul.f32 %v7895_v63, %v10226_v16  ;;  %v13624_v47 = vld [vmem:[#allocation110_spill] sm:$0xff]  ;;  %v4056_v41 = vsel %vm1718_vm0, %v13625_v39, 0.0  ;;  %v3482_v16 = vpack.c.bf16 %v3466_v27, %v3465_v12  ;;  %v13627_v12 = vld [vmem:[#allocation48_spill] sm:$0xff] }
 0x84d   : > { %v1914_v32 = vmul.f32 %v7897_v14, %v13624_v47  ;;  %v1937_v38 = vmul.f32 %v10581_v37, %v1915_v58  ;;  %v10595_v58 = vld [vmem:[%s13157_s5] ss:$0 sm:$0xff] }
 0x84f   : > { %v10565_v17 = vpop.xlane.xlu0 %2989  ;;  %v1936_v43 = vmul.f32 %v10581_v37, %v1914_v32  ;;  %v1959_v56 = vadd.f32 %v10595_v58, %v1937_v38 }
 0x851   : > { %v1958_v57 = vadd.f32 %v10595_v58, %v1936_v43 }
 0x853   : > { %v10570_v46 = vpop.xlane.xlu0 %4369 }
 0x854   : > { %4051 = vadd.xlane.f32.xlu0 %v4050_v20  ;;  %v1934_v20 = vmul.f32 %v10581_v37, %v1912_v53  ;;  %v13628_v53 = vld [vmem:[#allocation71_spill] sm:$0xff] }
 0x856   : > { %v7899_v33 = vpop.eup %7898 }
 0x857   : > { %v1830_v13 = vpop.xlane.xlu0 %1829  ;;  %v1913_v63 = vmul.f32 %v7899_v33, %v10265_v22  ;;  %v4059_v22 = vsel %vm1718_vm0, %v13627_v12, 0.0  ;;  %v10601_v33 = vsub.f32 %v13628_v53, %v4325_v40  ;;  %v2227_v12 = vpack.c.bf16 %v1959_v56, %v1958_v57  ;;  %v13632_v53 = vld [vmem:[#allocation72_spill] sm:$0xff] }
 0x858   : > { %v1868_v14 = vmul.f32 0.015625, %v1830_v13  ;;  %4057 = vadd.xlane.f32.xlu0 %v4056_v41  ;;  %v13629_v13 = vld [vmem:[#allocation93_spill] sm:$0xff]  ;;  %v2992_v40 = vmul.f32 0.015625, %v13631_v21  ;;  %v13634_v21 = vld [vmem:[#allocation27_spill] sm:$0xff] }
 0x859   : > { %3529 = vrot.lane.b32.xlu1 %v3482_v16, %s8549_s27  ;;  %v1935_v47 = vmul.f32 %v10581_v37, %v1913_v63  ;;  %v4326_v41 = vmul.f32 0.015625, %v13629_v13  ;;  %v1956_v16 = vadd.f32 %v10595_v58, %v1934_v20  ;;  %v13633_v13 = vld [vmem:[#allocation51_spill] sm:$0xff]  ;;  %v4357_v43 = vmul.f32 %v10601_v33, %v10601_v33 }
 0x85a   : > { %v1884_v27 = vadd.f32 1e-05, %v1868_v14  ;;  %v13630_v14 = vld [vmem:[#allocation109_spill] sm:$0xff]  ;;  %v3008_v56 = vadd.f32 1e-05, %v2992_v40 }
 0x85b   : > { %v1833_v32 = vpop.xlane.xlu0 %1832  ;;  %v1957_v63 = vadd.f32 %v10595_v58, %v1935_v47  ;;  %v2991_v39 = vmul.f32 0.015625, %v13630_v14  ;;  %v10610_v55 = vsub.f32 %v13632_v53, %v4326_v41  ;;  %v4062_v47 = vsel %vm1718_vm0, %v13633_v13, 0.0  ;;  %v13656_v53 = vld [vmem:[#allocation61_spill] sm:$0xff] }
 0x85c   : > { %7900 = vrsqrt.f32 %v1884_v27  ;;  %v1869_v1 = vmul.f32 0.015625, %v1833_v32  ;;  %4060 = vadd.xlane.f32.xlu0 %v4059_v22  ;;  %v4389_v41 = vsel %vm1718_vm0, %v4357_v43, 0.0 }
 0x85d   : > { %v2226_v38 = vpack.c.bf16 %v1957_v63, %v1956_v16  ;;  %v3007_v57 = vadd.f32 1e-05, %v2991_v39  ;;  %v4358_v32 = vmul.f32 %v10610_v55, %v10610_v55  ;;  %v13635_v63 = vld [vmem:[#allocation33_spill] sm:$0xff] }
 0x85e   : > { %v1885_v29 = vadd.f32 1e-05, %v1869_v1 }
 0x85f   : > { %7256 = vmatprep.mubr.msk.bf16.mxu1 %vm1718_vm0, %v2226_v38  ;;  %v1836_v20 = vpop.xlane.xlu0 %1835  ;;  %v4392_v38 = vsel %vm1718_vm0, %v4358_v32, 0.0 }
 0x860   : > { %7902 = vrsqrt.f32 %v1885_v29  ;;  %v1870_v27 = vmul.f32 0.015625, %v1836_v20  ;;  %4063 = vadd.xlane.f32.xlu0 %v4062_v47  ;;  %7257 = vmatmul.mubr.msk.bf16.vlgmr.msra.gmra.mrb[64].mxu1 %vm1718_vm0, %v2227_v12  ;;  %v13636_v47 = vld [vmem:[#allocation39_spill] sm:$0xff] }
 0x861   : > { %7273 = vmatpush3.bf16.msra.mxu1 %v13607_v2 }
 0x862   : > { %v1886_v1 = vadd.f32 1e-05, %v1870_v27  ;;  %7274 = vmatprep.subr.bf16.mxu1 %v13634_v21 }
 0x863   : > { %v1839_v22 = vpop.xlane.xlu0 %1838 }
 0x864   : > { %7904 = vrsqrt.f32 %v1886_v1  ;;  %v1871_v16 = vmul.f32 0.015625, %v1839_v22  ;;  %4390 = vadd.xlane.f32.xlu0 %v4389_v41  ;;  %v13637_v1 = vld [vmem:[#allocation100_spill] sm:$0xff]  ;;  %v13639_v41 = vld [vmem:[#allocation75_spill] sm:$0xff] }
 0x865   : > { %7275 = vmatpush3.bf16.msra.mxu1 %v13634_v21  ;;  %7906 = vrsqrt.f32 %v3007_v57  ;;  %v13638_v22 = vld [vmem:[#allocation44_spill] sm:$0xff]  ;;  %v2994_v32 = vmul.f32 0.015625, %v13639_v41  ;;  %v13655_v21 = vld [vmem:[#allocation74_spill] sm:$0xff] }
 0x866   : > { %v7901_v29 = vpop.eup %7900  ;;  %v1887_v12 = vadd.f32 1e-05, %v1871_v16  ;;  %7276 = vmatprep.subr.bf16.mxu1 %v13635_v63  ;;  %7908 = vrsqrt.f32 %v3008_v56  ;;  %v2993_v56 = vmul.f32 0.015625, %v13637_v1  ;;  %v13641_v41 = vld [vmem:[#allocation92_spill] sm:$0xff] }
 0x867   : > { %v3524_v39 = vpop.permute.xlu0 %3523  ;;  %v1916_v14 = vmul.f32 %v7901_v29, %v10306_v31 }
 0x868   : > { %7910 = vrsqrt.f32 %v1887_v12  ;;  %4393 = vadd.xlane.f32.xlu0 %v4392_v38  ;;  %7508 = vmatprep.subr.msk.bf16.mxu0 %vm1718_vm0, %v3524_v39  ;;  %v3568_v40 = vsel %vm1718_vm0, %v3524_v39, 0 }
 0x869   : > { %7277 = vmatpush3.bf16.msra.mxu1 %v13635_v63  ;;  %7313 = vmatpush3.bf16.xpose.msra.mxu0 %v3568_v40  ;;  %v1938_v27 = vmul.f32 %v10581_v37, %v1916_v14  ;;  %v3009_v40 = vadd.f32 1e-05, %v2993_v56 }
 0x86a   : > { %v7903_v20 = vpop.eup %7902  ;;  %7278 = vmatprep.subr.bf16.mxu1 %v13636_v47 }
 0x86b   : > { %v1917_v43 = vmul.f32 %v7903_v20, %v10319_v61  ;;  %v1960_v16 = vadd.f32 %v10595_v58, %v1938_v27  ;;  %v13640_v20 = vld [vmem:[#allocation50_spill] sm:$0xff]  ;;  %7912 = vrsqrt.f32 %v3009_v40 }
 0x86c   : > { %v13645_v40 = vld [vmem:[#allocation42_spill] sm:$0xff] }
 0x86d   : > { %7279 = vmatpush3.bf16.msra.mxu1 %v13636_v47  ;;  %v1939_v31 = vmul.f32 %v10581_v37, %v1917_v43  ;;  %v3010_v43 = vadd.f32 1e-05, %v2994_v32  ;;  %v13642_v47 = vld [vmem:[#allocation98_spill] sm:$0xff] }
 0x86e   : > { %v7905_v57 = vpop.eup %7904  ;;  %7280 = vmatprep.subr.bf16.mxu1 %v13638_v22 }
 0x86f   : > { %v1961_v29 = vadd.f32 %v10595_v58, %v1939_v31  ;;  %v1918_v12 = vmul.f32 %v7905_v57, %v10336_v11  ;;  %v7907_v61 = vpop.eup %7906  ;;  %7914 = vrsqrt.f32 %v3010_v43  ;;  %v4053_v43 = vsel %vm1718_vm0, %v13645_v40, 0.0 }
 0x870   : > { %v7909_v39 = vpop.eup %7908  ;;  %v3039_v31 = vmul.f32 %v7907_v61, %v13641_v41 }
 0x871   : > { %7281 = vmatpush3.bf16.msra.mxu1 %v13638_v22  ;;  %v2228_v38 = vpack.c.bf16 %v1961_v29, %v1960_v16  ;;  %v1940_v27 = vmul.f32 %v10581_v37, %v1918_v12  ;;  %v3040_v11 = vmul.f32 %v7909_v39, %v13642_v47  ;;  %v13643_v16 = vld [vmem:[#allocation56_spill] sm:$0xff] }
 0x872   : > { %v7911_v14 = vpop.eup %7910  ;;  %7282 = vmatprep.subr.bf16.mxu1 %v13640_v20  ;;  %v3058_v56 = vmul.f32 %v10355_v23, %v3039_v31 }
 0x873   : > { %7260 = vmatprep.mubr.msk.bf16.mxu1 %vm1718_vm0, %v2228_v38  ;;  %v1919_v1 = vmul.f32 %v7911_v14, %v10344_v15  ;;  %v3059_v32 = vmul.f32 %v10355_v23, %v3040_v11  ;;  %v1962_v15 = vadd.f32 %v10595_v58, %v1940_v27  ;;  %v13644_v38 = vld [vmem:[#allocation60_spill] sm:$0xff] }
 0x874   : > { %v3077_v47 = vadd.f32 %v10380_v42, %v3058_v56 }
 0x875   : > { %7283 = vmatpush3.bf16.msra.mxu1 %v13640_v20  ;;  %v1941_v57 = vmul.f32 %v10581_v37, %v1919_v1  ;;  %v3078_v61 = vadd.f32 %v10380_v42, %v3059_v32  ;;  %v7913_v27 = vpop.eup %7912  ;;  %v13647_v32 = vld [vmem:[#allocation99_spill] sm:$0xff] }
 0x876   : > { %7284 = vmatprep.subr.bf16.mxu1 %v13643_v16 }
 0x877   : > { %v1963_v29 = vadd.f32 %v10595_v58, %v1941_v57  ;;  %v3467_v1 = vpack.c.bf16 %v3078_v61, %v3077_v47  ;;  %v13646_v57 = vld [vmem:[#allocation95_spill] sm:$0xff] }
 0x878   : > { %v10655_v12 = vpop.xlane.xlu1 %4366  ;;  %v3041_v56 = vmul.f32 %v7913_v27, %v13646_v57 }
 0x879   : > { %7285 = vmatpush3.bf16.msra.mxu1 %v13643_v16  ;;  %v2229_v39 = vpack.c.bf16 %v1963_v29, %v1962_v15  ;;  %v7915_v31 = vpop.eup %7914 }
 0x87a   : > { %7286 = vmatprep.subr.bf16.mxu1 %v13644_v38  ;;  %v3042_v15 = vmul.f32 %v7915_v31, %v13647_v32  ;;  %v3060_v29 = vmul.f32 %v10355_v23, %v3041_v56 }
 0x87b   : > { %7261 = vmatmul.mubr.msk.bf16.gmra.mrb[68].mxu1 %vm1718_vm0, %v2229_v39 }
 0x87c   : > { %v10662_v14 = vpop.xlane.xlu1 %4372  ;;  %v3061_v39 = vmul.f32 %v10355_v23, %v3042_v15  ;;  %v3079_v47 = vadd.f32 %v10380_v42, %v3060_v29 }
 0x87d   : > { %7287 = vmatpush3.bf16.msra.mxu1 %v13644_v38  ;;  %4054 = vadd.xlane.f32.xlu1 %v4053_v43 }
 0x87e   : > { %3491 = vrot.lane.b32.xlu0 %v3467_v1, %s8549_s27  ;;  %v3080_v61 = vadd.f32 %v10380_v42, %v3061_v39  ;;  %v13648_v39 = vld [vmem:[#allocation78_spill] sm:$0xff] }
 0x880   : > { %v10668_v41 = vpop.xlane.xlu1 %4375  ;;  %v3468_v1 = vpack.c.bf16 %v3080_v61, %v3079_v47  ;;  %v4327_v47 = vmul.f32 0.015625, %v13648_v39 }
 0x884   : > { %v1842_v11 = vpop.xlane.xlu1 %1841 }
 0x885   : > { %v1872_v20 = vmul.f32 0.015625, %v1842_v11 }
 0x887   : > { %v1888_v57 = vadd.f32 1e-05, %v1872_v20  ;;  %v13651_v20 = vld [vmem:[#allocation73_spill] sm:$0xff] }
 0x888   : > { %v1848_v16 = vpop.xlane.xlu1 %1847 }
 0x889   : > { %v1874_v22 = vmul.f32 0.015625, %v1848_v16  ;;  %v13649_v16 = vld [vmem:[#allocation54_spill] sm:$0xff] }
 0x88a   : > { %v4065_v11 = vsel %vm1718_vm0, %v13649_v16, 0.0 }
 0x88b   : > { %v1890_v56 = vadd.f32 1e-05, %v1874_v22  ;;  %v10686_v22 = vsub.f32 %v13651_v20, %v4327_v47  ;;  %v4332_v47 = vmul.f32 0.015625, %v10363_v24 }
 0x88c   : > { %v1851_v43 = vpop.xlane.xlu1 %1850 }
 0x88d   : > { %v1875_v38 = vmul.f32 0.015625, %v1851_v43  ;;  %13652 = vst [vmem:[#allocation83_spill] sm:$0xff] %v10686_v22 }
 0x88e   : > { %3493 = vrot.lane.b32.xlu1 %v3468_v1, %s8549_s27 }
 0x88f   : > { %v1891_v31 = vadd.f32 1e-05, %v1875_v38 }
 0x890   : > { %v3526_v63 = vpop.permute.xlu1 %3525 }
 0x891   : > { %7509 = vmatprep.subr.msk.bf16.mxu0 %vm1718_vm0, %v3526_v63  ;;  %v3571_v27 = vsel %vm1718_vm0, %v3526_v63, 0  ;;  %7916 = vrsqrt.f32 %v1891_v31  ;;  %v13650_v63 = vld [vmem:[#allocation103_spill] sm:$0xff] }
 0x892   : > { %7315 = vmatpush3.bf16.xpose.msra.mxu0 %v3571_v27  ;;  %7918 = vrsqrt.f32 %v1888_v57  ;;  %v4328_v38 = vmul.f32 0.015625, %v13650_v63  ;;  %v13653_v27 = vld [vmem:[#allocation59_spill] sm:$0xff] }
 0x893   : > { %7920 = vrsqrt.f32 %v1890_v56  ;;  %v4071_v31 = vsel %vm1718_vm0, %v13653_v27, 0.0  ;;  %v13654_v56 = vld [vmem:[#allocation80_spill] sm:$0xff]  ;;  %v4074_v27 = vsel %vm1718_vm0, %v13656_v53, 0.0  ;;  %v13659_v53 = vld [vmem:[#allocation81_spill] sm:$0xff] }
 0x894   : > { %v10692_v2 = vsub.f32 %v13655_v21, %v4328_v38 }
 0x896   : > { %v4360_v24 = vmul.f32 %v10692_v2, %v10692_v2 }
 0x898   : > { %v1845_v32 = vpop.xlane.xlu0 %1844 }
 0x899   : > { %v1873_v15 = vmul.f32 0.015625, %v1845_v32  ;;  %v4329_v32 = vmul.f32 0.015625, %v13654_v56  ;;  %v4359_v56 = vmul.f32 %v10686_v22, %v10686_v22 }
 0x89b   : > { %v1889_v29 = vadd.f32 1e-05, %v1873_v15  ;;  %v7917_v43 = vpop.eup %7916 }
 0x89c   : > { %v10680_v61 = vpop.xlane.xlu0 %4381  ;;  %v7919_v57 = vpop.eup %7918  ;;  %v1923_v63 = vmul.f32 %v7917_v43, %v10410_v35  ;;  %v13658_v43 = vld [vmem:[#allocation77_spill] sm:$0xff] }
 0x89d   : > { %7922 = vrsqrt.f32 %v1889_v29  ;;  %4066 = vadd.xlane.f32.xlu0 %v4065_v11  ;;  %v7921_v39 = vpop.eup %7920  ;;  %v4330_v29 = vmul.f32 0.015625, %v10267_v45 }
 0x89e   : > { %v1922_v45 = vmul.f32 %v7921_v39, %v10400_v51  ;;  %v1945_v22 = vmul.f32 %v10581_v37, %v1923_v63  ;;  %v2996_v63 = vmul.f32 0.015625, %v10393_v4 }
 0x8a0   : > { %v1854_v1 = vpop.xlane.xlu0 %1853  ;;  %v1944_v39 = vmul.f32 %v10581_v37, %v1922_v45  ;;  %v2995_v45 = vmul.f32 0.015625, %v10402_v52  ;;  %v2998_v52 = vmul.f32 0.015625, %v10412_v48 }
 0x8a1   : > { %v1876_v15 = vmul.f32 0.015625, %v1854_v1  ;;  %4072 = vadd.xlane.f32.xlu0 %v4071_v31  ;;  %v1920_v1 = vmul.f32 %v7919_v57, %v10388_v10  ;;  %v13657_v31 = vld [vmem:[#allocation76_spill] sm:$0xff]  ;;  %v10713_v10 = vsub.f32 %v13659_v53, %v4332_v47  ;;  %v4398_v47 = vsel %vm1718_vm0, %v4360_v24, 0.0  ;;  %v13662_v53 = vld [vmem:[#allocation22_spill] sm:$0xff] }
 0x8a2   : > { %v10703_v16 = vsub.f32 %v13657_v31, %v4329_v32  ;;  %v4395_v32 = vsel %vm1718_vm0, %v4359_v56, 0.0  ;;  %v2997_v24 = vmul.f32 0.015625, %v10404_v34 }
 0x8a3   : > { %v1892_v11 = vadd.f32 1e-05, %v1876_v15  ;;  %v10709_v15 = vsub.f32 %v13658_v43, %v4330_v29  ;;  %13660 = vst [vmem:[#allocation20_spill] sm:$0xff] %v10713_v10  ;;  %v1942_v51 = vmul.f32 %v10581_v37, %v1920_v1  ;;  %v1967_v1 = vadd.f32 %v10595_v58, %v1945_v22 }
 0x8a4   : > { %v1857_v20 = vpop.xlane.xlu0 %1856  ;;  %v4361_v29 = vmul.f32 %v10703_v16, %v10703_v16  ;;  %v4364_v4 = vmul.f32 %v10713_v10, %v10713_v10  ;;  %v3012_v22 = vadd.f32 1e-05, %v2996_v63  ;;  %v4080_v43 = vmul.f32 0.015625, %v10440_v7 }
 0x8a5   : > { %7924 = vrsqrt.f32 %v1892_v11  ;;  %v1877_v38 = vmul.f32 0.015625, %v1857_v20  ;;  %4075 = vadd.xlane.f32.xlu0 %v4074_v27  ;;  %v4331_v11 = vmul.f32 0.015625, %v10391_v60 }
 0x8a7   : > { %v7923_v35 = vpop.eup %7922  ;;  %v1893_v21 = vadd.f32 1e-05, %v1877_v38 }
 0x8a8   : > { %v1860_v57 = vpop.xlane.xlu0 %1859  ;;  %v1921_v20 = vmul.f32 %v7923_v35, %v10436_v0  ;;  %v4078_v0 = vmul.f32 0.015625, %v10429_v8 }
 0x8a9   : > { %7926 = vrsqrt.f32 %v1893_v21  ;;  %v1878_v27 = vmul.f32 0.015625, %v1860_v57  ;;  %4396 = vadd.xlane.f32.xlu0 %v4395_v32  ;;  %v4362_v21 = vmul.f32 %v10709_v15, %v10709_v15  ;;  %v1964_v57 = vadd.f32 %v10595_v58, %v1942_v51 }
 0x8aa   : > { %v1943_v56 = vmul.f32 %v10581_v37, %v1921_v20  ;;  %v1966_v32 = vadd.f32 %v10595_v58, %v1944_v39  ;;  %v13661_v20 = vld [vmem:[#allocation79_spill] sm:$0xff] }
 0x8ab   : > { %v1894_v38 = vadd.f32 1e-05, %v1878_v27  ;;  %v10737_v27 = vsub.f32 %v13661_v20, %v4331_v11  ;;  %v4404_v39 = vsel %vm1718_vm0, %v4362_v21, 0.0  ;;  %v13663_v11 = vld [vmem:[#allocation57_spill] sm:$0xff]  ;;  %v4401_v21 = vsel %vm1718_vm0, %v4361_v29, 0.0 }
 0x8ac   : > { %v1863_v35 = vpop.xlane.xlu0 %1862  ;;  %v1965_v60 = vadd.f32 %v10595_v58, %v1943_v56  ;;  %v10741_v56 = vsub.f32 %v13662_v53, %v4078_v0  ;;  %v2231_v34 = vpack.c.bf16 %v1967_v1, %v1966_v32  ;;  %v4068_v63 = vsel %vm1718_vm0, %v13663_v11, 0.0 }
 0x8ad   : > { %7928 = vrsqrt.f32 %v1894_v38  ;;  %v1879_v8 = vmul.f32 0.015625, %v1863_v35  ;;  %4399 = vadd.xlane.f32.xlu0 %v4398_v47  ;;  %v3011_v38 = vadd.f32 1e-05, %v2995_v45  ;;  %v3013_v35 = vadd.f32 1e-05, %v2997_v24 }
 0x8ae   : > { %v2230_v31 = vpack.c.bf16 %v1965_v60, %v1964_v57  ;;  %v4077_v57 = vmul.f32 0.015625, %v10420_v26  ;;  %v3014_v0 = vadd.f32 1e-05, %v2998_v52  ;;  %v13664_v26 = vld [vmem:[#allocation28_spill] sm:$0xff]  ;;  %v3000_v45 = vmul.f32 0.015625, %v10476_v54 }
 0x8af   : > { %v7925_v51 = vpop.eup %7924  ;;  %v1895_v10 = vadd.f32 1e-05, %v1879_v8  ;;  %v4110_v60 = vmul.f32 %v10741_v56, %v10741_v56  ;;  %v3004_v24 = vmul.f32 0.015625, %v10553_v30  ;;  %v13665_v8 = vld [vmem:[#allocation19_spill] sm:$0xff]  ;;  %v3003_v54 = vmul.f32 0.015625, %v10547_v28 }
 0x8b0   : > { %7264 = vmatprep.mubr.msk.bf16.mxu1 %vm1718_vm0, %v2230_v31  ;;  %v3528_v47 = vpop.permute.xlu0 %3527  ;;  %v1924_v48 = vmul.f32 %v7925_v51, %v10455_v6  ;;  %v4410_v31 = vsel %vm1718_vm0, %v4364_v4, 0.0  ;;  %v4363_v6 = vmul.f32 %v10737_v27, %v10737_v27  ;;  %v10767_v32 = vsub.f32 %v13665_v8, %v4077_v57 }
 0x8b1   : > { %7930 = vrsqrt.f32 %v1895_v10  ;;  %4405 = vadd.xlane.f32.xlu0 %v4404_v39  ;;  %7265 = vmatmul.mubr.msk.bf16.gmra.mrb[72].mxu1 %vm1718_vm0, %v2231_v34  ;;  %v3574_v7 = vsel %vm1718_vm0, %v3528_v47, 0  ;;  %v10758_v10 = vsub.f32 %v13664_v26, %v4080_v43  ;;  %v2999_v43 = vmul.f32 0.015625, %v10465_v18 }
 0x8b2   : > { %7510 = vmatprep.subr.msk.bf16.mxu0 %vm1718_vm0, %v3528_v47  ;;  %4069 = vadd.xlane.f32.xlu1 %v4068_v63  ;;  %7932 = vrsqrt.f32 %v3012_v22  ;;  %v1946_v29 = vmul.f32 %v10581_v37, %v1924_v48  ;;  %v4079_v22 = vmul.f32 0.015625, %v10514_v9  ;;  %v4407_v52 = vsel %vm1718_vm0, %v4363_v6, 0.0  ;;  %v13666_v48 = vld [vmem:[#allocation25_spill] sm:$0xff] }
 0x8b3   : > { %v7927_v1 = vpop.eup %7926  ;;  %7317 = vmatpush3.bf16.xpose.msra.mxu0 %v3574_v7  ;;  %7934 = vrsqrt.f32 %v3011_v38  ;;  %v3016_v51 = vadd.f32 1e-05, %v3000_v45  ;;  %v3002_v34 = vmul.f32 0.015625, %v10525_v49  ;;  %v4128_v38 = vsel %vm1718_vm0, %v4110_v60, 0.0 }
 0x8b4   : > { %v1925_v4 = vmul.f32 %v7927_v1, %v10462_v36  ;;  %7936 = vrsqrt.f32 %v3013_v35  ;;  %v4112_v18 = vmul.f32 %v10758_v10, %v10758_v10  ;;  %v3020_v47 = vadd.f32 1e-05, %v3004_v24 }
 0x8b5   : > { %4411 = vadd.xlane.f32.xlu0 %v4410_v31  ;;  %7938 = vrsqrt.f32 %v3014_v0  ;;  %v1968_v9 = vadd.f32 %v10595_v58, %v1946_v29  ;;  %v3015_v63 = vadd.f32 1e-05, %v2999_v43  ;;  %v10782_v35 = vsub.f32 %v13666_v48, %v4079_v22 }
 0x8b6   : > { %4402 = vadd.xlane.f32.xlu1 %v4401_v21  ;;  %v1947_v30 = vmul.f32 %v10581_v37, %v1925_v4  ;;  %v4413_v57 = vmul.f32 0.015625, %v10655_v12  ;;  %v4109_v49 = vmul.f32 %v10767_v32, %v10767_v32  ;;  %v3001_v7 = vmul.f32 0.015625, %v10521_v3 }
 0x8b7   : > { %v7929_v36 = vpop.eup %7928  ;;  %v3019_v0 = vadd.f32 1e-05, %v3003_v54  ;;  %7940 = vrsqrt.f32 %v3016_v51  ;;  %v3018_v6 = vadd.f32 1e-05, %v3002_v34  ;;  %v4134_v1 = vsel %vm1718_vm0, %v4112_v18, 0.0 }
 0x8b8   : > { %v1969_v39 = vadd.f32 %v10595_v58, %v1947_v30  ;;  %v1926_v28 = vmul.f32 %v7929_v36, %v10474_v59  ;;  %v4414_v59 = vmul.f32 0.015625, %v10570_v46  ;;  %7942 = vrsqrt.f32 %v3020_v47 }
 0x8b9   : > { %4129 = vadd.xlane.f32.xlu0 %v4128_v38  ;;  %v3006_v45 = vmul.f32 0.015625, %v10565_v17  ;;  %7944 = vrsqrt.f32 %v3015_v63  ;;  %v4429_v24 = vadd.f32 1e-05, %v4413_v57  ;;  %v4125_v4 = vsel %vm1718_vm0, %v4109_v49, 0.0  ;;  %v13669_v57 = vld [vmem:[#allocation105_spill] sm:$0xff] }
 0x8ba   : > { %4408 = vadd.xlane.f32.xlu1 %v4407_v52  ;;  %v2232_v31 = vpack.c.bf16 %v1969_v39, %v1968_v9  ;;  %v1948_v60 = vmul.f32 %v10581_v37, %v1926_v28  ;;  %v4111_v46 = vmul.f32 %v10782_v35, %v10782_v35  ;;  %v3017_v43 = vadd.f32 1e-05, %v3001_v7  ;;  %v13668_v9 = vld [vmem:[#allocation107_spill] sm:$0xff]  ;;  %v13670_v7 = vld [vmem:[#allocation97_spill] sm:$0xff] }
 0x8bb   : > { %v7931_v21 = vpop.eup %7930  ;;  %7946 = vrsqrt.f32 %v3019_v0  ;;  %v3005_v17 = vmul.f32 0.015625, %v10561_v50  ;;  %v4430_v54 = vadd.f32 1e-05, %v4414_v59  ;;  %v3022_v30 = vadd.f32 1e-05, %v3006_v45  ;;  %v13671_v45 = vld [vmem:[#allocation124_spill] sm:$0xff] }
 0x8bc   : > { %7268 = vmatprep.mubr.msk.bf16.mxu1 %vm1718_vm0, %v2232_v31  ;;  %v1927_v12 = vmul.f32 %v7931_v21, %v10483_v25  ;;  %v7933_v3 = vpop.eup %7932  ;;  %7948 = vrsqrt.f32 %v3018_v6  ;;  %v1970_v36 = vadd.f32 %v10595_v58, %v1948_v60  ;;  %v4131_v38 = vsel %vm1718_vm0, %v4111_v46, 0.0  ;;  %v13672_v60 = vld [vmem:[#allocation119_spill] sm:$0xff] }
 0x8bd   : > { %4135 = vadd.xlane.f32.xlu0 %v4134_v1  ;;  %v7935_v29 = vpop.eup %7934  ;;  %7950 = vrsqrt.f32 %v4429_v24  ;;  %v3021_v18 = vadd.f32 1e-05, %v3005_v17  ;;  %v3044_v49 = vmul.f32 %v7933_v3, %v13669_v57  ;;  %v13673_v3 = vld [vmem:[#allocation120_spill] sm:$0xff] }
 0x8be   : > { %4126 = vadd.xlane.f32.xlu1 %v4125_v4  ;;  %v1949_v22 = vmul.f32 %v10581_v37, %v1927_v12  ;;  %v7937_v25 = vpop.eup %7936  ;;  %7952 = vrsqrt.f32 %v3017_v43  ;;  %v13667_v37 = vld [vmem:[#allocation96_spill] sm:$0xff] }
 0x8bf   : > { %v7939_v52 = vpop.eup %7938  ;;  %7954 = vrsqrt.f32 %v4430_v54  ;;  %v3043_v47 = vmul.f32 %v7935_v29, %v13667_v37  ;;  %v3045_v0 = vmul.f32 %v7937_v25, %v13670_v7  ;;  %v3063_v46 = vmul.f32 %v10355_v23, %v3044_v49  ;;  %v13676_v49 = vld [vmem:[#allocation121_spill] sm:$0xff] }
 0x8c0   : > { %v1971_v51 = vadd.f32 %v10595_v58, %v1949_v22  ;;  %7956 = vrsqrt.f32 %v3022_v30  ;;  %v3046_v39 = vmul.f32 %v7939_v52, %v13668_v9  ;;  %v13674_v22 = vld [vmem:[#allocation123_spill] sm:$0xff] }
 0x8c1   : > { %v10801_v34 = vpop.xlane.xlu1 %4378  ;;  %v7941_v28 = vpop.eup %7940  ;;  %7958 = vrsqrt.f32 %v3021_v18  ;;  %v3062_v6 = vmul.f32 %v10355_v23, %v3043_v47  ;;  %v3064_v29 = vmul.f32 %v10355_v23, %v3045_v0  ;;  %v3082_v9 = vadd.f32 %v10380_v42, %v3063_v46 }
 0x8c2   : > { %4132 = vadd.xlane.f32.xlu1 %v4131_v38  ;;  %v2233_v50 = vpack.c.bf16 %v1971_v51, %v1970_v36  ;;  %v7943_v58 = vpop.eup %7942  ;;  %v3065_v59 = vmul.f32 %v10355_v23, %v3046_v39  ;;  %v3048_v24 = vmul.f32 %v7941_v28, %v13672_v60 }
 0x8c3   : > { %v7945_v31 = vpop.eup %7944  ;;  %v3052_v12 = vmul.f32 %v7943_v58, %v13671_v45  ;;  %v3081_v52 = vadd.f32 %v10380_v42, %v3062_v6  ;;  %v3083_v39 = vadd.f32 %v10380_v42, %v3064_v29 }
 0x8c4   : > { %7269 = vmatmul.mubr.msk.bf16.gmra.mrb[76].mxu1 %vm1718_vm0, %v2233_v50  ;;  %v3047_v43 = vmul.f32 %v7945_v31, %v13673_v3  ;;  %v3084_v30 = vadd.f32 %v10380_v42, %v3065_v59  ;;  %v3067_v18 = vmul.f32 %v10355_v23, %v3048_v24  ;;  %v13675_v50 = vld [vmem:[#allocation122_spill] sm:$0xff]  ;;  %v13677_v24 = vld [vmem:[#allocation127_spill] sm:$0xff] }
 0x8c5   : > { %v10807_v63 = vpop.xlane.xlu1 %4042  ;;  %v7947_v21 = vpop.eup %7946  ;;  %v3071_v38 = vmul.f32 %v10355_v23, %v3052_v12  ;;  %v3469_v31 = vpack.c.bf16 %v3082_v9, %v3081_v52  ;;  %v13678_v3 = vld [vmem:[#allocation126_spill] sm:$0xff] }
 0x8c6   : > { %v7949_v4 = vpop.eup %7948  ;;  %v3051_v25 = vmul.f32 %v7947_v21, %v13674_v22  ;;  %v3066_v28 = vmul.f32 %v10355_v23, %v3047_v43  ;;  %v3470_v21 = vpack.c.bf16 %v3084_v30, %v3083_v39  ;;  %v3086_v12 = vadd.f32 %v10380_v42, %v3067_v18 }
 0x8c7   : > { %v7951_v17 = vpop.eup %7950  ;;  %v3050_v37 = vmul.f32 %v7949_v4, %v13675_v50  ;;  %v3090_v45 = vadd.f32 %v10380_v42, %v3071_v38 }
 0x8c8   : > { %v7953_v54 = vpop.eup %7952  ;;  %v4461_v58 = vmul.f32 %v7951_v17, %v10360_v19  ;;  %v3070_v57 = vmul.f32 %v10355_v23, %v3051_v25  ;;  %v3085_v19 = vadd.f32 %v10380_v42, %v3066_v28 }
 0x8c9   : > { %v10813_v1 = vpop.xlane.xlu1 %4045  ;;  %v7955_v36 = vpop.eup %7954  ;;  %v3049_v7 = vmul.f32 %v7953_v54, %v13676_v49  ;;  %v3069_v60 = vmul.f32 %v10355_v23, %v3050_v37  ;;  %v4081_v49 = vmul.f32 0.015625, %v10807_v63 }
 0x8ca   : > { %v7957_v47 = vpop.eup %7956  ;;  %v4462_v6 = vmul.f32 %v7955_v36, %v10294_v5  ;;  %v4477_v46 = vmul.f32 %v10498_v44, %v4461_v58  ;;  %v3089_v5 = vadd.f32 %v10380_v42, %v3070_v57  ;;  %v3471_v54 = vpack.c.bf16 %v3086_v12, %v3085_v19 }
 0x8cb   : > { %v7959_v0 = vpop.eup %7958  ;;  %v3054_v4 = vmul.f32 %v7957_v47, %v13677_v24  ;;  %v3068_v29 = vmul.f32 %v10355_v23, %v3049_v7  ;;  %v3088_v52 = vadd.f32 %v10380_v42, %v3069_v60  ;;  %v4415_v12 = vmul.f32 0.015625, %v10662_v14  ;;  %v13680_v60 = vld [vmem:[#allocation37_spill] sm:$0xff] }
 0x8cc   : > { %v3053_v43 = vmul.f32 %v7959_v0, %v13678_v3  ;;  %v4478_v17 = vmul.f32 %v10498_v44, %v4462_v6  ;;  %v3473_v25 = vpack.c.bf16 %v3090_v45, %v3089_v5  ;;  %v4493_v36 = vadd.f32 %v10506_v62, %v4477_v46  ;;  %v13679_v0 = vld [vmem:[#allocation31_spill] sm:$0xff] }
 0x8cd   : > { %v4049_v51 = vpop.xlane.xlu1 %4048  ;;  %v3073_v30 = vmul.f32 %v10355_v23, %v3054_v4  ;;  %v3087_v38 = vadd.f32 %v10380_v42, %v3068_v29  ;;  %v4416_v45 = vmul.f32 0.015625, %v10668_v41  ;;  %v4431_v63 = vadd.f32 1e-05, %v4415_v12  ;;  %v13681_v29 = vld [vmem:[#allocation40_spill] sm:$0xff] }
 0x8ce   : > { %v3072_v18 = vmul.f32 %v10355_v23, %v3053_v43  ;;  %v4494_v50 = vadd.f32 %v10506_v62, %v4478_v17  ;;  %v4417_v41 = vmul.f32 0.015625, %v10801_v34  ;;  %v13698_v23 = vld [vmem:[#allocation68_spill] sm:$0xff] }
 0x8cf   : > { %v3472_v37 = vpack.c.bf16 %v3088_v52, %v3087_v38  ;;  %v3092_v47 = vadd.f32 %v10380_v42, %v3073_v30  ;;  %v4432_v5 = vadd.f32 1e-05, %v4416_v45  ;;  %v13682_v52 = vld [vmem:[#allocation45_spill] sm:$0xff] }
 0x8d0   : > { %v10858_v39 = vpack.c.bf16 %v4494_v50, %v4493_v36  ;;  %v3091_v28 = vadd.f32 %v10380_v42, %v3072_v18 }
 0x8d1   : > { %v10833_v59 = vpop.xlane.xlu1 %4384  ;;  %7960 = vrsqrt.f32 %v4432_v5 }
 0x8d2   : > { %v3474_v58 = vpack.c.bf16 %v3092_v47, %v3091_v28  ;;  %7962 = vrsqrt.f32 %v4431_v63  ;;  %v13685_v63 = vld [vmem:[#allocation112_spill] sm:$0xff] }
 0x8d3   : > { %3495 = vrot.lane.b32.xlu1 %v3469_v31, %s8549_s27  ;;  %3497 = vrot.lane.b32.xlu0 %v3470_v21, %s8549_s27  ;;  %v10867_v31 = vsub.f32 %v13679_v0, %v4081_v49  ;;  %v4083_v21 = vmul.f32 0.015625, %v4049_v51 }
 0x8d5   : > { %v4388_v22 = vpop.xlane.xlu1 %4387  ;;  %v10872_v24 = vsub.f32 %v13680_v60, %v4083_v21  ;;  %v4113_v46 = vmul.f32 %v10867_v31, %v10867_v31 }
 0x8d6   : > { %v4420_v28 = vmul.f32 0.015625, %v4388_v22  ;;  %v13684_v22 = vld [vmem:[#allocation82_spill] sm:$0xff] }
 0x8d7   : > { %3503 = vrot.lane.b32.xlu0 %v3473_v25, %s8549_s27  ;;  %3499 = vrot.lane.b32.xlu1 %v3471_v54, %s8549_s27  ;;  %v4137_v17 = vsel %vm1718_vm0, %v4113_v46, 0.0  ;;  %v4115_v14 = vmul.f32 %v10872_v24, %v10872_v24  ;;  %v4082_v25 = vmul.f32 0.015625, %v10813_v1  ;;  %v4418_v54 = vmul.f32 0.015625, %v10680_v61 }
 0x8d8   : > { %v4436_v45 = vadd.f32 1e-05, %v4420_v28 }
 0x8d9   : > { %v3530_v44 = vpop.permute.xlu1 %3529  ;;  %v4143_v18 = vsel %vm1718_vm0, %v4115_v14, 0.0  ;;  %v4434_v34 = vadd.f32 1e-05, %v4418_v54 }
 0x8da   : > { %7511 = vmatprep.subr.msk.bf16.mxu0 %vm1718_vm0, %v3530_v44  ;;  %v3577_v9 = vsel %vm1718_vm0, %v3530_v44, 0  ;;  %v4433_v44 = vadd.f32 1e-05, %v4417_v41 }
 0x8db   : > { %3501 = vrot.lane.b32.xlu1 %v3472_v37, %s8549_s27  ;;  %7319 = vmatpush3.bf16.xpose.msra.mxu0 %v3577_v9  ;;  %v13683_v37 = vld [vmem:[#allocation34_spill] sm:$0xff] }
 0x8dc   : > { %7512 = vmatprep.subr.msk.bf16.mxu0 %vm1718_vm0, %v10858_v39  ;;  %v10892_v47 = vsub.f32 %v13683_v37, %v4082_v25  ;;  %7964 = vrsqrt.f32 %v4433_v44 }
 0x8dd   : > { %7966 = vrsqrt.f32 %v4434_v34 }
 0x8de   : > { %7968 = vrsqrt.f32 %v4436_v45 }
 0x8df   : > { %3505 = vrot.lane.b32.xlu1 %v3474_v58, %s8549_s27  ;;  %v4114_v58 = vmul.f32 %v10892_v47, %v10892_v47 }
 0x8e1   : > { %v4052_v62 = vpop.xlane.xlu0 %4051  ;;  %v4140_v12 = vsel %vm1718_vm0, %v4114_v58, 0.0  ;;  %v13687_v58 = vld [vmem:[#allocation48_spill] sm:$0xff] }
 0x8e2   : > { %v4084_v4 = vmul.f32 0.015625, %v4052_v62  ;;  %v7961_v62 = vpop.eup %7960 }
 0x8e4   : > { %v10877_v3 = vsub.f32 %v13681_v29, %v4084_v4  ;;  %v4464_v4 = vmul.f32 %v7961_v62, %v13684_v22 }
 0x8e5   : > { %v4058_v57 = vpop.xlane.xlu0 %4057 }
 0x8e6   : > { %v4086_v43 = vmul.f32 0.015625, %v4058_v57  ;;  %v4116_v50 = vmul.f32 %v10877_v3, %v10877_v3  ;;  %v4419_v57 = vmul.f32 0.015625, %v10833_v59 }
 0x8e8   : > { %v10886_v30 = vsub.f32 %v13682_v52, %v4086_v43  ;;  %v4146_v1 = vsel %vm1718_vm0, %v4116_v50, 0.0  ;;  %v4435_v46 = vadd.f32 1e-05, %v4419_v57  ;;  %v13688_v57 = vld [vmem:[#allocation84_spill] sm:$0xff] }
 0x8e9   : > { %v4061_v7 = vpop.xlane.xlu0 %4060 }
 0x8ea   : > { %v4118_v9 = vmul.f32 %v10886_v30, %v10886_v30  ;;  %7970 = vrsqrt.f32 %v4435_v46  ;;  %v4087_v54 = vmul.f32 0.015625, %v4061_v7 }
 0x8ec   : > { %v4152_v49 = vsel %vm1718_vm0, %v4118_v9, 0.0  ;;  %v10926_v62 = vsub.f32 %v13687_v58, %v4087_v54  ;;  %v13690_v54 = vld [vmem:[#allocation85_spill] sm:$0xff] }
 0x8ed   : > { %v4064_v6 = vpop.xlane.xlu0 %4063 }
 0x8ee   : > { %v4088_v36 = vmul.f32 0.015625, %v4064_v6  ;;  %v7963_v6 = vpop.eup %7962 }
 0x8ef   : > { %v4463_v43 = vmul.f32 %v7963_v6, %v13685_v63  ;;  %v7965_v41 = vpop.eup %7964  ;;  %v4550_v6 = vsel %vm1718_vm0, %v10858_v39, 0 }
 0x8f0   : > { %v10896_v61 = vsub.f32 %v13633_v13, %v4088_v36 }
 0x8f1   : > { %v4391_v19 = vpop.xlane.xlu0 %4390 }
 0x8f2   : > { %v4120_v21 = vmul.f32 %v10896_v61, %v10896_v61  ;;  %v4421_v25 = vmul.f32 0.015625, %v4391_v19 }
 0x8f4   : > { %v4158_v5 = vsel %vm1718_vm0, %v4120_v21, 0.0  ;;  %v4437_v28 = vadd.f32 1e-05, %v4421_v25 }
 0x8f5   : > { %v4394_v51 = vpop.xlane.xlu0 %4393 }
 0x8f6   : > { %4138 = vadd.xlane.f32.xlu0 %v4137_v17  ;;  %v4422_v59 = vmul.f32 0.015625, %v4394_v51  ;;  %v10914_v17 = vld [vmem:[%s13158_s6] ss:$0 sm:$0xff] }
 0x8f7   : > { %v4480_v14 = vmul.f32 %v10914_v17, %v4464_v4  ;;  %v4479_v36 = vmul.f32 %v10914_v17, %v4463_v43  ;;  %v10921_v51 = vld [vmem:[%s13159_s7] ss:$0 sm:$0xff] }
 0x8f9   : > { %v3492_v38 = vpop.permute.xlu0 %3491  ;;  %v4496_v34 = vadd.f32 %v10921_v51, %v4480_v14  ;;  %v4495_v19 = vadd.f32 %v10921_v51, %v4479_v36 }
 0x8fa   : > { %4144 = vadd.xlane.f32.xlu0 %v4143_v18  ;;  %7320 = vmatprep.mubr.msk.bf16.mxu0 %vm1718_vm0, %v3492_v38  ;;  %v7967_v38 = vpop.eup %7966  ;;  %v4438_v18 = vadd.f32 1e-05, %v4422_v59  ;;  %v13689_v59 = vld [vmem:[#allocation26_spill] sm:$0xff] }
 0x8fb   : > { %v4518_v45 = vpack.c.bf16 %v4496_v34, %v4495_v19  ;;  %v7969_v4 = vpop.eup %7968 }
 0x8fc   : > { %7972 = vrsqrt.f32 %v4438_v18  ;;  %v7971_v43 = vpop.eup %7970  ;;  %v4468_v14 = vmul.f32 %v7969_v4, %v13689_v59 }
 0x8fd   : > { %7974 = vrsqrt.f32 %v4437_v28  ;;  %v4467_v36 = vmul.f32 %v7971_v43, %v13690_v54 }
 0x8fe   : > { %4147 = vadd.xlane.f32.xlu0 %v4146_v1  ;;  %v13686_v1 = vld [vmem:[#allocation24_spill] sm:$0xff] }
 0x8ff   : > { %v4465_v9 = vmul.f32 %v7965_v41, %v13686_v1  ;;  %v4483_v34 = vmul.f32 %v10914_v17, %v4467_v36 }
 0x901   : > { %v4481_v22 = vmul.f32 %v10914_v17, %v4465_v9  ;;  %v4499_v19 = vadd.f32 %v10921_v51, %v4483_v34 }
 0x902   : > { %4153 = vadd.xlane.f32.xlu0 %v4152_v49  ;;  %v4466_v49 = vmul.f32 %v7967_v38, %v13688_v57  ;;  %v4553_v38 = vsel %vm1718_vm0, %v4518_v45, 0 }
 0x903   : > { %4141 = vadd.xlane.f32.xlu1 %v4140_v12  ;;  %v4497_v39 = vadd.f32 %v10921_v51, %v4481_v22 }
 0x904   : > { %v4482_v63 = vmul.f32 %v10914_v17, %v4466_v49 }
 0x906   : > { %4159 = vadd.xlane.f32.xlu0 %v4158_v5  ;;  %v4119_v5 = vmul.f32 %v10926_v62, %v10926_v62  ;;  %v4498_v25 = vadd.f32 %v10921_v51, %v4482_v63 }
 0x908   : > { %v4155_v41 = vsel %vm1718_vm0, %v4119_v5, 0.0  ;;  %v4519_v18 = vpack.c.bf16 %v4498_v25, %v4497_v39  ;;  %v13691_v5 = vld [vmem:[#allocation54_spill] sm:$0xff] }
 0x90a   : > { %v4055_v50 = vpop.xlane.xlu1 %4054  ;;  %v4556_v49 = vsel %vm1718_vm0, %v4519_v18, 0 }
 0x90b   : > { %v4085_v44 = vmul.f32 0.015625, %v4055_v50  ;;  %v4484_v50 = vmul.f32 %v10914_v17, %v4468_v14 }
 0x90d   : > { %v10929_v7 = vsub.f32 %v13645_v40, %v4085_v44  ;;  %v7973_v44 = vpop.eup %7972  ;;  %v4500_v9 = vadd.f32 %v10921_v51, %v4484_v50 }
 0x90e   : > { %v3494_v21 = vpop.permute.xlu1 %3493  ;;  %v7975_v1 = vpop.eup %7974  ;;  %v4470_v28 = vmul.f32 %v7973_v44, %v10610_v55 }
 0x90f   : > { %7321 = vmatmul.mubr.msk.bf16.vlgmr.msra.gmra.mrb[32].mxu0 %vm1718_vm0, %v3494_v21  ;;  %v4117_v12 = vmul.f32 %v10929_v7, %v10929_v7  ;;  %v4469_v57 = vmul.f32 %v7975_v1, %v10601_v33  ;;  %v4520_v21 = vpack.c.bf16 %v4500_v9, %v4499_v19 }
 0x910   : > { %7369 = vmatpush3.bf16.xpose.msra.mxu0 %v4550_v6  ;;  %v4486_v6 = vmul.f32 %v10914_v17, %v4470_v28 }
 0x911   : > { %7513 = vmatprep.subr.msk.bf16.mxu0 %vm1718_vm0, %v4518_v45  ;;  %v4149_v46 = vsel %vm1718_vm0, %v4117_v12, 0.0  ;;  %v4485_v45 = vmul.f32 %v10914_v17, %v4469_v57  ;;  %v4559_v55 = vsel %vm1718_vm0, %v4520_v21, 0 }
 0x912   : > { %4150 = vadd.xlane.f32.xlu1 %v4149_v46  ;;  %v4502_v12 = vadd.f32 %v10921_v51, %v4486_v6 }
 0x913   : > { %v4501_v22 = vadd.f32 %v10921_v51, %v4485_v45 }
 0x915   : > { %v4521_v4 = vpack.c.bf16 %v4502_v12, %v4501_v22 }
 0x916   : > { %4156 = vadd.xlane.f32.xlu1 %v4155_v41  ;;  %v13692_v41 = vld [vmem:[#allocation59_spill] sm:$0xff] }
 0x917   : > { %v4562_v59 = vsel %vm1718_vm0, %v4521_v4, 0 }
 0x918   : > { %7371 = vmatpush3.bf16.xpose.msra.mxu0 %v4553_v38 }
 0x919   : > { %7514 = vmatprep.subr.msk.bf16.mxu0 %vm1718_vm0, %v4519_v18 }
 0x920   : > { %7373 = vmatpush3.bf16.xpose.msra.mxu0 %v4556_v49 }
 0x921   : > { %7515 = vmatprep.subr.msk.bf16.mxu0 %vm1718_vm0, %v4520_v21 }
 0x928   : > { %7375 = vmatpush3.bf16.xpose.msra.mxu0 %v4559_v55 }
 0x929   : > { %7516 = vmatprep.subr.msk.bf16.mxu0 %vm1718_vm0, %v4521_v4 }
 0x92a   : > { %v4067_v33 = vpop.xlane.xlu0 %4066 }
 0x92b   : > { %v4089_v46 = vmul.f32 0.015625, %v4067_v33  ;;  %v13693_v33 = vld [vmem:[#allocation61_spill] sm:$0xff] }
 0x92d   : > { %v10966_v63 = vsub.f32 %v13691_v5, %v4089_v46 }
 0x92e   : > { %v4073_v43 = vpop.xlane.xlu0 %4072 }
 0x92f   : > { %v4091_v39 = vmul.f32 0.015625, %v4073_v43  ;;  %v4121_v14 = vmul.f32 %v10966_v63, %v10966_v63 }
 0x930   : > { %7377 = vmatpush3.bf16.xpose.msra.mxu0 %v4562_v59 }
 0x931   : > { %v10972_v25 = vsub.f32 %v13692_v41, %v4091_v39  ;;  %v4161_v54 = vsel %vm1718_vm0, %v4121_v14, 0.0 }
 0x932   : > { %4162 = vadd.xlane.f32.xlu1 %v4161_v54  ;;  %v4076_v36 = vpop.xlane.xlu0 %4075 }
 0x933   : > { %v10975_v38 = vpop.f32.mrb[64].mxu1  ;;  %v4123_v18 = vmul.f32 %v10972_v25, %v10972_v25  ;;  %v4092_v6 = vmul.f32 0.015625, %v4076_v36 }
 0x934   : > { %v10979_v50 = vpop.f32.mrb[65].mxu1 }
 0x935   : > { %v10981_v44 = vpop.f32.mrb[66].mxu1  ;;  %v4167_v34 = vsel %vm1718_vm0, %v4123_v18, 0.0  ;;  %v10987_v46 = vsub.f32 %v13693_v33, %v4092_v6 }
 0x936   : > { %v10984_v1 = vpop.f32.mrb[67].mxu1  ;;  %4168 = vadd.xlane.f32.xlu1 %v4167_v34  ;;  %v4397_v9 = vpop.xlane.xlu0 %4396 }
 0x937   : > { %v4423_v28 = vmul.f32 0.015625, %v4397_v9 }
 0x939   : > { %v4439_v19 = vadd.f32 1e-05, %v4423_v28 }
 0x93a   : > { %v4400_v57 = vpop.xlane.xlu0 %4399 }
 0x93b   : > { %7976 = vrsqrt.f32 %v4439_v19  ;;  %v4424_v49 = vmul.f32 0.015625, %v4400_v57  ;;  %v4124_v57 = vmul.f32 %v10987_v46, %v10987_v46 }
 0x93d   : > { %v4440_v21 = vadd.f32 1e-05, %v4424_v49  ;;  %v13694_v49 = vld [vmem:[#allocation83_spill] sm:$0xff] }
 0x93e   : > { %v4406_v45 = vpop.xlane.xlu0 %4405 }
 0x93f   : > { %7978 = vrsqrt.f32 %v4440_v21  ;;  %v4426_v12 = vmul.f32 0.015625, %v4406_v45  ;;  %v4070_v22 = vpop.xlane.xlu1 %4069 }
 0x940   : > { %v4090_v55 = vmul.f32 0.015625, %v4070_v22 }
 0x941   : > { %v4442_v4 = vadd.f32 1e-05, %v4426_v12  ;;  %v13695_v12 = vld [vmem:[#allocation63_spill] sm:$0xff] }
 0x942   : > { %v10990_v43 = vsub.f32 %v13663_v11, %v4090_v55  ;;  %v4412_v39 = vpop.xlane.xlu0 %4411 }
 0x943   : > { %7980 = vrsqrt.f32 %v4442_v4  ;;  %v4428_v59 = vmul.f32 0.015625, %v4412_v39  ;;  %v4403_v14 = vpop.xlane.xlu1 %4402 }
 0x944   : > { %v4425_v54 = vmul.f32 0.015625, %v4403_v14  ;;  %v4122_v36 = vmul.f32 %v10990_v43, %v10990_v43  ;;  %v4170_v14 = vsel %vm1718_vm0, %v4124_v57, 0.0 }
 0x945   : > { %v7977_v18 = vpop.eup %7976  ;;  %v4444_v34 = vadd.f32 1e-05, %v4428_v59 }
 0x946   : > { %v4441_v9 = vadd.f32 1e-05, %v4425_v54  ;;  %v4130_v28 = vpop.xlane.xlu0 %4129  ;;  %v4164_v19 = vsel %vm1718_vm0, %v4122_v36, 0.0  ;;  %v4471_v21 = vmul.f32 %v7977_v18, %v13694_v49 }
 0x947   : > { %7982 = vrsqrt.f32 %v4444_v34  ;;  %v4174_v6 = vmul.f32 0.015625, %v4130_v28  ;;  %v4409_v45 = vpop.xlane.xlu1 %4408  ;;  %4165 = vadd.xlane.f32.xlu0 %v4164_v19  ;;  %5383 = vrot.lane.b32.xlu1 %v13695_v12, %s8549_s27  ;;  %v13696_v28 = vld [vmem:[#allocation65_spill] sm:$0xff] }
 0x948   : > { %7984 = vrsqrt.f32 %v4441_v9  ;;  %v4427_v22 = vmul.f32 0.015625, %v4409_v45  ;;  %v4487_v36 = vmul.f32 %v10914_v17, %v4471_v21 }
 0x949   : > { %v7979_v55 = vpop.eup %7978  ;;  %v4190_v4 = vadd.f32 1e-05, %v4174_v6 }
 0x94a   : > { %v4443_v39 = vadd.f32 1e-05, %v4427_v22  ;;  %v4136_v59 = vpop.xlane.xlu0 %4135  ;;  %v4472_v54 = vmul.f32 %v7979_v55, %v10692_v2  ;;  %v4503_v57 = vadd.f32 %v10921_v51, %v4487_v36 }
 0x94b   : > { %v4176_v18 = vmul.f32 0.015625, %v4136_v59  ;;  %v4127_v34 = vpop.xlane.xlu1 %4126  ;;  %5387 = vrot.lane.b32.xlu1 %v13696_v28, %s8549_s27  ;;  %4171 = vadd.xlane.f32.xlu0 %v4170_v14  ;;  %v13697_v59 = vld [vmem:[#allocation66_spill] sm:$0xff] }
 0x94c   : > { %7986 = vrsqrt.f32 %v4443_v39  ;;  %v4173_v19 = vmul.f32 0.015625, %v4127_v34  ;;  %v4488_v9 = vmul.f32 %v10914_v17, %v4472_v54 }
 0x94d   : > { %v7981_v49 = vpop.eup %7980  ;;  %7988 = vrsqrt.f32 %v4190_v4  ;;  %v4192_v21 = vadd.f32 1e-05, %v4176_v18 }
 0x94e   : > { %v4189_v6 = vadd.f32 1e-05, %v4173_v19  ;;  %v11006_v45 = vpop.f32.mrb[68].mxu1  ;;  %v4504_v2 = vadd.f32 %v10921_v51, %v4488_v9  ;;  %v4474_v39 = vmul.f32 %v7981_v49, %v10709_v15 }
 0x94f   : > { %v4133_v22 = vpop.xlane.xlu1 %4132  ;;  %v11010_v55 = vpop.f32.mrb[69].mxu1  ;;  %5389 = vrot.lane.b32.xlu1 %v13697_v59, %s8549_s27 }
 0x950   : > { %7990 = vrsqrt.f32 %v4189_v6  ;;  %v4175_v14 = vmul.f32 0.015625, %v4133_v22  ;;  %v11015_v54 = vpop.f32.mrb[70].mxu1  ;;  %v4522_v4 = vpack.c.bf16 %v4504_v2, %v4503_v57  ;;  %v4490_v49 = vmul.f32 %v10914_v17, %v4474_v39  ;;  %v13699_v6 = vld [vmem:[#allocation20_spill] sm:$0xff]  ;;  %v3498_v2 = vpop.permute.xlu0 %3497 }
 0x951   : > { %v7983_v34 = vpop.eup %7982  ;;  %v11017_v19 = vpop.f32.mrb[71].mxu1  ;;  %7992 = vrsqrt.f32 %v4192_v21 }
 0x952   : > { %v7985_v36 = vpop.eup %7984  ;;  %v4191_v42 = vadd.f32 1e-05, %v4175_v14  ;;  %7517 = vmatprep.subr.msk.bf16.mxu0 %vm1718_vm0, %v4522_v4  ;;  %v4565_v18 = vsel %vm1718_vm0, %v4522_v4, 0  ;;  %v4476_v57 = vmul.f32 %v7983_v34, %v13699_v6  ;;  %v4506_v39 = vadd.f32 %v10921_v51, %v4490_v49 }
 0x953   : > { %v3496_v9 = vpop.permute.xlu1 %3495  ;;  %5393 = vrot.lane.b32.xlu1 %v13698_v23, %s8549_s27  ;;  %7379 = vmatpush3.bf16.xpose.msra.mxu0 %v4565_v18  ;;  %v4473_v15 = vmul.f32 %v7985_v36, %v10703_v16  ;;  %v13700_v23 = vld [vmem:[#allocation70_spill] sm:$0xff] }
 0x954   : > { %7994 = vrsqrt.f32 %v4191_v42  ;;  %7324 = vmatprep.mubr.msk.bf16.mxu0 %vm1718_vm0, %v3496_v9  ;;  %v4492_v42 = vmul.f32 %v10914_v17, %v4476_v57 }
 0x955   : > { %7325 = vmatmul.mubr.msk.bf16.gmra.mrb[36].mxu0 %vm1718_vm0, %v3498_v2  ;;  %v4489_v22 = vmul.f32 %v10914_v17, %v4473_v15  ;;  %v13701_v2 = vld [vmem:[#allocation72_spill] sm:$0xff] }
 0x956   : > { %v7987_v21 = vpop.eup %7986  ;;  %v4508_v57 = vadd.f32 %v10921_v51, %v4492_v42 }
 0x957   : > { %v7989_v14 = vpop.eup %7988  ;;  %v3500_v4 = vpop.permute.xlu1 %3499  ;;  %5397 = vrot.lane.b32.xlu1 %v13700_v23, %s8549_s27  ;;  %v4505_v16 = vadd.f32 %v10921_v51, %v4489_v22  ;;  %v4475_v34 = vmul.f32 %v7987_v21, %v10737_v27 }
 0x958   : > { %7328 = vmatprep.mubr.msk.bf16.mxu0 %vm1718_vm0, %v3500_v4  ;;  %v4222_v15 = vmul.f32 %v7989_v14, %v10741_v56  ;;  %v11049_v14 = vld [vmem:[%s13156_s4] ss:$0 sm:$0xff] }
 0x959   : > { %v4523_v36 = vpack.c.bf16 %v4506_v39, %v4505_v16  ;;  %v4491_v18 = vmul.f32 %v10914_v17, %v4475_v34  ;;  %v3504_v17 = vpop.permute.xlu0 %3503  ;;  %v13702_v39 = vld [vmem:[#allocation74_spill] sm:$0xff] }
 0x95a   : > { %v7991_v9 = vpop.eup %7990  ;;  %v11061_v34 = vld [vmem:[%s13157_s5] ss:$0 sm:$0xff] }
 0x95b   : > { %v3502_v6 = vpop.permute.xlu1 %3501  ;;  %5401 = vrot.lane.b32.xlu1 %v13701_v2, %s8549_s27  ;;  %7518 = vmatprep.subr.msk.bf16.mxu0 %vm1718_vm0, %v4523_v36  ;;  %v4568_v49 = vsel %vm1718_vm0, %v4523_v36, 0  ;;  %v4507_v27 = vadd.f32 %v10921_v51, %v4491_v18  ;;  %v4221_v22 = vmul.f32 %v7991_v9, %v10767_v32  ;;  %v7993_v21 = vpop.eup %7992  ;;  %v4238_v51 = vmul.f32 %v11049_v14, %v4222_v15  ;;  %v13703_v18 = vld [vmem:[#allocation64_spill] sm:$0xff]  ;;  %v13704_v15 = vld [vmem:[#allocation77_spill] sm:$0xff] }
 0x95c   : > { %7381 = vmatpush3.bf16.xpose.msra.mxu0 %v4568_v49  ;;  %v4224_v36 = vmul.f32 %v7993_v21, %v10758_v10  ;;  %v13706_v21 = vld [vmem:[#allocation81_spill] sm:$0xff] }
 0x95d   : > { %7329 = vmatmul.mubr.msk.bf16.gmra.mrb[40].mxu0 %vm1718_vm0, %v3502_v6  ;;  %v4524_v56 = vpack.c.bf16 %v4508_v57, %v4507_v27  ;;  %v4237_v4 = vmul.f32 %v11049_v14, %v4221_v22  ;;  %v4254_v9 = vadd.f32 %v11061_v34, %v4238_v51  ;;  %v13705_v22 = vld [vmem:[#allocation67_spill] sm:$0xff]  ;;  %v13709_v51 = vld [vmem:[#allocation73_spill] sm:$0xff] }
 0x95e   : > { %v7995_v16 = vpop.eup %7994  ;;  %7332 = vmatprep.mubr.msk.bf16.mxu0 %vm1718_vm0, %v3504_v17  ;;  %v4240_v57 = vmul.f32 %v11049_v14, %v4224_v36 }
 0x95f   : > { %v4223_v32 = vmul.f32 %v7995_v16, %v10782_v35  ;;  %5405 = vrot.lane.b32.xlu1 %v13702_v39, %s8549_s27  ;;  %7519 = vmatprep.subr.msk.bf16.mxu0 %vm1718_vm0, %v4524_v56  ;;  %v4253_v42 = vadd.f32 %v11061_v34, %v4237_v4  ;;  %v4571_v6 = vsel %vm1718_vm0, %v4524_v56, 0  ;;  %v3506_v49 = vpop.permute.xlu1 %3505  ;;  %v13707_v56 = vld [vmem:[#allocation69_spill] sm:$0xff]  ;;  %v13708_v16 = vld [vmem:[#allocation71_spill] sm:$0xff] }
 0x960   : > { %v4256_v17 = vadd.f32 %v11061_v34, %v4240_v57 }
 0x961   : > { %5385 = vrot.lane.b32.xlu0 %v13703_v18, %s8549_s27  ;;  %v4239_v35 = vmul.f32 %v11049_v14, %v4223_v32  ;;  %v4509_v27 = vpack.c.bf16 %v4254_v9, %v4253_v42  ;;  %v13710_v32 = vld [vmem:[#allocation76_spill] sm:$0xff] }
 0x963   : > { %5409 = vrot.lane.b32.xlu1 %v13704_v15, %s8549_s27  ;;  %v4255_v10 = vadd.f32 %v11061_v34, %v4239_v35 }
 0x964   : > { %7383 = vmatpush3.bf16.xpose.msra.mxu0 %v4571_v6 }
 0x965   : > { %5391 = vrot.lane.b32.xlu0 %v13705_v22, %s8549_s27  ;;  %7333 = vmatmul.mubr.msk.bf16.gmra.mrb[44].mxu0 %vm1718_vm0, %v3506_v49  ;;  %v4510_v4 = vpack.c.bf16 %v4256_v17, %v4255_v10 }
 0x966   : > { %7384 = vmatprep.mubr.msk.bf16.mxu0 %vm1718_vm0, %v4509_v27 }
 0x967   : > { %5413 = vrot.lane.b32.xlu1 %v13706_v21, %s8549_s27 }
 0x969   : > { %5395 = vrot.lane.b32.xlu0 %v13707_v56, %s8549_s27 }
 0x96d   : > { %5399 = vrot.lane.b32.xlu0 %v13708_v16, %s8549_s27  ;;  %7385 = vmatmul.mubr.msk.bf16.vlgmr.msra.gmra.mrb[48].mxu0 %vm1718_vm0, %v4510_v4 }
 0x971   : > { %5403 = vrot.lane.b32.xlu0 %v13709_v51, %s8549_s27 }
 0x975   : > { %5407 = vrot.lane.b32.xlu0 %v13710_v32, %s8549_s27 }
 0x979   : > { %5411 = vrot.lane.b32.xlu0 %v13661_v20, %s8549_s27 }
 0x983   : > { %v4139_v42 = vpop.xlane.xlu0 %4138 }
 0x984   : > { %v11092_v36 = vpop.f32.mrb[72].mxu1  ;;  %v4177_v35 = vmul.f32 0.015625, %v4139_v42 }
 0x985   : > { %v11094_v9 = vpop.f32.mrb[73].mxu1 }
 0x986   : > { %v11096_v6 = vpop.f32.mrb[74].mxu1  ;;  %v4193_v10 = vadd.f32 1e-05, %v4177_v35 }
 0x987   : > { %v11098_v49 = vpop.f32.mrb[75].mxu1  ;;  %v4145_v27 = vpop.xlane.xlu0 %4144 }
 0x988   : > { %v4179_v57 = vmul.f32 0.015625, %v4145_v27  ;;  %7996 = vrsqrt.f32 %v4193_v10 }
 0x98a   : > { %v4195_v17 = vadd.f32 1e-05, %v4179_v57 }
 0x98b   : > { %v4148_v4 = vpop.xlane.xlu0 %4147 }
 0x98c   : > { %v4180_v21 = vmul.f32 0.015625, %v4148_v4  ;;  %7998 = vrsqrt.f32 %v4195_v17 }
 0x98e   : > { %v4196_v15 = vadd.f32 1e-05, %v4180_v21 }
 0x98f   : > { %v4154_v32 = vpop.xlane.xlu0 %4153 }
 0x990   : > { %8000 = vrsqrt.f32 %v4196_v15  ;;  %v4142_v20 = vpop.xlane.xlu1 %4141  ;;  %v4182_v42 = vmul.f32 0.015625, %v4154_v32 }
 0x991   : > { %v4178_v51 = vmul.f32 0.015625, %v4142_v20 }
 0x992   : > { %v7997_v56 = vpop.eup %7996  ;;  %v4198_v10 = vadd.f32 1e-05, %v4182_v42 }
 0x993   : > { %v4194_v39 = vadd.f32 1e-05, %v4178_v51  ;;  %v4160_v16 = vpop.xlane.xlu0 %4159  ;;  %v4225_v20 = vmul.f32 %v7997_v56, %v10867_v31 }
 0x994   : > { %v4184_v21 = vmul.f32 0.015625, %v4160_v16 }
 0x995   : > { %8002 = vrsqrt.f32 %v4194_v39  ;;  %v4241_v42 = vmul.f32 %v11049_v14, %v4225_v20 }
 0x996   : > { %v7999_v35 = vpop.eup %7998  ;;  %8004 = vrsqrt.f32 %v4198_v10  ;;  %v4200_v51 = vadd.f32 1e-05, %v4184_v21 }
 0x997   : > { %v11100_v2 = vpop.f32.mrb[76].mxu1  ;;  %v4227_v39 = vmul.f32 %v7999_v35, %v10872_v24  ;;  %v4257_v35 = vadd.f32 %v11061_v34, %v4241_v42 }
 0x998   : > { %v11102_v23 = vpop.f32.mrb[77].mxu1  ;;  %8006 = vrsqrt.f32 %v4200_v51 }
 0x999   : > { %v11104_v27 = vpop.f32.mrb[78].mxu1  ;;  %v4243_v16 = vmul.f32 %v11049_v14, %v4227_v39 }
 0x99a   : > { %v8001_v57 = vpop.eup %8000  ;;  %v11106_v17 = vpop.f32.mrb[79].mxu1 }
 0x99b   : > { %v4228_v15 = vmul.f32 %v8001_v57, %v10877_v3  ;;  %v4259_v10 = vadd.f32 %v11061_v34, %v4243_v16 }
 0x99d   : > { %v4244_v22 = vmul.f32 %v11049_v14, %v4228_v15 }
 0x99f   : > { %v8003_v32 = vpop.eup %8002  ;;  %v4151_v4 = vpop.xlane.xlu1 %4150  ;;  %v4260_v24 = vadd.f32 %v11061_v34, %v4244_v22 }
 0x9a0   : > { %v4181_v28 = vmul.f32 0.015625, %v4151_v4  ;;  %v4226_v59 = vmul.f32 %v8003_v32, %v10892_v47  ;;  %v8005_v20 = vpop.eup %8004 }
 0x9a1   : > { %v4512_v15 = vpack.c.bf16 %v4260_v24, %v4259_v10 }
 0x9a2   : > { %v4197_v12 = vadd.f32 1e-05, %v4181_v28  ;;  %v4242_v3 = vmul.f32 %v11049_v14, %v4226_v59  ;;  %v4230_v28 = vmul.f32 %v8005_v20, %v10886_v30  ;;  %v8007_v59 = vpop.eup %8006 }
 0x9a3   : > { %v4157_v31 = vpop.xlane.xlu1 %4156  ;;  %v4232_v51 = vmul.f32 %v8007_v59, %v10896_v61 }
 0x9a4   : > { %8008 = vrsqrt.f32 %v4197_v12  ;;  %v4183_v56 = vmul.f32 0.015625, %v4157_v31  ;;  %v4258_v57 = vadd.f32 %v11061_v34, %v4242_v3  ;;  %v4246_v39 = vmul.f32 %v11049_v14, %v4230_v28 }
 0x9a5   : > { %v4248_v31 = vmul.f32 %v11049_v14, %v4232_v51 }
 0x9a6   : > { %v4199_v47 = vadd.f32 1e-05, %v4183_v56  ;;  %v4511_v21 = vpack.c.bf16 %v4258_v57, %v4257_v35  ;;  %v4262_v16 = vadd.f32 %v11061_v34, %v4246_v39 }
 0x9a7   : > { %v4264_v61 = vadd.f32 %v11061_v34, %v4248_v31 }
 0x9a8   : > { %8010 = vrsqrt.f32 %v4199_v47  ;;  %7388 = vmatprep.mubr.msk.bf16.mxu0 %vm1718_vm0, %v4511_v21 }
 0x9a9   : > { %7389 = vmatmul.mubr.msk.bf16.gmra.mrb[52].mxu0 %vm1718_vm0, %v4512_v15 }
 0x9ae   : > { %v8009_v12 = vpop.eup %8008 }
 0x9af   : > { %v4229_v22 = vmul.f32 %v8009_v12, %v10929_v7 }
 0x9b1   : > { %v4245_v32 = vmul.f32 %v11049_v14, %v4229_v22 }
 0x9b2   : > { %v8011_v4 = vpop.eup %8010 }
 0x9b3   : > { %v4261_v42 = vadd.f32 %v11061_v34, %v4245_v32  ;;  %v4231_v3 = vmul.f32 %v8011_v4, %v10926_v62 }
 0x9b5   : > { %v4513_v30 = vpack.c.bf16 %v4262_v16, %v4261_v42  ;;  %v4247_v24 = vmul.f32 %v11049_v14, %v4231_v3 }
 0x9b7   : > { %7392 = vmatprep.mubr.msk.bf16.mxu0 %vm1718_vm0, %v4513_v30  ;;  %v4263_v7 = vadd.f32 %v11061_v34, %v4247_v24 }
 0x9b9   : > { %v4514_v56 = vpack.c.bf16 %v4264_v61, %v4263_v7 }
 0x9bb   : > { %7393 = vmatmul.mubr.msk.bf16.gmra.mrb[56].mxu0 %vm1718_vm0, %v4514_v56 }
 0x9bf   : > { %v4163_v35 = vpop.xlane.xlu1 %4162 }
 0x9c0   : > { %v4185_v62 = vmul.f32 0.015625, %v4163_v35 }
 0x9c2   : > { %v4201_v21 = vadd.f32 1e-05, %v4185_v62 }
 0x9c3   : > { %v4169_v57 = vpop.xlane.xlu1 %4168 }
 0x9c4   : > { %v4187_v15 = vmul.f32 0.015625, %v4169_v57  ;;  %8012 = vrsqrt.f32 %v4201_v21 }
 0x9c6   : > { %v4203_v20 = vadd.f32 1e-05, %v4187_v15 }
 0x9c7   : > { %v5384_v10 = vpop.permute.xlu1 %5383 }
 0x9c8   : > { %v5431_v47 = vsel %vm1718_vm0, %v5384_v10, 0.0  ;;  %8014 = vrsqrt.f32 %v4203_v20 }
 0x9c9   : > { %5432 = vadd.xlane.f32.xlu0 %v5431_v47 }
 0x9ce   : > { %v8013_v4 = vpop.eup %8012 }
 0x9cf   : > { %v4233_v16 = vmul.f32 %v8013_v4, %v10966_v63 }
 0x9d1   : > { %v4249_v56 = vmul.f32 %v11049_v14, %v4233_v16 }
 0x9d2   : > { %v8015_v3 = vpop.eup %8014 }
 0x9d3   : > { %v4235_v35 = vmul.f32 %v8015_v3, %v10972_v25  ;;  %v4265_v47 = vadd.f32 %v11061_v34, %v4249_v56 }
 0x9d4   : > { %v4166_v28 = vpop.xlane.xlu0 %4165 }
 0x9d5   : > { %v4186_v59 = vmul.f32 0.015625, %v4166_v28  ;;  %v4251_v15 = vmul.f32 %v11049_v14, %v4235_v35 }
 0x9d7   : > { %v4202_v12 = vadd.f32 1e-05, %v4186_v59  ;;  %v4267_v25 = vadd.f32 %v11061_v34, %v4251_v15 }
 0x9d8   : > { %v4172_v22 = vpop.xlane.xlu0 %4171 }
 0x9d9   : > { %8016 = vrsqrt.f32 %v4202_v12  ;;  %v4188_v39 = vmul.f32 0.015625, %v4172_v22 }
 0x9db   : > { %v4204_v51 = vadd.f32 1e-05, %v4188_v39 }
 0x9dc   : > { %v5386_v32 = vpop.permute.xlu0 %5385 }
 0x9dd   : > { %8018 = vrsqrt.f32 %v4204_v51  ;;  %v5434_v42 = vsel %vm1718_vm0, %v5386_v32, 0.0 }
 0x9de   : > { %5435 = vadd.xlane.f32.xlu1 %v5434_v42 }
 0x9df   : > { %5015 = vrot.lane.b32.xlu0 %v13665_v8, %s8549_s27 }
 0x9e2   : > { %v11141_v31 = vpop.f32.mrb[32].mxu0 }
 0x9e3   : > { %v8017_v30 = vpop.eup %8016  ;;  %v11143_v24 = vpop.f32.mrb[33].mxu0  ;;  %5019 = vrot.lane.b32.xlu0 %v13666_v48, %s8549_s27 }
 0x9e4   : > { %v11147_v7 = vpop.f32.mrb[34].mxu0  ;;  %v4234_v61 = vmul.f32 %v8017_v30, %v10990_v43 }
 0x9e5   : > { %v11152_v57 = vpop.f32.mrb[35].mxu0 }
 0x9e6   : > { %v4250_v63 = vmul.f32 %v11049_v14, %v4234_v61 }
 0x9e7   : > { %v8019_v10 = vpop.eup %8018 }
 0x9e8   : > { %v4266_v62 = vadd.f32 %v11061_v34, %v4250_v63  ;;  %v4236_v21 = vmul.f32 %v8019_v10, %v10987_v46  ;;  %v5388_v46 = vpop.permute.xlu1 %5387 }
 0x9e9   : > { %v5437_v22 = vsel %vm1718_vm0, %v5388_v46, 0.0 }
 0x9ea   : > { %v4515_v20 = vpack.c.bf16 %v4266_v62, %v4265_v47  ;;  %v4252_v43 = vmul.f32 %v11049_v14, %v4236_v21  ;;  %v5392_v14 = vpop.permute.xlu0 %5391 }
 0x9eb   : > { %v5443_v39 = vsel %vm1718_vm0, %v5392_v14, 0.0 }
 0x9ec   : > { %7396 = vmatprep.mubr.msk.bf16.mxu0 %vm1718_vm0, %v4515_v20  ;;  %v4268_v28 = vadd.f32 %v11061_v34, %v4252_v43  ;;  %v5390_v12 = vpop.permute.xlu1 %5389 }
 0x9ed   : > { %v5440_v32 = vsel %vm1718_vm0, %v5390_v12, 0.0 }
 0x9ee   : > { %v4516_v59 = vpack.c.bf16 %v4268_v28, %v4267_v25  ;;  %v5396_v10 = vpop.permute.xlu0 %5395 }
 0x9ef   : > { %5017 = vrot.lane.b32.xlu1 %v13662_v53, %s8549_s27  ;;  %v5449_v20 = vsel %vm1718_vm0, %v5396_v10, 0.0 }
 0x9f0   : > { %7397 = vmatmul.mubr.msk.bf16.gmra.mrb[60].mxu0 %vm1718_vm0, %v4516_v59  ;;  %v5394_v51 = vpop.permute.xlu1 %5393 }
 0x9f1   : > { %v5446_v34 = vsel %vm1718_vm0, %v5394_v51, 0.0  ;;  %v13711_v51 = vlaneseq }
 0x9f2   : > { %v5400_v43 = vpop.permute.xlu0 %5399 }
 0x9f3   : > { %5021 = vrot.lane.b32.xlu1 %v13664_v26, %s8549_s27  ;;  %v5455_v46 = vsel %vm1718_vm0, %v5400_v43, 0.0 }
 0x9f4   : > { %v5398_v15 = vpop.permute.xlu1 %5397 }
 0x9f8   : > { %v5402_v12 = vpop.permute.xlu1 %5401 }
 0x9f9   : > { %v5458_v14 = vsel %vm1718_vm0, %v5402_v12, 0.0 }
 0xa02   : > { %5438 = vadd.xlane.f32.xlu0 %v5437_v22 }
 0xa06   : > { %5444 = vadd.xlane.f32.xlu0 %v5443_v39  ;;  %v5452_v39 = vsel %vm1718_vm0, %v5398_v15, 0.0 }
 0xa0a   : > { %5447 = vadd.xlane.f32.xlu0 %v5446_v34  ;;  %v11225_v34 = vand.u32 127, %v13711_v51 }
 0xa0c   : > { %13712 = vst [vmem:[#allocation89_spill] sm:$0xff] %v11225_v34  ;;  %vm2389_vm1 = vcmp.lt.s32.totalorder %v11225_v34, 16 }
 0xa0d   : > { %v11252_v51 = vsel %vm2389_vm1, %v10981_v44, -1e+30 }
 0xa17   : > { %5441 = vadd.xlane.f32.xlu1 %v5440_v32  ;;  %v5404_v32 = vpop.permute.xlu0 %5403 }
 0xa18   : > { %v5461_v10 = vsel %vm1718_vm0, %v5404_v32, 0.0 }
 0xa20   : > { %5025 = vrot.lane.b32.xlu0 %v13683_v37, %s8549_s27 }
 0xa28   : > { %v11174_v4 = vpop.f32.mrb[36].mxu0  ;;  %5023 = vrot.lane.b32.xlu1 %v13679_v0, %s8549_s27 }
 0xa29   : > { %v11178_v42 = vpop.f32.mrb[37].mxu0 }
 0xa2a   : > { %v11180_v16 = vpop.f32.mrb[38].mxu0 }
 0xa2b   : > { %v11182_v3 = vpop.f32.mrb[39].mxu0 }
 0xa2c   : > { %5027 = vrot.lane.b32.xlu1 %v13680_v60, %s8549_s27  ;;  %v11342_v60 = vsel %vm2389_vm1, %v11092_v36, -1e+30  ;;  %v11356_v36 = vsel %vm2389_vm1, %v11152_v57, -1e+30  ;;  %v11375_v57 = vsel %vm2389_vm1, %v11100_v2, -1e+30 }
 0xa30   : > { %v11186_v30 = vpop.f32.mrb[40].mxu0  ;;  %5029 = vrot.lane.b32.xlu1 %v13681_v29, %s8549_s27 }
 0xa31   : > { %v11190_v61 = vpop.f32.mrb[41].mxu0 }
 0xa32   : > { %v11192_v56 = vpop.f32.mrb[42].mxu0 }
 0xa33   : > { %v11194_v35 = vpop.f32.mrb[43].mxu0 }
 0xa38   : > { %v11196_v63 = vpop.f32.mrb[44].mxu0 }
 0xa39   : > { %v11198_v47 = vpop.f32.mrb[45].mxu0 }
 0xa3a   : > { %v11200_v62 = vpop.f32.mrb[46].mxu0 }
 0xa3b   : > { %v11202_v21 = vpop.f32.mrb[47].mxu0 }
 0xa3f   : > { %5450 = vadd.xlane.f32.xlu0 %v5449_v20 }
 0xa40   : > { %v11205_v25 = vpop.f32.mrb[48].mxu0 }
 0xa41   : > { %v11207_v28 = vpop.f32.mrb[49].mxu0 }
 0xa42   : > { %v11209_v59 = vpop.f32.mrb[50].mxu0 }
 0xa43   : > { %v11212_v22 = vpop.f32.mrb[51].mxu0  ;;  %5456 = vadd.xlane.f32.xlu0 %v5455_v46  ;;  %v11238_v46 = vsel %vm2389_vm1, %v10979_v50, -1e+30 }
 0xa47   : > { %5459 = vadd.xlane.f32.xlu0 %v5458_v14  ;;  %v5406_v14 = vpop.permute.xlu1 %5405 }
 0xa48   : > { %v5464_v44 = vsel %vm1718_vm0, %v5406_v14, 0.0 }
 0xa4b   : > { %v5410_v32 = vpop.permute.xlu1 %5409 }
 0xa4c   : > { %v5470_v50 = vsel %vm1718_vm0, %v5410_v32, 0.0  ;;  %v11274_v32 = vsel %vm2389_vm1, %v11015_v54, -1e+30 }
 0xa54   : > { %5453 = vadd.xlane.f32.xlu1 %v5452_v39  ;;  %v11246_v39 = vsel %vm2389_vm1, %v10984_v1, -1e+30  ;;  %v11261_v1 = vsel %vm2389_vm1, %v11017_v19, -1e+30  ;;  %v11279_v19 = vsel %vm2389_vm1, %v10975_v38, -1e+30 }
 0xa55   : > { %v11293_v38 = vsel %vm2389_vm1, %v11006_v45, -1e+30 }
 0xa5d   : > { %5033 = vrot.lane.b32.xlu0 %v13682_v52, %s8549_s27 }
 0xa65   : > { %5031 = vrot.lane.b32.xlu1 %v13645_v40, %s8549_s27  ;;  %v5414_v40 = vpop.permute.xlu1 %5413 }
 0xa69   : > { %5035 = vrot.lane.b32.xlu1 %v13687_v58, %s8549_s27 }
 0xa6d   : > { %5037 = vrot.lane.b32.xlu1 %v13633_v13, %s8549_s27 }
 0xa7c   : > { %v11229_v15 = vpop.f32.mrb[52].mxu0  ;;  %5462 = vadd.xlane.f32.xlu0 %v5461_v10 }
 0xa7d   : > { %v11231_v20 = vpop.f32.mrb[53].mxu0 }
 0xa7e   : > { %v11233_v43 = vpop.f32.mrb[54].mxu0 }
 0xa7f   : > { %v11240_v12 = vpop.f32.mrb[55].mxu0 }
 0xa80   : > { %2406 = vmax.xlane.f32.xlu0 %v11238_v46 }
 0xa84   : > { %2408 = vmax.xlane.f32.xlu0 %v11246_v39 }
 0xa88   : > { %2412 = vmax.xlane.f32.xlu0 %v11252_v51 }
 0xa8c   : > { %5471 = vadd.xlane.f32.xlu0 %v5470_v50  ;;  %v5408_v50 = vpop.permute.xlu0 %5407 }
 0xa8d   : > { %v5467_v14 = vsel %vm1718_vm0, %v5408_v50, 0.0 }
 0xa8e   : > { %v11256_v10 = vpop.f32.mrb[56].mxu0 }
 0xa8f   : > { %v11263_v13 = vpop.f32.mrb[57].mxu0 }
 0xa90   : > { %v11265_v58 = vpop.f32.mrb[58].mxu0  ;;  %2416 = vmax.xlane.f32.xlu0 %v11261_v1  ;;  %v5412_v45 = vpop.permute.xlu0 %5411 }
 0xa91   : > { %v11269_v52 = vpop.f32.mrb[59].mxu0  ;;  %5465 = vadd.xlane.f32.xlu1 %v5464_v44  ;;  %v11287_v44 = vsel %vm2389_vm1, %v11010_v55, -1e+30 }
 0xa94   : > { %2420 = vmax.xlane.f32.xlu0 %v11274_v32 }
 0xa95   : > { %2410 = vmax.xlane.f32.xlu1 %v11279_v19 }
 0xa99   : > { %5468 = vadd.xlane.f32.xlu1 %v5467_v14 }
 0xa9d   : > { %2414 = vmax.xlane.f32.xlu1 %v11287_v44 }
 0xaa1   : > { %2418 = vmax.xlane.f32.xlu1 %v11293_v38 }
 0xaaa   : > { %5041 = vrot.lane.b32.xlu0 %v13663_v11, %s8549_s27  ;;  %v5473_v11 = vsel %vm1718_vm0, %v5412_v45, 0.0 }
 0xab2   : > { %5039 = vrot.lane.b32.xlu1 %v13691_v5, %s8549_s27  ;;  %v5436_v5 = vpop.xlane.xlu1 %5435 }
 0xab6   : > { %5043 = vrot.lane.b32.xlu1 %v13692_v41, %s8549_s27  ;;  %v11316_v41 = vsel %vm2389_vm1, %v11094_v9, -1e+30 }
 0xaba   : > { %5045 = vrot.lane.b32.xlu1 %v13693_v33, %s8549_s27  ;;  %v11322_v33 = vsel %vm2389_vm1, %v11098_v49, -1e+30  ;;  %v5476_v49 = vsel %vm1718_vm0, %v5414_v40, 0.0  ;;  %v11349_v40 = vsel %vm2389_vm1, %v11104_v27, -1e+30 }
 0xabb   : > { %v11363_v27 = vsel %vm2389_vm1, %v11147_v7, -1e+30  ;;  %v11381_v7 = vsel %vm2389_vm1, %v11143_v24, -1e+30  ;;  %v13721_v24 = vld [vmem:[#allocation63_spill] sm:$0xff] }
 0xabc   : > { %13717 = vst [vmem:[#allocation87_spill] sm:$0xff] %v11363_v27  ;;  %13718 = vst [vmem:[#allocation32_spill] sm:$0xff] %v11381_v7 }
 0xac3   : > { %v11304_v55 = vpop.f32.mrb[60].mxu0 }
 0xac4   : > { %13713 = vst [vmem:[#allocation114_spill] sm:$0xff] %v11304_v55  ;;  %v11306_v54 = vpop.f32.mrb[61].mxu0  ;;  %v5433_v55 = vpop.xlane.xlu0 %5432 }
 0xac5   : > { %13714 = vst [vmem:[#allocation102_spill] sm:$0xff] %v11306_v54  ;;  %v11308_v50 = vpop.f32.mrb[62].mxu0  ;;  %v11337_v54 = vsel %vm2389_vm1, %v11106_v17, -1e+30 }
 0xac6   : > { %13715 = vst [vmem:[#allocation86_spill] sm:$0xff] %v11308_v50  ;;  %v11310_v14 = vpop.f32.mrb[63].mxu0  ;;  %v5018_v50 = vpop.permute.xlu1 %5017 }
 0xac7   : > { %13716 = vst [vmem:[#allocation30_spill] sm:$0xff] %v11310_v14  ;;  %v5066_v9 = vsel %vm1718_vm0, %v5018_v50, 0.0 }
 0xac9   : > { %5474 = vadd.xlane.f32.xlu0 %v5473_v11  ;;  %v11328_v11 = vsel %vm2389_vm1, %v11096_v6, -1e+30  ;;  %v5016_v6 = vpop.permute.xlu0 %5015 }
 0xaca   : > { %v5022_v45 = vpop.permute.xlu1 %5021  ;;  %v5063_v17 = vsel %vm1718_vm0, %v5016_v6, 0.0 }
 0xacb   : > { %v5072_v14 = vsel %vm1718_vm0, %v5022_v45, 0.0  ;;  %v5480_v45 = vmul.f32 0.015625, %v5436_v5 }
 0xacd   : > { %2422 = vmax.xlane.f32.xlu0 %v11316_v41  ;;  %v5020_v50 = vpop.permute.xlu0 %5019  ;;  %v11391_v2 = vsub.f32 %v13703_v18, %v5480_v45 }
 0xacf   : > { %13720 = vst [vmem:[#allocation38_spill] sm:$0xff] %v11391_v2  ;;  %v5512_v6 = vmul.f32 %v11391_v2, %v11391_v2 }
 0xad1   : > { %2424 = vmax.xlane.f32.xlu0 %v11322_v33  ;;  %v5439_v5 = vpop.xlane.xlu0 %5438 }
 0xad5   : > { %2428 = vmax.xlane.f32.xlu0 %v11328_v11 }
 0xad9   : > { %5067 = vadd.xlane.f32.xlu0 %v5066_v9  ;;  %v11368_v9 = vsel %vm2389_vm1, %v11102_v23, -1e+30  ;;  %v11387_v23 = vsel %vm2389_vm1, %v11141_v31, -1e+30  ;;  %v5442_v31 = vpop.xlane.xlu1 %5441 }
 0xada   : > { %13719 = vst [vmem:[#allocation36_spill] sm:$0xff] %v11387_v23 }
 0xadd   : > { %5073 = vadd.xlane.f32.xlu0 %v5072_v14  ;;  %v5069_v14 = vsel %vm1718_vm0, %v5020_v50, 0.0 }
 0xade   : > { %5477 = vadd.xlane.f32.xlu1 %v5476_v49  ;;  %v5479_v49 = vmul.f32 0.015625, %v5433_v55 }
 0xae1   : > { %2432 = vmax.xlane.f32.xlu0 %v11337_v54 }
 0xae2   : > { %2426 = vmax.xlane.f32.xlu1 %v11342_v60 }
 0xae5   : > { %2436 = vmax.xlane.f32.xlu0 %v11349_v40 }
 0xae6   : > { %5064 = vadd.xlane.f32.xlu1 %v5063_v17  ;;  %v11397_v17 = vsub.f32 %v13721_v24, %v5479_v49  ;;  %v11407_v49 = vsel %vm2389_vm1, %v11182_v3, -1e+30  ;;  %v5481_v3 = vmul.f32 0.015625, %v5439_v5  ;;  %v11439_v5 = vsel %vm2389_vm1, %v11194_v35, -1e+30 }
 0xae7   : > { %13723 = vst [vmem:[#allocation115_spill] sm:$0xff] %v11407_v49  ;;  %13730 = vst [vmem:[#allocation116_spill] sm:$0xff] %v11439_v5 }
 0xae8   : > { %13722 = vst [vmem:[#allocation88_spill] sm:$0xff] %v11397_v17  ;;  %v5511_v50 = vmul.f32 %v11397_v17, %v11397_v17 }
 0xae9   : > { %3694 = vmax.xlane.f32.xlu0 %v11356_v36 }
 0xaea   : > { %5070 = vadd.xlane.f32.xlu1 %v5069_v14  ;;  %v5445_v14 = vpop.xlane.xlu0 %5444 }
 0xaed   : > { %3698 = vmax.xlane.f32.xlu0 %v11363_v27 }
 0xaee   : > { %2430 = vmax.xlane.f32.xlu1 %v11368_v9  ;;  %v5448_v18 = vpop.xlane.xlu0 %5447 }
 0xaf2   : > { %2434 = vmax.xlane.f32.xlu1 %v11375_v57  ;;  %v5026_v55 = vpop.permute.xlu0 %5025 }
 0xaf6   : > { %3692 = vmax.xlane.f32.xlu1 %v11381_v7  ;;  %v5078_v7 = vsel %vm1718_vm0, %v5026_v55, 0.0  ;;  %v13725_v55 = vld [vmem:[#allocation66_spill] sm:$0xff] }
 0xafa   : > { %3696 = vmax.xlane.f32.xlu1 %v11387_v23  ;;  %v5024_v23 = vpop.permute.xlu1 %5023 }
 0xafb   : > { %v5075_v24 = vsel %vm1718_vm0, %v5024_v23, 0.0  ;;  %v13727_v23 = vld [vmem:[#allocation65_spill] sm:$0xff] }
 0xafe   : > { %v5028_v45 = vpop.permute.xlu1 %5027 }
 0xb02   : > { %v5030_v2 = vpop.permute.xlu1 %5029 }
 0xb03   : > { %5545 = vrot.lane.b32.xlu0 %v5512_v6, %s8549_s27  ;;  %v5084_v6 = vsel %vm1718_vm0, %v5030_v2, 0.0  ;;  %v5482_v2 = vmul.f32 0.015625, %v5442_v31  ;;  %v5484_v31 = vmul.f32 0.015625, %v5448_v18 }
 0xb06   : > { %v5454_v18 = vpop.xlane.xlu1 %5453 }
 0xb0b   : > { %5543 = vrot.lane.b32.xlu1 %v5511_v50, %s8549_s27  ;;  %v5081_v50 = vsel %vm1718_vm0, %v5028_v45, 0.0  ;;  %v11425_v45 = vsub.f32 %v13727_v23, %v5481_v3 }
 0xb0d   : > { %13728 = vst [vmem:[#allocation49_spill] sm:$0xff] %v11425_v45 }
 0xb22   : > { %5079 = vadd.xlane.f32.xlu0 %v5078_v7  ;;  %v11415_v7 = vsel %vm2389_vm1, %v11178_v42, -1e+30  ;;  %v11433_v42 = vsel %vm2389_vm1, %v11180_v16, -1e+30  ;;  %v11451_v16 = vsel %vm2389_vm1, %v11190_v61, -1e+30  ;;  %v5451_v61 = vpop.xlane.xlu0 %5450 }
 0xb23   : > { %13724 = vst [vmem:[#allocation104_spill] sm:$0xff] %v11415_v7  ;;  %13729 = vst [vmem:[#allocation128_spill] sm:$0xff] %v11433_v42 }
 0xb24   : > { %13732 = vst [vmem:[#allocation106_spill] sm:$0xff] %v11451_v16 }
 0xb26   : > { %5085 = vadd.xlane.f32.xlu0 %v5084_v6  ;;  %v11419_v6 = vsub.f32 %v13725_v55, %v5482_v2  ;;  %v5483_v2 = vmul.f32 0.015625, %v5445_v14  ;;  %v11469_v14 = vsel %vm2389_vm1, %v11192_v56, -1e+30  ;;  %v11482_v56 = vsel %vm2389_vm1, %v11186_v30, -1e+30  ;;  %v13741_v30 = vld [vmem:[#allocation70_spill] sm:$0xff] }
 0xb27   : > { %13737 = vst [vmem:[#allocation125_spill] sm:$0xff] %v11469_v14  ;;  %13739 = vst [vmem:[#allocation108_spill] sm:$0xff] %v11482_v56 }
 0xb28   : > { %13726 = vst [vmem:[#allocation47_spill] sm:$0xff] %v11419_v6  ;;  %v5514_v17 = vmul.f32 %v11419_v6, %v11419_v6  ;;  %v5032_v6 = vpop.permute.xlu1 %5031 }
 0xb2a   : > { %3702 = vmax.xlane.f32.xlu0 %v11407_v49 }
 0xb2f   : > { %5076 = vadd.xlane.f32.xlu1 %v5075_v24  ;;  %v5513_v24 = vmul.f32 %v11425_v45, %v11425_v45 }
 0xb33   : > { %5082 = vadd.xlane.f32.xlu1 %v5081_v50  ;;  %v13733_v50 = vld [vmem:[#allocation68_spill] sm:$0xff] }
 0xb34   : > { %v11455_v35 = vsub.f32 %v13733_v50, %v5484_v31  ;;  %v5036_v50 = vpop.permute.xlu1 %5035 }
 0xb36   : > { %13734 = vst [vmem:[#allocation53_spill] sm:$0xff] %v11455_v35  ;;  %v5516_v55 = vmul.f32 %v11455_v35, %v11455_v35  ;;  %v5485_v35 = vmul.f32 0.015625, %v5451_v61  ;;  %v11515_v61 = vsel %vm2389_vm1, %v11212_v22, -1e+30 }
 0xb37   : > { %3700 = vmax.xlane.f32.xlu1 %v11415_v7  ;;  %13746 = vst [vmem:[#allocation110_spill] sm:$0xff] %v11515_v61 }
 0xb40   : > { %5549 = vrot.lane.b32.xlu0 %v5514_v17, %s8549_s27  ;;  %v11445_v17 = vsel %vm2389_vm1, %v11174_v4, -1e+30  ;;  %v13735_v4 = vld [vmem:[#allocation67_spill] sm:$0xff] }
 0xb41   : > { %13731 = vst [vmem:[#allocation43_spill] sm:$0xff] %v11445_v17  ;;  %v11461_v3 = vsub.f32 %v13735_v4, %v5483_v2  ;;  %v5038_v4 = vpop.permute.xlu1 %5037 }
 0xb43   : > { %13736 = vst [vmem:[#allocation55_spill] sm:$0xff] %v11461_v3  ;;  %v5515_v23 = vmul.f32 %v11461_v3, %v11461_v3  ;;  %v11477_v3 = vsel %vm2389_vm1, %v11202_v21, -1e+30  ;;  %v11491_v21 = vsel %vm2389_vm1, %v11198_v47, -1e+30 }
 0xb44   : > { %13738 = vst [vmem:[#allocation117_spill] sm:$0xff] %v11477_v3  ;;  %13740 = vst [vmem:[#allocation90_spill] sm:$0xff] %v11491_v21  ;;  %v11509_v47 = vsel %vm2389_vm1, %v11200_v62, -1e+30  ;;  %v11527_v62 = vsel %vm2389_vm1, %v11207_v28, -1e+30 }
 0xb45   : > { %13745 = vst [vmem:[#allocation113_spill] sm:$0xff] %v11509_v47  ;;  %13748 = vst [vmem:[#allocation93_spill] sm:$0xff] %v11527_v62  ;;  %v5466_v22 = vpop.xlane.xlu1 %5465 }
 0xb48   : > { %5547 = vrot.lane.b32.xlu1 %v5513_v24, %s8549_s27  ;;  %v5457_v24 = vpop.xlane.xlu0 %5456 }
 0xb4c   : > { %v5460_v31 = vpop.xlane.xlu0 %5459 }
 0xb5f   : > { %3706 = vmax.xlane.f32.xlu0 %v11433_v42 }
 0xb63   : > { %3710 = vmax.xlane.f32.xlu0 %v11439_v5 }
 0xb6c   : > { %3704 = vmax.xlane.f32.xlu1 %v11445_v17 }
 0xb70   : > { %3708 = vmax.xlane.f32.xlu1 %v11451_v16 }
 0xb79   : > { %5553 = vrot.lane.b32.xlu0 %v5516_v55, %s8549_s27  ;;  %v5034_v55 = vpop.permute.xlu0 %5033 }
 0xb7a   : > { %v5090_v2 = vsel %vm1718_vm0, %v5034_v55, 0.0  ;;  %v5087_v55 = vsel %vm1718_vm0, %v5032_v6, 0.0  ;;  %v13743_v6 = vld [vmem:[#allocation69_spill] sm:$0xff] }
 0xb81   : > { %5551 = vrot.lane.b32.xlu1 %v5515_v23, %s8549_s27  ;;  %v5096_v23 = vsel %vm1718_vm0, %v5038_v4, 0.0  ;;  %v5486_v4 = vmul.f32 0.015625, %v5454_v18  ;;  %v5488_v18 = vmul.f32 0.015625, %v5460_v31 }
 0xb98   : > { %3714 = vmax.xlane.f32.xlu0 %v11469_v14 }
 0xb9c   : > { %5091 = vadd.xlane.f32.xlu0 %v5090_v2  ;;  %v5093_v2 = vsel %vm1718_vm0, %v5036_v50, 0.0  ;;  %v11501_v50 = vsub.f32 %v13743_v6, %v5485_v35  ;;  %v5463_v35 = vpop.xlane.xlu0 %5462  ;;  %v5487_v6 = vmul.f32 0.015625, %v5457_v24 }
 0xb9e   : > { %13744 = vst [vmem:[#allocation118_spill] sm:$0xff] %v11501_v50 }
 0xba0   : > { %5097 = vadd.xlane.f32.xlu0 %v5096_v23  ;;  %v11495_v23 = vsub.f32 %v13741_v30, %v5486_v4  ;;  %v2407_v30 = vpop.xlane.xlu0 %2406 }
 0xba2   : > { %13742 = vst [vmem:[#allocation94_spill] sm:$0xff] %v11495_v23  ;;  %v5518_v45 = vmul.f32 %v11495_v23, %v11495_v23  ;;  %v13751_v23 = vld [vmem:[#allocation71_spill] sm:$0xff] }
 0xba3   : > { %v11539_v28 = vsub.f32 %v13751_v23, %v5487_v6  ;;  %v11555_v23 = vsel %vm2389_vm1, %v11209_v59, -1e+30 }
 0xba4   : > { %3718 = vmax.xlane.f32.xlu0 %v11477_v3  ;;  %13753 = vst [vmem:[#allocation100_spill] sm:$0xff] %v11555_v23  ;;  %v11563_v3 = vsel %vm2389_vm1, %v11205_v25, -1e+30  ;;  %v13757_v25 = vld [vmem:[#allocation73_spill] sm:$0xff] }
 0xba5   : > { %3712 = vmax.xlane.f32.xlu1 %v11482_v56  ;;  %13752 = vst [vmem:[#allocation91_spill] sm:$0xff] %v11539_v28  ;;  %13754 = vst [vmem:[#allocation75_spill] sm:$0xff] %v11563_v3  ;;  %v5490_v56 = vmul.f32 0.015625, %v5466_v22 }
 0xba9   : > { %5088 = vadd.xlane.f32.xlu1 %v5087_v55  ;;  %v5517_v55 = vmul.f32 %v11501_v50, %v11501_v50  ;;  %v11536_v50 = vpop.xlane.xlu0 %2408 }
 0xbad   : > { %5094 = vadd.xlane.f32.xlu1 %v5093_v2  ;;  %v13749_v2 = vld [vmem:[#allocation72_spill] sm:$0xff] }
 0xbae   : > { %v11531_v4 = vsub.f32 %v13749_v2, %v5488_v18 }
 0xbb0   : > { %13750 = vst [vmem:[#allocation109_spill] sm:$0xff] %v11531_v4 }
 0xbb1   : > { %3716 = vmax.xlane.f32.xlu1 %v11491_v21 }
 0xbba   : > { %5557 = vrot.lane.b32.xlu0 %v5518_v45, %s8549_s27  ;;  %v11521_v45 = vsel %vm2389_vm1, %v11196_v63, -1e+30  ;;  %v5520_v63 = vmul.f32 %v11531_v4, %v11531_v4 }
 0xbbb   : > { %13747 = vst [vmem:[#allocation111_spill] sm:$0xff] %v11521_v45 }
 0xbc2   : > { %5555 = vrot.lane.b32.xlu1 %v5517_v55, %s8549_s27  ;;  %v2411_v55 = vpop.xlane.xlu1 %2410 }
 0xbc6   : > { %v5469_v31 = vpop.xlane.xlu1 %5468 }
 0xbca   : > { %v11544_v18 = vpop.xlane.xlu1 %2414 }
 0xbce   : > { %v11546_v2 = vpop.xlane.xlu1 %2418 }
 0xbd9   : > { %3722 = vmax.xlane.f32.xlu0 %v11509_v47 }
 0xbdd   : > { %4688 = vmax.xlane.f32.xlu0 %v11515_v61  ;;  %v5519_v61 = vmul.f32 %v11539_v28, %v11539_v28 }
 0xbe6   : > { %3720 = vmax.xlane.f32.xlu1 %v11521_v45 }
 0xbea   : > { %4686 = vmax.xlane.f32.xlu1 %v11527_v62  ;;  %v2413_v62 = vpop.xlane.xlu0 %2412 }
 0xbee   : > { %v5472_v24 = vpop.xlane.xlu0 %5471 }
 0xbf2   : > { %v11548_v4 = vpop.xlane.xlu0 %2416 }
 0xbf3   : > { %5561 = vrot.lane.b32.xlu0 %v5520_v63, %s8549_s27  ;;  %v5040_v63 = vpop.permute.xlu1 %5039 }
 0xbf4   : > { %v5099_v59 = vsel %vm1718_vm0, %v5040_v63, 0.0  ;;  %v5492_v63 = vmul.f32 0.015625, %v5472_v24 }
 0xbf6   : > { %v11550_v45 = vpop.xlane.xlu0 %2420 }
 0xbf7   : > { %v5044_v47 = vpop.permute.xlu1 %5043 }
 0xbfa   : > { %v5042_v6 = vpop.permute.xlu0 %5041 }
 0xbfb   : > { %5559 = vrot.lane.b32.xlu1 %v5519_v61, %s8549_s27  ;;  %v5102_v61 = vsel %vm1718_vm0, %v5042_v6, 0.0  ;;  %v5046_v28 = vpop.permute.xlu1 %5045  ;;  %v13755_v6 = vld [vmem:[#allocation74_spill] sm:$0xff] }
 0xbfc   : > { %v5108_v21 = vsel %vm1718_vm0, %v5046_v28, 0.0  ;;  %v11569_v14 = vsub.f32 %v13755_v6, %v5490_v56  ;;  %v13761_v56 = vld [vmem:[#allocation77_spill] sm:$0xff] }
 0xbfe   : > { %13756 = vst [vmem:[#allocation92_spill] sm:$0xff] %v11569_v14  ;;  %v5475_v5 = vpop.xlane.xlu0 %5474 }
 0xc02   : > { %v11588_v6 = vpop.xlane.xlu0 %2422 }
 0xc12   : > { %4692 = vmax.xlane.f32.xlu0 %v11555_v23  ;;  %v5105_v23 = vsel %vm1718_vm0, %v5044_v47, 0.0  ;;  %v13759_v47 = vld [vmem:[#allocation76_spill] sm:$0xff] }
 0xc16   : > { %5103 = vadd.xlane.f32.xlu0 %v5102_v61  ;;  %v5489_v61 = vmul.f32 0.015625, %v5463_v35  ;;  %v11584_v35 = vsub.f32 %v13761_v56, %v5492_v63 }
 0xc18   : > { %v11575_v28 = vsub.f32 %v13757_v25, %v5489_v61  ;;  %13762 = vst [vmem:[#allocation99_spill] sm:$0xff] %v11584_v35  ;;  %v5524_v24 = vmul.f32 %v11584_v35, %v11584_v35  ;;  %v2441_v25 = vsub.f32 %v11252_v51, %v2413_v62 }
 0xc1a   : > { %5109 = vadd.xlane.f32.xlu0 %v5108_v21  ;;  %v5522_v21 = vmul.f32 %v11569_v14, %v11569_v14  ;;  %13758 = vst [vmem:[#allocation98_spill] sm:$0xff] %v11575_v28  ;;  %v5521_v22 = vmul.f32 %v11575_v28, %v11575_v28 }
 0xc1f   : > { %4690 = vmax.xlane.f32.xlu1 %v11563_v3  ;;  %v5491_v3 = vmul.f32 0.015625, %v5469_v31  ;;  %v2438_v31 = vsub.f32 %v11238_v46, %v2407_v30  ;;  %v5478_v46 = vpop.xlane.xlu1 %5477 }
 0xc21   : > { %v2454_v61 = vmul.f32 1.442695, %v2438_v31 }
 0xc23   : > { %5100 = vadd.xlane.f32.xlu1 %v5099_v59  ;;  %8020 = vpow2.f32 %v2454_v61 }
 0xc27   : > { %5106 = vadd.xlane.f32.xlu1 %v5105_v23  ;;  %v11580_v23 = vsub.f32 %v13759_v47, %v5491_v3  ;;  %v2440_v3 = vsub.f32 %v11279_v19, %v2411_v55  ;;  %v2460_v47 = vmul.f32 1.442695, %v2441_v25  ;;  %v2439_v19 = vsub.f32 %v11246_v39, %v11536_v50 }
 0xc29   : > { %13760 = vst [vmem:[#allocation95_spill] sm:$0xff] %v11580_v23  ;;  %v5523_v59 = vmul.f32 %v11580_v23, %v11580_v23  ;;  %v2456_v62 = vmul.f32 1.442695, %v2439_v19  ;;  %v13763_v19 = vld [vmem:[#allocation81_spill] sm:$0xff] }
 0xc2d   : > { %v11603_v56 = vpop.eup %8020 }
 0xc30   : > { %5565 = vrot.lane.b32.xlu0 %v5522_v21, %s8549_s27  ;;  %v11595_v21 = vpop.xlane.xlu0 %2424 }
 0xc34   : > { %v11599_v63 = vpop.xlane.xlu0 %2428 }
 0xc38   : > { %5563 = vrot.lane.b32.xlu1 %v5521_v22, %s8549_s27  ;;  %v2458_v22 = vmul.f32 1.442695, %v2440_v3  ;;  %v11601_v30 = vpop.xlane.xlu0 %5067 }
 0xc3a   : > { %8022 = vpow2.f32 %v2458_v22  ;;  %v5494_v22 = vmul.f32 0.015625, %v5478_v46  ;;  %v13767_v46 = vld [vmem:[#allocation79_spill] sm:$0xff] }
 0xc3b   : > { %8024 = vpow2.f32 %v2460_v47 }
 0xc3c   : > { %5567 = vrot.lane.b32.xlu1 %v5523_v59, %s8549_s27  ;;  %v11605_v59 = vpop.xlane.xlu1 %2426  ;;  %v11612_v51 = vpop.xlane.xlu0 %5073  ;;  %8026 = vpow2.f32 %v2456_v62  ;;  %v11634_v35 = vsub.f32 %v13763_v19, %v5494_v22  ;;  %v5493_v62 = vmul.f32 0.015625, %v5475_v5  ;;  %v2443_v5 = vsub.f32 %v11261_v1, %v11548_v4 }
 0xc3e   : > { %13764 = vst [vmem:[#allocation78_spill] sm:$0xff] %v11634_v35  ;;  %v5526_v28 = vmul.f32 %v11634_v35, %v11634_v35  ;;  %v11646_v17 = vsub.f32 %v13767_v46, %v5493_v62  ;;  %v2445_v62 = vsub.f32 %v11274_v32, %v11550_v45  ;;  %v2444_v32 = vsub.f32 %v11293_v38, %v11546_v2 }
 0xc40   : > { %5569 = vrot.lane.b32.xlu1 %v5524_v24, %s8549_s27  ;;  %v11615_v31 = vpop.xlane.xlu1 %5064  ;;  %v11620_v61 = vpop.xlane.xlu0 %2432  ;;  %13768 = vst [vmem:[#allocation22_spill] sm:$0xff] %v11646_v17  ;;  %v5525_v22 = vmul.f32 %v11646_v17, %v11646_v17  ;;  %v2468_v17 = vmul.f32 1.442695, %v2445_v62 }
 0xc44   : > { %v11610_v55 = vpop.eup %8022  ;;  %v11622_v3 = vpop.xlane.xlu1 %5070 }
 0xc45   : > { %v11617_v24 = vpop.eup %8024  ;;  %v11624_v25 = vpop.xlane.xlu0 %2436 }
 0xc46   : > { %v11628_v50 = vpop.eup %8026 }
 0xc48   : > { %v11626_v39 = vpop.xlane.xlu1 %2430 }
 0xc49   : > { %v11630_v47 = vpop.xlane.xlu0 %3694 }
 0xc4c   : > { %v11636_v23 = vpop.xlane.xlu1 %2434 }
 0xc4d   : > { %v11638_v14 = vpop.xlane.xlu0 %3698 }
 0xc4e   : > { %13765 = vst [vmem:[#allocation103_spill] sm:$0xff] %v11638_v14 }
 0xc4f   : > { %2486 = vadd.xlane.f32.xlu0 %v11603_v56 }
 0xc50   : > { %v11642_v16 = vpop.xlane.xlu1 %3692 }
 0xc51   : > { %13766 = vst [vmem:[#allocation80_spill] sm:$0xff] %v11642_v16  ;;  %v5546_v42 = vpop.permute.xlu0 %5545 }
 0xc52   : > { %v5594_v38 = vsel %vm1718_vm0, %v5546_v42, 0.0 }
 0xc53   : > { %2490 = vadd.xlane.f32.xlu0 %v11610_v55 }
 0xc54   : > { %v11650_v19 = vpop.xlane.xlu1 %3696 }
 0xc55   : > { %13769 = vst [vmem:[#allocation28_spill] sm:$0xff] %v11650_v19  ;;  %v11652_v49 = vpop.xlane.xlu0 %5079 }
 0xc57   : > { %2492 = vadd.xlane.f32.xlu0 %v11617_v24 }
 0xc58   : > { %v5544_v35 = vpop.permute.xlu1 %5543 }
 0xc59   : > { %v11657_v7 = vpop.xlane.xlu0 %5085 }
 0xc5c   : > { %v11661_v46 = vpop.xlane.xlu1 %5076 }
 0xc5d   : > { %v11663_v16 = vpop.xlane.xlu0 %3702 }
 0xc5e   : > { %13770 = vst [vmem:[#allocation19_spill] sm:$0xff] %v11663_v16 }
 0xc60   : > { %v11665_v19 = vpop.xlane.xlu1 %5082 }
 0xc61   : > { %v11669_v1 = vpop.permute.xlu0 %5549 }
 0xc64   : > { %2488 = vadd.xlane.f32.xlu1 %v11628_v50  ;;  %v11671_v4 = vpop.xlane.xlu1 %3700 }
 0xc65   : > { %13771 = vst [vmem:[#allocation25_spill] sm:$0xff] %v11671_v4  ;;  %v11675_v45 = vpop.xlane.xlu0 %3706  ;;  %v5111_v4 = vmul.f32 0.015625, %v11615_v31 }
 0xc66   : > { %13772 = vst [vmem:[#allocation96_spill] sm:$0xff] %v11675_v45 }
 0xc68   : > { %v11682_v62 = vpop.permute.xlu1 %5547 }
 0xc6d   : > { %5573 = vrot.lane.b32.xlu0 %v5526_v28, %s8549_s27  ;;  %v2464_v28 = vmul.f32 1.442695, %v2443_v5 }
 0xc6f   : > { %8028 = vpow2.f32 %v2464_v28  ;;  %v2466_v28 = vmul.f32 1.442695, %v2444_v32 }
 0xc70   : > { %8030 = vpow2.f32 %v2468_v17 }
 0xc75   : > { %5571 = vrot.lane.b32.xlu1 %v5525_v22, %s8549_s27  ;;  %v2442_v22 = vsub.f32 %v11287_v44, %v11544_v18  ;;  %v11684_v44 = vpop.xlane.xlu0 %3710  ;;  %v11687_v18 = vpop.xlane.xlu1 %3704 }
 0xc76   : > { %13773 = vst [vmem:[#allocation107_spill] sm:$0xff] %v11684_v44  ;;  %13774 = vst [vmem:[#allocation105_spill] sm:$0xff] %v11687_v18  ;;  %v5112_v44 = vmul.f32 0.015625, %v11601_v30  ;;  %v11722_v30 = vsub.f32 %v13665_v8, %v5111_v4 }
 0xc77   : > { %v2462_v5 = vmul.f32 1.442695, %v2442_v22 }
 0xc78   : > { %13779 = vst [vmem:[#allocation123_spill] sm:$0xff] %v11722_v30 }
 0xc79   : > { %v11677_v27 = vpop.eup %8028  ;;  %8032 = vpow2.f32 %v2462_v5  ;;  %v11690_v2 = vpop.permute.xlu0 %5553 }
 0xc7a   : > { %v11680_v17 = vpop.eup %8030  ;;  %8034 = vpow2.f32 %v2466_v28  ;;  %v11694_v5 = vpop.xlane.xlu1 %3708 }
 0xc7b   : > { %13775 = vst [vmem:[#allocation97_spill] sm:$0xff] %v11694_v5  ;;  %v11711_v5 = vsub.f32 %v13662_v53, %v5112_v44  ;;  %v5114_v44 = vmul.f32 0.015625, %v11612_v51  ;;  %v2446_v51 = vsub.f32 %v11316_v41, %v11588_v6  ;;  %v2449_v41 = vsub.f32 %v11328_v11, %v11599_v63 }
 0xc7d   : > { %v11697_v32 = vpop.xlane.xlu0 %3714  ;;  %13778 = vst [vmem:[#allocation120_spill] sm:$0xff] %v11711_v5  ;;  %v11739_v8 = vsub.f32 %v13664_v26, %v5114_v44  ;;  %v2448_v26 = vsub.f32 %v11342_v60, %v11605_v59 }
 0xc7e   : > { %13776 = vst [vmem:[#allocation124_spill] sm:$0xff] %v11697_v32  ;;  %v11702_v28 = vpop.permute.xlu1 %5551  ;;  %v5144_v32 = vmul.f32 %v11711_v5, %v11711_v5  ;;  %v5143_v5 = vmul.f32 %v11722_v30, %v11722_v30 }
 0xc7f   : > { %13781 = vst [vmem:[#allocation121_spill] sm:$0xff] %v11739_v8  ;;  %v2474_v6 = vmul.f32 1.442695, %v2448_v26  ;;  %v2451_v26 = vsub.f32 %v11337_v54, %v11620_v61  ;;  %v11799_v61 = vsel %vm2389_vm1, %v11240_v12, -1e+30 }
 0xc80   : > { %13790 = vst [vmem:[#allocation84_spill] sm:$0xff] %v11799_v61 }
 0xc81   : > { %v11705_v42 = vpop.xlane.xlu0 %5091  ;;  %v2480_v30 = vmul.f32 1.442695, %v2451_v26  ;;  %v2452_v26 = vsub.f32 %v11375_v57, %v11636_v23 }
 0xc82   : > { %v11708_v18 = vpop.xlane.xlu1 %3712 }
 0xc83   : > { %v11692_v22 = vpop.eup %8032  ;;  %13777 = vst [vmem:[#allocation119_spill] sm:$0xff] %v11708_v18 }
 0xc84   : > { %v11699_v45 = vpop.eup %8034 }
 0xc85   : > { %v11713_v16 = vpop.xlane.xlu0 %5097 }
 0xc86   : > { %v11718_v14 = vpop.xlane.xlu1 %5088 }
 0xc8a   : > { %v11727_v53 = vpop.xlane.xlu1 %5094 }
 0xc8c   : > { %2496 = vadd.xlane.f32.xlu0 %v11677_v27 }
 0xc8e   : > { %v11743_v4 = vpop.xlane.xlu1 %3716 }
 0xc8f   : > { %13782 = vst [vmem:[#allocation127_spill] sm:$0xff] %v11743_v4  ;;  %v5115_v4 = vmul.f32 0.015625, %v11661_v46 }
 0xc90   : > { %2500 = vadd.xlane.f32.xlu0 %v11680_v17 }
 0xc94   : > { %5595 = vadd.xlane.f32.xlu0 %v5594_v38  ;;  %v5591_v38 = vsel %vm1718_vm0, %v5544_v35, 0.0  ;;  %v5113_v35 = vmul.f32 0.015625, %v11622_v3 }
 0xc96   : > { %v11733_v31 = vsub.f32 %v13666_v48, %v5113_v35  ;;  %v5146_v48 = vmul.f32 %v11739_v8, %v11739_v8  ;;  %v2470_v35 = vmul.f32 1.442695, %v2446_v51 }
 0xc98   : > { %13780 = vst [vmem:[#allocation122_spill] sm:$0xff] %v11733_v31  ;;  %v5145_v3 = vmul.f32 %v11733_v31, %v11733_v31  ;;  %8036 = vpow2.f32 %v2470_v35 }
 0xc99   : > { %2494 = vadd.xlane.f32.xlu1 %v11692_v22  ;;  %8038 = vpow2.f32 %v2474_v6 }
 0xc9d   : > { %2498 = vadd.xlane.f32.xlu1 %v11699_v45 }
 0xca1   : > { %5592 = vadd.xlane.f32.xlu1 %v5591_v38  ;;  %v11725_v38 = vpop.xlane.xlu0 %3718 }
 0xca2   : > { %v11769_v59 = vpop.eup %8036 }
 0xca3   : > { %v11776_v63 = vpop.eup %8038 }
 0xca5   : > { %v11735_v18 = vpop.permute.xlu0 %5557 }
 0xcaa   : > { %5177 = vrot.lane.b32.xlu0 %v5144_v32, %s8549_s27  ;;  %v11747_v32 = vpop.xlane.xlu0 %3722 }
 0xcab   : > { %13783 = vst [vmem:[#allocation126_spill] sm:$0xff] %v11747_v32 }
 0xcae   : > { %v11757_v44 = vpop.xlane.xlu0 %4688 }
 0xcaf   : > { %13784 = vst [vmem:[#allocation31_spill] sm:$0xff] %v11757_v44 }
 0xcb2   : > { %5175 = vrot.lane.b32.xlu1 %v5143_v5, %s8549_s27  ;;  %v11755_v5 = vpop.permute.xlu1 %5555  ;;  %v11763_v8 = vpop.permute.xlu0 %5561 }
 0xcb6   : > { %5179 = vrot.lane.b32.xlu1 %v5145_v3, %s8549_s27  ;;  %v11761_v31 = vpop.xlane.xlu1 %3720  ;;  %v2476_v3 = vmul.f32 1.442695, %v2449_v41  ;;  %v11767_v60 = vpop.xlane.xlu0 %4692 }
 0xcb7   : > { %13785 = vst [vmem:[#allocation40_spill] sm:$0xff] %v11761_v31  ;;  %13787 = vst [vmem:[#allocation82_spill] sm:$0xff] %v11767_v60  ;;  %v5600_v60 = vsel %vm1718_vm0, %v11669_v1, 0.0  ;;  %v11811_v1 = vsel %vm2389_vm1, %v11233_v43, -1e+30  ;;  %v5597_v43 = vsel %vm1718_vm0, %v11682_v62, 0.0 }
 0xcb8   : > { %8040 = vpow2.f32 %v2476_v3  ;;  %13792 = vst [vmem:[#allocation85_spill] sm:$0xff] %v11811_v1  ;;  %v5606_v62 = vsel %vm1718_vm0, %v11690_v2, 0.0 }
 0xcba   : > { %5181 = vrot.lane.b32.xlu1 %v5146_v48, %s8549_s27  ;;  %v11765_v51 = vpop.xlane.xlu1 %4686  ;;  %v2447_v48 = vsub.f32 %v11322_v33, %v11595_v21  ;;  %v11778_v35 = vpop.xlane.xlu0 %5103  ;;  %v2453_v33 = vsub.f32 %v11349_v40, %v11624_v25  ;;  %v2450_v40 = vsub.f32 %v11368_v9, %v11626_v39 }
 0xcbb   : > { %13786 = vst [vmem:[#allocation34_spill] sm:$0xff] %v11765_v51 }
 0xcbc   : > { %v2472_v41 = vmul.f32 1.442695, %v2447_v48  ;;  %v2484_v54 = vmul.f32 1.442695, %v2453_v33  ;;  %v2478_v12 = vmul.f32 1.442695, %v2450_v40 }
 0xcbd   : > { %v2482_v33 = vmul.f32 1.442695, %v2452_v26  ;;  %v11831_v40 = vsel %vm2389_vm1, %v11231_v20, -1e+30  ;;  %v11848_v20 = vsel %vm2389_vm1, %v11269_v52, -1e+30 }
 0xcbe   : > { %v11774_v11 = vpop.permute.xlu1 %5559  ;;  %v11790_v21 = vpop.xlane.xlu0 %5109  ;;  %8042 = vpow2.f32 %v2472_v41  ;;  %13793 = vst [vmem:[#allocation83_spill] sm:$0xff] %v11831_v40  ;;  %13795 = vst [vmem:[#allocation64_spill] sm:$0xff] %v11848_v20  ;;  %v5603_v52 = vsel %vm1718_vm0, %v11702_v28, 0.0 }
 0xcbf   : > { %13789 = vst [vmem:[#allocation24_spill] sm:$0xff] %v11790_v21  ;;  %8044 = vpow2.f32 %v2480_v30  ;;  %v5116_v21 = vmul.f32 0.015625, %v11652_v49 }
 0xcc0   : > { %8046 = vpow2.f32 %v2484_v54 }
 0xcc1   : > { %8048 = vpow2.f32 %v2478_v12  ;;  %v11842_v12 = vsel %vm2389_vm1, %v11229_v15, -1e+30  ;;  %v11869_v32 = vsub.f32 %v13683_v37, %v5116_v21 }
 0xcc2   : > { %v11783_v6 = vpop.xlane.xlu1 %4690  ;;  %v11785_v3 = vpop.eup %8040  ;;  %8050 = vpow2.f32 %v2482_v33  ;;  %13794 = vst [vmem:[#allocation20_spill] sm:$0xff] %v11842_v12 }
 0xcc3   : > { %13788 = vst [vmem:[#allocation112_spill] sm:$0xff] %v11783_v6  ;;  %v11801_v48 = vpop.permute.xlu0 %5565  ;;  %13796 = vst [vmem:[#allocation63_spill] sm:$0xff] %v11869_v32 }
 0xcc6   : > { %v11794_v44 = vpop.xlane.xlu1 %5100 }
 0xcc9   : > { %2502 = vadd.xlane.f32.xlu0 %v11769_v59 }
 0xcca   : > { %v11806_v25 = vpop.xlane.xlu1 %5106 }
 0xccb   : > { %13791 = vst [vmem:[#allocation26_spill] sm:$0xff] %v11806_v25 }
 0xccd   : > { %2506 = vadd.xlane.f32.xlu0 %v11776_v63 }
 0xcce   : > { %v11821_v39 = vpop.permute.xlu1 %5563 }
 0xcd1   : > { %2508 = vadd.xlane.f32.xlu0 %v11785_v3 }
 0xcd2   : > { %v11835_v23 = vpop.permute.xlu1 %5567 }
 0xcd5   : > { %5601 = vadd.xlane.f32.xlu0 %v5600_v60  ;;  %v11813_v60 = vpop.eup %8042 }
 0xcd6   : > { %v11819_v41 = vpop.eup %8044 }
 0xcd7   : > { %v11826_v54 = vpop.eup %8046 }
 0xcd8   : > { %v11850_v26 = vpop.eup %8048 }
 0xcd9   : > { %4696 = vmax.xlane.f32.xlu0 %v11799_v61  ;;  %v11856_v15 = vpop.eup %8050 }
 0xcdc   : > { %v2487_v30 = vpop.xlane.xlu0 %2486 }
 0xcdd   : > { %4700 = vmax.xlane.f32.xlu0 %v11811_v1 }
 0xcde   : > { %2504 = vadd.xlane.f32.xlu1 %v11813_v60 }
 0xce0   : > { %v2491_v9 = vpop.xlane.xlu0 %2490 }
 0xce1   : > { %2512 = vadd.xlane.f32.xlu0 %v11819_v41 }
 0xce2   : > { %5598 = vadd.xlane.f32.xlu1 %v5597_v43  ;;  %v11852_v43 = vpop.permute.xlu1 %5569 }
 0xce4   : > { %v2493_v57 = vpop.xlane.xlu0 %2492 }
 0xce5   : > { %2516 = vadd.xlane.f32.xlu0 %v11826_v54  ;;  %8052 = vrcp.f32 %v2493_v57 }
 0xce6   : > { %4694 = vmax.xlane.f32.xlu1 %v11831_v40  ;;  %8054 = vrcp.f32 %v2487_v30 }
 0xce7   : > { %8056 = vrcp.f32 %v2491_v9 }
 0xce9   : > { %5607 = vadd.xlane.f32.xlu0 %v5606_v62 }
 0xcea   : > { %4698 = vmax.xlane.f32.xlu1 %v11842_v12 }
 0xced   : > { %4704 = vmax.xlane.f32.xlu0 %v11848_v20  ;;  %v11864_v20 = vsel %vm2389_vm1, %v11263_v13, -1e+30  ;;  %v5148_v13 = vmul.f32 %v11869_v32, %v11869_v32 }
 0xcee   : > { %2510 = vadd.xlane.f32.xlu1 %v11850_v26 }
 0xcef   : > { %v8053_v33 = vpop.eup %8052 }
 0xcf0   : > { %v8055_v62 = vpop.eup %8054  ;;  %v2537_v12 = vmul.f32 %v8053_v33, %v2493_v57 }
 0xcf1   : > { %v2489_v2 = vpop.xlane.xlu1 %2488  ;;  %v8057_v1 = vpop.eup %8056  ;;  %v2534_v61 = vmul.f32 %v8055_v62, %v2487_v30 }
 0xcf2   : > { %8058 = vrcp.f32 %v2489_v2  ;;  %2514 = vadd.xlane.f32.xlu1 %v11856_v15  ;;  %v2536_v40 = vmul.f32 %v8057_v1, %v2491_v9  ;;  %v2553_v25 = vsub.f32 2.0, %v2537_v12 }
 0xcf3   : > { %v2550_v6 = vsub.f32 2.0, %v2534_v61 }
 0xcf4   : > { %v2552_v31 = vsub.f32 2.0, %v2536_v40  ;;  %v2569_v57 = vmul.f32 %v8053_v33, %v2553_v25  ;;  %v11898_v33 = vsel %vm2389_vm1, %v11256_v10, -1e+30  ;;  %v5117_v10 = vmul.f32 0.015625, %v11665_v19 }
 0xcf5   : > { %v2566_v30 = vmul.f32 %v8055_v62, %v2550_v6  ;;  %v11880_v6 = vsub.f32 %v13679_v0, %v5115_v4  ;;  %v11892_v0 = vpop.permute.xlu1 %5571 }
 0xcf6   : > { %5604 = vadd.xlane.f32.xlu1 %v5603_v52  ;;  %v2568_v52 = vmul.f32 %v8057_v1, %v2552_v31  ;;  %v2585_v12 = vmul.f32 %v11617_v24, %v2569_v57  ;;  %v11885_v24 = vpop.permute.xlu0 %5573 }
 0xcf7   : > { %v2582_v61 = vmul.f32 %v11603_v56, %v2566_v30  ;;  %13797 = vst [vmem:[#allocation66_spill] sm:$0xff] %v11880_v6  ;;  %v5147_v46 = vmul.f32 %v11880_v6, %v11880_v6 }
 0xcf8   : > { %v2584_v21 = vmul.f32 %v11610_v55, %v2568_v52  ;;  %v11890_v55 = vsel %vm2389_vm1, %v11265_v58, -1e+30  ;;  %v5118_v58 = vmul.f32 0.015625, %v11657_v7 }
 0xcfa   : > { %4702 = vmax.xlane.f32.xlu1 %v11864_v20  ;;  %v2599_v25 = vpack.c.bf16 %v2585_v12, %v2584_v21  ;;  %v11903_v30 = vsub.f32 %v13681_v29, %v5118_v58  ;;  %v13802_v58 = vld [vmem:[#allocation87_spill] sm:$0xff] }
 0xcfc   : > { %v8059_v51 = vpop.eup %8058  ;;  %13798 = vst [vmem:[#allocation65_spill] sm:$0xff] %v11903_v30 }
 0xcfd   : > { %v2535_v28 = vmul.f32 %v8059_v51, %v2489_v2 }
 0xcff   : > { %v2551_v9 = vsub.f32 2.0, %v2535_v28 }
 0xd01   : > { %v2567_v49 = vmul.f32 %v8059_v51, %v2551_v9 }
 0xd03   : > { %5185 = vrot.lane.b32.xlu0 %v5148_v13, %s8549_s27  ;;  %v2583_v37 = vmul.f32 %v11628_v50, %v2567_v49 }
 0xd05   : > { %v2598_v31 = vpack.c.bf16 %v2583_v37, %v2582_v61  ;;  %v5150_v61 = vmul.f32 %v11903_v30, %v11903_v30 }
 0xd07   : > { %7288 = vmatprep.mubr.bf16.mxu1 %v2598_v31 }
 0xd08   : > { %7289 = vmatmul.mubr.bf16.vlgmr.msra.gmra.mrb[80].mxu1 %v2599_v25 }
 0xd0b   : > { %5183 = vrot.lane.b32.xlu1 %v5147_v46, %s8549_s27  ;;  %v13799_v46 = vld [vmem:[#allocation37_spill] sm:$0xff] }
 0xd19   : > { %v2497_v51 = vpop.xlane.xlu0 %2496 }
 0xd1a   : > { %8060 = vrcp.f32 %v2497_v51 }
 0xd1d   : > { %v2501_v56 = vpop.xlane.xlu0 %2500 }
 0xd1e   : > { %8062 = vrcp.f32 %v2501_v56 }
 0xd22   : > { %4708 = vmax.xlane.f32.xlu0 %v11890_v55 }
 0xd24   : > { %v8061_v4 = vpop.eup %8060 }
 0xd25   : > { %v2539_v40 = vmul.f32 %v8061_v4, %v2497_v51  ;;  %v11912_v51 = vsub.f32 %v13799_v46, %v5117_v10 }
 0xd26   : > { %v2495_v50 = vpop.xlane.xlu1 %2494 }
 0xd27   : > { %8064 = vrcp.f32 %v2495_v50  ;;  %v2555_v62 = vsub.f32 2.0, %v2539_v40  ;;  %13800 = vst [vmem:[#allocation68_spill] sm:$0xff] %v11912_v51 }
 0xd28   : > { %v8063_v2 = vpop.eup %8062 }
 0xd29   : > { %v2541_v28 = vmul.f32 %v8063_v2, %v2501_v56  ;;  %v2571_v52 = vmul.f32 %v8061_v4, %v2555_v62 }
 0xd2a   : > { %v2499_v1 = vpop.xlane.xlu1 %2498 }
 0xd2b   : > { %8066 = vrcp.f32 %v2499_v1  ;;  %v2557_v13 = vsub.f32 2.0, %v2541_v28  ;;  %v2587_v29 = vmul.f32 %v11677_v27, %v2571_v52  ;;  %v3725_v27 = vsub.f32 %v11356_v36, %v11630_v47 }
 0xd2d   : > { %v2573_v21 = vmul.f32 %v8063_v2, %v2557_v13  ;;  %v13801_v2 = vld [vmem:[#allocation103_spill] sm:$0xff] }
 0xd2e   : > { %v3727_v62 = vsub.f32 %v13802_v58, %v13801_v2  ;;  %v11931_v10 = vpop.xlane.xlu1 %5592  ;;  %v13811_v2 = vld [vmem:[#allocation114_spill] sm:$0xff] }
 0xd2f   : > { %4706 = vmax.xlane.f32.xlu1 %v11898_v33  ;;  %v2589_v19 = vmul.f32 %v11680_v17, %v2573_v21  ;;  %v13804_v17 = vld [vmem:[#allocation32_spill] sm:$0xff]  ;;  %v11972_v58 = vsel %vm2389_vm1, %v13811_v2, -1e+30 }
 0xd30   : > { %v3746_v28 = vmul.f32 1.442695, %v3727_v62 }
 0xd31   : > { %v8065_v57 = vpop.eup %8064 }
 0xd32   : > { %v2538_v9 = vmul.f32 %v8065_v57, %v2495_v50 }
 0xd34   : > { %v2554_v49 = vsub.f32 2.0, %v2538_v9 }
 0xd35   : > { %v8067_v12 = vpop.eup %8066 }
 0xd36   : > { %v2570_v37 = vmul.f32 %v8065_v57, %v2554_v49  ;;  %v2540_v7 = vmul.f32 %v8067_v12, %v2499_v1  ;;  %v5149_v1 = vmul.f32 %v11912_v51, %v11912_v51  ;;  %v11923_v57 = vpop.xlane.xlu0 %5595  ;;  %v13805_v49 = vld [vmem:[#allocation28_spill] sm:$0xff] }
 0xd38   : > { %v2556_v31 = vsub.f32 2.0, %v2540_v7  ;;  %5189 = vrot.lane.b32.xlu0 %v5150_v61, %s8549_s27  ;;  %v2586_v25 = vmul.f32 %v11692_v22, %v2570_v37  ;;  %v3742_v22 = vmul.f32 1.442695, %v3725_v27 }
 0xd3a   : > { %v2572_v56 = vmul.f32 %v8067_v12, %v2556_v31  ;;  %v2600_v50 = vpack.c.bf16 %v2587_v29, %v2586_v25  ;;  %8068 = vpow2.f32 %v3742_v22  ;;  %v11927_v52 = vpop.permute.xlu0 %5177  ;;  %v13806_v12 = vld [vmem:[#allocation36_spill] sm:$0xff]  ;;  %v11938_v31 = vpop.permute.xlu1 %5175  ;;  %v5612_v29 = vsel %vm1718_vm0, %v11735_v18, 0.0  ;;  %v13809_v18 = vld [vmem:[#allocation30_spill] sm:$0xff] }
 0xd3b   : > { %8070 = vpow2.f32 %v3746_v28  ;;  %v3726_v61 = vsub.f32 %v13806_v12, %v13805_v49 }
 0xd3c   : > { %7292 = vmatprep.mubr.bf16.mxu1 %v2600_v50  ;;  %v2588_v4 = vmul.f32 %v11699_v45, %v2572_v56  ;;  %v13803_v45 = vld [vmem:[#allocation80_spill] sm:$0xff]  ;;  %v13808_v56 = vld [vmem:[#allocation102_spill] sm:$0xff] }
 0xd3d   : > { %v3724_v9 = vsub.f32 %v13804_v17, %v13803_v45  ;;  %v3744_v37 = vmul.f32 1.442695, %v3726_v61  ;;  %v11948_v50 = vsel %vm2389_vm1, %v13808_v56, -1e+30  ;;  %v5609_v45 = vsel %vm1718_vm0, %v11755_v5, 0.0 }
 0xd3e   : > { %v2601_v40 = vpack.c.bf16 %v2589_v19, %v2588_v4  ;;  %v11943_v46 = vpop.permute.xlu1 %5179  ;;  %v5615_v5 = vsel %vm1718_vm0, %v11774_v11, 0.0 }
 0xd3f   : > { %v3740_v13 = vmul.f32 1.442695, %v3724_v9 }
 0xd40   : > { %5187 = vrot.lane.b32.xlu1 %v5149_v1, %s8549_s27  ;;  %7293 = vmatmul.mubr.bf16.gmra.mrb[84].mxu1 %v2601_v40  ;;  %v11959_v1 = vsel %vm2389_vm1, %v13809_v18, -1e+30 }
 0xd41   : > { %8072 = vpow2.f32 %v3740_v13  ;;  %v13812_v13 = vld [vmem:[#allocation86_spill] sm:$0xff] }
 0xd42   : > { %8074 = vpow2.f32 %v3744_v37  ;;  %v11965_v22 = vpop.permute.xlu1 %5181  ;;  %v11982_v49 = vsel %vm2389_vm1, %v13812_v13, -1e+30 }
 0xd43   : > { %13813 = vst [vmem:[#allocation69_spill] sm:$0xff] %v11982_v49 }
 0xd44   : > { %v11933_v36 = vpop.eup %8068 }
 0xd45   : > { %v11936_v7 = vpop.eup %8070 }
 0xd46   : > { %13807 = vst [vmem:[#allocation67_spill] sm:$0xff] %v11936_v7 }
 0xd4b   : > { %v11952_v19 = vpop.eup %8072 }
 0xd4c   : > { %v11963_v27 = vpop.eup %8074 }
 0xd4d   : > { %13810 = vst [vmem:[#allocation70_spill] sm:$0xff] %v11963_v27 }
 0xd56   : > { %v2503_v47 = vpop.xlane.xlu0 %2502 }
 0xd57   : > { %3774 = vadd.xlane.f32.xlu0 %v11933_v36 }
 0xd5a   : > { %v2507_v21 = vpop.xlane.xlu0 %2506 }
 0xd5b   : > { %3778 = vadd.xlane.f32.xlu0 %v11936_v7 }
 0xd5e   : > { %v2509_v25 = vpop.xlane.xlu0 %2508 }
 0xd5f   : > { %5613 = vadd.xlane.f32.xlu0 %v5612_v29  ;;  %8076 = vrcp.f32 %v2509_v25 }
 0xd60   : > { %8078 = vrcp.f32 %v2503_v47 }
 0xd61   : > { %8080 = vrcp.f32 %v2507_v21 }
 0xd62   : > { %v11950_v4 = vpop.xlane.xlu0 %5601 }
 0xd63   : > { %4710 = vmax.xlane.f32.xlu0 %v11948_v50 }
 0xd64   : > { %3772 = vadd.xlane.f32.xlu1 %v11952_v19 }
 0xd66   : > { %v11961_v40 = vpop.xlane.xlu0 %4696 }
 0xd67   : > { %4712 = vmax.xlane.f32.xlu0 %v11959_v1 }
 0xd68   : > { %3776 = vadd.xlane.f32.xlu1 %v11963_v27 }
 0xd69   : > { %v8077_v17 = vpop.eup %8076 }
 0xd6a   : > { %v11974_v62 = vpop.xlane.xlu0 %4700  ;;  %v8079_v9 = vpop.eup %8078  ;;  %v2545_v29 = vmul.f32 %v8077_v17, %v2509_v25 }
 0xd6b   : > { %v2505_v28 = vpop.xlane.xlu1 %2504  ;;  %4714 = vmax.xlane.f32.xlu0 %v11972_v58  ;;  %v8081_v12 = vpop.eup %8080  ;;  %v2542_v56 = vmul.f32 %v8079_v9, %v2503_v47 }
 0xd6c   : > { %8082 = vrcp.f32 %v2505_v28  ;;  %5610 = vadd.xlane.f32.xlu1 %v5609_v45  ;;  %v2544_v18 = vmul.f32 %v8081_v12, %v2507_v21  ;;  %v2561_v45 = vsub.f32 2.0, %v2545_v29  ;;  %v13814_v29 = vld [vmem:[#allocation21_spill] sm:$0xff] }
 0xd6d   : > { %v2558_v30 = vsub.f32 2.0, %v2542_v56 }
 0xd6e   : > { %v2513_v61 = vpop.xlane.xlu0 %2512  ;;  %v2560_v51 = vsub.f32 2.0, %v2544_v18  ;;  %v2577_v7 = vmul.f32 %v8077_v17, %v2561_v45 }
 0xd6f   : > { %v11984_v37 = vpop.xlane.xlu1 %5598  ;;  %4716 = vmax.xlane.f32.xlu0 %v11982_v49  ;;  %8084 = vrcp.f32 %v2513_v61  ;;  %v2574_v25 = vmul.f32 %v8079_v9, %v2558_v30 }
 0xd70   : > { %v2576_v21 = vmul.f32 %v8081_v12, %v2560_v51  ;;  %v2593_v11 = vmul.f32 %v11785_v3, %v2577_v7 }
 0xd71   : > { %v2590_v56 = vmul.f32 %v11769_v59, %v2574_v25 }
 0xd72   : > { %v2517_v13 = vpop.xlane.xlu0 %2516 }
 0xd73   : > { %v11989_v2 = vpop.xlane.xlu1 %4694  ;;  %5616 = vadd.xlane.f32.xlu0 %v5615_v5  ;;  %8086 = vrcp.f32 %v2517_v13 }
 0xd76   : > { %v8083_v34 = vpop.eup %8082 }
 0xd77   : > { %v2543_v32 = vmul.f32 %v8083_v34, %v2505_v28  ;;  %v11991_v6 = vpop.xlane.xlu1 %4698  ;;  %v2592_v28 = vmul.f32 %v11776_v63, %v2576_v21 }
 0xd79   : > { %v2559_v47 = vsub.f32 2.0, %v2543_v32  ;;  %v8085_v5 = vpop.eup %8084  ;;  %v2603_v32 = vpack.c.bf16 %v2593_v11, %v2592_v28 }
 0xd7a   : > { %v2547_v30 = vmul.f32 %v8085_v5, %v2513_v61 }
 0xd7b   : > { %v2575_v49 = vmul.f32 %v8083_v34, %v2559_v47  ;;  %v2511_v27 = vpop.xlane.xlu1 %2510  ;;  %v13815_v34 = vld [vmem:[#allocation27_spill] sm:$0xff] }
 0xd7c   : > { %8088 = vrcp.f32 %v2511_v27  ;;  %v2563_v7 = vsub.f32 2.0, %v2547_v30  ;;  %v13820_v30 = vld [vmem:[#allocation115_spill] sm:$0xff] }
 0xd7d   : > { %3900 = vrot.lane.b32.xlu1 %v13814_v29, %s8549_s27  ;;  %v2591_v18 = vmul.f32 %v11813_v60, %v2575_v49  ;;  %v8087_v3 = vpop.eup %8086  ;;  %v13816_v60 = vld [vmem:[#allocation33_spill] sm:$0xff] }
 0xd7e   : > { %v2549_v51 = vmul.f32 %v8087_v3, %v2517_v13  ;;  %v2579_v49 = vmul.f32 %v8085_v5, %v2563_v7 }
 0xd7f   : > { %v2515_v17 = vpop.xlane.xlu1 %2514  ;;  %v2602_v45 = vpack.c.bf16 %v2591_v18, %v2590_v56 }
 0xd80   : > { %8090 = vrcp.f32 %v2515_v17  ;;  %v2565_v12 = vsub.f32 2.0, %v2549_v51  ;;  %v2595_v61 = vmul.f32 %v11819_v41, %v2579_v49  ;;  %v5618_v41 = vsel %vm1718_vm0, %v11763_v8, 0.0 }
 0xd81   : > { %3902 = vrot.lane.b32.xlu1 %v13815_v34, %s8549_s27  ;;  %7296 = vmatprep.mubr.bf16.mxu1 %v2602_v45  ;;  %v13818_v34 = vld [vmem:[#allocation104_spill] sm:$0xff] }
 0xd82   : > { %7297 = vmatmul.mubr.bf16.gmra.mrb[88].mxu1 %v2603_v32  ;;  %v2581_v11 = vmul.f32 %v8087_v3, %v2565_v12  ;;  %v13817_v32 = vld [vmem:[#allocation25_spill] sm:$0xff] }
 0xd83   : > { %v3728_v5 = vsub.f32 %v13818_v34, %v13817_v32 }
 0xd85   : > { %v3748_v51 = vmul.f32 1.442695, %v3728_v5 }
 0xd86   : > { %v8089_v9 = vpop.eup %8088 }
 0xd87   : > { %v2546_v59 = vmul.f32 %v8089_v9, %v2511_v27  ;;  %v2597_v27 = vmul.f32 %v11826_v54, %v2581_v11  ;;  %8092 = vpow2.f32 %v3748_v51  ;;  %v13830_v11 = vld [vmem:[#allocation43_spill] sm:$0xff] }
 0xd89   : > { %3904 = vrot.lane.b32.xlu0 %v13816_v60, %s8549_s27  ;;  %v2562_v25 = vsub.f32 2.0, %v2546_v59  ;;  %v13823_v59 = vld [vmem:[#allocation42_spill] sm:$0xff]  ;;  %v13825_v60 = vld [vmem:[#allocation45_spill] sm:$0xff] }
 0xd8a   : > { %v8091_v63 = vpop.eup %8090 }
 0xd8b   : > { %v2548_v47 = vmul.f32 %v8091_v63, %v2515_v17  ;;  %v2578_v21 = vmul.f32 %v8089_v9, %v2562_v25  ;;  %v13819_v17 = vld [vmem:[#allocation19_spill] sm:$0xff]  ;;  %v5120_v9 = vmul.f32 0.015625, %v11705_v42  ;;  %v13827_v25 = vld [vmem:[#allocation96_spill] sm:$0xff]  ;;  %v12035_v42 = vpop.xlane.xlu0 %5607 }
 0xd8c   : > { %v3729_v3 = vsub.f32 %v13820_v30, %v13819_v17 }
 0xd8d   : > { %v2564_v29 = vsub.f32 2.0, %v2548_v47  ;;  %v2594_v56 = vmul.f32 %v11850_v26, %v2578_v21  ;;  %v13829_v21 = vld [vmem:[#allocation105_spill] sm:$0xff] }
 0xd8e   : > { %v3750_v7 = vmul.f32 1.442695, %v3729_v3 }
 0xd8f   : > { %v2580_v18 = vmul.f32 %v8091_v63, %v2564_v29  ;;  %v2604_v13 = vpack.c.bf16 %v2595_v61, %v2594_v56  ;;  %v12025_v63 = vsub.f32 %v13825_v60, %v5120_v9  ;;  %v3730_v29 = vsub.f32 %v13830_v11, %v13829_v21  ;;  %v13839_v21 = vld [vmem:[#allocation51_spill] sm:$0xff] }
 0xd90   : > { %8094 = vpow2.f32 %v3750_v7 }
 0xd91   : > { %v2596_v28 = vmul.f32 %v11856_v15, %v2580_v18  ;;  %7300 = vmatprep.mubr.bf16.mxu1 %v2604_v13  ;;  %v12013_v26 = vpop.eup %8092  ;;  %v5119_v15 = vmul.f32 0.015625, %v11718_v14  ;;  %13826 = vst [vmem:[#allocation73_spill] sm:$0xff] %v12025_v63  ;;  %v5152_v49 = vmul.f32 %v12025_v63, %v12025_v63  ;;  %v13828_v14 = vld [vmem:[#allocation128_spill] sm:$0xff]  ;;  %v3752_v61 = vmul.f32 1.442695, %v3730_v29  ;;  %v12039_v18 = vpop.xlane.xlu0 %4704 }
 0xd92   : > { %13821 = vst [vmem:[#allocation72_spill] sm:$0xff] %v12013_v26  ;;  %v3731_v47 = vsub.f32 %v13828_v14, %v13827_v25  ;;  %v13837_v25 = vld [vmem:[#allocation48_spill] sm:$0xff] }
 0xd93   : > { %v2605_v45 = vpack.c.bf16 %v2597_v27, %v2596_v28  ;;  %v12022_v12 = vsub.f32 %v13823_v59, %v5119_v15  ;;  %v12043_v28 = vpop.xlane.xlu1 %5604  ;;  %v5121_v59 = vmul.f32 0.015625, %v11727_v53 }
 0xd94   : > { %v3754_v56 = vmul.f32 1.442695, %v3731_v47 }
 0xd95   : > { %7301 = vmatmul.mubr.bf16.gmra.mrb[92].mxu1 %v2605_v45  ;;  %13824 = vst [vmem:[#allocation74_spill] sm:$0xff] %v12022_v12  ;;  %v5151_v8 = vmul.f32 %v12022_v12, %v12022_v12  ;;  %v12041_v13 = vpop.permute.xlu0 %5185  ;;  %v12078_v14 = vsub.f32 %v13837_v25, %v5121_v59  ;;  %v13841_v59 = vld [vmem:[#allocation39_spill] sm:$0xff] }
 0xd96   : > { %8096 = vpow2.f32 %v3754_v56 }
 0xd97   : > { %8098 = vpow2.f32 %v3752_v61  ;;  %v12055_v17 = vpop.xlane.xlu1 %4702  ;;  %13838 = vst [vmem:[#allocation87_spill] sm:$0xff] %v12078_v14  ;;  %v5153_v29 = vmul.f32 %v12078_v14, %v12078_v14 }
 0xd9a   : > { %v12015_v54 = vpop.eup %8094 }
 0xd9b   : > { %13822 = vst [vmem:[#allocation71_spill] sm:$0xff] %v12015_v54  ;;  %v12069_v15 = vpop.permute.xlu1 %5183 }
 0xda0   : > { %v12049_v32 = vpop.eup %8096 }
 0xda1   : > { %13832 = vst [vmem:[#allocation77_spill] sm:$0xff] %v12049_v32  ;;  %v12053_v5 = vpop.eup %8098 }
 0xda2   : > { %13834 = vst [vmem:[#allocation79_spill] sm:$0xff] %v12053_v5 }
 0xda5   : > { %5619 = vadd.xlane.f32.xlu1 %v5618_v41 }
 0xda8   : > { %3780 = vadd.xlane.f32.xlu0 %v12013_v26  ;;  %v13846_v26 = vld [vmem:[#allocation107_spill] sm:$0xff] }
 0xda9   : > { %3782 = vadd.xlane.f32.xlu1 %v12015_v54 }
 0xdaf   : > { %v12045_v27 = vpop.xlane.xlu0 %4708 }
 0xdb3   : > { %v12067_v41 = vpop.permute.xlu0 %5189 }
 0xdba   : > { %5191 = vrot.lane.b32.xlu1 %v5151_v8, %s8549_s27 }
 0xdbc   : > { %v12072_v60 = vpop.xlane.xlu1 %4706 }
 0xdbe   : > { %5193 = vrot.lane.b32.xlu0 %v5152_v49, %s8549_s27  ;;  %v5122_v49 = vmul.f32 0.015625, %v11713_v16 }
 0xdc0   : > { %v12083_v11 = vsub.f32 %v13839_v21, %v5122_v49  ;;  %v12087_v56 = vpop.permute.xlu1 %5187 }
 0xdc2   : > { %13840 = vst [vmem:[#allocation80_spill] sm:$0xff] %v12083_v11  ;;  %v5154_v16 = vmul.f32 %v12083_v11, %v12083_v11 }
 0xddb   : > { %v12047_v45 = vpop.f32.mrb[80].mxu1 }
 0xddc   : > { %13831 = vst [vmem:[#allocation76_spill] sm:$0xff] %v12047_v45  ;;  %v12051_v34 = vpop.f32.mrb[81].mxu1 }
 0xddd   : > { %13833 = vst [vmem:[#allocation81_spill] sm:$0xff] %v12051_v34  ;;  %3786 = vadd.xlane.f32.xlu0 %v12049_v32  ;;  %v12058_v30 = vpop.f32.mrb[82].mxu1 }
 0xdde   : > { %13835 = vst [vmem:[#allocation37_spill] sm:$0xff] %v12058_v30  ;;  %3784 = vadd.xlane.f32.xlu1 %v12053_v5  ;;  %v12063_v51 = vpop.f32.mrb[83].mxu1  ;;  %v13845_v5 = vld [vmem:[#allocation106_spill] sm:$0xff] }
 0xddf   : > { %13836 = vst [vmem:[#allocation103_spill] sm:$0xff] %v12063_v51 }
 0xde4   : > { %v3775_v9 = vpop.xlane.xlu0 %3774 }
 0xde5   : > { %8100 = vrcp.f32 %v3775_v9 }
 0xde8   : > { %v12074_v8 = vpop.xlane.xlu0 %3778 }
 0xdec   : > { %v12080_v47 = vpop.xlane.xlu0 %5613 }
 0xdef   : > { %5195 = vrot.lane.b32.xlu1 %v5153_v29, %s8549_s27  ;;  %v8101_v49 = vpop.eup %8100 }
 0xdf0   : > { %v12090_v53 = vpop.xlane.xlu0 %4710  ;;  %v3821_v3 = vmul.f32 %v8101_v49, %v3775_v9  ;;  %v13844_v9 = vld [vmem:[#allocation97_spill] sm:$0xff] }
 0xdf1   : > { %v3773_v61 = vpop.xlane.xlu1 %3772  ;;  %v3732_v32 = vsub.f32 %v13845_v5, %v13844_v9  ;;  %v13854_v9 = vld [vmem:[#allocation44_spill] sm:$0xff]  ;;  %v13870_v5 = vld [vmem:[#allocation57_spill] sm:$0xff] }
 0xdf2   : > { %8102 = vrcp.f32 %v3773_v61  ;;  %v3837_v45 = vsub.f32 2.0, %v3821_v3 }
 0xdf3   : > { %5197 = vrot.lane.b32.xlu0 %v5154_v16, %s8549_s27  ;;  %3906 = vrot.lane.b32.xlu1 %v13841_v59, %s8549_s27 }
 0xdf4   : > { %v12097_v25 = vpop.xlane.xlu0 %4712  ;;  %v3853_v16 = vmul.f32 %v8101_v49, %v3837_v45  ;;  %v13847_v45 = vld [vmem:[#allocation116_spill] sm:$0xff]  ;;  %v13849_v49 = vld [vmem:[#allocation125_spill] sm:$0xff] }
 0xdf5   : > { %v12099_v21 = vpop.xlane.xlu1 %3776 }
 0xdf6   : > { %v3869_v54 = vmul.f32 %v11933_v36, %v3853_v16 }
 0xdf8   : > { %v12101_v7 = vpop.xlane.xlu0 %4714 }
 0xdf9   : > { %v12103_v29 = vpop.xlane.xlu1 %5610 }
 0xdfc   : > { %v8103_v30 = vpop.eup %8102  ;;  %v12105_v34 = vpop.xlane.xlu0 %4716 }
 0xdfd   : > { %13842 = vst [vmem:[#allocation32_spill] sm:$0xff] %v12105_v34  ;;  %v3820_v51 = vmul.f32 %v8103_v30, %v3773_v61  ;;  %v3901_v11 = vpop.permute.xlu1 %3900 }
 0xdfe   : > { %7336 = vmatprep.subr.bf16.mxu1 %v3901_v11 }
 0xdff   : > { %v3836_v14 = vsub.f32 2.0, %v3820_v51  ;;  %7337 = vmatpush3.bf16.msra.mxu1 %v3901_v11  ;;  %v3733_v51 = vsub.f32 %v13847_v45, %v13846_v26  ;;  %v3756_v11 = vmul.f32 1.442695, %v3732_v32 }
 0xe00   : > { %v12107_v59 = vpop.xlane.xlu0 %5616 }
 0xe01   : > { %13843 = vst [vmem:[#allocation28_spill] sm:$0xff] %v12107_v59  ;;  %v3852_v63 = vmul.f32 %v8103_v30, %v3836_v14  ;;  %v3903_v12 = vpop.permute.xlu1 %3902  ;;  %v3758_v30 = vmul.f32 1.442695, %v3733_v51  ;;  %8104 = vpow2.f32 %v3756_v11  ;;  %v13848_v14 = vld [vmem:[#allocation124_spill] sm:$0xff]  ;;  %v13858_v11 = vld [vmem:[#allocation117_spill] sm:$0xff] }
 0xe02   : > { %7338 = vmatprep.subr.bf16.mxu1 %v3903_v12  ;;  %v3735_v59 = vsub.f32 %v13849_v49, %v13848_v14 }
 0xe03   : > { %7339 = vmatpush3.bf16.msra.mxu1 %v3903_v12  ;;  %v3868_v3 = vmul.f32 %v11952_v19, %v3852_v63  ;;  %8106 = vpow2.f32 %v3758_v30  ;;  %v5624_v19 = vsel %vm1718_vm0, %v11801_v48, 0.0  ;;  %v5621_v48 = vsel %vm1718_vm0, %v11821_v39, 0.0  ;;  %v13857_v39 = vld [vmem:[#allocation108_spill] sm:$0xff] }
 0xe04   : > { %v3905_v34 = vpop.permute.xlu0 %3904  ;;  %v3762_v12 = vmul.f32 1.442695, %v3735_v59  ;;  %v3737_v30 = vsub.f32 %v13858_v11, %v11725_v38  ;;  %v5123_v11 = vmul.f32 0.015625, %v11794_v44 }
 0xe05   : > { %7340 = vmatprep.subr.bf16.mxu1 %v3905_v34  ;;  %v3884_v61 = vpack.c.bf16 %v3869_v54, %v3868_v3  ;;  %v13855_v3 = vld [vmem:[#allocation50_spill] sm:$0xff] }
 0xe06   : > { %8108 = vpow2.f32 %v3762_v12  ;;  %v3766_v14 = vmul.f32 1.442695, %v3737_v30  ;;  %v5630_v12 = vsel %vm1718_vm0, %v11852_v43, 0.0  ;;  %v5124_v30 = vmul.f32 0.015625, %v11778_v35 }
 0xe07   : > { %7341 = vmatpush3.bf16.msra.mxu1 %v3905_v34  ;;  %7352 = vmatprep.mubr.bf16.mxu1 %v3884_v61  ;;  %v13856_v61 = vld [vmem:[#allocation119_spill] sm:$0xff] }
 0xe08   : > { %v3734_v45 = vsub.f32 %v13857_v39, %v13856_v61 }
 0xe0a   : > { %v3760_v51 = vmul.f32 1.442695, %v3734_v45 }
 0xe0b   : > { %v12123_v26 = vpop.eup %8104 }
 0xe0c   : > { %8110 = vpow2.f32 %v3760_v51  ;;  %v13864_v51 = vld [vmem:[#allocation56_spill] sm:$0xff] }
 0xe0d   : > { %v12136_v16 = vpop.eup %8106  ;;  %8112 = vpow2.f32 %v3766_v14  ;;  %v13865_v14 = vld [vmem:[#allocation54_spill] sm:$0xff] }
 0xe10   : > { %v12139_v59 = vpop.eup %8108 }
 0xe12   : > { %5625 = vadd.xlane.f32.xlu0 %v5624_v19  ;;  %v5627_v19 = vsel %vm1718_vm0, %v11835_v23, 0.0 }
 0xe13   : > { %v12119_v36 = vpop.f32.mrb[84].mxu1 }
 0xe14   : > { %13850 = vst [vmem:[#allocation36_spill] sm:$0xff] %v12119_v36  ;;  %v12121_v54 = vpop.f32.mrb[85].mxu1  ;;  %v13876_v36 = vld [vmem:[#allocation113_spill] sm:$0xff] }
 0xe15   : > { %13851 = vst [vmem:[#allocation102_spill] sm:$0xff] %v12121_v54  ;;  %v12125_v63 = vpop.f32.mrb[86].mxu1 }
 0xe16   : > { %13852 = vst [vmem:[#allocation30_spill] sm:$0xff] %v12125_v63  ;;  %3788 = vadd.xlane.f32.xlu0 %v12123_v26  ;;  %v12130_v34 = vpop.f32.mrb[87].mxu1  ;;  %v12150_v49 = vpop.eup %8110 }
 0xe17   : > { %13853 = vst [vmem:[#allocation114_spill] sm:$0xff] %v12130_v34  ;;  %5622 = vadd.xlane.f32.xlu1 %v5621_v48 }
 0xe1a   : > { %3790 = vadd.xlane.f32.xlu0 %v12136_v16 }
 0xe1e   : > { %3794 = vadd.xlane.f32.xlu0 %v12139_v59 }
 0xe28   : > { %3908 = vrot.lane.b32.xlu1 %v13854_v9, %s8549_s27  ;;  %v12159_v9 = vpop.eup %8112 }
 0xe29   : > { %13860 = vst [vmem:[#allocation21_spill] sm:$0xff] %v12159_v9 }
 0xe32   : > { %v12172_v23 = vpop.xlane.xlu1 %5619 }
 0xe34   : > { %3910 = vrot.lane.b32.xlu0 %v13855_v3, %s8549_s27 }
 0xe36   : > { %v12174_v45 = vpop.xlane.xlu1 %3782 }
 0xe4c   : > { %3792 = vadd.xlane.f32.xlu1 %v12150_v49 }
 0xe50   : > { %5631 = vadd.xlane.f32.xlu1 %v5630_v12  ;;  %v12181_v12 = vsub.f32 %v13865_v14, %v5123_v11 }
 0xe52   : > { %13866 = vst [vmem:[#allocation104_spill] sm:$0xff] %v12181_v12 }
 0xe53   : > { %5628 = vadd.xlane.f32.xlu0 %v5627_v19  ;;  %v12183_v19 = vpop.permute.xlu1 %5191 }
 0xe55   : > { %v12157_v48 = vpop.f32.mrb[88].mxu1 }
 0xe56   : > { %13859 = vst [vmem:[#allocation86_spill] sm:$0xff] %v12157_v48  ;;  %v12161_v3 = vpop.f32.mrb[89].mxu1  ;;  %v12192_v48 = vsub.f32 %v13870_v5, %v5124_v30  ;;  %v13873_v30 = vld [vmem:[#allocation127_spill] sm:$0xff] }
 0xe57   : > { %13861 = vst [vmem:[#allocation27_spill] sm:$0xff] %v12161_v3  ;;  %3798 = vadd.xlane.f32.xlu0 %v12159_v9  ;;  %v12164_v38 = vpop.f32.mrb[90].mxu1  ;;  %v13874_v3 = vld [vmem:[#allocation90_spill] sm:$0xff]  ;;  %v13891_v9 = vld [vmem:[#allocation59_spill] sm:$0xff] }
 0xe58   : > { %13862 = vst [vmem:[#allocation33_spill] sm:$0xff] %v12164_v38  ;;  %v12168_v39 = vpop.f32.mrb[91].mxu1  ;;  %13871 = vst [vmem:[#allocation45_spill] sm:$0xff] %v12192_v48  ;;  %v5156_v38 = vmul.f32 %v12192_v48, %v12192_v48  ;;  %v13880_v48 = vld [vmem:[#allocation93_spill] sm:$0xff] }
 0xe59   : > { %13863 = vst [vmem:[#allocation25_spill] sm:$0xff] %v12168_v39  ;;  %v3736_v39 = vsub.f32 %v13874_v3, %v13873_v30  ;;  %v13883_v30 = vld [vmem:[#allocation110_spill] sm:$0xff] }
 0xe61   : > { %3912 = vrot.lane.b32.xlu1 %v13864_v51, %s8549_s27  ;;  %v5155_v51 = vmul.f32 %v12181_v12, %v12181_v12  ;;  %v13889_v12 = vld [vmem:[#allocation100_spill] sm:$0xff] }
 0xe68   : > { %v12185_v61 = vpop.f32.mrb[92].mxu1 }
 0xe69   : > { %13867 = vst [vmem:[#allocation19_spill] sm:$0xff] %v12185_v61  ;;  %v12187_v32 = vpop.f32.mrb[93].mxu1  ;;  %v3764_v61 = vmul.f32 1.442695, %v3736_v39  ;;  %v13882_v39 = vld [vmem:[#allocation31_spill] sm:$0xff] }
 0xe6a   : > { %13868 = vst [vmem:[#allocation115_spill] sm:$0xff] %v12187_v32  ;;  %v12189_v43 = vpop.f32.mrb[94].mxu1  ;;  %v13878_v32 = vld [vmem:[#allocation111_spill] sm:$0xff] }
 0xe6b   : > { %13869 = vst [vmem:[#allocation42_spill] sm:$0xff] %v12189_v43  ;;  %v12198_v35 = vpop.xlane.xlu1 %3784  ;;  %v12200_v11 = vpop.f32.mrb[95].mxu1  ;;  %v13875_v43 = vld [vmem:[#allocation126_spill] sm:$0xff]  ;;  %8114 = vpow2.f32 %v3764_v61 }
 0xe6c   : > { %13872 = vst [vmem:[#allocation96_spill] sm:$0xff] %v12200_v11  ;;  %v3739_v63 = vsub.f32 %v13876_v36, %v13875_v43  ;;  %v4719_v36 = vsub.f32 %v13883_v30, %v13882_v39  ;;  %v13884_v43 = vld [vmem:[#allocation112_spill] sm:$0xff] }
 0xe6d   : > { %5199 = vrot.lane.b32.xlu0 %v5155_v51, %s8549_s27  ;;  %v13877_v51 = vld [vmem:[#allocation40_spill] sm:$0xff] }
 0xe6e   : > { %v3770_v14 = vmul.f32 1.442695, %v3739_v63  ;;  %v3738_v11 = vsub.f32 %v13878_v32, %v13877_v51  ;;  %v12226_v63 = vpop.xlane.xlu0 %3780  ;;  %v4736_v32 = vmul.f32 1.442695, %v4719_v36  ;;  %v5633_v36 = vsel %vm1718_vm0, %v11892_v0, 0.0 }
 0xe6f   : > { %v12207_v5 = vpop.permute.xlu1 %5195 }
 0xe70   : > { %8116 = vpow2.f32 %v3770_v14  ;;  %v3768_v54 = vmul.f32 1.442695, %v3738_v11  ;;  %v13885_v11 = vld [vmem:[#allocation75_spill] sm:$0xff] }
 0xe71   : > { %5201 = vrot.lane.b32.xlu0 %v5156_v38, %s8549_s27  ;;  %v13879_v38 = vld [vmem:[#allocation34_spill] sm:$0xff] }
 0xe72   : > { %8118 = vpow2.f32 %v3768_v54  ;;  %v4718_v3 = vsub.f32 %v13880_v48, %v13879_v38  ;;  %v4720_v54 = vsub.f32 %v13885_v11, %v13884_v43  ;;  %v13887_v48 = vld [vmem:[#allocation26_spill] sm:$0xff]  ;;  %v12236_v30 = vpop.permute.xlu0 %5193 }
 0xe73   : > { %v3907_v44 = vpop.permute.xlu1 %3906  ;;  %v5125_v51 = vmul.f32 0.015625, %v13887_v48  ;;  %v13888_v38 = vld [vmem:[#allocation82_spill] sm:$0xff] }
 0xe74   : > { %7342 = vmatprep.subr.bf16.mxu1 %v3907_v44  ;;  %v4734_v61 = vmul.f32 1.442695, %v4718_v3  ;;  %v4721_v39 = vsub.f32 %v13889_v12, %v13888_v38  ;;  %v4738_v3 = vmul.f32 1.442695, %v4720_v54  ;;  %v13895_v38 = vld [vmem:[#allocation60_spill] sm:$0xff] }
 0xe75   : > { %7343 = vmatpush3.bf16.msra.mxu1 %v3907_v44  ;;  %v12216_v34 = vpop.eup %8114  ;;  %v12242_v43 = vsub.f32 %v13891_v9, %v5125_v51 }
 0xe76   : > { %8120 = vpow2.f32 %v4734_v61  ;;  %v13890_v61 = vld [vmem:[#allocation24_spill] sm:$0xff]  ;;  %v4740_v11 = vmul.f32 1.442695, %v4721_v39  ;;  %v12244_v48 = vpop.xlane.xlu0 %3786 }
 0xe77   : > { %8122 = vpow2.f32 %v4736_v32  ;;  %13892 = vst [vmem:[#allocation43_spill] sm:$0xff] %v12242_v43  ;;  %v5157_v54 = vmul.f32 %v12242_v43, %v12242_v43  ;;  %v5229_v43 = vsel %vm1718_vm0, %v11943_v46, 0.0  ;;  %v5241_v46 = vsel %vm1718_vm0, %v12087_v56, 0.0 }
 0xe78   : > { %8124 = vpow2.f32 %v4738_v3 }
 0xe79   : > { %8126 = vpow2.f32 %v4740_v11  ;;  %v5223_v11 = vsel %vm1718_vm0, %v11938_v31, 0.0  ;;  %v5232_v31 = vsel %vm1718_vm0, %v11965_v22, 0.0 }
 0xe7a   : > { %v12221_v44 = vpop.eup %8116  ;;  %v12257_v9 = vpop.permute.xlu0 %5197 }
 0xe7b   : > { %13881 = vst [vmem:[#allocation128_spill] sm:$0xff] %v12221_v44 }
 0xe7c   : > { %v12230_v14 = vpop.eup %8118 }
 0xe7d   : > { %13886 = vst [vmem:[#allocation105_spill] sm:$0xff] %v12230_v14 }
 0xe80   : > { %v12246_v32 = vpop.eup %8120 }
 0xe81   : > { %v12255_v0 = vpop.eup %8122 }
 0xe85   : > { %3796 = vadd.xlane.f32.xlu1 %v12216_v34 }
 0xe89   : > { %3802 = vadd.xlane.f32.xlu1 %v12221_v44  ;;  %v5126_v44 = vmul.f32 0.015625, %v13890_v61 }
 0xe90   : > { %3800 = vadd.xlane.f32.xlu0 %v12230_v14  ;;  %v13893_v14 = vld [vmem:[#allocation61_spill] sm:$0xff] }
 0xe91   : > { %v12249_v12 = vsub.f32 %v13893_v14, %v5126_v44  ;;  %v12263_v44 = vpop.eup %8124 }
 0xe92   : > { %v12270_v39 = vpop.eup %8126 }
 0xe93   : > { %13894 = vst [vmem:[#allocation48_spill] sm:$0xff] %v12249_v12  ;;  %v5158_v51 = vmul.f32 %v12249_v12, %v12249_v12  ;;  %13896 = vst [vmem:[#allocation51_spill] sm:$0xff] %v12270_v39 }
 0xe94   : > { %5634 = vadd.xlane.f32.xlu0 %v5633_v36 }
 0xe98   : > { %4766 = vadd.xlane.f32.xlu0 %v12246_v32 }
 0xe9a   : > { %5203 = vrot.lane.b32.xlu1 %v5157_v54, %s8549_s27 }
 0xe9c   : > { %4768 = vadd.xlane.f32.xlu0 %v12255_v0 }
 0xe9e   : > { %5205 = vrot.lane.b32.xlu1 %v5158_v51, %s8549_s27 }
 0xe9f   : > { %v12265_v14 = vpop.xlane.xlu0 %5625 }
 0xea0   : > { %4770 = vadd.xlane.f32.xlu0 %v12263_v44 }
 0xea2   : > { %3914 = vrot.lane.b32.xlu1 %v13895_v38, %s8549_s27  ;;  %v5226_v38 = vsel %vm1718_vm0, %v11927_v52, 0.0  ;;  %v5235_v52 = vsel %vm1718_vm0, %v12069_v15, 0.0 }
 0xea3   : > { %v12272_v3 = vpop.xlane.xlu0 %3788 }
 0xea4   : > { %v12274_v36 = vpop.xlane.xlu1 %5622  ;;  %4772 = vadd.xlane.f32.xlu0 %v12270_v39  ;;  %v5639_v39 = vmul.f32 0.015625, %v11931_v10  ;;  %v5247_v10 = vsel %vm1718_vm0, %v12183_v19, 0.0 }
 0xea7   : > { %v12277_v61 = vpop.xlane.xlu0 %3790 }
 0xea8   : > { %v3909_v54 = vpop.permute.xlu1 %3908  ;;  %5224 = vadd.xlane.f32.xlu0 %v5223_v11  ;;  %v5640_v11 = vmul.f32 0.015625, %v11923_v57  ;;  %v5636_v57 = vsel %vm1718_vm0, %v11885_v24, 0.0 }
 0xea9   : > { %7344 = vmatprep.subr.bf16.mxu1 %v3909_v54 }
 0xeaa   : > { %7345 = vmatpush3.bf16.msra.mxu1 %v3909_v54  ;;  %v5655_v54 = vadd.f32 1e-05, %v5639_v39  ;;  %v5238_v39 = vsel %vm1718_vm0, %v12041_v13, 0.0 }
 0xeab   : > { %v12281_v51 = vpop.xlane.xlu0 %3794 }
 0xeac   : > { %5227 = vadd.xlane.f32.xlu0 %v5226_v38  ;;  %v5656_v38 = vadd.f32 1e-05, %v5640_v11  ;;  %8128 = vrsqrt.f32 %v5655_v54  ;;  %v13899_v11 = vld [vmem:[#allocation83_spill] sm:$0xff] }
 0xead   : > { %v4722_v54 = vsub.f32 %v13899_v11, %v11989_v2 }
 0xeae   : > { %8130 = vrsqrt.f32 %v5656_v38  ;;  %v5244_v38 = vsel %vm1718_vm0, %v12067_v41, 0.0 }
 0xeaf   : > { %v3911_v12 = vpop.permute.xlu0 %3910 }
 0xeb0   : > { %5230 = vadd.xlane.f32.xlu0 %v5229_v43  ;;  %7346 = vmatprep.subr.bf16.mxu1 %v3911_v12 }
 0xeb1   : > { %7347 = vmatpush3.bf16.msra.mxu1 %v3911_v12  ;;  %v13897_v12 = vld [vmem:[#allocation88_spill] sm:$0xff] }
 0xeb4   : > { %5233 = vadd.xlane.f32.xlu0 %v5232_v31  ;;  %v13898_v31 = vld [vmem:[#allocation38_spill] sm:$0xff] }
 0xeb6   : > { %v8129_v22 = vpop.eup %8128 }
 0xeb7   : > { %v5687_v15 = vmul.f32 %v8129_v22, %v13897_v12  ;;  %v4742_v22 = vmul.f32 1.442695, %v4722_v54 }
 0xeb8   : > { %5236 = vadd.xlane.f32.xlu0 %v5235_v52  ;;  %v8131_v43 = vpop.eup %8130  ;;  %v13900_v52 = vld [vmem:[#allocation14_spill] sm:$0xff] }
 0xeb9   : > { %v5688_v56 = vmul.f32 %v8131_v43, %v13898_v31  ;;  %v5703_v19 = vmul.f32 %v5687_v15, %v13900_v52  ;;  %v5250_v43 = vsel %vm1718_vm0, %v12236_v30, 0.0  ;;  %8132 = vpow2.f32 %v4742_v22  ;;  %v13903_v15 = vld [vmem:[#allocation20_spill] sm:$0xff] }
 0xeba   : > { %v4724_v41 = vsub.f32 %v13903_v15, %v11991_v6 }
 0xebb   : > { %v5704_v24 = vmul.f32 %v5688_v56, %v13900_v52  ;;  %v5642_v56 = vmul.f32 0.015625, %v11950_v4 }
 0xebc   : > { %5242 = vadd.xlane.f32.xlu0 %v5241_v46  ;;  %v13901_v46 = vld [vmem:[#allocation84_spill] sm:$0xff]  ;;  %v4746_v30 = vmul.f32 1.442695, %v4724_v41 }
 0xebd   : > { %v5658_v6 = vadd.f32 1e-05, %v5642_v56  ;;  %v4729_v56 = vsub.f32 %v11890_v55, %v12045_v27 }
 0xec0   : > { %5248 = vadd.xlane.f32.xlu0 %v5247_v10  ;;  %v4723_v10 = vsub.f32 %v13901_v46, %v11961_v40  ;;  %v5253_v40 = vsel %vm1718_vm0, %v12207_v5, 0.0 }
 0xec2   : > { %v4744_v12 = vmul.f32 1.442695, %v4723_v10 }
 0xec4   : > { %8134 = vpow2.f32 %v4744_v12  ;;  %v13906_v12 = vld [vmem:[#allocation49_spill] sm:$0xff] }
 0xec5   : > { %8136 = vpow2.f32 %v4746_v30 }
 0xec6   : > { %5637 = vadd.xlane.f32.xlu1 %v5636_v57  ;;  %v13902_v57 = vld [vmem:[#allocation15_spill] sm:$0xff] }
 0xec7   : > { %v5719_v13 = vadd.f32 %v5703_v19, %v13902_v57  ;;  %v5720_v2 = vadd.f32 %v5704_v24, %v13902_v57  ;;  %v5256_v19 = vsel %vm1718_vm0, %v12257_v9, 0.0  ;;  %v13904_v24 = vld [vmem:[#allocation85_spill] sm:$0xff] }
 0xec8   : > { %v4725_v46 = vsub.f32 %v13904_v24, %v11974_v62  ;;  %v4728_v62 = vsub.f32 %v11898_v33, %v12072_v60  ;;  %v5644_v24 = vmul.f32 0.015625, %v12035_v42  ;;  %v4726_v42 = vsub.f32 %v11864_v20, %v12055_v17  ;;  %v13909_v20 = vld [vmem:[#allocation55_spill] sm:$0xff] }
 0xec9   : > { %v5743_v31 = vpack.c.bf16 %v5720_v2, %v5719_v13  ;;  %v13905_v13 = vld [vmem:[#allocation64_spill] sm:$0xff] }
 0xeca   : > { %5239 = vadd.xlane.f32.xlu1 %v5238_v39  ;;  %v5641_v39 = vmul.f32 0.015625, %v11984_v37  ;;  %v12326_v37 = vpop.eup %8132  ;;  %v4748_v22 = vmul.f32 1.442695, %v4725_v46  ;;  %v4754_v30 = vmul.f32 1.442695, %v4728_v62 }
 0xecc   : > { %v5657_v11 = vadd.f32 1e-05, %v5641_v39  ;;  %v13907_v39 = vld [vmem:[#allocation47_spill] sm:$0xff] }
 0xece   : > { %5245 = vadd.xlane.f32.xlu1 %v5244_v38  ;;  %8138 = vrsqrt.f32 %v5657_v11  ;;  %v12331_v4 = vpop.eup %8134 }
 0xecf   : > { %8140 = vrsqrt.f32 %v5658_v6  ;;  %v12336_v9 = vpop.eup %8136 }
 0xed0   : > { %8142 = vpow2.f32 %v4748_v22  ;;  %v5660_v22 = vadd.f32 1e-05, %v5644_v24  ;;  %v5646_v24 = vmul.f32 0.015625, %v12080_v47 }
 0xed2   : > { %5251 = vadd.xlane.f32.xlu1 %v5250_v43  ;;  %v4727_v43 = vsub.f32 %v13905_v13, %v12039_v18 }
 0xed4   : > { %v4752_v41 = vmul.f32 1.442695, %v4727_v43 }
 0xed6   : > { %5783 = vrot.lane.b32.xlu0 %v5743_v31, %s8549_s27  ;;  %5254 = vadd.xlane.f32.xlu1 %v5253_v40  ;;  %8144 = vpow2.f32 %v4752_v41  ;;  %v4750_v41 = vmul.f32 1.442695, %v4726_v42  ;;  %v4731_v42 = vsub.f32 %v11959_v1, %v12097_v25 }
 0xed7   : > { %8146 = vpow2.f32 %v4754_v30 }
 0xed8   : > { %v8139_v10 = vpop.eup %8138 }
 0xed9   : > { %v12322_v54 = vpop.xlane.xlu1 %3792  ;;  %v8141_v2 = vpop.eup %8140  ;;  %v5689_v15 = vmul.f32 %v8139_v10, %v13906_v12  ;;  %v5643_v10 = vmul.f32 0.015625, %v12043_v28 }
 0xeda   : > { %5257 = vadd.xlane.f32.xlu1 %v5256_v19  ;;  %v5690_v31 = vmul.f32 %v8141_v2, %v13907_v39  ;;  %v4756_v19 = vmul.f32 1.442695, %v4729_v56  ;;  %v12353_v33 = vpop.eup %8142 }
 0xedb   : > { %v5705_v40 = vmul.f32 %v5689_v15, %v13900_v52  ;;  %v5659_v2 = vadd.f32 1e-05, %v5643_v10 }
 0xedc   : > { %v5706_v18 = vmul.f32 %v5690_v31, %v13900_v52  ;;  %8148 = vpow2.f32 %v4756_v19 }
 0xedd   : > { %v12328_v5 = vpop.xlane.xlu1 %5631  ;;  %v5721_v11 = vadd.f32 %v5705_v40, %v13902_v57  ;;  %8150 = vrsqrt.f32 %v5660_v22  ;;  %v13908_v40 = vld [vmem:[#allocation53_spill] sm:$0xff] }
 0xede   : > { %4774 = vadd.xlane.f32.xlu1 %v12326_v37  ;;  %8152 = vrsqrt.f32 %v5659_v2 }
 0xedf   : > { %8154 = vrcp.f32 %v12074_v8 }
 0xee0   : > { %v12350_v6 = vpop.xlane.xlu0 %5628  ;;  %v12357_v55 = vpop.eup %8144  ;;  %8156 = vrcp.f32 %v12099_v21 }
 0xee1   : > { %v3913_v38 = vpop.permute.xlu1 %3912  ;;  %v12363_v46 = vpop.eup %8146  ;;  %8158 = vrcp.f32 %v12226_v63 }
 0xee2   : > { %4776 = vadd.xlane.f32.xlu1 %v12331_v4  ;;  %7348 = vmatprep.subr.bf16.mxu1 %v3913_v38  ;;  %8160 = vrcp.f32 %v12174_v45 }
 0xee3   : > { %7349 = vmatpush3.bf16.msra.mxu1 %v3913_v38  ;;  %v5722_v38 = vadd.f32 %v5706_v18, %v13902_v57  ;;  %8162 = vrcp.f32 %v12244_v48 }
 0xee4   : > { %v12359_v27 = vpop.xlane.xlu0 %3798  ;;  %8164 = vrcp.f32 %v12198_v35 }
 0xee5   : > { %v5744_v60 = vpack.c.bf16 %v5722_v38, %v5721_v11  ;;  %8166 = vpow2.f32 %v4750_v41  ;;  %v4730_v38 = vsub.f32 %v11948_v50, %v12090_v53 }
 0xee6   : > { %4778 = vadd.xlane.f32.xlu1 %v12336_v9  ;;  %v12367_v43 = vpop.eup %8148  ;;  %8168 = vrcp.f32 %v12277_v61 }
 0xee7   : > { %v8151_v62 = vpop.eup %8150  ;;  %8170 = vrcp.f32 %v12272_v3  ;;  %v4758_v53 = vmul.f32 1.442695, %v4730_v38 }
 0xee8   : > { %v5200_v13 = vpop.permute.xlu0 %5199  ;;  %v8153_v39 = vpop.eup %8152  ;;  %v5692_v56 = vmul.f32 %v8151_v62, %v13908_v40  ;;  %8172 = vrcp.f32 %v12322_v54  ;;  %v4760_v40 = vmul.f32 1.442695, %v4731_v42 }
 0xee9   : > { %v5259_v12 = vsel %vm1718_vm0, %v5200_v13, 0.0  ;;  %v8155_v31 = vpop.eup %8154  ;;  %v5691_v17 = vmul.f32 %v8153_v39, %v13909_v20 }
 0xeea   : > { %v8157_v30 = vpop.eup %8156  ;;  %v3823_v13 = vmul.f32 %v8155_v31, %v12074_v8 }
 0xeeb   : > { %v8159_v18 = vpop.eup %8158  ;;  %v3822_v10 = vmul.f32 %v8157_v30, %v12099_v21  ;;  %v5707_v22 = vmul.f32 %v5691_v17, %v13900_v52  ;;  %v5645_v17 = vmul.f32 0.015625, %v12103_v29 }
 0xeec   : > { %v5202_v15 = vpop.permute.xlu0 %5201  ;;  %v8161_v19 = vpop.eup %8160  ;;  %v3824_v2 = vmul.f32 %v8159_v18, %v12226_v63 }
 0xeed   : > { %v5262_v28 = vsel %vm1718_vm0, %v5202_v15, 0.0  ;;  %v8163_v50 = vpop.eup %8162  ;;  %v3838_v41 = vsub.f32 2.0, %v3822_v10  ;;  %v5723_v8 = vadd.f32 %v5707_v22, %v13902_v57  ;;  %v5661_v29 = vadd.f32 1e-05, %v5645_v17 }
 0xeee   : > { %v8165_v21 = vpop.eup %8164  ;;  %v3840_v62 = vsub.f32 2.0, %v3824_v2  ;;  %v3827_v20 = vmul.f32 %v8163_v50, %v12244_v48 }
 0xeef   : > { %v12403_v63 = vpop.eup %8166  ;;  %v3826_v38 = vmul.f32 %v8165_v21, %v12198_v35 }
 0xef0   : > { %v8169_v25 = vpop.eup %8168 }
 0xef1   : > { %v3842_v35 = vsub.f32 2.0, %v3826_v38 }
 0xef5   : > { %4780 = vadd.xlane.f32.xlu0 %v12353_v33 }
 0xef7   : > { %5785 = vrot.lane.b32.xlu1 %v5744_v60, %s8549_s27  ;;  %v5708_v60 = vmul.f32 %v5692_v56, %v13900_v52  ;;  %v4732_v56 = vsub.f32 %v11972_v58, %v12101_v7  ;;  %v3829_v58 = vmul.f32 %v8169_v25, %v12277_v61 }
 0xef9   : > { %4784 = vadd.xlane.f32.xlu0 %v12357_v55  ;;  %v5724_v47 = vadd.f32 %v5708_v60, %v13902_v57  ;;  %v8171_v60 = vpop.eup %8170  ;;  %v4762_v42 = vmul.f32 1.442695, %v4732_v56 }
 0xefb   : > { %v5745_v22 = vpack.c.bf16 %v5724_v47, %v5723_v8  ;;  %v13911_v47 = vld [vmem:[#allocation28_spill] sm:$0xff]  ;;  %v3845_v8 = vsub.f32 2.0, %v3829_v58 }
 0xefc   : > { %v5647_v61 = vmul.f32 0.015625, %v13911_v47  ;;  %v5649_v47 = vmul.f32 0.015625, %v12274_v36 }
 0xefd   : > { %4786 = vadd.xlane.f32.xlu0 %v12363_v46 }
 0xf01   : > { %4788 = vadd.xlane.f32.xlu0 %v12367_v43 }
 0xf05   : > { %5260 = vadd.xlane.f32.xlu0 %v5259_v12  ;;  %v3825_v12 = vmul.f32 %v8161_v19, %v12174_v45  ;;  %v3839_v45 = vsub.f32 2.0, %v3823_v13  ;;  %v3856_v13 = vmul.f32 %v8159_v18, %v3840_v62  ;;  %v13910_v18 = vld [vmem:[#allocation70_spill] sm:$0xff] }
 0xf07   : > { %v3841_v39 = vsub.f32 2.0, %v3825_v12  ;;  %v3855_v12 = vmul.f32 %v8155_v31, %v3839_v45 }
 0xf09   : > { %5263 = vadd.xlane.f32.xlu0 %v5262_v28  ;;  %v5662_v28 = vadd.f32 1e-05, %v5646_v24  ;;  %v3854_v24 = vmul.f32 %v8157_v30, %v3838_v41  ;;  %v3857_v2 = vmul.f32 %v8161_v19, %v3841_v39  ;;  %v3828_v30 = vmul.f32 %v8171_v60, %v12272_v3  ;;  %v12426_v41 = vpop.eup %8172  ;;  %v13912_v39 = vld [vmem:[#allocation72_spill] sm:$0xff] }
 0xf0a   : > { %v3872_v3 = vmul.f32 %v13912_v39, %v3856_v13  ;;  %v5651_v39 = vmul.f32 0.015625, %v12350_v6 }
 0xf0b   : > { %v3870_v19 = vmul.f32 %v13910_v18, %v3854_v24  ;;  %v13915_v24 = vld [vmem:[#allocation32_spill] sm:$0xff] }
 0xf12   : > { %v12383_v11 = vpop.xlane.xlu1 %3796 }
 0xf13   : > { %8174 = vrcp.f32 %v12383_v11 }
 0xf14   : > { %8176 = vrcp.f32 %v12281_v51 }
 0xf15   : > { %8178 = vrcp.f32 %v12359_v27 }
 0xf16   : > { %v12395_v15 = vpop.xlane.xlu1 %3802  ;;  %8180 = vpow2.f32 %v4758_v53  ;;  %v3843_v53 = vsub.f32 2.0, %v3827_v20  ;;  %v13914_v20 = vld [vmem:[#allocation67_spill] sm:$0xff] }
 0xf17   : > { %8182 = vrsqrt.f32 %v5662_v28  ;;  %v5648_v28 = vmul.f32 0.015625, %v12172_v23  ;;  %v3871_v17 = vmul.f32 %v13914_v20, %v3855_v12  ;;  %v13917_v12 = vld [vmem:[#allocation23_spill] sm:$0xff] }
 0xf18   : > { %8184 = vpow2.f32 %v4760_v40  ;;  %v3859_v23 = vmul.f32 %v8163_v50, %v3843_v53  ;;  %v3830_v50 = vmul.f32 %v12426_v41, %v12322_v54  ;;  %v13918_v54 = vld [vmem:[#allocation77_spill] sm:$0xff] }
 0xf19   : > { %v5664_v18 = vadd.f32 1e-05, %v5648_v28 }
 0xf1a   : > { %v5204_v1 = vpop.permute.xlu1 %5203  ;;  %v3875_v28 = vmul.f32 %v13918_v54, %v3859_v23 }
 0xf1b   : > { %4782 = vadd.xlane.f32.xlu1 %v12403_v63  ;;  %v5265_v48 = vsel %vm1718_vm0, %v5204_v1, 0.0  ;;  %v13913_v1 = vld [vmem:[#allocation71_spill] sm:$0xff] }
 0xf1c   : > { %v3873_v40 = vmul.f32 %v13913_v1, %v3857_v2  ;;  %v3885_v2 = vpack.c.bf16 %v3871_v17, %v3870_v19  ;;  %v5650_v19 = vmul.f32 0.015625, %v12265_v14 }
 0xf1d   : > { %v12413_v10 = vpop.xlane.xlu0 %3800  ;;  %v12431_v56 = vpop.eup %8174 }
 0xf1e   : > { %v5206_v7 = vpop.permute.xlu1 %5205  ;;  %8186 = vrcp.f32 %v12413_v10  ;;  %v12434_v38 = vpop.eup %8176  ;;  %v5666_v17 = vadd.f32 1e-05, %v5650_v19 }
 0xf1f   : > { %5266 = vadd.xlane.f32.xlu1 %v5265_v48  ;;  %5787 = vrot.lane.b32.xlu0 %v5745_v22, %s8549_s27  ;;  %8188 = vrcp.f32 %v12395_v15  ;;  %v5268_v62 = vsel %vm1718_vm0, %v5206_v7, 0.0  ;;  %v13916_v22 = vld [vmem:[#allocation69_spill] sm:$0xff]  ;;  %v3858_v48 = vmul.f32 %v8165_v21, %v3842_v35  ;;  %v3844_v7 = vsub.f32 2.0, %v3828_v30  ;;  %v12438_v13 = vpop.eup %8178 }
 0xf20   : > { %8190 = vpow2.f32 %v4762_v42  ;;  %v4733_v58 = vsub.f32 %v13916_v22, %v13915_v24  ;;  %v12446_v53 = vpop.eup %8180  ;;  %v3832_v21 = vmul.f32 %v12431_v56, %v12383_v11  ;;  %v3886_v35 = vpack.c.bf16 %v3873_v40, %v3872_v3  ;;  %v13919_v11 = vld [vmem:[#allocation79_spill] sm:$0xff]  ;;  %v13920_v3 = vld [vmem:[#allocation29_spill] sm:$0xff] }
 0xf21   : > { %v12424_v31 = vpop.xlane.xlu0 %5634  ;;  %8192 = vrsqrt.f32 %v5661_v29  ;;  %v5663_v29 = vadd.f32 1e-05, %v5647_v61  ;;  %v8183_v30 = vpop.eup %8182  ;;  %v3831_v36 = vmul.f32 %v12434_v38, %v12281_v51  ;;  %v3874_v61 = vmul.f32 %v13919_v11, %v3858_v48 }
 0xf22   : > { %v3915_v45 = vpop.permute.xlu1 %3914  ;;  %v12460_v14 = vpop.eup %8184  ;;  %v5665_v51 = vadd.f32 1e-05, %v5649_v47  ;;  %v5652_v24 = vmul.f32 0.015625, %v12328_v5  ;;  %v4764_v22 = vmul.f32 1.442695, %v4733_v58 }
 0xf23   : > { %5269 = vadd.xlane.f32.xlu1 %v5268_v62  ;;  %7350 = vmatprep.subr.bf16.mxu1 %v3915_v45  ;;  %v3861_v62 = vmul.f32 %v8169_v25, %v3845_v8  ;;  %v3833_v25 = vmul.f32 %v12438_v13, %v12359_v27  ;;  %v3846_v8 = vsub.f32 2.0, %v3830_v50  ;;  %v3847_v23 = vsub.f32 2.0, %v3831_v36  ;;  %v13921_v50 = vld [vmem:[#allocation35_spill] sm:$0xff]  ;;  %v13923_v36 = vld [vmem:[#allocation41_spill] sm:$0xff] }
 0xf24   : > { %7351 = vmatpush3.bf16.msra.mxu1 %v3915_v45  ;;  %v3860_v45 = vmul.f32 %v8171_v60, %v3844_v7  ;;  %v3848_v60 = vsub.f32 2.0, %v3832_v21  ;;  %v3887_v6 = vpack.c.bf16 %v3875_v28, %v3874_v61  ;;  %v13924_v28 = vld [vmem:[#allocation118_spill] sm:$0xff] }
 0xf25   : > { %7400 = vmatprep.subr.bf16.mxu1 %v13917_v12  ;;  %v12444_v42 = vpop.xlane.xlu0 %4766  ;;  %v3877_v27 = vmul.f32 %v12136_v16, %v3861_v62  ;;  %v3849_v48 = vsub.f32 2.0, %v3833_v25  ;;  %v3862_v16 = vmul.f32 %v12426_v41, %v3846_v8  ;;  %v13922_v41 = vld [vmem:[#allocation94_spill] sm:$0xff] }
 0xf26   : > { %8194 = vrcp.f32 %v12444_v42  ;;  %v3876_v7 = vmul.f32 %v12123_v26, %v3860_v45  ;;  %v3864_v58 = vmul.f32 %v12431_v56, %v3848_v60  ;;  %v3863_v26 = vmul.f32 %v12434_v38, %v3847_v23 }
 0xf27   : > { %4790 = vadd.xlane.f32.xlu1 %v12446_v53  ;;  %7353 = vmatmul.mubr.bf16.vlgmr.msra.gmra.mrb[96].mxu1 %v3885_v2  ;;  %8196 = vrsqrt.f32 %v5664_v18  ;;  %v5667_v18 = vadd.f32 1e-05, %v5651_v39  ;;  %v5694_v19 = vmul.f32 %v8183_v30, %v13922_v41  ;;  %v3878_v38 = vmul.f32 %v12150_v49, %v3862_v16  ;;  %v13925_v39 = vld [vmem:[#allocation21_spill] sm:$0xff] }
 0xf28   : > { %7356 = vmatprep.mubr.bf16.mxu1 %v3886_v35  ;;  %7401 = vmatpush3.bf16.msra.mxu1 %v13917_v12  ;;  %v8187_v40 = vpop.eup %8186  ;;  %v3888_v21 = vpack.c.bf16 %v3877_v27, %v3876_v7  ;;  %v5668_v35 = vadd.f32 1e-05, %v5652_v24  ;;  %v3879_v30 = vmul.f32 %v12139_v59, %v3863_v26  ;;  %v13926_v24 = vld [vmem:[#allocation46_spill] sm:$0xff]  ;;  %v13927_v7 = vld [vmem:[#allocation109_spill] sm:$0xff] }
 0xf29   : > { %7402 = vmatprep.subr.bf16.mxu1 %v13920_v3  ;;  %v4769_v1 = vpop.xlane.xlu0 %4768  ;;  %v8189_v20 = vpop.eup %8188  ;;  %v3834_v47 = vmul.f32 %v8187_v40, %v12413_v10  ;;  %v3865_v10 = vmul.f32 %v12438_v13, %v3849_v48  ;;  %v3880_v13 = vmul.f32 %v12216_v34, %v3864_v58  ;;  %v5710_v49 = vmul.f32 %v5694_v19, %v13900_v52  ;;  %v13930_v19 = vld [vmem:[#allocation105_spill] sm:$0xff] }
 0xf2a   : > { %8198 = vrcp.f32 %v4769_v1  ;;  %v12469_v2 = vpop.eup %8190  ;;  %v3835_v62 = vmul.f32 %v8189_v20, %v12395_v15 }
 0xf2b   : > { %8200 = vrsqrt.f32 %v5663_v29  ;;  %4792 = vadd.xlane.f32.xlu1 %v12460_v14  ;;  %v8193_v29 = vpop.eup %8192  ;;  %v3850_v15 = vsub.f32 2.0, %v3834_v47  ;;  %v3881_v60 = vmul.f32 %v13925_v39, %v3865_v10  ;;  %v13929_v10 = vld [vmem:[#allocation52_spill] sm:$0xff] }
 0xf2c   : > { %7403 = vmatpush3.bf16.msra.mxu1 %v13920_v3  ;;  %8202 = vrsqrt.f32 %v5665_v51  ;;  %v5693_v45 = vmul.f32 %v8193_v29, %v13924_v28  ;;  %v3851_v25 = vsub.f32 2.0, %v3835_v62 }
 0xf2d   : > { %7404 = vmatprep.subr.bf16.mxu1 %v13921_v50  ;;  %v4771_v5 = vpop.xlane.xlu0 %4770  ;;  %v3890_v59 = vpack.c.bf16 %v3881_v60, %v3880_v13  ;;  %v13932_v13 = vld [vmem:[#allocation98_spill] sm:$0xff] }
 0xf2e   : > { %8204 = vrcp.f32 %v4771_v5  ;;  %v5709_v34 = vmul.f32 %v5693_v45, %v13900_v52  ;;  %v3867_v48 = vmul.f32 %v8189_v20, %v3851_v25  ;;  %v13931_v45 = vld [vmem:[#allocation128_spill] sm:$0xff] }
 0xf2f   : > { %8206 = vrsqrt.f32 %v5666_v17  ;;  %4794 = vadd.xlane.f32.xlu1 %v12469_v2  ;;  %7357 = vmatmul.mubr.bf16.gmra.mrb[100].mxu1 %v3887_v6  ;;  %v3866_v17 = vmul.f32 %v8187_v40, %v3850_v15  ;;  %v13928_v40 = vld [vmem:[#allocation91_spill] sm:$0xff] }
 0xf30   : > { %8208 = vpow2.f32 %v4764_v22  ;;  %7360 = vmatprep.mubr.bf16.mxu1 %v3888_v21  ;;  %7405 = vmatpush3.bf16.msra.mxu1 %v13921_v50  ;;  %v8195_v56 = vpop.eup %8194  ;;  %v3889_v22 = vpack.c.bf16 %v3879_v30, %v3878_v38  ;;  %v3883_v25 = vmul.f32 %v13931_v45, %v3867_v48 }
 0xf31   : > { %8210 = vrsqrt.f32 %v5667_v18  ;;  %7406 = vmatprep.subr.bf16.mxu1 %v13923_v36  ;;  %v4773_v54 = vpop.xlane.xlu0 %4772  ;;  %v4814_v11 = vmul.f32 %v8195_v56, %v12444_v42  ;;  %v8197_v61 = vpop.eup %8196  ;;  %v3882_v15 = vmul.f32 %v13930_v19, %v3866_v17  ;;  %v13938_v19 = vld [vmem:[#allocation51_spill] sm:$0xff] }
 0xf32   : > { %8212 = vrcp.f32 %v4773_v54  ;;  %v5696_v16 = vmul.f32 %v8197_v61, %v13927_v7  ;;  %v13935_v7 = vld [vmem:[#allocation95_spill] sm:$0xff] }
 0xf33   : > { %8214 = vrsqrt.f32 %v5668_v35  ;;  %v4830_v8 = vsub.f32 2.0, %v4814_v11  ;;  %v3891_v48 = vpack.c.bf16 %v3883_v25, %v3882_v15 }
 0xf34   : > { %v8199_v51 = vpop.eup %8198  ;;  %7407 = vmatpush3.bf16.msra.mxu1 %v13923_v36  ;;  %v5712_v11 = vmul.f32 %v5696_v16, %v13900_v52 }
 0xf35   : > { %v8201_v27 = vpop.eup %8200  ;;  %v4815_v23 = vmul.f32 %v8199_v51, %v4769_v1  ;;  %7408 = vmatprep.subr.bf16.mxu1 %v13926_v24  ;;  %v5225_v42 = vpop.xlane.xlu0 %5224  ;;  %v4846_v47 = vmul.f32 %v8195_v56, %v4830_v8  ;;  %v5726_v1 = vadd.f32 %v5710_v49, %v13902_v57  ;;  %v5725_v56 = vadd.f32 %v5709_v34, %v13902_v57 }
 0xf36   : > { %v5271_v6 = vmul.f32 0.015625, %v5225_v42  ;;  %v8203_v18 = vpop.eup %8202  ;;  %v5695_v21 = vmul.f32 %v8201_v27, %v13928_v40  ;;  %v13933_v27 = vld [vmem:[#allocation92_spill] sm:$0xff] }
 0xf37   : > { %v4831_v29 = vsub.f32 2.0, %v4815_v23  ;;  %7361 = vmatmul.mubr.bf16.gmra.mrb[104].mxu1 %v3889_v22  ;;  %v5697_v61 = vmul.f32 %v8203_v18, %v13932_v13  ;;  %v13934_v22 = vld [vmem:[#allocation58_spill] sm:$0xff] }
 0xf38   : > { %v8205_v58 = vpop.eup %8204  ;;  %v5287_v62 = vadd.f32 1e-05, %v5271_v6  ;;  %7364 = vmatprep.mubr.bf16.mxu1 %v3890_v59  ;;  %7409 = vmatpush3.bf16.msra.mxu1 %v13926_v24  ;;  %v5711_v49 = vmul.f32 %v5695_v21, %v13900_v52  ;;  %v5746_v6 = vpack.c.bf16 %v5726_v1, %v5725_v56  ;;  %v13937_v21 = vld [vmem:[#allocation62_spill] sm:$0xff] }
 0xf39   : > { %v8207_v26 = vpop.eup %8206  ;;  %v4847_v35 = vmul.f32 %v8199_v51, %v4831_v29  ;;  %v4816_v20 = vmul.f32 %v8205_v58, %v4771_v5  ;;  %7410 = vmatprep.subr.bf16.mxu1 %v13929_v10  ;;  %v5228_v41 = vpop.xlane.xlu0 %5227  ;;  %v4862_v5 = vmul.f32 %v12246_v32, %v4846_v47  ;;  %v5728_v32 = vadd.f32 %v5712_v11, %v13902_v57 }
 0xf3a   : > { %v12499_v38 = vpop.eup %8208  ;;  %v5272_v28 = vmul.f32 0.015625, %v5228_v41  ;;  %8216 = vrsqrt.f32 %v5287_v62  ;;  %v5698_v17 = vmul.f32 %v8207_v26, %v13933_v27  ;;  %v13936_v62 = vld [vmem:[#allocation99_spill] sm:$0xff] }
 0xf3b   : > { %v8211_v30 = vpop.eup %8210  ;;  %v4832_v8 = vsub.f32 2.0, %v4816_v20  ;;  %v4863_v51 = vmul.f32 %v12255_v0, %v4847_v35  ;;  %v5713_v0 = vmul.f32 %v5697_v61, %v13900_v52 }
 0xf3c   : > { %v8213_v39 = vpop.eup %8212  ;;  %v5288_v60 = vadd.f32 1e-05, %v5272_v28  ;;  %7411 = vmatpush3.bf16.msra.mxu1 %v13929_v10  ;;  %v5699_v16 = vmul.f32 %v8211_v30, %v13935_v7  ;;  %v5714_v29 = vmul.f32 %v5698_v17, %v13900_v52  ;;  %v13941_v17 = vld [vmem:[#allocation101_spill] sm:$0xff] }
 0xf3d   : > { %v8215_v23 = vpop.eup %8214  ;;  %v4817_v42 = vmul.f32 %v8213_v39, %v4773_v54  ;;  %7412 = vmatprep.subr.bf16.mxu1 %v13934_v22  ;;  %v5231_v34 = vpop.xlane.xlu0 %5230  ;;  %v4878_v59 = vpack.c.bf16 %v4863_v51, %v4862_v5  ;;  %v4848_v18 = vmul.f32 %v8205_v58, %v4832_v8  ;;  %v5727_v54 = vadd.f32 %v5711_v49, %v13902_v57  ;;  %v13939_v8 = vld [vmem:[#allocation123_spill] sm:$0xff] }
 0xf3e   : > { %8218 = vrsqrt.f32 %v5288_v60  ;;  %4796 = vadd.xlane.f32.xlu0 %v12499_v38  ;;  %v5700_v1 = vmul.f32 %v8215_v23, %v13936_v62  ;;  %v5729_v58 = vadd.f32 %v5713_v0, %v13902_v57  ;;  %v5715_v20 = vmul.f32 %v5699_v16, %v13900_v52  ;;  %v13942_v0 = vld [vmem:[#allocation18_spill] sm:$0xff] }
 0xf3f   : > { %v4833_v47 = vsub.f32 2.0, %v4817_v42  ;;  %7365 = vmatmul.mubr.bf16.gmra.mrb[108].mxu1 %v3891_v48  ;;  %v5747_v35 = vpack.c.bf16 %v5728_v32, %v5727_v54  ;;  %v4864_v41 = vmul.f32 %v12263_v44, %v4848_v18  ;;  %v5730_v56 = vadd.f32 %v5714_v29, %v13902_v57 }
 0xf40   : > { %5789 = vrot.lane.b32.xlu1 %v5746_v6, %s8549_s27  ;;  %7413 = vmatpush3.bf16.msra.mxu1 %v13934_v22  ;;  %v5716_v28 = vmul.f32 %v5700_v1, %v13900_v52  ;;  %v5731_v61 = vadd.f32 %v5715_v20, %v13902_v57  ;;  %v5653_v51 = vmul.f32 0.015625, %v12424_v31  ;;  %v5273_v32 = vmul.f32 0.015625, %v5231_v34 }
 0xf41   : > { %v4849_v40 = vmul.f32 %v8213_v39, %v4833_v47  ;;  %7416 = vmatprep.mubr.bf16.mxu1 %v4878_v59  ;;  %7414 = vmatprep.subr.bf16.mxu1 %v13937_v21  ;;  %v5234_v26 = vpop.xlane.xlu0 %5233  ;;  %v5748_v13 = vpack.c.bf16 %v5730_v56, %v5729_v58  ;;  %v13940_v39 = vld [vmem:[#allocation120_spill] sm:$0xff] }
 0xf42   : > { %v5732_v5 = vadd.f32 %v5716_v28, %v13902_v57  ;;  %v5274_v42 = vmul.f32 0.015625, %v5234_v26  ;;  %v5669_v6 = vadd.f32 1e-05, %v5653_v51  ;;  %v5289_v47 = vadd.f32 1e-05, %v5273_v32  ;;  %v13944_v51 = vld [vmem:[#allocation121_spill] sm:$0xff] }
 0xf43   : > { %v4865_v15 = vmul.f32 %v13938_v19, %v4849_v40 }
 0xf44   : > { %5791 = vrot.lane.b32.xlu1 %v5747_v35, %s8549_s27  ;;  %7415 = vmatpush3.bf16.msra.mxu1 %v13937_v21  ;;  %v8217_v45 = vpop.eup %8216  ;;  %v5749_v27 = vpack.c.bf16 %v5732_v5, %v5731_v61  ;;  %v5290_v16 = vadd.f32 1e-05, %v5274_v42  ;;  %8220 = vrsqrt.f32 %v5669_v6  ;;  %v13943_v61 = vld [vmem:[#allocation22_spill] sm:$0xff] }
 0xf45   : > { %v4879_v25 = vpack.c.bf16 %v4865_v15, %v4864_v41  ;;  %v5237_v11 = vpop.xlane.xlu0 %5236  ;;  %v5319_v44 = vmul.f32 %v8217_v45, %v13939_v8  ;;  %v13946_v6 = vld [vmem:[#allocation78_spill] sm:$0xff] }
 0xf46   : > { %v5275_v54 = vmul.f32 0.015625, %v5237_v11  ;;  %8222 = vrsqrt.f32 %v5290_v16 }
 0xf47   : > { %7417 = vmatmul.mubr.bf16.vlgmr.msra.gmra.mrb[112].mxu1 %v4879_v25  ;;  %v5335_v48 = vmul.f32 %v5319_v44, %v13941_v17  ;;  %8224 = vrsqrt.f32 %v5289_v47 }
 0xf48   : > { %v8219_v30 = vpop.eup %8218  ;;  %5793 = vrot.lane.b32.xlu1 %v5748_v13, %s8549_s27  ;;  %v5291_v34 = vadd.f32 1e-05, %v5275_v54 }
 0xf49   : > { %v5320_v60 = vmul.f32 %v8219_v30, %v13940_v39  ;;  %v5243_v49 = vpop.xlane.xlu0 %5242  ;;  %v5351_v18 = vadd.f32 %v5335_v48, %v13942_v0 }
 0xf4a   : > { %v5277_v26 = vmul.f32 0.015625, %v5243_v49 }
 0xf4b   : > { %v5336_v23 = vmul.f32 %v5320_v60, %v13941_v17 }
 0xf4c   : > { %5795 = vrot.lane.b32.xlu1 %v5749_v27, %s8549_s27  ;;  %v5293_v41 = vadd.f32 1e-05, %v5277_v26  ;;  %v13948_v26 = vld [vmem:[#allocation63_spill] sm:$0xff] }
 0xf4d   : > { %v5249_v59 = vpop.xlane.xlu0 %5248  ;;  %v5352_v7 = vadd.f32 %v5336_v23, %v13942_v0  ;;  %v13945_v23 = vld [vmem:[#allocation122_spill] sm:$0xff] }
 0xf4e   : > { %v5279_v19 = vmul.f32 0.015625, %v5249_v59  ;;  %v8221_v56 = vpop.eup %8220 }
 0xf4f   : > { %v5735_v62 = vpack.c.bf16 %v5352_v7, %v5351_v18  ;;  %v5701_v30 = vmul.f32 %v8221_v56, %v13943_v61 }
 0xf50   : > { %v8223_v25 = vpop.eup %8222  ;;  %v5295_v11 = vadd.f32 1e-05, %v5279_v19 }
 0xf51   : > { %v5784_v31 = vpop.permute.xlu0 %5783  ;;  %v8225_v44 = vpop.eup %8224  ;;  %v5322_v39 = vmul.f32 %v8223_v25, %v13944_v51  ;;  %v5717_v27 = vmul.f32 %v5701_v30, %v13900_v52 }
 0xf52   : > { %v5824_v29 = vsel %vm1718_vm0, %v5784_v31, 0  ;;  %7520 = vmatprep.subr.msk.bf16.mxu1 %vm1718_vm0, %v5784_v31  ;;  %v5321_v42 = vmul.f32 %v8225_v44, %v13945_v23 }
 0xf53   : > { %v5638_v1 = vpop.xlane.xlu1 %5637  ;;  %7433 = vmatpush3.bf16.xpose.msra.mxu1 %v5824_v29  ;;  %v5338_v18 = vmul.f32 %v5322_v39, %v13941_v17  ;;  %v5733_v54 = vadd.f32 %v5717_v27, %v13902_v57  ;;  %v13947_v29 = vld [vmem:[#allocation66_spill] sm:$0xff] }
 0xf54   : > { %v5654_v40 = vmul.f32 0.015625, %v5638_v1  ;;  %5759 = vrot.lane.b32.xlu0 %v5735_v62, %s8549_s27  ;;  %v13951_v39 = vld [vmem:[#allocation74_spill] sm:$0xff] }
 0xf56   : > { %v5670_v35 = vadd.f32 1e-05, %v5654_v40 }
 0xf57   : > { %v5240_v58 = vpop.xlane.xlu1 %5239 }
 0xf58   : > { %8226 = vrsqrt.f32 %v5670_v35  ;;  %v5276_v20 = vmul.f32 0.015625, %v5240_v58 }
 0xf59   : > { %8228 = vrsqrt.f32 %v5291_v34  ;;  %v5337_v34 = vmul.f32 %v5321_v42, %v13941_v17  ;;  %v13952_v42 = vld [vmem:[#allocation73_spill] sm:$0xff] }
 0xf5a   : > { %v5292_v15 = vadd.f32 1e-05, %v5276_v20 }
 0xf5b   : > { %v5246_v28 = vpop.xlane.xlu1 %5245 }
 0xf5c   : > { %8230 = vrsqrt.f32 %v5292_v15  ;;  %v5278_v45 = vmul.f32 0.015625, %v5246_v28  ;;  %v13949_v28 = vld [vmem:[#allocation68_spill] sm:$0xff] }
 0xf5d   : > { %8232 = vrsqrt.f32 %v5293_v41 }
 0xf5e   : > { %v5294_v13 = vadd.f32 1e-05, %v5278_v45 }
 0xf5f   : > { %v5252_v8 = vpop.xlane.xlu1 %5251 }
 0xf60   : > { %8234 = vrsqrt.f32 %v5294_v13  ;;  %v5280_v5 = vmul.f32 0.015625, %v5252_v8  ;;  %v13950_v13 = vld [vmem:[#allocation65_spill] sm:$0xff] }
 0xf61   : > { %8236 = vrsqrt.f32 %v5295_v11 }
 0xf62   : > { %v8227_v60 = vpop.eup %8226  ;;  %v5296_v49 = vadd.f32 1e-05, %v5280_v5 }
 0xf63   : > { %v5255_v48 = vpop.xlane.xlu1 %5254  ;;  %v5702_v59 = vmul.f32 %v8227_v60, %v13946_v6  ;;  %v8229_v32 = vpop.eup %8228 }
 0xf64   : > { %8238 = vrsqrt.f32 %v5296_v49  ;;  %v5281_v7 = vmul.f32 0.015625, %v5255_v48  ;;  %v5323_v62 = vmul.f32 %v8229_v32, %v13947_v29 }
 0xf65   : > { %v5718_v16 = vmul.f32 %v5702_v59, %v13900_v52  ;;  %v5354_v52 = vadd.f32 %v5338_v18, %v13942_v0 }
 0xf66   : > { %v8231_v31 = vpop.eup %8230  ;;  %v5297_v47 = vadd.f32 1e-05, %v5281_v7  ;;  %v5339_v11 = vmul.f32 %v5323_v62, %v13941_v17 }
 0xf67   : > { %v5258_v1 = vpop.xlane.xlu1 %5257  ;;  %v5734_v40 = vadd.f32 %v5718_v16, %v13902_v57  ;;  %v5324_v35 = vmul.f32 %v8231_v31, %v13948_v26  ;;  %v8233_v58 = vpop.eup %8232  ;;  %v5353_v57 = vadd.f32 %v5337_v34, %v13942_v0 }
 0xf68   : > { %8240 = vrsqrt.f32 %v5297_v47  ;;  %v5282_v20 = vmul.f32 0.015625, %v5258_v1  ;;  %v5325_v45 = vmul.f32 %v8233_v58, %v13949_v28  ;;  %v5355_v27 = vadd.f32 %v5339_v11, %v13942_v0  ;;  %v13953_v47 = vld [vmem:[#allocation87_spill] sm:$0xff] }
 0xf69   : > { %v5750_v41 = vpack.c.bf16 %v5734_v40, %v5733_v54  ;;  %v5340_v19 = vmul.f32 %v5324_v35, %v13941_v17  ;;  %v5736_v8 = vpack.c.bf16 %v5354_v52, %v5353_v57  ;;  %v13954_v35 = vld [vmem:[#allocation80_spill] sm:$0xff] }
 0xf6a   : > { %v8235_v15 = vpop.eup %8234  ;;  %v5298_v56 = vadd.f32 1e-05, %v5282_v20  ;;  %v5341_v23 = vmul.f32 %v5325_v45, %v13941_v17 }
 0xf6b   : > { %v4775_v25 = vpop.xlane.xlu1 %4774  ;;  %5797 = vrot.lane.b32.xlu1 %v5750_v41, %s8549_s27  ;;  %v5326_v61 = vmul.f32 %v8235_v15, %v13950_v13  ;;  %v8237_v30 = vpop.eup %8236  ;;  %v5356_v44 = vadd.f32 %v5340_v19, %v13942_v0 }
 0xf6c   : > { %8242 = vrsqrt.f32 %v5298_v56  ;;  %v5327_v60 = vmul.f32 %v8237_v30, %v13951_v39  ;;  %v5357_v18 = vadd.f32 %v5341_v23, %v13942_v0 }
 0xf6d   : > { %8244 = vrcp.f32 %v4775_v25  ;;  %v5342_v5 = vmul.f32 %v5326_v61, %v13941_v17  ;;  %v5737_v6 = vpack.c.bf16 %v5356_v44, %v5355_v27 }
 0xf6e   : > { %v8239_v51 = vpop.eup %8238  ;;  %v5343_v31 = vmul.f32 %v5327_v60, %v13941_v17 }
 0xf6f   : > { %v4777_v49 = vpop.xlane.xlu1 %4776  ;;  %5761 = vrot.lane.b32.xlu1 %v5736_v8, %s8549_s27  ;;  %v5328_v48 = vmul.f32 %v8239_v51, %v13952_v42  ;;  %v5358_v59 = vadd.f32 %v5342_v5, %v13942_v0 }
 0xf70   : > { %8246 = vrcp.f32 %v4777_v49  ;;  %v5359_v26 = vadd.f32 %v5343_v31, %v13942_v0 }
 0xf71   : > { %v5344_v32 = vmul.f32 %v5328_v48, %v13941_v17  ;;  %v5738_v29 = vpack.c.bf16 %v5358_v59, %v5357_v18 }
 0xf72   : > { %v8241_v7 = vpop.eup %8240 }
 0xf73   : > { %v4779_v16 = vpop.xlane.xlu1 %4778  ;;  %5763 = vrot.lane.b32.xlu1 %v5737_v6, %s8549_s27  ;;  %v5329_v54 = vmul.f32 %v8241_v7, %v13953_v47  ;;  %v5360_v62 = vadd.f32 %v5344_v32, %v13942_v0 }
 0xf74   : > { %8248 = vrcp.f32 %v4779_v16 }
 0xf75   : > { %v5345_v20 = vmul.f32 %v5329_v54, %v13941_v17  ;;  %v5739_v19 = vpack.c.bf16 %v5360_v62, %v5359_v26 }
 0xf76   : > { %v8243_v1 = vpop.eup %8242 }
 0xf77   : > { %v8245_v40 = vpop.eup %8244  ;;  %v5786_v34 = vpop.permute.xlu1 %5785  ;;  %5765 = vrot.lane.b32.xlu1 %v5738_v29, %s8549_s27  ;;  %v5330_v58 = vmul.f32 %v8243_v1, %v13954_v35  ;;  %v5361_v57 = vadd.f32 %v5345_v20, %v13942_v0  ;;  %v13956_v35 = vld [vmem:[#allocation45_spill] sm:$0xff] }
 0xf78   : > { %v4818_v41 = vmul.f32 %v8245_v40, %v4775_v25  ;;  %v5827_v52 = vsel %vm1718_vm0, %v5786_v34, 0  ;;  %7521 = vmatprep.subr.msk.bf16.mxu1 %vm1718_vm0, %v5786_v34 }
 0xf79   : > { %7435 = vmatpush3.bf16.xpose.msra.mxu1 %v5827_v52  ;;  %v5346_v15 = vmul.f32 %v5330_v58, %v13941_v17 }
 0xf7a   : > { %v8247_v56 = vpop.eup %8246  ;;  %v4834_v28 = vsub.f32 2.0, %v4818_v41 }
 0xf7b   : > { %v4819_v45 = vmul.f32 %v8247_v56, %v4777_v49  ;;  %5767 = vrot.lane.b32.xlu1 %v5739_v19, %s8549_s27  ;;  %v5362_v11 = vadd.f32 %v5346_v15, %v13942_v0 }
 0xf7c   : > { %v4850_v13 = vmul.f32 %v8245_v40, %v4834_v28 }
 0xf7d   : > { %v4835_v25 = vsub.f32 2.0, %v4819_v45  ;;  %v5740_v61 = vpack.c.bf16 %v5362_v11, %v5361_v57 }
 0xf7e   : > { %v4866_v8 = vmul.f32 %v12326_v37, %v4850_v13  ;;  %v8249_v39 = vpop.eup %8248 }
 0xf7f   : > { %v4851_v30 = vmul.f32 %v8247_v56, %v4835_v25  ;;  %5769 = vrot.lane.b32.xlu1 %v5740_v61, %s8549_s27  ;;  %v4820_v49 = vmul.f32 %v8249_v39, %v4779_v16 }
 0xf81   : > { %v4867_v44 = vmul.f32 %v12331_v4, %v4851_v30  ;;  %v4836_v23 = vsub.f32 2.0, %v4820_v49 }
 0xf82   : > { %v4781_v5 = vpop.xlane.xlu0 %4780 }
 0xf83   : > { %8250 = vrcp.f32 %v4781_v5  ;;  %v4880_v51 = vpack.c.bf16 %v4867_v44, %v4866_v8  ;;  %v4852_v59 = vmul.f32 %v8249_v39, %v4836_v23 }
 0xf85   : > { %7420 = vmatprep.mubr.bf16.mxu1 %v4880_v51  ;;  %v4868_v37 = vmul.f32 %v12336_v9, %v4852_v59  ;;  %v13955_v9 = vld [vmem:[#allocation104_spill] sm:$0xff] }
 0xf86   : > { %v4785_v60 = vpop.xlane.xlu0 %4784 }
 0xf8a   : > { %v4787_v27 = vpop.xlane.xlu0 %4786 }
 0xf8d   : > { %v8251_v42 = vpop.eup %8250 }
 0xf8e   : > { %v4821_v48 = vmul.f32 %v8251_v42, %v4781_v5  ;;  %v4789_v6 = vpop.xlane.xlu0 %4788 }
 0xf90   : > { %v4837_v32 = vsub.f32 2.0, %v4821_v48 }
 0xf92   : > { %v4853_v7 = vmul.f32 %v8251_v42, %v4837_v32  ;;  %v5261_v18 = vpop.xlane.xlu0 %5260 }
 0xf93   : > { %v5283_v31 = vmul.f32 0.015625, %v5261_v18 }
 0xf94   : > { %v4869_v4 = vmul.f32 %v12353_v33, %v4853_v7 }
 0xf95   : > { %v5299_v47 = vadd.f32 1e-05, %v5283_v31 }
 0xf96   : > { %v5264_v54 = vpop.xlane.xlu0 %5263  ;;  %v4881_v29 = vpack.c.bf16 %v4869_v4, %v4868_v37 }
 0xf97   : > { %8252 = vrsqrt.f32 %v5299_v47  ;;  %v5284_v62 = vmul.f32 0.015625, %v5264_v54 }
 0xf98   : > { %7421 = vmatmul.mubr.bf16.gmra.mrb[116].mxu1 %v4881_v29  ;;  %v13957_v29 = vld [vmem:[#allocation43_spill] sm:$0xff] }
 0xf99   : > { %v5300_v16 = vadd.f32 1e-05, %v5284_v62 }
 0xf9a   : > { %v5788_v1 = vpop.permute.xlu0 %5787 }
 0xf9b   : > { %8254 = vrsqrt.f32 %v5300_v16  ;;  %v5830_v40 = vsel %vm1718_vm0, %v5788_v1, 0  ;;  %7522 = vmatprep.subr.msk.bf16.mxu1 %vm1718_vm0, %v5788_v1 }
 0xf9c   : > { %7437 = vmatpush3.bf16.xpose.msra.mxu1 %v5830_v40  ;;  %8256 = vrcp.f32 %v4789_v6 }
 0xf9d   : > { %8258 = vrcp.f32 %v4785_v60 }
 0xf9e   : > { %8260 = vrcp.f32 %v4787_v27 }
 0xfa1   : > { %v8253_v34 = vpop.eup %8252 }
 0xfa2   : > { %v5331_v33 = vmul.f32 %v8253_v34, %v13955_v9 }
 0xfa4   : > { %v5347_v20 = vmul.f32 %v5331_v33, %v13941_v17  ;;  %v13958_v33 = vld [vmem:[#allocation48_spill] sm:$0xff] }
 0xfa5   : > { %v8255_v26 = vpop.eup %8254 }
 0xfa6   : > { %v5332_v58 = vmul.f32 %v8255_v26, %v13956_v35  ;;  %v8257_v19 = vpop.eup %8256  ;;  %v5363_v15 = vadd.f32 %v5347_v20, %v13942_v0 }
 0xfa7   : > { %v8259_v28 = vpop.eup %8258  ;;  %v4825_v13 = vmul.f32 %v8257_v19, %v4789_v6 }
 0xfa8   : > { %v4783_v41 = vpop.xlane.xlu1 %4782  ;;  %v5348_v52 = vmul.f32 %v5332_v58, %v13941_v17  ;;  %v8261_v45 = vpop.eup %8260  ;;  %v4823_v61 = vmul.f32 %v8259_v28, %v4785_v60 }
 0xfa9   : > { %8262 = vrcp.f32 %v4783_v41  ;;  %v4824_v30 = vmul.f32 %v8261_v45, %v4787_v27  ;;  %v4841_v5 = vsub.f32 2.0, %v4825_v13 }
 0xfaa   : > { %v5364_v56 = vadd.f32 %v5348_v52, %v13942_v0  ;;  %v4839_v39 = vsub.f32 2.0, %v4823_v61 }
 0xfab   : > { %v4840_v23 = vsub.f32 2.0, %v4824_v30  ;;  %v4857_v32 = vmul.f32 %v8257_v19, %v4841_v5 }
 0xfac   : > { %v5267_v57 = vpop.xlane.xlu1 %5266  ;;  %v5741_v11 = vpack.c.bf16 %v5364_v56, %v5363_v15  ;;  %v4855_v7 = vmul.f32 %v8259_v28, %v4839_v39 }
 0xfad   : > { %v5285_v25 = vmul.f32 0.015625, %v5267_v57  ;;  %v4856_v60 = vmul.f32 %v8261_v45, %v4840_v23  ;;  %v4873_v27 = vmul.f32 %v12367_v43, %v4857_v32 }
 0xfae   : > { %5771 = vrot.lane.b32.xlu0 %v5741_v11, %s8549_s27  ;;  %v4871_v4 = vmul.f32 %v12357_v55, %v4855_v7 }
 0xfaf   : > { %v5301_v8 = vadd.f32 1e-05, %v5285_v25  ;;  %v4872_v54 = vmul.f32 %v12363_v46, %v4856_v60 }
 0xfb0   : > { %v5270_v44 = vpop.xlane.xlu1 %5269 }
 0xfb1   : > { %8264 = vrsqrt.f32 %v5301_v8  ;;  %v5286_v51 = vmul.f32 0.015625, %v5270_v44  ;;  %v4883_v40 = vpack.c.bf16 %v4873_v27, %v4872_v54 }
 0xfb3   : > { %v8263_v49 = vpop.eup %8262  ;;  %v5302_v42 = vadd.f32 1e-05, %v5286_v51 }
 0xfb4   : > { %v4822_v48 = vmul.f32 %v8263_v49, %v4783_v41  ;;  %v4791_v59 = vpop.xlane.xlu1 %4790 }
 0xfb5   : > { %8266 = vrsqrt.f32 %v5302_v42 }
 0xfb6   : > { %v4838_v6 = vsub.f32 2.0, %v4822_v48  ;;  %8268 = vrcp.f32 %v4791_v59 }
 0xfb8   : > { %v4854_v18 = vmul.f32 %v8263_v49, %v4838_v6  ;;  %v4793_v31 = vpop.xlane.xlu1 %4792 }
 0xfb9   : > { %8270 = vrcp.f32 %v4793_v31 }
 0xfba   : > { %v4870_v37 = vmul.f32 %v12403_v63, %v4854_v18 }
 0xfbb   : > { %v8265_v47 = vpop.eup %8264 }
 0xfbc   : > { %v5333_v62 = vmul.f32 %v8265_v47, %v13957_v29  ;;  %v4795_v16 = vpop.xlane.xlu1 %4794  ;;  %v4882_v1 = vpack.c.bf16 %v4871_v4, %v4870_v37 }
 0xfbd   : > { %8272 = vrcp.f32 %v4795_v16 }
 0xfbe   : > { %7424 = vmatprep.mubr.bf16.mxu1 %v4882_v1  ;;  %v5349_v43 = vmul.f32 %v5333_v62, %v13941_v17 }
 0xfbf   : > { %v8267_v34 = vpop.eup %8266  ;;  %7425 = vmatmul.mubr.bf16.gmra.mrb[120].mxu1 %v4883_v40 }
 0xfc0   : > { %v8269_v9 = vpop.eup %8268  ;;  %v5334_v26 = vmul.f32 %v8267_v34, %v13958_v33  ;;  %v5790_v35 = vpop.permute.xlu1 %5789  ;;  %v5365_v19 = vadd.f32 %v5349_v43, %v13942_v0 }
 0xfc1   : > { %v4826_v63 = vmul.f32 %v8269_v9, %v4791_v59  ;;  %v5833_v55 = vsel %vm1718_vm0, %v5790_v35, 0  ;;  %7523 = vmatprep.subr.msk.bf16.mxu1 %vm1718_vm0, %v5790_v35 }
 0xfc2   : > { %7439 = vmatpush3.bf16.xpose.msra.mxu1 %v5833_v55  ;;  %v5350_v46 = vmul.f32 %v5334_v26, %v13941_v17 }
 0xfc3   : > { %v8271_v58 = vpop.eup %8270  ;;  %v4842_v20 = vsub.f32 2.0, %v4826_v63 }
 0xfc4   : > { %v4827_v41 = vmul.f32 %v8271_v58, %v4793_v31  ;;  %v5792_v52 = vpop.permute.xlu1 %5791  ;;  %v5366_v15 = vadd.f32 %v5350_v46, %v13942_v0 }
 0xfc5   : > { %7524 = vmatprep.subr.msk.bf16.mxu1 %vm1718_vm0, %v5792_v52  ;;  %v4858_v56 = vmul.f32 %v8269_v9, %v4842_v20  ;;  %v5836_v11 = vsel %vm1718_vm0, %v5792_v52, 0 }
 0xfc6   : > { %v4843_v28 = vsub.f32 2.0, %v4827_v41  ;;  %v5742_v45 = vpack.c.bf16 %v5366_v15, %v5365_v19 }
 0xfc7   : > { %v4874_v13 = vmul.f32 %v12446_v53, %v4858_v56  ;;  %v8273_v30 = vpop.eup %8272 }
 0xfc8   : > { %v4859_v57 = vmul.f32 %v8271_v58, %v4843_v28  ;;  %5773 = vrot.lane.b32.xlu1 %v5742_v45, %s8549_s27  ;;  %v5794_v17 = vpop.permute.xlu1 %5793  ;;  %v4828_v8 = vmul.f32 %v8273_v30, %v4795_v16 }
 0xfc9   : > { %v5839_v44 = vsel %vm1718_vm0, %v5794_v17, 0 }
 0xfca   : > { %7441 = vmatpush3.bf16.xpose.msra.mxu1 %v5836_v11  ;;  %v4875_v25 = vmul.f32 %v12460_v14, %v4859_v57  ;;  %v4844_v51 = vsub.f32 2.0, %v4828_v8 }
 0xfcb   : > { %7525 = vmatprep.subr.msk.bf16.mxu1 %vm1718_vm0, %v5794_v17  ;;  %v4797_v61 = vpop.xlane.xlu0 %4796 }
 0xfcc   : > { %8274 = vrcp.f32 %v4797_v61  ;;  %v4884_v0 = vpack.c.bf16 %v4875_v25, %v4874_v13  ;;  %v5796_v5 = vpop.permute.xlu1 %5795  ;;  %v4860_v53 = vmul.f32 %v8273_v30, %v4844_v51 }
 0xfcd   : > { %v5842_v14 = vsel %vm1718_vm0, %v5796_v5, 0 }
 0xfce   : > { %7428 = vmatprep.mubr.bf16.mxu1 %v4884_v0  ;;  %v4876_v59 = vmul.f32 %v12469_v2, %v4860_v53 }
 0xfcf   : > { %v5760_v6 = vpop.permute.xlu0 %5759 }
 0xfd2   : > { %7443 = vmatpush3.bf16.xpose.msra.mxu1 %v5839_v44 }
 0xfd3   : > { %7526 = vmatprep.subr.msk.bf16.mxu1 %vm1718_vm0, %v5796_v5 }
 0xfd6   : > { %v8275_v39 = vpop.eup %8274 }
 0xfd7   : > { %v4829_v49 = vmul.f32 %v8275_v39, %v4797_v61 }
 0xfd9   : > { %v4845_v23 = vsub.f32 2.0, %v4829_v49 }
 0xfda   : > { %7445 = vmatpush3.bf16.xpose.msra.mxu1 %v5842_v14 }
 0xfdb   : > { %v4861_v42 = vmul.f32 %v8275_v39, %v4845_v23 }
 0xfdd   : > { %v5798_v48 = vpop.permute.xlu1 %5797  ;;  %v4877_v32 = vmul.f32 %v12499_v38, %v4861_v42 }
 0xfde   : > { %7527 = vmatprep.subr.msk.bf16.mxu1 %vm1718_vm0, %v5798_v48  ;;  %v5845_v60 = vsel %vm1718_vm0, %v5798_v48, 0 }
 0xfdf   : > { %v4885_v7 = vpack.c.bf16 %v4877_v32, %v4876_v59 }
 0xfe1   : > { %v5762_v18 = vpop.permute.xlu1 %5761  ;;  %7429 = vmatmul.mubr.bf16.gmra.mrb[124].mxu1 %v4885_v7 }
 0xfe2   : > { %7447 = vmatpush3.bf16.xpose.msra.mxu1 %v5845_v60  ;;  %7448 = vmatprep.mubr.msk.bf16.mxu1 %vm1718_vm0, %v5760_v6 }
 0xfe5   : > { %v5764_v31 = vpop.permute.xlu1 %5763 }
 0xfe9   : > { %7449 = vmatmul.mubr.msk.bf16.vlgmr.msra.gmra.mrb[128].mxu1 %vm1718_vm0, %v5762_v18  ;;  %v5766_v27 = vpop.permute.xlu1 %5765 }
 0xfea   : > { %7452 = vmatprep.mubr.msk.bf16.mxu1 %vm1718_vm0, %v5764_v31 }
 0xfed   : > { %v5768_v2 = vpop.permute.xlu1 %5767 }
 0xff1   : > { %7453 = vmatmul.mubr.msk.bf16.gmra.mrb[132].mxu1 %vm1718_vm0, %v5766_v27  ;;  %v5770_v38 = vpop.permute.xlu1 %5769 }
 0xff2   : > { %7456 = vmatprep.mubr.msk.bf16.mxu1 %vm1718_vm0, %v5768_v2 }
 0xff9   : > { %7457 = vmatmul.mubr.msk.bf16.gmra.mrb[136].mxu1 %vm1718_vm0, %v5770_v38 }
 0xffa   : > { %v12630_v37 = vpop.f32.mrb[96].mxu1 }
 0xffb   : > { %v12632_v4 = vpop.f32.mrb[97].mxu1 }
 0xffc   : > { %v12634_v47 = vpop.f32.mrb[98].mxu1 }
 0xffd   : > { %v12638_v29 = vpop.f32.mrb[99].mxu1 }
0x1002   : > { %v12642_v16 = vpop.f32.mrb[100].mxu1 }
0x1003   : > { %v12644_v1 = vpop.f32.mrb[101].mxu1 }
0x1004   : > { %v12646_v40 = vpop.f32.mrb[102].mxu1 }
0x1005   : > { %v12650_v9 = vpop.f32.mrb[103].mxu1 }
0x100a   : > { %v12654_v26 = vpop.f32.mrb[104].mxu1 }
0x100b   : > { %v12656_v35 = vpop.f32.mrb[105].mxu1 }
0x100c   : > { %v12658_v43 = vpop.f32.mrb[106].mxu1 }
0x100d   : > { %v12662_v55 = vpop.f32.mrb[107].mxu1 }
0x1012   : > { %v12666_v58 = vpop.f32.mrb[108].mxu1 }
0x1013   : > { %v12668_v20 = vpop.f32.mrb[109].mxu1 }
0x1014   : > { %v12670_v41 = vpop.f32.mrb[110].mxu1 }
0x1015   : > { %v12674_v19 = vpop.f32.mrb[111].mxu1 }
0x101a   : > { %v12678_v56 = vpop.f32.mrb[112].mxu1 }
0x101b   : > { %v12680_v28 = vpop.f32.mrb[113].mxu1 }
0x101c   : > { %v12682_v45 = vpop.f32.mrb[114].mxu1 }
0x101d   : > { %v12686_v11 = vpop.f32.mrb[115].mxu1 }
0x1020   : > { %v5772_v13 = vpop.permute.xlu0 %5771 }
0x1021   : > { %7460 = vmatprep.mubr.msk.bf16.mxu1 %vm1718_vm0, %v5772_v13 }
0x103a   : > { %v5774_v25 = vpop.permute.xlu1 %5773 }
0x103b   : > { %7461 = vmatmul.mubr.msk.bf16.gmra.mrb[140].mxu1 %vm1718_vm0, %v5774_v25 }
0x106b   : > { %v12692_v61 = vpop.f32.mrb[116].mxu1 }
0x106c   : > { %v12694_v0 = vpop.f32.mrb[117].mxu1 }
0x106d   : > { %v12696_v30 = vpop.f32.mrb[118].mxu1 }
0x106e   : > { %v12700_v44 = vpop.f32.mrb[119].mxu1 }
0x1092   : > { %v12704_v51 = vpop.f32.mrb[120].mxu1 }
0x1093   : > { %13959 = vst [vmem:[#allocation39_spill] sm:$0xff] %v12704_v51  ;;  %v12706_v39 = vpop.f32.mrb[121].mxu1 }
0x1094   : > { %v12708_v49 = vpop.f32.mrb[122].mxu1 }
0x1095   : > { %13960 = vst [vmem:[#allocation97_spill] sm:$0xff] %v12708_v49  ;;  %v12712_v23 = vpop.f32.mrb[123].mxu1 }
0x10b4   : > { %v12716_v42 = vpop.f32.mrb[124].mxu1 }
0x10b5   : > { %13961 = vst [vmem:[#allocation106_spill] sm:$0xff] %v12716_v42  ;;  %v12718_v48 = vpop.f32.mrb[125].mxu1 }
0x10b6   : > { %13962 = vst [vmem:[#allocation107_spill] sm:$0xff] %v12718_v48  ;;  %v12720_v59 = vpop.f32.mrb[126].mxu1 }
0x10b7   : > { %13963 = vst [vmem:[#allocation116_spill] sm:$0xff] %v12720_v59  ;;  %v12724_v7 = vpop.f32.mrb[127].mxu1 }
0x10b8   : > { %13964 = vst [vmem:[#allocation124_spill] sm:$0xff] %v12724_v7 }
0x10bc   : > { %v7450_v60 = vpop.f32.mrb[128].mxu1 }
0x10bd   : > { %v5881_v18 = vpop.f32.mrb[129].mxu1  ;;  %v5946_v25 = vsel %vm2389_vm1, %v7450_v60, -1e+30 }
0x10be   : > { %v5944_v27 = vsel %vm2389_vm1, %v5881_v18, -1e+30  ;;  %v7451_v2 = vpop.f32.mrb[130].mxu1 }
0x10bf   : > { %5960 = vmax.xlane.f32.xlu0 %v5944_v27  ;;  %v5884_v38 = vpop.f32.mrb[131].mxu1  ;;  %v5947_v6 = vsel %vm2389_vm1, %v7451_v2, -1e+30 }
0x10c0   : > { %v5945_v13 = vsel %vm2389_vm1, %v5884_v38, -1e+30 }
0x10c1   : > { %5962 = vmax.xlane.f32.xlu1 %v5945_v13 }
0x10c3   : > { %5964 = vmax.xlane.f32.xlu0 %v5946_v25 }
0x10c4   : > { %v7454_v32 = vpop.f32.mrb[132].mxu1 }
0x10c5   : > { %v5897_v53 = vpop.f32.mrb[133].mxu1  ;;  %v12743_v38 = vsel %vm2389_vm1, %v7454_v32, -1e+30 }
0x10c6   : > { %v12738_v14 = vsel %vm2389_vm1, %v5897_v53, -1e+30  ;;  %v7455_v18 = vpop.f32.mrb[134].mxu1 }
0x10c7   : > { %5966 = vmax.xlane.f32.xlu0 %v5947_v6  ;;  %5968 = vmax.xlane.f32.xlu1 %v12738_v14  ;;  %v5900_v8 = vpop.f32.mrb[135].mxu1  ;;  %v12753_v5 = vsel %vm2389_vm1, %v7455_v18, -1e+30 }
0x10c8   : > { %v12747_v60 = vsel %vm2389_vm1, %v5900_v8, -1e+30 }
0x10cb   : > { %5972 = vmax.xlane.f32.xlu1 %v12743_v38  ;;  %5970 = vmax.xlane.f32.xlu0 %v12747_v60 }
0x10cc   : > { %v7458_v2 = vpop.f32.mrb[136].mxu1 }
0x10cd   : > { %v5913_v53 = vpop.f32.mrb[137].mxu1  ;;  %v12763_v17 = vsel %vm2389_vm1, %v7458_v2, -1e+30 }
0x10ce   : > { %v12757_v57 = vsel %vm2389_vm1, %v5913_v53, -1e+30  ;;  %v7459_v32 = vpop.f32.mrb[138].mxu1 }
0x10cf   : > { %5974 = vmax.xlane.f32.xlu0 %v12753_v5  ;;  %5976 = vmax.xlane.f32.xlu1 %v12757_v57  ;;  %v5916_v8 = vpop.f32.mrb[139].mxu1  ;;  %v12773_v18 = vsel %vm2389_vm1, %v7459_v32, -1e+30 }
0x10d0   : > { %v12767_v33 = vsel %vm2389_vm1, %v5916_v8, -1e+30 }
0x10d3   : > { %5980 = vmax.xlane.f32.xlu1 %v12763_v17  ;;  %5978 = vmax.xlane.f32.xlu0 %v12767_v33 }
0x10d7   : > { %5982 = vmax.xlane.f32.xlu0 %v12773_v18 }
0x110e   : > { %v7462_v53 = vpop.f32.mrb[140].mxu1 }
0x110f   : > { %v5929_v54 = vpop.f32.mrb[141].mxu1  ;;  %v12788_v32 = vsel %vm2389_vm1, %v7462_v53, -1e+30 }
0x1110   : > { %v12778_v2 = vsel %vm2389_vm1, %v5929_v54, -1e+30  ;;  %v7463_v52 = vpop.f32.mrb[142].mxu1 }
0x1111   : > { %5984 = vmax.xlane.f32.xlu1 %v12778_v2  ;;  %v5932_v8 = vpop.f32.mrb[143].mxu1  ;;  %v12793_v54 = vsel %vm2389_vm1, %v7463_v52, -1e+30 }
0x1112   : > { %v12783_v15 = vsel %vm2389_vm1, %v5932_v8, -1e+30 }
0x1113   : > { %5986 = vmax.xlane.f32.xlu0 %v12783_v15 }
0x1115   : > { %5988 = vmax.xlane.f32.xlu1 %v12788_v32 }
0x1117   : > { %5990 = vmax.xlane.f32.xlu0 %v12793_v54 }
0x114c   : > { %v5961_v63 = vpop.xlane.xlu0 %5960 }
0x114d   : > { %v5992_v46 = vsub.f32 %v5944_v27, %v5961_v63 }
0x114e   : > { %v5963_v34 = vpop.xlane.xlu1 %5962 }
0x114f   : > { %v6008_v62 = vmul.f32 1.442695, %v5992_v46  ;;  %v5993_v8 = vsub.f32 %v5945_v13, %v5963_v34 }
0x1150   : > { %v5965_v42 = vpop.xlane.xlu0 %5964 }
0x1151   : > { %8276 = vpow2.f32 %v6008_v62  ;;  %v6010_v59 = vmul.f32 1.442695, %v5993_v8  ;;  %v5994_v48 = vsub.f32 %v5946_v25, %v5965_v42 }
0x1153   : > { %8278 = vpow2.f32 %v6010_v59  ;;  %v6012_v53 = vmul.f32 1.442695, %v5994_v48 }
0x1154   : > { %v5967_v7 = vpop.xlane.xlu0 %5966  ;;  %v5969_v63 = vpop.xlane.xlu1 %5968 }
0x1155   : > { %8280 = vpow2.f32 %v6012_v53  ;;  %v5995_v51 = vsub.f32 %v5947_v6, %v5967_v7 }
0x1157   : > { %v6014_v49 = vmul.f32 1.442695, %v5995_v51  ;;  %v5996_v51 = vsub.f32 %v12738_v14, %v5969_v63 }
0x1158   : > { %v5971_v46 = vpop.xlane.xlu0 %5970 }
0x1159   : > { %8282 = vpow2.f32 %v6014_v49  ;;  %v5973_v49 = vpop.xlane.xlu1 %5972  ;;  %v5997_v42 = vsub.f32 %v12747_v60, %v5971_v46  ;;  %v6016_v48 = vmul.f32 1.442695, %v5996_v51 }
0x115a   : > { %v5998_v59 = vsub.f32 %v12743_v38, %v5973_v49 }
0x115b   : > { %v12796_v52 = vpop.eup %8276  ;;  %v6018_v7 = vmul.f32 1.442695, %v5997_v42  ;;  %8284 = vpow2.f32 %v6016_v48 }
0x115c   : > { %6040 = vadd.xlane.f32.xlu1 %v12796_v52  ;;  %v5975_v6 = vpop.xlane.xlu0 %5974 }
0x115d   : > { %v12799_v31 = vpop.eup %8278  ;;  %v5999_v27 = vsub.f32 %v12753_v5, %v5975_v6  ;;  %8286 = vpow2.f32 %v6018_v7  ;;  %v5977_v5 = vpop.xlane.xlu1 %5976 }
0x115e   : > { %6042 = vadd.xlane.f32.xlu0 %v12799_v31  ;;  %v6000_v60 = vsub.f32 %v12757_v57, %v5977_v5 }
0x115f   : > { %v12802_v34 = vpop.eup %8280 }
0x1160   : > { %6044 = vadd.xlane.f32.xlu1 %v12802_v34  ;;  %v5979_v38 = vpop.xlane.xlu0 %5978  ;;  %v6024_v63 = vmul.f32 1.442695, %v6000_v60 }
0x1161   : > { %v5981_v8 = vpop.xlane.xlu1 %5980  ;;  %v6001_v53 = vsub.f32 %v12767_v33, %v5979_v38 }
0x1162   : > { %v6002_v46 = vsub.f32 %v12763_v17, %v5981_v8 }
0x1163   : > { %v12805_v62 = vpop.eup %8282 }
0x1164   : > { %6046 = vadd.xlane.f32.xlu0 %v12805_v62  ;;  %v5983_v51 = vpop.xlane.xlu0 %5982 }
0x1165   : > { %v6003_v49 = vsub.f32 %v12773_v18, %v5983_v51 }
0x1171   : > { %6168 = vrot.lane.b32.xlu1 %v13917_v12, %s8549_s27  ;;  %v6020_v12 = vmul.f32 1.442695, %v5998_v59 }
0x1173   : > { %8288 = vpow2.f32 %v6020_v12 }
0x1175   : > { %6172 = vrot.lane.b32.xlu1 %v13921_v50, %s8549_s27  ;;  %v6022_v50 = vmul.f32 1.442695, %v5999_v27 }
0x1177   : > { %8290 = vpow2.f32 %v6022_v50 }
0x1178   : > { %8292 = vpow2.f32 %v6024_v63 }
0x117a   : > { %6170 = vrot.lane.b32.xlu0 %v13920_v3, %s8549_s27  ;;  %v12818_v3 = vpop.eup %8284 }
0x117b   : > { %v12820_v13 = vpop.eup %8286 }
0x117d   : > { %v12824_v14 = vpop.eup %8288 }
0x1181   : > { %v12827_v25 = vpop.eup %8290 }
0x1182   : > { %v12844_v7 = vpop.eup %8292 }
0x1199   : > { %6048 = vadd.xlane.f32.xlu1 %v12818_v3  ;;  %6050 = vadd.xlane.f32.xlu0 %v12820_v13 }
0x119d   : > { %6052 = vadd.xlane.f32.xlu1 %v12824_v14 }
0x11a0   : > { %v5987_v48 = vpop.xlane.xlu0 %5986 }
0x11a1   : > { %6054 = vadd.xlane.f32.xlu1 %v12827_v25  ;;  %v6005_v33 = vsub.f32 %v12783_v15, %v5987_v48 }
0x11a3   : > { %v6034_v18 = vmul.f32 1.442695, %v6005_v33 }
0x11a4   : > { %v5991_v12 = vpop.xlane.xlu0 %5990 }
0x11a5   : > { %v6007_v27 = vsub.f32 %v12793_v54, %v5991_v12 }
0x11a7   : > { %v6038_v5 = vmul.f32 1.442695, %v6007_v27 }
0x11af   : > { %6174 = vrot.lane.b32.xlu0 %v13923_v36, %s8549_s27  ;;  %v6026_v36 = vmul.f32 1.442695, %v6001_v53 }
0x11b1   : > { %8294 = vpow2.f32 %v6026_v36 }
0x11b2   : > { %6176 = vrot.lane.b32.xlu1 %v13926_v24, %s8549_s27  ;;  %v6028_v24 = vmul.f32 1.442695, %v6002_v46 }
0x11b3   : > { %6178 = vrot.lane.b32.xlu0 %v13929_v10, %s8549_s27  ;;  %v5985_v10 = vpop.xlane.xlu1 %5984 }
0x11b4   : > { %8296 = vpow2.f32 %v6028_v24  ;;  %v6004_v42 = vsub.f32 %v12778_v2, %v5985_v10 }
0x11b6   : > { %v6032_v57 = vmul.f32 1.442695, %v6004_v42 }
0x11b7   : > { %6180 = vrot.lane.b32.xlu0 %v13934_v22, %s8549_s27  ;;  %v6030_v22 = vmul.f32 1.442695, %v6003_v49  ;;  %v5989_v59 = vpop.xlane.xlu1 %5988 }
0x11b8   : > { %v6006_v6 = vsub.f32 %v12788_v32, %v5989_v59 }
0x11b9   : > { %8298 = vpow2.f32 %v6030_v22 }
0x11ba   : > { %8300 = vpow2.f32 %v6032_v57  ;;  %v6036_v15 = vmul.f32 1.442695, %v6006_v6 }
0x11bb   : > { %v12846_v17 = vpop.eup %8294  ;;  %8302 = vpow2.f32 %v6034_v18 }
0x11bc   : > { %8304 = vpow2.f32 %v6036_v15 }
0x11bd   : > { %8306 = vpow2.f32 %v6038_v5 }
0x11be   : > { %v12851_v2 = vpop.eup %8296 }
0x11c3   : > { %v12855_v50 = vpop.eup %8298 }
0x11c4   : > { %v12858_v38 = vpop.eup %8300 }
0x11c5   : > { %v12861_v32 = vpop.eup %8302 }
0x11c6   : > { %v12864_v60 = vpop.eup %8304 }
0x11c7   : > { %v12867_v53 = vpop.eup %8306 }
0x11d6   : > { %6056 = vadd.xlane.f32.xlu1 %v12844_v7  ;;  %6058 = vadd.xlane.f32.xlu0 %v12846_v17 }
0x11da   : > { %6060 = vadd.xlane.f32.xlu1 %v12851_v2 }
0x11de   : > { %6062 = vadd.xlane.f32.xlu1 %v12855_v50 }
0x11e2   : > { %6064 = vadd.xlane.f32.xlu1 %v12858_v38 }
0x11e6   : > { %6066 = vadd.xlane.f32.xlu1 %v12861_v32 }
0x11e9   : > { %v6041_v8 = vpop.xlane.xlu1 %6040 }
0x11ea   : > { %8308 = vrcp.f32 %v6041_v8  ;;  %6068 = vadd.xlane.f32.xlu1 %v12864_v60 }
0x11eb   : > { %v6043_v54 = vpop.xlane.xlu0 %6042 }
0x11ec   : > { %8310 = vrcp.f32 %v6043_v54  ;;  %6182 = vrot.lane.b32.xlu0 %v13937_v21, %s8549_s27 }
0x11ed   : > { %v6045_v63 = vpop.xlane.xlu1 %6044 }
0x11ee   : > { %8312 = vrcp.f32 %v6045_v63  ;;  %6070 = vadd.xlane.f32.xlu1 %v12867_v53 }
0x11f1   : > { %v6169_v46 = vpop.permute.xlu1 %6168  ;;  %v6047_v36 = vpop.xlane.xlu0 %6046 }
0x11f2   : > { %7464 = vmatprep.subr.bf16.mxu0 %v6169_v46  ;;  %8314 = vrcp.f32 %v6047_v36 }
0x11f3   : > { %7465 = vmatpush3.bf16.msra.mxu0 %v6169_v46 }
0x11f4   : > { %v8309_v51 = vpop.eup %8308 }
0x11f5   : > { %v6088_v24 = vmul.f32 %v8309_v51, %v6041_v8  ;;  %v6171_v10 = vpop.permute.xlu0 %6170  ;;  %v6173_v57 = vpop.permute.xlu1 %6172  ;;  %v13966_v8 = vpack.c.bf16 %v12638_v29, %v12632_v4  ;;  %v13968_v4 = vpack.c.bf16 %v12662_v55, %v12656_v35  ;;  %v13969_v29 = vpack.c.bf16 %v12658_v43, %v12654_v26 }
0x11f6   : > { %v8311_v49 = vpop.eup %8310  ;;  %7466 = vmatprep.subr.bf16.mxu0 %v6171_v10 }
0x11f7   : > { %v6104_v22 = vsub.f32 2.0, %v6088_v24  ;;  %v6089_v42 = vmul.f32 %v8311_v49, %v6043_v54  ;;  %7467 = vmatpush3.bf16.msra.mxu0 %v6171_v10  ;;  %v13967_v24 = vpack.c.bf16 %v12646_v40, %v12642_v16  ;;  %v13970_v16 = vpack.c.bf16 %v12674_v19, %v12668_v20 }
0x11f8   : > { %v8313_v48 = vpop.eup %8312  ;;  %7468 = vmatprep.subr.bf16.mxu0 %v6173_v57  ;;  %v13971_v40 = vpack.c.bf16 %v12670_v41, %v12666_v58 }
0x11f9   : > { %v6120_v21 = vmul.f32 %v8309_v51, %v6104_v22  ;;  %v6105_v33 = vsub.f32 2.0, %v6089_v42  ;;  %v6090_v59 = vmul.f32 %v8313_v48, %v6045_v63 }
0x11fb   : > { %v6121_v18 = vmul.f32 %v8311_v49, %v6105_v33  ;;  %v6106_v6 = vsub.f32 2.0, %v6090_v59  ;;  %7469 = vmatpush3.bf16.msra.mxu0 %v6173_v57  ;;  %v6136_v15 = vmul.f32 %v12796_v52, %v6120_v21 }
0x11fc   : > { %v8315_v12 = vpop.eup %8314 }
0x11fd   : > { %v6137_v27 = vmul.f32 %v12799_v31, %v6121_v18  ;;  %v6091_v5 = vmul.f32 %v8315_v12, %v6047_v36  ;;  %v6122_v46 = vmul.f32 %v8313_v48, %v6106_v6 }
0x11ff   : > { %6305 = vrot.lane.b32.xlu1 %v13966_v8, %s8549_s27  ;;  %v6152_v54 = vpack.c.bf16 %v6137_v27, %v6136_v15  ;;  %v6107_v51 = vsub.f32 2.0, %v6091_v5  ;;  %v6138_v52 = vmul.f32 %v12802_v34, %v6122_v46 }
0x1201   : > { %7480 = vmatprep.mubr.bf16.mxu0 %v6152_v54  ;;  %v6123_v63 = vmul.f32 %v8315_v12, %v6107_v51 }
0x1203   : > { %6311 = vrot.lane.b32.xlu1 %v13967_v24, %s8549_s27  ;;  %v6139_v31 = vmul.f32 %v12805_v62, %v6123_v63 }
0x1205   : > { %v6153_v36 = vpack.c.bf16 %v6139_v31, %v6138_v52 }
0x1207   : > { %6313 = vrot.lane.b32.xlu1 %v13968_v4, %s8549_s27 }
0x120b   : > { %6315 = vrot.lane.b32.xlu1 %v13969_v29, %s8549_s27 }
0x120f   : > { %6317 = vrot.lane.b32.xlu1 %v13970_v16, %s8549_s27 }
0x1213   : > { %6319 = vrot.lane.b32.xlu1 %v13971_v40, %s8549_s27 }
0x1226   : > { %v6049_v34 = vpop.xlane.xlu1 %6048  ;;  %v6051_v62 = vpop.xlane.xlu0 %6050 }
0x1227   : > { %8316 = vrcp.f32 %v6049_v34 }
0x1228   : > { %8318 = vrcp.f32 %v6051_v62 }
0x122a   : > { %v6053_v49 = vpop.xlane.xlu1 %6052  ;;  %v6175_v35 = vpop.permute.xlu0 %6174 }
0x122b   : > { %7470 = vmatprep.subr.bf16.mxu0 %v6175_v35 }
0x122c   : > { %7471 = vmatpush3.bf16.msra.mxu0 %v6175_v35 }
0x122e   : > { %v6055_v55 = vpop.xlane.xlu1 %6054  ;;  %v6179_v10 = vpop.permute.xlu0 %6178 }
0x122f   : > { %8320 = vrcp.f32 %v6055_v55 }
0x1230   : > { %8322 = vrcp.f32 %v6053_v49 }
0x1231   : > { %v8317_v58 = vpop.eup %8316 }
0x1232   : > { %v6177_v26 = vpop.permute.xlu1 %6176  ;;  %v6181_v43 = vpop.permute.xlu0 %6180  ;;  %v6092_v41 = vmul.f32 %v8317_v58, %v6049_v34 }
0x1233   : > { %7472 = vmatprep.subr.bf16.mxu0 %v6177_v26  ;;  %v8319_v20 = vpop.eup %8318 }
0x1234   : > { %7473 = vmatpush3.bf16.msra.mxu0 %v6177_v26  ;;  %v6093_v19 = vmul.f32 %v8319_v20, %v6051_v62  ;;  %v6108_v42 = vsub.f32 2.0, %v6092_v41 }
0x1235   : > { %7474 = vmatprep.subr.bf16.mxu0 %v6179_v10 }
0x1236   : > { %v6109_v48 = vsub.f32 2.0, %v6093_v19  ;;  %v6124_v59 = vmul.f32 %v8317_v58, %v6108_v42 }
0x1238   : > { %7475 = vmatpush3.bf16.msra.mxu0 %v6179_v10  ;;  %v6125_v18 = vmul.f32 %v8319_v20, %v6109_v48  ;;  %v6140_v8 = vmul.f32 %v12818_v3, %v6124_v59 }
0x1239   : > { %7476 = vmatprep.subr.bf16.mxu0 %v6181_v43  ;;  %v8321_v22 = vpop.eup %8320 }
0x123a   : > { %v8323_v57 = vpop.eup %8322  ;;  %v6095_v21 = vmul.f32 %v8321_v22, %v6055_v55  ;;  %v6141_v54 = vmul.f32 %v12820_v13, %v6125_v18 }
0x123b   : > { %v6094_v12 = vmul.f32 %v8323_v57, %v6053_v49 }
0x123c   : > { %7477 = vmatpush3.bf16.msra.mxu0 %v6181_v43  ;;  %v6111_v15 = vsub.f32 2.0, %v6095_v21  ;;  %v6154_v24 = vpack.c.bf16 %v6141_v54, %v6140_v8 }
0x123d   : > { %v6110_v46 = vsub.f32 2.0, %v6094_v12 }
0x123e   : > { %v6127_v51 = vmul.f32 %v8321_v22, %v6111_v15 }
0x123f   : > { %v6126_v52 = vmul.f32 %v8323_v57, %v6110_v46 }
0x1240   : > { %v6143_v40 = vmul.f32 %v12827_v25, %v6127_v51 }
0x1241   : > { %v6142_v13 = vmul.f32 %v12824_v14, %v6126_v52 }
0x1243   : > { %v6155_v26 = vpack.c.bf16 %v6143_v40, %v6142_v13  ;;  %v7753_v13 = vld [vmem:[#allocation7 + $0x14] ss:$8 sps:$4 sm:$0xff]  }
0x1263   : > { %v6057_v33 = vpop.xlane.xlu1 %6056  ;;  %v6059_v6 = vpop.xlane.xlu0 %6058 }
0x1264   : > { %8324 = vrcp.f32 %v6057_v33 }
0x1265   : > { %8326 = vrcp.f32 %v6059_v6 }
0x1267   : > { %v6061_v27 = vpop.xlane.xlu1 %6060  ;;  %v6183_v5 = vpop.permute.xlu0 %6182 }
0x1268   : > { %8328 = vrcp.f32 %v6061_v27  ;;  %7478 = vmatprep.subr.bf16.mxu0 %v6183_v5 }
0x1269   : > { %7479 = vmatpush3.bf16.msra.mxu0 %v6183_v5 }
0x126b   : > { %v6063_v63 = vpop.xlane.xlu1 %6062 }
0x126c   : > { %8330 = vrcp.f32 %v6063_v63  ;;  %7481 = vmatmul.mubr.bf16.vlgmr.msra.gmra.mrb[64].mxu0 %v6153_v36 }
0x126d   : > { %7484 = vmatprep.mubr.bf16.mxu0 %v6154_v24 }
0x126e   : > { %v8325_v31 = vpop.eup %8324 }
0x126f   : > { %v8327_v4 = vpop.eup %8326  ;;  %v6096_v29 = vmul.f32 %v8325_v31, %v6057_v33  ;;  %v6065_v16 = vpop.xlane.xlu1 %6064 }
0x1270   : > { %v6097_v34 = vmul.f32 %v8327_v4, %v6059_v6  ;;  %8332 = vrcp.f32 %v6065_v16 }
0x1271   : > { %v6112_v3 = vsub.f32 2.0, %v6096_v29 }
0x1272   : > { %v8329_v62 = vpop.eup %8328  ;;  %v6113_v49 = vsub.f32 2.0, %v6097_v34  ;;  %v7748_v34 = vld [vmem:[#allocation7] ss:$8 sps:$4 sm:$0xff]  }
0x1273   : > { %v6128_v35 = vmul.f32 %v8325_v31, %v6112_v3  ;;  %v6098_v55 = vmul.f32 %v8329_v62, %v6061_v27  ;;  %v6067_v10 = vpop.xlane.xlu1 %6066  ;;  %v7750_v3 = vld [vmem:[#allocation7 + $0x4] ss:$8 sps:$4 sm:$0xff]  }
0x1274   : > { %v6129_v43 = vmul.f32 %v8327_v4, %v6113_v49  ;;  %8334 = vrcp.f32 %v6067_v10  ;;  %7485 = vmatmul.mubr.bf16.gmra.mrb[68].mxu0 %v6155_v26  ;;  %6601 = vmatprep.subr.bf16.mxu0 %v7750_v3  ;;  %v7759_v49 = vld [vmem:[#allocation7 + $0x34] ss:$8 sps:$4 sm:$0xff]   ;;  %v7768_v26 = vld [vmem:[#allocation7 + $0x64] ss:$8 sps:$4 sm:$0xff]  }
0x1275   : > { %v6114_v36 = vsub.f32 2.0, %v6098_v55  ;;  %v6144_v58 = vmul.f32 %v12844_v7, %v6128_v35  ;;  %6602 = vmatpush1.bf16.msra.mxu0 %v7748_v34  ;;  %v7757_v35 = vld [vmem:[#allocation7 + $0x30] ss:$8 sps:$4 sm:$0xff]   ;;  %v7765_v55 = vld [vmem:[#allocation7 + $0x54] ss:$8 sps:$4 sm:$0xff]  }
0x1276   : > { %v8331_v20 = vpop.eup %8330  ;;  %v6145_v25 = vmul.f32 %v12846_v17, %v6129_v43  ;;  %6603 = vmatprep.subr.bf16.mxu0 %v7753_v13  ;;  %v7766_v43 = vld [vmem:[#allocation7 + $0x60] ss:$8 sps:$4 sm:$0xff]  }
0x1277   : > { %v6099_v41 = vmul.f32 %v8331_v20, %v6063_v63  ;;  %v6069_v19 = vpop.xlane.xlu1 %6068  ;;  %v6130_v14 = vmul.f32 %v8329_v62, %v6114_v36  ;;  %v7754_v62 = vld [vmem:[#allocation7 + $0x20] ss:$8 sps:$4 sm:$0xff]   ;;  %v7771_v36 = vld [vmem:[#allocation7 + $0x74] ss:$8 sps:$4 sm:$0xff]  }
0x1278   : > { %8336 = vrcp.f32 %v6069_v19  ;;  %v6156_v22 = vpack.c.bf16 %v6145_v25, %v6144_v58  ;;  %v7769_v58 = vld [vmem:[#allocation7 + $0x70] ss:$8 sps:$4 sm:$0xff]   ;;  %v7772_v25 = vld [vmem:[#allocation7 + $0x80] ss:$8 sps:$4 sm:$0xff]  }
0x1279   : > { %v6115_v42 = vsub.f32 2.0, %v6099_v41  ;;  %v6146_v18 = vmul.f32 %v12851_v2, %v6130_v14  ;;  %v7777_v41 = vld [vmem:[#allocation7 + $0x94] ss:$8 sps:$4 sm:$0xff]   ;;  %v7778_v14 = vld [vmem:[#allocation7 + $0xa0] ss:$8 sps:$4 sm:$0xff]  }
0x127a   : > { %v8333_v48 = vpop.eup %8332  ;;  %7488 = vmatprep.mubr.bf16.mxu0 %v6156_v22  ;;  %v7780_v22 = vld [vmem:[#allocation7 + $0xa4] ss:$8 sps:$4 sm:$0xff]  }
0x127b   : > { %v6131_v57 = vmul.f32 %v8331_v20, %v6115_v42  ;;  %v6100_v21 = vmul.f32 %v8333_v48, %v6065_v16  ;;  %v6071_v33 = vpop.xlane.xlu1 %6070  ;;  %v7774_v20 = vld [vmem:[#allocation7 + $0x84] ss:$8 sps:$4 sm:$0xff]   ;;  %v7783_v42 = vld [vmem:[#allocation7 + $0xb4] ss:$8 sps:$4 sm:$0xff]  }
0x127c   : > { %8338 = vrcp.f32 %v6071_v33 }
0x127d   : > { %v6116_v59 = vsub.f32 2.0, %v6100_v21  ;;  %v6147_v7 = vmul.f32 %v12855_v50, %v6131_v57  ;;  %v7786_v57 = vld [vmem:[#allocation7 + $0xc4] ss:$8 sps:$4 sm:$0xff]   ;;  %v7784_v21 = vld [vmem:[#allocation7 + $0xc0] ss:$8 sps:$4 sm:$0xff]  }
0x127e   : > { %v8335_v6 = vpop.eup %8334 }
0x127f   : > { %v6101_v12 = vmul.f32 %v8335_v6, %v6067_v10  ;;  %v6157_v17 = vpack.c.bf16 %v6147_v7, %v6146_v18  ;;  %v6132_v15 = vmul.f32 %v8333_v48, %v6116_v59  ;;  %v7763_v10 = vld [vmem:[#allocation7 + $0x50] ss:$8 sps:$4 sm:$0xff]   ;;  %v7792_v18 = vld [vmem:[#allocation7 + $0xe4] ss:$8 sps:$4 sm:$0xff]   ;;  %v7790_v7 = vld [vmem:[#allocation7 + $0xe0] ss:$8 sps:$4 sm:$0xff]  }
0x1280   : > { %v7781_v48 = vld [vmem:[#allocation7 + $0xb0] ss:$8 sps:$4 sm:$0xff]  }
0x1281   : > { %v6117_v27 = vsub.f32 2.0, %v6101_v12  ;;  %7489 = vmatmul.mubr.bf16.gmra.mrb[72].mxu0 %v6157_v17  ;;  %v6148_v51 = vmul.f32 %v12858_v38, %v6132_v15  ;;  %v7751_v38 = vld [vmem:[#allocation7 + $0x10] ss:$8 sps:$4 sm:$0xff]  }
0x1282   : > { %v8337_v5 = vpop.eup %8336  ;;  %6604 = vmatpush1.bf16.msra.mxu0 %v7751_v38  ;;  %v7787_v59 = vld [vmem:[#allocation7 + $0xd0] ss:$8 sps:$4 sm:$0xff]  }
0x1283   : > { %v6133_v8 = vmul.f32 %v8335_v6, %v6117_v27  ;;  %v6102_v54 = vmul.f32 %v8337_v5, %v6069_v19  ;;  %v7775_v19 = vld [vmem:[#allocation7 + $0x90] ss:$8 sps:$4 sm:$0xff]   ;;  %v7795_v6 = vld [vmem:[#allocation7 + $0xf4] ss:$8 sps:$4 sm:$0xff]  }
0x1284   : > { %v7793_v12 = vld [vmem:[#allocation7 + $0xf0] ss:$8 sps:$4 sm:$0xff]  }
0x1285   : > { %v6118_v46 = vsub.f32 2.0, %v6102_v54  ;;  %v6149_v63 = vmul.f32 %v12861_v32, %v6133_v8  ;;  %v7756_v32 = vld [vmem:[#allocation7 + $0x24] ss:$8 sps:$4 sm:$0xff]  }
0x1286   : > { %v8339_v24 = vpop.eup %8338  ;;  %6605 = vmatprep.subr.bf16.mxu0 %v7756_v32 }
0x1287   : > { %v6103_v52 = vmul.f32 %v8339_v24, %v6071_v33  ;;  %v6158_v31 = vpack.c.bf16 %v6149_v63, %v6148_v51  ;;  %v6134_v2 = vmul.f32 %v8337_v5, %v6118_v46  ;;  %6606 = vmatpush1.bf16.msra.mxu0 %v7754_v62  ;;  %v7789_v33 = vld [vmem:[#allocation7 + $0xd4] ss:$8 sps:$4 sm:$0xff]  }
0x1288   : > { %6607 = vmatprep.subr.bf16.mxu0 %v7759_v49  ;;  %v13974_v49 = vpack.c.bf16 %v12686_v11, %v12680_v28 }
0x1289   : > { %v6119_v4 = vsub.f32 2.0, %v6103_v52  ;;  %7492 = vmatprep.mubr.bf16.mxu0 %v6158_v31  ;;  %v6150_v29 = vmul.f32 %v12864_v60, %v6134_v2  ;;  %v7762_v60 = vld [vmem:[#allocation7 + $0x44] ss:$8 sps:$4 sm:$0xff]   ;;  %v13972_v2 = vpack.c.bf16 %v12634_v47, %v12630_v37 }
0x128b   : > { %v6135_v50 = vmul.f32 %v8339_v24, %v6119_v4  ;;  %6608 = vmatpush1.bf16.msra.mxu0 %v7757_v35 }
0x128c   : > { %6609 = vmatprep.subr.bf16.mxu0 %v7762_v60  ;;  %v13975_v60 = vld [vmem:[#allocation103_spill] sm:$0xff] }
0x128d   : > { %v6151_v16 = vmul.f32 %v12867_v53, %v6135_v50  ;;  %v7760_v53 = vld [vmem:[#allocation7 + $0x40] ss:$8 sps:$4 sm:$0xff]  }
0x128f   : > { %v6159_v40 = vpack.c.bf16 %v6151_v16, %v6150_v29  ;;  %6610 = vmatpush1.bf16.msra.mxu0 %v7760_v53  ;;  %v13973_v29 = vpack.c.bf16 %v12650_v9, %v12644_v1  ;;  %v6306_v1 = vpop.permute.xlu1 %6305  ;;  %v13976_v53 = vld [vmem:[#allocation81_spill] sm:$0xff] }
0x1290   : > { %6611 = vmatprep.subr.bf16.mxu0 %v7765_v55  ;;  %v13977_v55 = vpack.c.bf16 %v13975_v60, %v13976_v53 }
0x1291   : > { %7493 = vmatmul.mubr.bf16.gmra.mrb[76].mxu0 %v6159_v40 }
0x1293   : > { %6612 = vmatpush1.bf16.msra.mxu0 %v7763_v10  ;;  %v6347_v10 = vsel %vm1718_vm0, %v13977_v55, %v6306_v1  ;;  %v6746_v55 = vld [vmem:[%s13161_s9] sm:$0x3] }
0x1294   : > { %6613 = vmatprep.subr.bf16.mxu0 %v7768_v26 }
0x1297   : > { %6614 = vmatpush1.bf16.msra.mxu0 %v7766_v43  ;;  %v13978_v43 = vpack.c.bf16 %v12682_v45, %v12678_v56  ;;  %v13984_v56 = vld [vmem:[#allocation102_spill] sm:$0xff] }
0x1298   : > { %6615 = vmatprep.subr.bf16.mxu0 %v7771_v36 }
0x129b   : > { %6616 = vmatpush1.bf16.msra.mxu0 %v7769_v58 }
0x129c   : > { %6617 = vmatprep.subr.bf16.mxu0 %v7774_v20  ;;  %v13979_v20 = vld [vmem:[#allocation37_spill] sm:$0xff] }
0x129f   : > { %6618 = vmatpush1.bf16.msra.mxu0 %v7772_v25  ;;  %v13980_v25 = vld [vmem:[#allocation76_spill] sm:$0xff] }
0x12a0   : > { %6619 = vmatprep.subr.bf16.mxu0 %v7777_v41  ;;  %v13981_v28 = vpack.c.bf16 %v13979_v20, %v13980_v25  ;;  %v8350_v20 = vld [vmem:[%s8786_s26] sm:$0xff] }
0x12a3   : > { %6620 = vmatpush1.bf16.msra.mxu0 %v7775_v19  ;;  %v13982_v19 = vpack.c.bf16 %v12700_v44, %v12694_v0  ;;  %v13987_v0 = vld [vmem:[#allocation30_spill] sm:$0xff]  ;;  %v13988_v44 = vld [vmem:[#allocation36_spill] sm:$0xff] }
0x12a4   : > { %6621 = vmatprep.subr.bf16.mxu0 %v7780_v22 }
0x12a7   : > { %6622 = vmatpush1.bf16.msra.mxu0 %v7778_v14 }
0x12a8   : > { %6623 = vmatprep.subr.bf16.mxu0 %v7783_v42  ;;  %v13983_v42 = vld [vmem:[#allocation114_spill] sm:$0xff] }
0x12a9   : > { %v13985_v45 = vpack.c.bf16 %v13983_v42, %v13984_v56 }
0x12ab   : > { %6624 = vmatpush1.bf16.msra.mxu0 %v7781_v48 }
0x12ac   : > { %6625 = vmatprep.subr.bf16.mxu0 %v7786_v57 }
0x12af   : > { %6626 = vmatpush1.bf16.msra.mxu0 %v7784_v21  ;;  %v13986_v21 = vpack.c.bf16 %v12696_v30, %v12692_v61  ;;  %v13991_v61 = vld [vmem:[#allocation25_spill] sm:$0xff]  ;;  %v13992_v30 = vld [vmem:[#allocation27_spill] sm:$0xff] }
0x12b0   : > { %6627 = vmatprep.subr.bf16.mxu0 %v7789_v33 }
0x12b3   : > { %6628 = vmatpush1.bf16.msra.mxu0 %v7787_v59  ;;  %v6312_v59 = vpop.permute.xlu1 %6311 }
0x12b4   : > { %6629 = vmatprep.subr.bf16.mxu0 %v7792_v18 }
0x12b7   : > { %6630 = vmatpush1.bf16.msra.mxu0 %v7790_v7  ;;  %v13989_v7 = vpack.c.bf16 %v13987_v0, %v13988_v44 }
0x12b8   : > { %6631 = vmatprep.subr.bf16.mxu0 %v7795_v6 }
0x12b9   : > { %v6359_v6 = vsel %vm1718_vm0, %v13989_v7, %v6312_v59  ;;  %v8355_v7 = vld [vmem:[%s8786_s26 + $0x28] sm:$0xff] }
0x12bb   : > { %6632 = vmatpush1.bf16.msra.mxu0 %v7793_v12  ;;  %v13990_v12 = vpack.c.bf16 %v12712_v23, %v12706_v39  ;;  %v13997_v39 = vld [vmem:[#allocation33_spill] sm:$0xff]  ;;  %v13998_v23 = vld [vmem:[#allocation86_spill] sm:$0xff] }
0x133f   : > { %v7482_v17 = vpop.f32.mrb[64].mxu0 }
0x1340   : > { %v6226_v15 = vpop.f32.mrb[65].mxu0 }
0x1341   : > { %v7483_v27 = vpop.f32.mrb[66].mxu0 }
0x1342   : > { %v6290_v5 = vpack.c.bf16 %v7483_v27, %v7482_v17  ;;  %v6229_v8 = vpop.f32.mrb[67].mxu0 }
0x1343   : > { %v6289_v54 = vpack.c.bf16 %v6229_v8, %v6226_v15  ;;  %v6314_v15 = vpop.permute.xlu1 %6313 }
0x1345   : > { %6329 = vrot.lane.b32.xlu0 %v6289_v54, %s8549_s27  ;;  %v13994_v54 = vld [vmem:[#allocation97_spill] sm:$0xff] }
0x1347   : > { %v7486_v46 = vpop.f32.mrb[68].mxu0 }
0x1348   : > { %v6242_v51 = vpop.f32.mrb[69].mxu0 }
0x1349   : > { %6331 = vrot.lane.b32.xlu0 %v6290_v5, %s8549_s27  ;;  %v7487_v63 = vpop.f32.mrb[70].mxu0  ;;  %v13993_v5 = vpack.c.bf16 %v13991_v61, %v13992_v30 }
0x134a   : > { %v6292_v24 = vpack.c.bf16 %v7487_v63, %v7486_v46  ;;  %v6245_v52 = vpop.f32.mrb[71].mxu0  ;;  %v13995_v46 = vld [vmem:[#allocation39_spill] sm:$0xff] }
0x134b   : > { %v6291_v31 = vpack.c.bf16 %v6245_v52, %v6242_v51  ;;  %v6363_v8 = vsel %vm1718_vm0, %v13993_v5, %v6314_v15  ;;  %v13996_v51 = vpack.c.bf16 %v13994_v54, %v13995_v46  ;;  %v8356_v15 = vld [vmem:[%s8786_s26 + $0x30] sm:$0xff]  ;;  %v8357_v5 = vld [vmem:[%s8786_s26 + $0x38] sm:$0xff] }
0x134d   : > { %6307 = vrot.lane.b32.xlu0 %v13972_v2, %s8549_s27 }
0x1351   : > { %6333 = vrot.lane.b32.xlu0 %v6291_v31, %s8549_s27  ;;  %v13999_v31 = vpack.c.bf16 %v13997_v39, %v13998_v23  ;;  %v8359_v39 = vld [vmem:[%s8786_s26 + $0x48] sm:$0xff] }
0x1354   : > { %v7490_v4 = vpop.f32.mrb[72].mxu0 }
0x1355   : > { %v6258_v50 = vpop.f32.mrb[73].mxu0  ;;  %6309 = vrot.lane.b32.xlu0 %v13973_v29, %s8549_s27 }
0x1356   : > { %v7491_v16 = vpop.f32.mrb[74].mxu0 }
0x1357   : > { %v6294_v40 = vpack.c.bf16 %v7491_v16, %v7490_v4  ;;  %v6261_v34 = vpop.f32.mrb[75].mxu0  ;;  %v14000_v4 = vld [vmem:[#allocation124_spill] sm:$0xff] }
0x1358   : > { %v6293_v3 = vpack.c.bf16 %v6261_v34, %v6258_v50  ;;  %v14001_v50 = vld [vmem:[#allocation107_spill] sm:$0xff] }
0x1359   : > { %6335 = vrot.lane.b32.xlu0 %v6292_v24, %s8549_s27  ;;  %v6316_v24 = vpop.permute.xlu1 %6315  ;;  %v14002_v29 = vpack.c.bf16 %v14000_v4, %v14001_v50  ;;  %v8360_v4 = vld [vmem:[%s8786_s26 + $0x50] sm:$0xff] }
0x135a   : > { %v6367_v2 = vsel %vm1718_vm0, %v13999_v31, %v6316_v24 }
0x135d   : > { %6337 = vrot.lane.b32.xlu0 %v6293_v3, %s8549_s27  ;;  %v14003_v3 = vld [vmem:[#allocation96_spill] sm:$0xff] }
0x1361   : > { %6339 = vrot.lane.b32.xlu0 %v6294_v40, %s8549_s27  ;;  %v6318_v40 = vpop.permute.xlu1 %6317 }
0x1364   : > { %v7494_v37 = vpop.f32.mrb[76].mxu0 }
0x1365   : > { %v6274_v47 = vpop.f32.mrb[77].mxu0 }
0x1366   : > { %v7495_v13 = vpop.f32.mrb[78].mxu0 }
0x1367   : > { %v6296_v38 = vpack.c.bf16 %v7495_v13, %v7494_v37  ;;  %v6277_v32 = vpop.f32.mrb[79].mxu0  ;;  %v14004_v37 = vld [vmem:[#allocation115_spill] sm:$0xff] }
0x1368   : > { %v6295_v62 = vpack.c.bf16 %v6277_v32, %v6274_v47  ;;  %v14005_v47 = vpack.c.bf16 %v14003_v3, %v14004_v37  ;;  %v14007_v32 = vld [vmem:[#allocation106_spill] sm:$0xff] }
0x136a   : > { %6341 = vrot.lane.b32.xlu0 %v6295_v62, %s8549_s27  ;;  %v6371_v13 = vsel %vm1718_vm0, %v14005_v47, %v6318_v40  ;;  %v8361_v40 = vld [vmem:[%s8786_s26 + $0x58] sm:$0xff] }
0x136e   : > { %6343 = vrot.lane.b32.xlu0 %v6296_v38, %s8549_s27  ;;  %v14006_v38 = vld [vmem:[#allocation116_spill] sm:$0xff] }
0x136f   : > { %v14008_v62 = vpack.c.bf16 %v14006_v38, %v14007_v32 }
0x13b7   : > { %v6330_v9 = vpop.permute.xlu0 %6329 }
0x13b8   : > { %v6379_v35 = vsel %vm1718_vm0, %v13974_v49, %v6330_v9  ;;  %v6320_v9 = vpop.permute.xlu1 %6319  ;;  %v14009_v49 = vld [vmem:[#allocation42_spill] sm:$0xff] }
0x13b9   : > { %6633 = vmatprep.mubr.bf16.mxu0 %v6379_v35  ;;  %v14010_v35 = vld [vmem:[#allocation19_spill] sm:$0xff] }
0x13ba   : > { %6634 = vmatmul.mubr.bf16.vlgmr.msra.gmra.mrb[80].mxu0 %v6347_v10  ;;  %v14011_v60 = vpack.c.bf16 %v14009_v49, %v14010_v35  ;;  %v14012_v10 = vld [vmem:[#allocation17_spill] sm:$0xff]  ;;  %v8364_v35 = vld [vmem:[%s8786_s26 + $0x70] sm:$0xff] }
0x13bb   : > { %v6332_v26 = vpop.permute.xlu0 %6331 }
0x13bc   : > { %v6383_v36 = vsel %vm1718_vm0, %v13978_v43, %v6332_v26  ;;  %v6375_v53 = vsel %vm1718_vm0, %v14011_v60, %v6320_v9  ;;  %v12996_v26 = vrot.slane %v6746_v55, %v14012_v10  ;;  %v8365_v10 = vld [vmem:[%s8786_s26 + $0x78] sm:$0xff] }
0x13bd   : > { %6643 = vmatprep.mubr.bf16.mxu0 %v6383_v36  ;;  %v14013_v36 = vld [vmem:[#allocation16_spill] sm:$0xff] }
0x13bf   : > { %v6308_v58 = vpop.permute.xlu0 %6307 }
0x13c0   : > { %v6351_v11 = vsel %vm1718_vm0, %v13981_v28, %v6308_v58  ;;  %v12999_v58 = vrot.slane %v6746_v55, %v14013_v36 }
0x13c2   : > { %6644 = vmatmul.mubr.bf16.gmra.mrb[84].mxu0 %v6351_v11  ;;  %v8351_v11 = vld [vmem:[%s8786_s26 + $0x8] sm:$0xff] }
0x13c3   : > { %v6334_v41 = vpop.permute.xlu0 %6333 }
0x13c4   : > { %v6387_v22 = vsel %vm1718_vm0, %v13982_v19, %v6334_v41 }
0x13c5   : > { %6653 = vmatprep.mubr.bf16.mxu0 %v6387_v22 }
0x13c7   : > { %v6310_v14 = vpop.permute.xlu0 %6309 }
0x13c8   : > { %v6355_v48 = vsel %vm1718_vm0, %v13985_v45, %v6310_v14  ;;  %v8352_v14 = vld [vmem:[%s8786_s26 + $0x10] sm:$0xff] }
0x13ca   : > { %6654 = vmatmul.mubr.bf16.gmra.mrb[88].mxu0 %v6355_v48  ;;  %v8353_v48 = vld [vmem:[%s8786_s26 + $0x18] sm:$0xff] }
0x13cb   : > { %v6336_v57 = vpop.permute.xlu0 %6335 }
0x13cc   : > { %v6391_v33 = vsel %vm1718_vm0, %v13986_v21, %v6336_v57 }
0x13cd   : > { %6663 = vmatprep.mubr.bf16.mxu0 %v6391_v33 }
0x13cf   : > { %v6338_v18 = vpop.permute.xlu0 %6337 }
0x13d0   : > { %v6395_v17 = vsel %vm1718_vm0, %v13990_v12, %v6338_v18  ;;  %v8354_v18 = vld [vmem:[%s8786_s26 + $0x20] sm:$0xff] }
0x13d2   : > { %6664 = vmatmul.mubr.bf16.gmra.mrb[92].mxu0 %v6359_v6 }
0x13d3   : > { %6673 = vmatprep.mubr.bf16.mxu0 %v6395_v17  ;;  %v6340_v27 = vpop.permute.xlu0 %6339 }
0x13d4   : > { %v6399_v63 = vsel %vm1718_vm0, %v13996_v51, %v6340_v27 }
0x13da   : > { %6674 = vmatmul.mubr.bf16.gmra.mrb[96].mxu0 %v6363_v8 }
0x13db   : > { %6683 = vmatprep.mubr.bf16.mxu0 %v6399_v63  ;;  %v8358_v63 = vld [vmem:[%s8786_s26 + $0x40] sm:$0xff] }
0x13dc   : > { %v6342_v52 = vpop.permute.xlu0 %6341 }
0x13dd   : > { %v6403_v16 = vsel %vm1718_vm0, %v14002_v29, %v6342_v52 }
0x13e0   : > { %v6344_v34 = vpop.permute.xlu0 %6343 }
0x13e1   : > { %v6407_v1 = vsel %vm1718_vm0, %v14008_v62, %v6344_v34  ;;  %v8363_v62 = vld [vmem:[%s8786_s26 + $0x68] sm:$0xff] }
0x13e2   : > { %6684 = vmatmul.mubr.bf16.gmra.mrb[100].mxu0 %v6367_v2 }
0x13e3   : > { %6693 = vmatprep.mubr.bf16.mxu0 %v6403_v16 }
0x13ea   : > { %6694 = vmatmul.mubr.bf16.gmra.mrb[104].mxu0 %v6371_v13  ;;  %v8362_v13 = vld [vmem:[%s8786_s26 + $0x60] sm:$0xff] }
0x13eb   : > { %6703 = vmatprep.mubr.bf16.mxu0 %v6407_v1 }
0x13f2   : > { %6704 = vmatmul.mubr.bf16.gmra.mrb[108].mxu0 %v6375_v53 }
0x148d   : > { %v6635_v43 = vpop.f32.mrb[80].mxu0 }
0x148e   : > { %v6714_v25 = vadd.f32 %v8350_v20, %v6635_v43  ;;  %v6637_v28 = vpop.f32.mrb[81].mxu0 }
0x148f   : > { %v6715_v41 = vadd.f32 %v8351_v11, %v6637_v28  ;;  %v6639_v19 = vpop.f32.mrb[82].mxu0  ;;  %v8366_v28 = vld [vmem:[%s8786_s26 + $0x80] sm:$0xff] }
0x1490   : > { %v6758_v22 = vadd.f32 %v12996_v26, %v6714_v25  ;;  %v6716_v42 = vadd.f32 %v8352_v14, %v6639_v19  ;;  %v6641_v56 = vpop.f32.mrb[83].mxu0  ;;  %v8367_v19 = vld [vmem:[%s8786_s26 + $0x88] sm:$0xff] }
0x1491   : > { %v6759_v45 = vadd.f32 %v12999_v58, %v6715_v41  ;;  %v6717_v57 = vadd.f32 %v8353_v48, %v6641_v56  ;;  %v8368_v56 = vld [vmem:[%s8786_s26 + $0x90] sm:$0xff] }
0x1492   : > { %6790 = vst [vmem:[%s13009_s30] sm:$0xff] %v6758_v22  ;;  %v6760_v21 = vadd.f32 %v12996_v26, %v6716_v42 }
0x1493   : > { %6791 = vst [vmem:[%s13009_s30 + $0x8] sm:$0xff] %v6759_v45  ;;  %v6761_v33 = vadd.f32 %v12999_v58, %v6717_v57 }
0x1494   : > { %6792 = vst [vmem:[%s13009_s30 + $0x10] sm:$0xff] %v6760_v21  ;;  %v8369_v21 = vld [vmem:[%s8786_s26 + $0x98] sm:$0xff] }
0x1495   : > { %6793 = vst [vmem:[%s13009_s30 + $0x18] sm:$0xff] %v6761_v33  ;;  %v6645_v59 = vpop.f32.mrb[84].mxu0 }
0x1496   : > { %v6718_v0 = vadd.f32 %v8354_v18, %v6645_v59  ;;  %v6647_v44 = vpop.f32.mrb[85].mxu0 }
0x1497   : > { %v6719_v6 = vadd.f32 %v8355_v7, %v6647_v44  ;;  %v6649_v12 = vpop.f32.mrb[86].mxu0  ;;  %v8370_v44 = vld [vmem:[%s8786_s26 + $0xa0] sm:$0xff] }
0x1498   : > { %v6762_v17 = vadd.f32 %v12996_v26, %v6718_v0  ;;  %v6720_v27 = vadd.f32 %v8356_v15, %v6649_v12  ;;  %v6651_v61 = vpop.f32.mrb[87].mxu0  ;;  %v8371_v12 = vld [vmem:[%s8786_s26 + $0xa8] sm:$0xff] }
0x1499   : > { %v6763_v30 = vadd.f32 %v12999_v58, %v6719_v6  ;;  %v6721_v8 = vadd.f32 %v8357_v5, %v6651_v61  ;;  %v8372_v61 = vld [vmem:[%s8786_s26 + $0xb0] sm:$0xff] }
0x149a   : > { %6794 = vst [vmem:[%s13009_s30 + $0x20] sm:$0xff] %v6762_v17  ;;  %v6764_v54 = vadd.f32 %v12996_v26, %v6720_v27 }
0x149b   : > { %6795 = vst [vmem:[%s13009_s30 + $0x28] sm:$0xff] %v6763_v30  ;;  %v6765_v46 = vadd.f32 %v12999_v58, %v6721_v8 }
0x149c   : > { %6796 = vst [vmem:[%s13009_s30 + $0x30] sm:$0xff] %v6764_v54  ;;  %v8373_v54 = vld [vmem:[%s8786_s26 + $0xb8] sm:$0xff] }
0x149d   : > { %6797 = vst [vmem:[%s13009_s30 + $0x38] sm:$0xff] %v6765_v46  ;;  %v6655_v51 = vpop.f32.mrb[88].mxu0 }
0x149e   : > { %v6722_v24 = vadd.f32 %v8358_v63, %v6655_v51  ;;  %v6657_v52 = vpop.f32.mrb[89].mxu0 }
0x149f   : > { %v6723_v23 = vadd.f32 %v8359_v39, %v6657_v52  ;;  %v6659_v31 = vpop.f32.mrb[90].mxu0  ;;  %v8374_v52 = vld [vmem:[%s8786_s26 + $0xc0] sm:$0xff] }
0x14a0   : > { %v6766_v2 = vadd.f32 %v12996_v26, %v6722_v24  ;;  %v6724_v50 = vadd.f32 %v8360_v4, %v6659_v31  ;;  %v6661_v29 = vpop.f32.mrb[91].mxu0  ;;  %v8375_v31 = vld [vmem:[%s8786_s26 + $0xc8] sm:$0xff] }
0x14a1   : > { %v6767_v16 = vadd.f32 %v12999_v58, %v6723_v23  ;;  %v6725_v34 = vadd.f32 %v8361_v40, %v6661_v29  ;;  %v8376_v29 = vld [vmem:[%s8786_s26 + $0xd0] sm:$0xff] }
0x14a2   : > { %6798 = vst [vmem:[%s13009_s30 + $0x40] sm:$0xff] %v6766_v2  ;;  %v6768_v3 = vadd.f32 %v12996_v26, %v6724_v50 }
0x14a3   : > { %6799 = vst [vmem:[%s13009_s30 + $0x48] sm:$0xff] %v6767_v16  ;;  %v6769_v37 = vadd.f32 %v12999_v58, %v6725_v34 }
0x14a4   : > { %6800 = vst [vmem:[%s13009_s30 + $0x50] sm:$0xff] %v6768_v3  ;;  %v8377_v3 = vld [vmem:[%s8786_s26 + $0xd8] sm:$0xff] }
0x14a5   : > { %6801 = vst [vmem:[%s13009_s30 + $0x58] sm:$0xff] %v6769_v37  ;;  %v6665_v47 = vpop.f32.mrb[92].mxu0 }
0x14a6   : > { %v6726_v38 = vadd.f32 %v8362_v13, %v6665_v47  ;;  %v6667_v32 = vpop.f32.mrb[93].mxu0 }
0x14a7   : > { %v6727_v1 = vadd.f32 %v8363_v62, %v6667_v32  ;;  %v6669_v9 = vpop.f32.mrb[94].mxu0  ;;  %v8378_v32 = vld [vmem:[%s8786_s26 + $0xe0] sm:$0xff] }
0x14a8   : > { %v6770_v49 = vadd.f32 %v12996_v26, %v6726_v38  ;;  %v6728_v60 = vadd.f32 %v8364_v35, %v6669_v9  ;;  %v6671_v53 = vpop.f32.mrb[95].mxu0  ;;  %v8379_v9 = vld [vmem:[%s8786_s26 + $0xe8] sm:$0xff] }
0x14a9   : > { %v6771_v55 = vadd.f32 %v12999_v58, %v6727_v1  ;;  %v6729_v43 = vadd.f32 %v8365_v10, %v6671_v53  ;;  %v8380_v53 = vld [vmem:[%s8786_s26 + $0xf0] sm:$0xff] }
0x14aa   : > { %6802 = vst [vmem:[%s13009_s30 + $0x60] sm:$0xff] %v6770_v49  ;;  %v6772_v36 = vadd.f32 %v12996_v26, %v6728_v60 }
0x14ab   : > { %6803 = vst [vmem:[%s13009_s30 + $0x68] sm:$0xff] %v6771_v55  ;;  %v6773_v20 = vadd.f32 %v12999_v58, %v6729_v43 }
0x14ac   : > { %6804 = vst [vmem:[%s13009_s30 + $0x70] sm:$0xff] %v6772_v36  ;;  %v8381_v36 = vld [vmem:[%s8786_s26 + $0xf8] sm:$0xff]  ;;  %s6823_s26 = scalar_lea.sflag [#allocation4], %s8780_s20 }
0x14ad   : > { %6805 = vst [vmem:[%s13009_s30 + $0x78] sm:$0xff] %v6773_v20  ;;  %v6675_v25 = vpop.f32.mrb[96].mxu0 }
0x14ae   : > { %v6730_v11 = vadd.f32 %v8366_v28, %v6675_v25  ;;  %v6677_v41 = vpop.f32.mrb[97].mxu0 }
0x14af   : > { %v6731_v22 = vadd.f32 %v8367_v19, %v6677_v41  ;;  %v6679_v14 = vpop.f32.mrb[98].mxu0 }
0x14b0   : > { %v6774_v42 = vadd.f32 %v12996_v26, %v6730_v11  ;;  %v6732_v45 = vadd.f32 %v8368_v56, %v6679_v14  ;;  %v6681_v48 = vpop.f32.mrb[99].mxu0 }
0x14b1   : > { %v6775_v57 = vadd.f32 %v12999_v58, %v6731_v22  ;;  %v6733_v33 = vadd.f32 %v8369_v21, %v6681_v48 }
0x14b2   : > { %6806 = vst [vmem:[%s13009_s30 + $0x80] sm:$0xff] %v6774_v42  ;;  %v6776_v59 = vadd.f32 %v12996_v26, %v6732_v45 }
0x14b3   : > { %6807 = vst [vmem:[%s13009_s30 + $0x88] sm:$0xff] %v6775_v57  ;;  %v6777_v18 = vadd.f32 %v12999_v58, %v6733_v33 }
0x14b4   : > { %6808 = vst [vmem:[%s13009_s30 + $0x90] sm:$0xff] %v6776_v59 }
0x14b5   : > { %6809 = vst [vmem:[%s13009_s30 + $0x98] sm:$0xff] %v6777_v18  ;;  %v6685_v0 = vpop.f32.mrb[100].mxu0 }
0x14b6   : > { %v6734_v7 = vadd.f32 %v8370_v44, %v6685_v0  ;;  %v6687_v6 = vpop.f32.mrb[101].mxu0 }
0x14b7   : > { %v6735_v17 = vadd.f32 %v8371_v12, %v6687_v6  ;;  %v6689_v15 = vpop.f32.mrb[102].mxu0 }
0x14b8   : > { %v6778_v27 = vadd.f32 %v12996_v26, %v6734_v7  ;;  %v6736_v30 = vadd.f32 %v8372_v61, %v6689_v15  ;;  %v6691_v5 = vpop.f32.mrb[103].mxu0 }
0x14b9   : > { %v6779_v8 = vadd.f32 %v12999_v58, %v6735_v17  ;;  %v6737_v46 = vadd.f32 %v8373_v54, %v6691_v5 }
0x14ba   : > { %6810 = vst [vmem:[%s13009_s30 + $0xa0] sm:$0xff] %v6778_v27  ;;  %v6780_v51 = vadd.f32 %v12996_v26, %v6736_v30 }
0x14bb   : > { %6811 = vst [vmem:[%s13009_s30 + $0xa8] sm:$0xff] %v6779_v8  ;;  %v6781_v63 = vadd.f32 %v12999_v58, %v6737_v46 }
0x14bc   : > { %6812 = vst [vmem:[%s13009_s30 + $0xb0] sm:$0xff] %v6780_v51 }
0x14bd   : > { %6813 = vst [vmem:[%s13009_s30 + $0xb8] sm:$0xff] %v6781_v63  ;;  %v6695_v24 = vpop.f32.mrb[104].mxu0 }
0x14be   : > { %v6738_v39 = vadd.f32 %v8374_v52, %v6695_v24  ;;  %v6697_v23 = vpop.f32.mrb[105].mxu0 }
0x14bf   : > { %v6739_v2 = vadd.f32 %v8375_v31, %v6697_v23  ;;  %v6699_v4 = vpop.f32.mrb[106].mxu0 }
0x14c0   : > { %v6782_v50 = vadd.f32 %v12996_v26, %v6738_v39  ;;  %v6740_v16 = vadd.f32 %v8376_v29, %v6699_v4  ;;  %v6701_v40 = vpop.f32.mrb[107].mxu0 }
0x14c1   : > { %v6783_v34 = vadd.f32 %v12999_v58, %v6739_v2  ;;  %v6741_v37 = vadd.f32 %v8377_v3, %v6701_v40 }
0x14c2   : > { %6814 = vst [vmem:[%s13009_s30 + $0xc0] sm:$0xff] %v6782_v50  ;;  %v6784_v47 = vadd.f32 %v12996_v26, %v6740_v16 }
0x14c3   : > { %6815 = vst [vmem:[%s13009_s30 + $0xc8] sm:$0xff] %v6783_v34  ;;  %v6785_v13 = vadd.f32 %v12999_v58, %v6741_v37 }
0x14c4   : > { %6816 = vst [vmem:[%s13009_s30 + $0xd0] sm:$0xff] %v6784_v47 }
0x14c5   : > { %6817 = vst [vmem:[%s13009_s30 + $0xd8] sm:$0xff] %v6785_v13  ;;  %v6705_v38 = vpop.f32.mrb[108].mxu0 }
0x14c6   : > { %v6742_v62 = vadd.f32 %v8378_v32, %v6705_v38  ;;  %v6707_v1 = vpop.f32.mrb[109].mxu0 }
0x14c7   : > { %v6743_v49 = vadd.f32 %v8379_v9, %v6707_v1  ;;  %v6709_v35 = vpop.f32.mrb[110].mxu0 }
0x14c8   : > { %v6786_v60 = vadd.f32 %v12996_v26, %v6742_v62  ;;  %v6744_v55 = vadd.f32 %v8380_v53, %v6709_v35  ;;  %v6711_v10 = vpop.f32.mrb[111].mxu0 }
0x14c9   : > { %v6787_v43 = vadd.f32 %v12999_v58, %v6743_v49  ;;  %v6745_v20 = vadd.f32 %v8381_v36, %v6711_v10 }
0x14ca   : > { %6818 = vst [vmem:[%s13009_s30 + $0xe0] sm:$0xff] %v6786_v60  ;;  %v6788_v25 = vadd.f32 %v12996_v26, %v6744_v55 }
0x14cb   : > { %6819 = vst [vmem:[%s13009_s30 + $0xe8] sm:$0xff] %v6787_v43  ;;  %v6789_v28 = vadd.f32 %v12999_v58, %v6745_v20 }
0x14cc   : > { %6820 = vst [vmem:[%s13009_s30 + $0xf0] sm:$0xff] %v6788_v25 }
0x14cd   : > { %6821 = vst [vmem:[%s13009_s30 + $0xf8] sm:$0xff] %v6789_v28 }
0x14ce   : > { %8481 = shalt.err (!%p8478_p2)
}
0x14cf   : > { %s8482_s27 = scalar_lea.hbm %s13102_s17, 4096  ;;  %s8486_s24 = scalar_lea.hbm %s13162_s10, 8192 }
0x14d0   : > { %p8483_p13 = scmp.ne.s32.totalorder %s13102_s17, %s8482_s27  ;;  %p8487_p4 = scmp.lt.u32.totalorder %s13102_s17, %s13162_s10 }
0x14d1   : > { %p8488_p7 = scmp.lt.u32.totalorder %s8486_s24, %s8482_s27  ;;  %p8490_p11 = scmp.lt.u32.totalorder %s8482_s27, %s13102_s17 }
0x14d2   : > { %p8484_p6 = pnand %p8483_p13, %p14014_p0 }
0x14d3   : > { %p8489_p8 = por %p8488_p7, %p8487_p4 }
0x14d4   : > { %p8485_p10 = pneg %p8484_p6 }
0x14d5   : > { %p8491_p1 = por %p8490_p11, %p8489_p8 }
0x14d7   : > { %p8492_p3 = pnand %p8491_p1, %p8485_p10 }
0x14d9   : > { %8495 = shalt.err (!%p8492_p3)
}
0x14da   : > { %s8551_s21 = smov 256   ;;  %s8552_s13 = smov 16  }
0x14db   : > { %7538 = dma.vmem_to_hbm [thread:$0]  (%p14014_p0), %s13104_s22, 4096, %s13102_s17, %s6823_s26, %s8551_s21, %s8551_s21, %s8552_s13  }
0x14dc PF: > { %s14015_s25 = sld [smem:[#allocation12_spill]]  ;;  %s14016_s29 = sld [smem:[#allocation13_spill]] }
0x14dd   : > { %p14018_p9 = scmp.ge.s32.totalorder %s8538_s16, 2 }
0x14e2   : > { %s6851_s23 = sand.u32 1, %s14015_s25   ;;  %p14017_p5 = scmp.ne.s32.totalorder %s14016_s29, 0 }
0x14e3   : > { %s6852_s27 = scalar_lea.sflag [#allocation4], %s6851_s23 }
0x14e4   : > { %p7552_p12 = pnand %p14018_p9, %p14017_p5 }
0x14e6   : > { %8521 = dma.done.wait (!%p7552_p12), %s6852_s27, 4096  }
0x14e7   : > { %8523 = vsyncadd (!%p7552_p12), %s6852_s27, 4294963200  ;;  %p24_p2 = scmp.ge.s32.totalorder %s8718_s28, 4   ;;  %s14019_s13 = smov %s8530_s14 }
0x14e8   : > { %s14020_s14 = smov %s8534_s15  ;;  %s14021_s15 = smov %s8727_s11 }
0x14e9   : > { %s14022_s16 = smov %s8718_s28  ;;  %26 = sbr.rel (!%p24_p2) target bundleno = 6 (0x6), region = 113 }
0x14f0   :  { %6857 = vsyncpa [#allocation3], 1 }
0x14f1   :  { %6859 = vsyncpa [#allocation3 + $0x1], 1 }
0x14f2   :  { %6860 = vsyncpa [#allocation6], 1 }
0x14f3   :  { %6861 = vsyncpa [#allocation4], 1 }
0x14f4   :  { %6863 = vsyncpa [#allocation4 + $0x1], 1 }

</bundles_post_ra>
